<compile_context>
chip_gen: v7x
topology: tpu7x:2x2x1
jax: 0.10.0
libtpu: 0.0.40
codegen_flags: <defaults>
</compile_context>

<pallas_src>
import jax
import jax.numpy as jnp
from jax import lax
from jax.experimental import pallas as pl
from jax.experimental.pallas import tpu as pltpu


# ----------------------------- parameter prep ------------------------------

def _make_conv_bn(key, k, cin, cout):
    """Random Conv2d(k) + BatchNorm2d(eval) folded into (HWIO weight, bias)."""
    kw, kb, kg, kbe, km, kv = jax.random.split(key, 6)
    fan_in = k * k * cin
    w = jax.random.normal(kw, (k, k, cin, cout), jnp.float32) / jnp.sqrt(float(fan_in))
    conv_b = 0.01 * jax.random.normal(kb, (cout,), jnp.float32)
    gamma = 1.0 + 0.1 * jax.random.normal(kg, (cout,), jnp.float32)
    beta = 0.1 * jax.random.normal(kbe, (cout,), jnp.float32)
    mean = 0.1 * jax.random.normal(km, (cout,), jnp.float32)
    var = 0.5 + jnp.abs(jax.random.normal(kv, (cout,), jnp.float32))
    scale = gamma / jnp.sqrt(var + 1e-5)          # eval-mode BN
    w_folded = w * scale                          # fold BN scale into weights
    b_folded = beta + scale * (conv_b - mean)     # fold conv bias + BN shift
    return {"w": w_folded, "b": b_folded.reshape(1, cout)}


def init_inception_a_params(key, in_c, pool_c, c1, c3r, c3, c5r, c5):
    ks = jax.random.split(key, 6)
    return {
        "pool_conv": _make_conv_bn(ks[0], 1, in_c, pool_c),
        "conv1x1":   _make_conv_bn(ks[1], 1, in_c, c1),
        "conv3_red": _make_conv_bn(ks[2], 1, in_c, c3r),
        "conv3":     _make_conv_bn(ks[3], 3, c3r, c3),
        "conv5_red": _make_conv_bn(ks[4], 1, in_c, c5r),
        "conv5":     _make_conv_bn(ks[5], 5, c5r, c5),
    }


# ------------------------------ fused kernel -------------------------------

def _inception_a_nhwc(x, params):
    """x: (B,H,W,Cin) f32 NHWC -> (B,H,W,Ctot) f32 NHWC."""
    B, H, W, Cin = x.shape
    HW = H * W
    pool_c = params["pool_conv"]["w"].shape[-1]
    c1 = params["conv1x1"]["w"].shape[-1]
    c3r, c3 = params["conv3"]["w"].shape[2], params["conv3"]["w"].shape[3]
    c5r, c5 = params["conv5"]["w"].shape[2], params["conv5"]["w"].shape[3]
    c_slab = c1 + c3r + c5r
    c_tot = pool_c + c1 + c3 + c5

    # fused 1x1 weight slab: [branch2 | branch3-reduce | branch4-reduce]
    w_slab = jnp.concatenate(
        [params["conv1x1"]["w"].reshape(Cin, c1),
         params["conv3_red"]["w"].reshape(Cin, c3r),
         params["conv5_red"]["w"].reshape(Cin, c5r)], axis=-1).astype(jnp.bfloat16)
    b_slab = jnp.concatenate(
        [params["conv1x1"]["b"], params["conv3_red"]["b"],
         params["conv5_red"]["b"]], axis=-1)
    w_pool = params["pool_conv"]["w"].reshape(Cin, pool_c).astype(jnp.bfloat16)
    b_pool = params["pool_conv"]["b"]
    w3 = params["conv3"]["w"].reshape(9, c3r, c3).astype(jnp.bfloat16)
    b3 = params["conv3"]["b"]
    w5 = params["conv5"]["w"].reshape(25, c5r, c5).astype(jnp.bfloat16)
    b5 = params["conv5"]["b"]

    # lane/sublane-aligned view of x for the fused 1x1 slab matmul
    x_int = x.reshape(B, HW, Cin)
    # zero-padded NHWC tile (avg-pool taps)
    xp = jnp.pad(x, ((0, 0), (1, 1), (1, 1), (0, 0)))

    # per-position 1/window_count for count_include_pad=False average pooling
    rc = jnp.full((H,), 3.0, jnp.float32).at[0].set(2.0).at[H - 1].set(2.0)
    cc = jnp.full((W,), 3.0, jnp.float32).at[0].set(2.0).at[W - 1].set(2.0)
    inv = (1.0 / (rc[:, None] * cc[None, :])).reshape(HW, 1)

    def kernel(xi_ref, xp_ref, inv_ref, w_slab_ref, b_slab_ref,
               w_pool_ref, b_pool_ref, w3_ref, b3_ref, w5_ref, b5_ref,
               o_ref, pad3_ref, pad5_ref):
        # ---- fused 1x1 slab (branch2 + both reduces), aligned LHS load ----
        x_in = xi_ref[0].astype(jnp.bfloat16)                      # (HW, Cin)
        slab = jnp.dot(x_in, w_slab_ref[...],
                       preferred_element_type=jnp.float32)
        slab = jnp.maximum(slab + b_slab_ref[...], 0.0)
        b2_out = slab[:, 0:c1]
        r3 = slab[:, c1:c1 + c3r]
        r5 = slab[:, c1 + c3r:c1 + c3r + c5r]

        # ---- branch1: separable 3x3/s1 avg-pool (count_include_pad=False)
        # ---- followed by the 1x1 conv on the pooled map (never hits HBM)
        xpad = xp_ref[0]                                           # (H+2,W+2,Cin)
        v = xpad[0:H, :, :] + xpad[1:H + 1, :, :] + xpad[2:H + 2, :, :]
        s = v[:, 0:W, :] + v[:, 1:W + 1, :] + v[:, 2:W + 2, :]     # (H,W,Cin)
        pooled = s.reshape(HW, Cin) * inv_ref[...]
        b1_out = jnp.dot(pooled.astype(jnp.bfloat16), w_pool_ref[...],
                         preferred_element_type=jnp.float32)
        b1_out = jnp.maximum(b1_out + b_pool_ref[...], 0.0)

        # ---- branch3: zero-pad reduce output in VMEM, 3x3 tap reduction ----
        pad3_ref[...] = jnp.zeros((H + 2, W + 2, c3r), jnp.float32)
        pad3_ref[1:H + 1, 1:W + 1, :] = r3.reshape(H, W, c3r)
        acc3 = jnp.zeros((HW, c3), jnp.float32)
        for dh in range(3):
            for dw in range(3):
                win = pad3_ref[dh:dh + H, dw:dw + W, :].reshape(HW, c3r)
                acc3 = acc3 + jnp.dot(win.astype(jnp.bfloat16),
                                      w3_ref[dh * 3 + dw],
                                      preferred_element_type=jnp.float32)
        b3_out = jnp.maximum(acc3 + b3_ref[...], 0.0)

        # ---- branch4: zero-pad reduce output in VMEM, 5x5 tap reduction ----
        pad5_ref[...] = jnp.zeros((H + 4, W + 4, c5r), jnp.float32)
        pad5_ref[2:H + 2, 2:W + 2, :] = r5.reshape(H, W, c5r)
        acc5 = jnp.zeros((HW, c5), jnp.float32)
        for dh in range(5):
            for dw in range(5):
                win = pad5_ref[dh:dh + H, dw:dw + W, :].reshape(HW, c5r)
                acc5 = acc5 + jnp.dot(win.astype(jnp.bfloat16),
                                      w5_ref[dh * 5 + dw],
                                      preferred_element_type=jnp.float32)
        b4_out = jnp.maximum(acc5 + b5_ref[...], 0.0)

        # ---- lane-dense single store straight into the concat buffer ----
        o_ref[0] = jnp.concatenate([b1_out, b2_out, b3_out, b4_out], axis=-1)

    out = pl.pallas_call(
        kernel,
        out_shape=jax.ShapeDtypeStruct((B, HW, c_tot), jnp.float32),
        grid=(B,),
        in_specs=[
            pl.BlockSpec((1, HW, Cin), lambda b: (b, 0, 0)),
            pl.BlockSpec((1, H + 2, W + 2, Cin), lambda b: (b, 0, 0, 0)),
            pl.BlockSpec((HW, 1), lambda b: (0, 0)),
            pl.BlockSpec((Cin, c_slab), lambda b: (0, 0)),
            pl.BlockSpec((1, c_slab), lambda b: (0, 0)),
            pl.BlockSpec((Cin, pool_c), lambda b: (0, 0)),
            pl.BlockSpec((1, pool_c), lambda b: (0, 0)),
            pl.BlockSpec((9, c3r, c3), lambda b: (0, 0, 0)),
            pl.BlockSpec((1, c3), lambda b: (0, 0)),
            pl.BlockSpec((25, c5r, c5), lambda b: (0, 0, 0)),
            pl.BlockSpec((1, c5), lambda b: (0, 0)),
        ],
        out_specs=pl.BlockSpec((1, HW, c_tot), lambda b: (b, 0, 0)),
        scratch_shapes=[
            pltpu.VMEM((H + 2, W + 2, c3r), jnp.float32),
            pltpu.VMEM((H + 4, W + 4, c5r), jnp.float32),
        ],
        compiler_params=pltpu.CompilerParams(
            dimension_semantics=("parallel",)),
    )(x_int, xp, inv, w_slab, b_slab, w_pool, b_pool, w3, b3, w5, b5)

    return out.reshape(B, H, W, c_tot)


@jax.jit
def inception_a_forward(x_nchw, params):
    """PyTorch-convention NCHW in, NCHW out."""
    x = jnp.transpose(x_nchw, (0, 2, 3, 1)).astype(jnp.float32)   # -> NHWC
    y = _inception_a_nhwc(x, params)
    return jnp.transpose(y, (0, 3, 1, 2))                         # -> NCHW


# ---------------------- pure-JAX reference (f32, XLA) -----------------------

def _ref_inception_a(x_nchw, params):
    x = jnp.transpose(x_nchw, (0, 2, 3, 1)).astype(jnp.float32)
    B, H, W, _ = x.shape

    def conv_bn_relu(v, p, pad):
        y = lax.conv_general_dilated(
            v, p["w"], window_strides=(1, 1),
            padding=[(pad, pad), (pad, pad)],
            dimension_numbers=("NHWC", "HWIO", "NHWC"))
        return jnp.maximum(y + p["b"].reshape(1, 1, 1, -1), 0.0)

    # AvgPool2d(3, stride=1, padding=1, count_include_pad=False)
    xp = jnp.pad(x, ((0, 0), (1, 1), (1, 1), (0, 0)))
    op = jnp.pad(jnp.ones((1, H, W, 1), jnp.float32),
                 ((0, 0), (1, 1), (1, 1), (0, 0)))
    s = sum(xp[:, dh:dh + H, dw:dw + W, :] for dh in range(3) for dw in range(3))
    cnt = sum(op[:, dh:dh + H, dw:dw + W, :] for dh in range(3) for dw in range(3))
    pooled = s / cnt

    b1 = conv_bn_relu(pooled, params["pool_conv"], 0)
    b2 = conv_bn_relu(x, params["conv1x1"], 0)
    b3 = conv_bn_relu(conv_bn_relu(x, params["conv3_red"], 0), params["conv3"], 1)
    b4 = conv_bn_relu(conv_bn_relu(x, params["conv5_red"], 0), params["conv5"], 2)
    y = jnp.concatenate([b1, b2, b3, b4], axis=-1)
    return jnp.transpose(y, (0, 3, 1, 2))


# --------------------------------- main -------------------------------------

if __name__ == "__main__":
    key = jax.random.PRNGKey(0)
    pkey, xkey = jax.random.split(key)

    # Small InceptionA instantiation (lane-friendly channel widths).
    IN_C, POOL_C, C1, C3R, C3, C5R, C5 = 64, 64, 64, 64, 64, 64, 64
    B, H, W = 2, 16, 16

    params = init_inception_a_params(pkey, IN_C, POOL_C, C1, C3R, C3, C5R, C5)
    x = jax.random.normal(xkey, (B, IN_C, H, W), jnp.float32)   # NCHW

    out = inception_a_forward(x, params)
    jax.block_until_ready(out)
    assert out.shape == (B, POOL_C + C1 + C3 + C5, H, W), out.shape
    assert bool(jnp.isfinite(out).all())

    # loose tolerance: kernel matmuls run in bf16 (f32 accumulate), ref is f32
    ref = _ref_inception_a(x, params)
    err = float(jnp.max(jnp.abs(out - ref)))
    assert err < 5e-2, f"max abs error vs f32 reference: {err}"

    print("KERNEL_OK")
</pallas_src>

<mosaic_0001>
module attributes {stable_mosaic.version = 11 : i64} {
  func.func @kernel(%arg0: i32, %arg1: memref<1x256x64xf32, #tpu.memory_space<vmem>>, %arg2: memref<1x18x18x64xf32, #tpu.memory_space<vmem>>, %arg3: memref<256x1xf32, #tpu.memory_space<vmem>>, %arg4: memref<64x192xbf16, #tpu.memory_space<vmem>>, %arg5: memref<1x192xf32, #tpu.memory_space<vmem>>, %arg6: memref<64x64xbf16, #tpu.memory_space<vmem>>, %arg7: memref<1x64xf32, #tpu.memory_space<vmem>>, %arg8: memref<9x64x64xbf16, #tpu.memory_space<vmem>>, %arg9: memref<1x64xf32, #tpu.memory_space<vmem>>, %arg10: memref<25x64x64xbf16, #tpu.memory_space<vmem>>, %arg11: memref<1x64xf32, #tpu.memory_space<vmem>>, %arg12: memref<1x256x256xf32, #tpu.memory_space<vmem>>, %arg13: memref<18x18x64xf32, #tpu.memory_space<vmem>>, %arg14: memref<20x20x64xf32, #tpu.memory_space<vmem>>) attributes {dimension_semantics = [#tpu.dimension_semantics<parallel>], iteration_bounds = array<i64: 2>, scalar_prefetch = 0 : i64, scratch_operands = 2 : i64, tpu.core_type = #tpu.core_type<tc>, window_params = [{transform_indices = @transform_0, window_bounds = array<i64: 1, 256, 64>}, {transform_indices = @transform_1, window_bounds = array<i64: 1, 18, 18, 64>}, {pipeline_mode = #tpu.pipeline_mode<synchronous>, transform_indices = @transform_2, window_bounds = array<i64: 256, 1>}, {pipeline_mode = #tpu.pipeline_mode<synchronous>, transform_indices = @transform_3, window_bounds = array<i64: 64, 192>}, {pipeline_mode = #tpu.pipeline_mode<synchronous>, transform_indices = @transform_4, window_bounds = array<i64: 1, 192>}, {pipeline_mode = #tpu.pipeline_mode<synchronous>, transform_indices = @transform_5, window_bounds = array<i64: 64, 64>}, {pipeline_mode = #tpu.pipeline_mode<synchronous>, transform_indices = @transform_6, window_bounds = array<i64: 1, 64>}, {pipeline_mode = #tpu.pipeline_mode<synchronous>, transform_indices = @transform_7, window_bounds = array<i64: 9, 64, 64>}, {pipeline_mode = #tpu.pipeline_mode<synchronous>, transform_indices = @transform_8, window_bounds = array<i64: 1, 64>}, {pipeline_mode = #tpu.pipeline_mode<synchronous>, transform_indices = @transform_9, window_bounds = array<i64: 25, 64, 64>}, {pipeline_mode = #tpu.pipeline_mode<synchronous>, transform_indices = @transform_10, window_bounds = array<i64: 1, 64>}, {transform_indices = @transform_11, window_bounds = array<i64: 1, 256, 256>}]} {
    %c0 = arith.constant 0 : index
    %c0_0 = arith.constant 0 : index
    %c0_1 = arith.constant 0 : index
    %0 = vector.load %arg1[%c0, %c0_0, %c0_1] : memref<1x256x64xf32, #tpu.memory_space<vmem>>, vector<1x256x64xf32>
    %1 = vector.shape_cast %0 : vector<1x256x64xf32> to vector<256x64xf32>
    %2 = arith.truncf %1 : vector<256x64xf32> to vector<256x64xbf16>
    %c0_2 = arith.constant 0 : index
    %c0_3 = arith.constant 0 : index
    %3 = vector.load %arg4[%c0_2, %c0_3] : memref<64x192xbf16, #tpu.memory_space<vmem>>, vector<64x192xbf16>
    %cst = arith.constant dense<0.000000e+00> : vector<256x192xf32>
    %4 = tpu.matmul %2, %3, %cst {dimension_numbers = #tpu.dot_dimension_numbers<[1], [0], [0], [1], [0, 0, 1, 1], [], []>} : vector<256x64xbf16>, vector<64x192xbf16>, vector<256x192xf32> -> vector<256x192xf32>
    %c0_4 = arith.constant 0 : index
    %c0_5 = arith.constant 0 : index
    %5 = vector.load %arg5[%c0_4, %c0_5] : memref<1x192xf32, #tpu.memory_space<vmem>>, vector<1x192xf32>
    %6 = vector.broadcast %5 : vector<1x192xf32> to vector<256x192xf32>
    %7 = arith.addf %4, %6 : vector<256x192xf32>
    %cst_6 = arith.constant 0.000000e+00 : f32
    %8 = vector.broadcast %cst_6 : f32 to vector<256x192xf32>
    %9 = arith.maximumf %7, %8 : vector<256x192xf32>
    %10 = vector.extract_strided_slice %9 {offsets = [0, 0], sizes = [256, 64], strides = [1, 1]} : vector<256x192xf32> to vector<256x64xf32>
    %11 = vector.extract_strided_slice %9 {offsets = [0, 64], sizes = [256, 64], strides = [1, 1]} : vector<256x192xf32> to vector<256x64xf32>
    %12 = vector.extract_strided_slice %9 {offsets = [0, 128], sizes = [256, 64], strides = [1, 1]} : vector<256x192xf32> to vector<256x64xf32>
    %c0_7 = arith.constant 0 : index
    %c0_8 = arith.constant 0 : index
    %c0_9 = arith.constant 0 : index
    %c0_10 = arith.constant 0 : index
    %13 = vector.load %arg2[%c0_7, %c0_8, %c0_9, %c0_10] : memref<1x18x18x64xf32, #tpu.memory_space<vmem>>, vector<1x18x18x64xf32>
    %14 = vector.shape_cast %13 : vector<1x18x18x64xf32> to vector<18x18x64xf32>
    %15 = vector.extract_strided_slice %14 {offsets = [0, 0, 0], sizes = [16, 18, 64], strides = [1, 1, 1]} : vector<18x18x64xf32> to vector<16x18x64xf32>
    %16 = vector.extract_strided_slice %14 {offsets = [1, 0, 0], sizes = [16, 18, 64], strides = [1, 1, 1]} : vector<18x18x64xf32> to vector<16x18x64xf32>
    %17 = arith.addf %15, %16 : vector<16x18x64xf32>
    %18 = vector.extract_strided_slice %14 {offsets = [2, 0, 0], sizes = [16, 18, 64], strides = [1, 1, 1]} : vector<18x18x64xf32> to vector<16x18x64xf32>
    %19 = arith.addf %17, %18 : vector<16x18x64xf32>
    %20 = vector.extract_strided_slice %19 {offsets = [0, 0, 0], sizes = [16, 16, 64], strides = [1, 1, 1]} : vector<16x18x64xf32> to vector<16x16x64xf32>
    %21 = vector.extract_strided_slice %19 {offsets = [0, 1, 0], sizes = [16, 16, 64], strides = [1, 1, 1]} : vector<16x18x64xf32> to vector<16x16x64xf32>
    %22 = arith.addf %20, %21 : vector<16x16x64xf32>
    %23 = vector.extract_strided_slice %19 {offsets = [0, 2, 0], sizes = [16, 16, 64], strides = [1, 1, 1]} : vector<16x18x64xf32> to vector<16x16x64xf32>
    %24 = arith.addf %22, %23 : vector<16x16x64xf32>
    %25 = vector.shape_cast %24 : vector<16x16x64xf32> to vector<256x64xf32>
    %c0_11 = arith.constant 0 : index
    %c0_12 = arith.constant 0 : index
    %26 = vector.load %arg3[%c0_11, %c0_12] : memref<256x1xf32, #tpu.memory_space<vmem>>, vector<256x1xf32>
    %27 = vector.broadcast %26 : vector<256x1xf32> to vector<256x64xf32>
    %28 = arith.mulf %25, %27 : vector<256x64xf32>
    %29 = arith.truncf %28 : vector<256x64xf32> to vector<256x64xbf16>
    %c0_13 = arith.constant 0 : index
    %c0_14 = arith.constant 0 : index
    %30 = vector.load %arg6[%c0_13, %c0_14] : memref<64x64xbf16, #tpu.memory_space<vmem>>, vector<64x64xbf16>
    %cst_15 = arith.constant dense<0.000000e+00> : vector<256x64xf32>
    %31 = tpu.matmul %29, %30, %cst_15 {dimension_numbers = #tpu.dot_dimension_numbers<[1], [0], [0], [1], [0, 0, 1, 1], [], []>} : vector<256x64xbf16>, vector<64x64xbf16>, vector<256x64xf32> -> vector<256x64xf32>
    %c0_16 = arith.constant 0 : index
    %c0_17 = arith.constant 0 : index
    %32 = vector.load %arg7[%c0_16, %c0_17] : memref<1x64xf32, #tpu.memory_space<vmem>>, vector<1x64xf32>
    %33 = vector.broadcast %32 : vector<1x64xf32> to vector<256x64xf32>
    %34 = arith.addf %31, %33 : vector<256x64xf32>
    %cst_18 = arith.constant 0.000000e+00 : f32
    %35 = vector.broadcast %cst_18 : f32 to vector<256x64xf32>
    %36 = arith.maximumf %34, %35 : vector<256x64xf32>
    %cst_19 = arith.constant 0.000000e+00 : f32
    %37 = vector.broadcast %cst_19 : f32 to vector<18x18x64xf32>
    %c0_20 = arith.constant 0 : index
    %c0_21 = arith.constant 0 : index
    %c0_22 = arith.constant 0 : index
    %38 = vector.load %arg13[%c0_20, %c0_21, %c0_22] : memref<18x18x64xf32, #tpu.memory_space<vmem>>, vector<18x18x64xf32>
    tpu.vector_store %arg13[%c0_20, %c0_21, %c0_22], %37 {strides = array<i32>} : memref<18x18x64xf32, #tpu.memory_space<vmem>>, vector<18x18x64xf32>,
    %39 = vector.shape_cast %11 : vector<256x64xf32> to vector<16x16x64xf32>
    %c1 = arith.constant 1 : index
    %c1_23 = arith.constant 1 : index
    %c0_24 = arith.constant 0 : index
    %40 = vector.load %arg13[%c1, %c1_23, %c0_24] : memref<18x18x64xf32, #tpu.memory_space<vmem>>, vector<16x16x64xf32>
    tpu.vector_store %arg13[%c1, %c1_23, %c0_24], %39 {strides = array<i32>} : memref<18x18x64xf32, #tpu.memory_space<vmem>>, vector<16x16x64xf32>,
    %cst_25 = arith.constant 0.000000e+00 : f32
    %41 = vector.broadcast %cst_25 : f32 to vector<256x64xf32>
    %c0_26 = arith.constant 0 : index
    %c0_27 = arith.constant 0 : index
    %c0_28 = arith.constant 0 : index
    %42 = vector.load %arg13[%c0_26, %c0_27, %c0_28] : memref<18x18x64xf32, #tpu.memory_space<vmem>>, vector<16x16x64xf32>
    %43 = vector.shape_cast %42 : vector<16x16x64xf32> to vector<256x64xf32>
    %44 = arith.truncf %43 : vector<256x64xf32> to vector<256x64xbf16>
    %c0_29 = arith.constant 0 : index
    %c0_30 = arith.constant 0 : index
    %c0_31 = arith.constant 0 : index
    %45 = vector.load %arg8[%c0_29, %c0_30, %c0_31] : memref<9x64x64xbf16, #tpu.memory_space<vmem>>, vector<1x64x64xbf16>
    %46 = vector.shape_cast %45 : vector<1x64x64xbf16> to vector<64x64xbf16>
    %cst_32 = arith.constant dense<0.000000e+00> : vector<256x64xf32>
    %47 = tpu.matmul %44, %46, %cst_32 {dimension_numbers = #tpu.dot_dimension_numbers<[1], [0], [0], [1], [0, 0, 1, 1], [], []>} : vector<256x64xbf16>, vector<64x64xbf16>, vector<256x64xf32> -> vector<256x64xf32>
    %48 = arith.addf %41, %47 : vector<256x64xf32>
    %c0_33 = arith.constant 0 : index
    %c1_34 = arith.constant 1 : index
    %c0_35 = arith.constant 0 : index
    %49 = vector.load %arg13[%c0_33, %c1_34, %c0_35] : memref<18x18x64xf32, #tpu.memory_space<vmem>>, vector<16x16x64xf32>
    %50 = vector.shape_cast %49 : vector<16x16x64xf32> to vector<256x64xf32>
    %51 = arith.truncf %50 : vector<256x64xf32> to vector<256x64xbf16>
    %c1_36 = arith.constant 1 : index
    %c0_37 = arith.constant 0 : index
    %c0_38 = arith.constant 0 : index
    %52 = vector.load %arg8[%c1_36, %c0_37, %c0_38] : memref<9x64x64xbf16, #tpu.memory_space<vmem>>, vector<1x64x64xbf16>
    %53 = vector.shape_cast %52 : vector<1x64x64xbf16> to vector<64x64xbf16>
    %cst_39 = arith.constant dense<0.000000e+00> : vector<256x64xf32>
    %54 = tpu.matmul %51, %53, %cst_39 {dimension_numbers = #tpu.dot_dimension_numbers<[1], [0], [0], [1], [0, 0, 1, 1], [], []>} : vector<256x64xbf16>, vector<64x64xbf16>, vector<256x64xf32> -> vector<256x64xf32>
    %55 = arith.addf %48, %54 : vector<256x64xf32>
    %c0_40 = arith.constant 0 : index
    %c2 = arith.constant 2 : index
    %c0_41 = arith.constant 0 : index
    %56 = vector.load %arg13[%c0_40, %c2, %c0_41] : memref<18x18x64xf32, #tpu.memory_space<vmem>>, vector<16x16x64xf32>
    %57 = vector.shape_cast %56 : vector<16x16x64xf32> to vector<256x64xf32>
    %58 = arith.truncf %57 : vector<256x64xf32> to vector<256x64xbf16>
    %c2_42 = arith.constant 2 : index
    %c0_43 = arith.constant 0 : index
    %c0_44 = arith.constant 0 : index
    %59 = vector.load %arg8[%c2_42, %c0_43, %c0_44] : memref<9x64x64xbf16, #tpu.memory_space<vmem>>, vector<1x64x64xbf16>
    %60 = vector.shape_cast %59 : vector<1x64x64xbf16> to vector<64x64xbf16>
    %cst_45 = arith.constant dense<0.000000e+00> : vector<256x64xf32>
    %61 = tpu.matmul %58, %60, %cst_45 {dimension_numbers = #tpu.dot_dimension_numbers<[1], [0], [0], [1], [0, 0, 1, 1], [], []>} : vector<256x64xbf16>, vector<64x64xbf16>, vector<256x64xf32> -> vector<256x64xf32>
    %62 = arith.addf %55, %61 : vector<256x64xf32>
    %c1_46 = arith.constant 1 : index
    %c0_47 = arith.constant 0 : index
    %c0_48 = arith.constant 0 : index
    %63 = vector.load %arg13[%c1_46, %c0_47, %c0_48] : memref<18x18x64xf32, #tpu.memory_space<vmem>>, vector<16x16x64xf32>
    %64 = vector.shape_cast %63 : vector<16x16x64xf32> to vector<256x64xf32>
    %65 = arith.truncf %64 : vector<256x64xf32> to vector<256x64xbf16>
    %c3 = arith.constant 3 : index
    %c0_49 = arith.constant 0 : index
    %c0_50 = arith.constant 0 : index
    %66 = vector.load %arg8[%c3, %c0_49, %c0_50] : memref<9x64x64xbf16, #tpu.memory_space<vmem>>, vector<1x64x64xbf16>
    %67 = vector.shape_cast %66 : vector<1x64x64xbf16> to vector<64x64xbf16>
    %cst_51 = arith.constant dense<0.000000e+00> : vector<256x64xf32>
    %68 = tpu.matmul %65, %67, %cst_51 {dimension_numbers = #tpu.dot_dimension_numbers<[1], [0], [0], [1], [0, 0, 1, 1], [], []>} : vector<256x64xbf16>, vector<64x64xbf16>, vector<256x64xf32> -> vector<256x64xf32>
    %69 = arith.addf %62, %68 : vector<256x64xf32>
    %c1_52 = arith.constant 1 : index
    %c1_53 = arith.constant 1 : index
    %c0_54 = arith.constant 0 : index
    %70 = vector.load %arg13[%c1_52, %c1_53, %c0_54] : memref<18x18x64xf32, #tpu.memory_space<vmem>>, vector<16x16x64xf32>
    %71 = vector.shape_cast %70 : vector<16x16x64xf32> to vector<256x64xf32>
    %72 = arith.truncf %71 : vector<256x64xf32> to vector<256x64xbf16>
    %c4 = arith.constant 4 : index
    %c0_55 = arith.constant 0 : index
    %c0_56 = arith.constant 0 : index
    %73 = vector.load %arg8[%c4, %c0_55, %c0_56] : memref<9x64x64xbf16, #tpu.memory_space<vmem>>, vector<1x64x64xbf16>
    %74 = vector.shape_cast %73 : vector<1x64x64xbf16> to vector<64x64xbf16>
    %cst_57 = arith.constant dense<0.000000e+00> : vector<256x64xf32>
    %75 = tpu.matmul %72, %74, %cst_57 {dimension_numbers = #tpu.dot_dimension_numbers<[1], [0], [0], [1], [0, 0, 1, 1], [], []>} : vector<256x64xbf16>, vector<64x64xbf16>, vector<256x64xf32> -> vector<256x64xf32>
    %76 = arith.addf %69, %75 : vector<256x64xf32>
    %c1_58 = arith.constant 1 : index
    %c2_59 = arith.constant 2 : index
    %c0_60 = arith.constant 0 : index
    %77 = vector.load %arg13[%c1_58, %c2_59, %c0_60] : memref<18x18x64xf32, #tpu.memory_space<vmem>>, vector<16x16x64xf32>
    %78 = vector.shape_cast %77 : vector<16x16x64xf32> to vector<256x64xf32>
    %79 = arith.truncf %78 : vector<256x64xf32> to vector<256x64xbf16>
    %c5 = arith.constant 5 : index
    %c0_61 = arith.constant 0 : index
    %c0_62 = arith.constant 0 : index
    %80 = vector.load %arg8[%c5, %c0_61, %c0_62] : memref<9x64x64xbf16, #tpu.memory_space<vmem>>, vector<1x64x64xbf16>
    %81 = vector.shape_cast %80 : vector<1x64x64xbf16> to vector<64x64xbf16>
    %cst_63 = arith.constant dense<0.000000e+00> : vector<256x64xf32>
    %82 = tpu.matmul %79, %81, %cst_63 {dimension_numbers = #tpu.dot_dimension_numbers<[1], [0], [0], [1], [0, 0, 1, 1], [], []>} : vector<256x64xbf16>, vector<64x64xbf16>, vector<256x64xf32> -> vector<256x64xf32>
    %83 = arith.addf %76, %82 : vector<256x64xf32>
    %c2_64 = arith.constant 2 : index
    %c0_65 = arith.constant 0 : index
    %c0_66 = arith.constant 0 : index
    %84 = vector.load %arg13[%c2_64, %c0_65, %c0_66] : memref<18x18x64xf32, #tpu.memory_space<vmem>>, vector<16x16x64xf32>
    %85 = vector.shape_cast %84 : vector<16x16x64xf32> to vector<256x64xf32>
    %86 = arith.truncf %85 : vector<256x64xf32> to vector<256x64xbf16>
    %c6 = arith.constant 6 : index
    %c0_67 = arith.constant 0 : index
    %c0_68 = arith.constant 0 : index
    %87 = vector.load %arg8[%c6, %c0_67, %c0_68] : memref<9x64x64xbf16, #tpu.memory_space<vmem>>, vector<1x64x64xbf16>
    %88 = vector.shape_cast %87 : vector<1x64x64xbf16> to vector<64x64xbf16>
    %cst_69 = arith.constant dense<0.000000e+00> : vector<256x64xf32>
    %89 = tpu.matmul %86, %88, %cst_69 {dimension_numbers = #tpu.dot_dimension_numbers<[1], [0], [0], [1], [0, 0, 1, 1], [], []>} : vector<256x64xbf16>, vector<64x64xbf16>, vector<256x64xf32> -> vector<256x64xf32>
    %90 = arith.addf %83, %89 : vector<256x64xf32>
    %c2_70 = arith.constant 2 : index
    %c1_71 = arith.constant 1 : index
    %c0_72 = arith.constant 0 : index
    %91 = vector.load %arg13[%c2_70, %c1_71, %c0_72] : memref<18x18x64xf32, #tpu.memory_space<vmem>>, vector<16x16x64xf32>
    %92 = vector.shape_cast %91 : vector<16x16x64xf32> to vector<256x64xf32>
    %93 = arith.truncf %92 : vector<256x64xf32> to vector<256x64xbf16>
    %c7 = arith.constant 7 : index
    %c0_73 = arith.constant 0 : index
    %c0_74 = arith.constant 0 : index
    %94 = vector.load %arg8[%c7, %c0_73, %c0_74] : memref<9x64x64xbf16, #tpu.memory_space<vmem>>, vector<1x64x64xbf16>
    %95 = vector.shape_cast %94 : vector<1x64x64xbf16> to vector<64x64xbf16>
    %cst_75 = arith.constant dense<0.000000e+00> : vector<256x64xf32>
    %96 = tpu.matmul %93, %95, %cst_75 {dimension_numbers = #tpu.dot_dimension_numbers<[1], [0], [0], [1], [0, 0, 1, 1], [], []>} : vector<256x64xbf16>, vector<64x64xbf16>, vector<256x64xf32> -> vector<256x64xf32>
    %97 = arith.addf %90, %96 : vector<256x64xf32>
    %c2_76 = arith.constant 2 : index
    %c2_77 = arith.constant 2 : index
    %c0_78 = arith.constant 0 : index
    %98 = vector.load %arg13[%c2_76, %c2_77, %c0_78] : memref<18x18x64xf32, #tpu.memory_space<vmem>>, vector<16x16x64xf32>
    %99 = vector.shape_cast %98 : vector<16x16x64xf32> to vector<256x64xf32>
    %100 = arith.truncf %99 : vector<256x64xf32> to vector<256x64xbf16>
    %c8 = arith.constant 8 : index
    %c0_79 = arith.constant 0 : index
    %c0_80 = arith.constant 0 : index
    %101 = vector.load %arg8[%c8, %c0_79, %c0_80] : memref<9x64x64xbf16, #tpu.memory_space<vmem>>, vector<1x64x64xbf16>
    %102 = vector.shape_cast %101 : vector<1x64x64xbf16> to vector<64x64xbf16>
    %cst_81 = arith.constant dense<0.000000e+00> : vector<256x64xf32>
    %103 = tpu.matmul %100, %102, %cst_81 {dimension_numbers = #tpu.dot_dimension_numbers<[1], [0], [0], [1], [0, 0, 1, 1], [], []>} : vector<256x64xbf16>, vector<64x64xbf16>, vector<256x64xf32> -> vector<256x64xf32>
    %104 = arith.addf %97, %103 : vector<256x64xf32>
    %c0_82 = arith.constant 0 : index
    %c0_83 = arith.constant 0 : index
    %105 = vector.load %arg9[%c0_82, %c0_83] : memref<1x64xf32, #tpu.memory_space<vmem>>, vector<1x64xf32>
    %106 = vector.broadcast %105 : vector<1x64xf32> to vector<256x64xf32>
    %107 = arith.addf %104, %106 : vector<256x64xf32>
    %cst_84 = arith.constant 0.000000e+00 : f32
    %108 = vector.broadcast %cst_84 : f32 to vector<256x64xf32>
    %109 = arith.maximumf %107, %108 : vector<256x64xf32>
    %cst_85 = arith.constant 0.000000e+00 : f32
    %110 = vector.broadcast %cst_85 : f32 to vector<20x20x64xf32>
    %c0_86 = arith.constant 0 : index
    %c0_87 = arith.constant 0 : index
    %c0_88 = arith.constant 0 : index
    %111 = vector.load %arg14[%c0_86, %c0_87, %c0_88] : memref<20x20x64xf32, #tpu.memory_space<vmem>>, vector<20x20x64xf32>
    tpu.vector_store %arg14[%c0_86, %c0_87, %c0_88], %110 {strides = array<i32>} : memref<20x20x64xf32, #tpu.memory_space<vmem>>, vector<20x20x64xf32>,
    %112 = vector.shape_cast %12 : vector<256x64xf32> to vector<16x16x64xf32>
    %c2_89 = arith.constant 2 : index
    %c2_90 = arith.constant 2 : index
    %c0_91 = arith.constant 0 : index
    %113 = vector.load %arg14[%c2_89, %c2_90, %c0_91] : memref<20x20x64xf32, #tpu.memory_space<vmem>>, vector<16x16x64xf32>
    tpu.vector_store %arg14[%c2_89, %c2_90, %c0_91], %112 {strides = array<i32>} : memref<20x20x64xf32, #tpu.memory_space<vmem>>, vector<16x16x64xf32>,
    %cst_92 = arith.constant 0.000000e+00 : f32
    %114 = vector.broadcast %cst_92 : f32 to vector<256x64xf32>
    %c0_93 = arith.constant 0 : index
    %c0_94 = arith.constant 0 : index
    %c0_95 = arith.constant 0 : index
    %115 = vector.load %arg14[%c0_93, %c0_94, %c0_95] : memref<20x20x64xf32, #tpu.memory_space<vmem>>, vector<16x16x64xf32>
    %116 = vector.shape_cast %115 : vector<16x16x64xf32> to vector<256x64xf32>
    %117 = arith.truncf %116 : vector<256x64xf32> to vector<256x64xbf16>
    %c0_96 = arith.constant 0 : index
    %c0_97 = arith.constant 0 : index
    %c0_98 = arith.constant 0 : index
    %118 = vector.load %arg10[%c0_96, %c0_97, %c0_98] : memref<25x64x64xbf16, #tpu.memory_space<vmem>>, vector<1x64x64xbf16>
    %119 = vector.shape_cast %118 : vector<1x64x64xbf16> to vector<64x64xbf16>
    %cst_99 = arith.constant dense<0.000000e+00> : vector<256x64xf32>
    %120 = tpu.matmul %117, %119, %cst_99 {dimension_numbers = #tpu.dot_dimension_numbers<[1], [0], [0], [1], [0, 0, 1, 1], [], []>} : vector<256x64xbf16>, vector<64x64xbf16>, vector<256x64xf32> -> vector<256x64xf32>
    %121 = arith.addf %114, %120 : vector<256x64xf32>
    %c0_100 = arith.constant 0 : index
    %c1_101 = arith.constant 1 : index
    %c0_102 = arith.constant 0 : index
    %122 = vector.load %arg14[%c0_100, %c1_101, %c0_102] : memref<20x20x64xf32, #tpu.memory_space<vmem>>, vector<16x16x64xf32>
    %123 = vector.shape_cast %122 : vector<16x16x64xf32> to vector<256x64xf32>
    %124 = arith.truncf %123 : vector<256x64xf32> to vector<256x64xbf16>
    %c1_103 = arith.constant 1 : index
    %c0_104 = arith.constant 0 : index
    %c0_105 = arith.constant 0 : index
    %125 = vector.load %arg10[%c1_103, %c0_104, %c0_105] : memref<25x64x64xbf16, #tpu.memory_space<vmem>>, vector<1x64x64xbf16>
    %126 = vector.shape_cast %125 : vector<1x64x64xbf16> to vector<64x64xbf16>
    %cst_106 = arith.constant dense<0.000000e+00> : vector<256x64xf32>
    %127 = tpu.matmul %124, %126, %cst_106 {dimension_numbers = #tpu.dot_dimension_numbers<[1], [0], [0], [1], [0, 0, 1, 1], [], []>} : vector<256x64xbf16>, vector<64x64xbf16>, vector<256x64xf32> -> vector<256x64xf32>
    %128 = arith.addf %121, %127 : vector<256x64xf32>
    %c0_107 = arith.constant 0 : index
    %c2_108 = arith.constant 2 : index
    %c0_109 = arith.constant 0 : index
    %129 = vector.load %arg14[%c0_107, %c2_108, %c0_109] : memref<20x20x64xf32, #tpu.memory_space<vmem>>, vector<16x16x64xf32>
    %130 = vector.shape_cast %129 : vector<16x16x64xf32> to vector<256x64xf32>
    %131 = arith.truncf %130 : vector<256x64xf32> to vector<256x64xbf16>
    %c2_110 = arith.constant 2 : index
    %c0_111 = arith.constant 0 : index
    %c0_112 = arith.constant 0 : index
    %132 = vector.load %arg10[%c2_110, %c0_111, %c0_112] : memref<25x64x64xbf16, #tpu.memory_space<vmem>>, vector<1x64x64xbf16>
    %133 = vector.shape_cast %132 : vector<1x64x64xbf16> to vector<64x64xbf16>
    %cst_113 = arith.constant dense<0.000000e+00> : vector<256x64xf32>
    %134 = tpu.matmul %131, %133, %cst_113 {dimension_numbers = #tpu.dot_dimension_numbers<[1], [0], [0], [1], [0, 0, 1, 1], [], []>} : vector<256x64xbf16>, vector<64x64xbf16>, vector<256x64xf32> -> vector<256x64xf32>
    %135 = arith.addf %128, %134 : vector<256x64xf32>
    %c0_114 = arith.constant 0 : index
    %c3_115 = arith.constant 3 : index
    %c0_116 = arith.constant 0 : index
    %136 = vector.load %arg14[%c0_114, %c3_115, %c0_116] : memref<20x20x64xf32, #tpu.memory_space<vmem>>, vector<16x16x64xf32>
    %137 = vector.shape_cast %136 : vector<16x16x64xf32> to vector<256x64xf32>
    %138 = arith.truncf %137 : vector<256x64xf32> to vector<256x64xbf16>
    %c3_117 = arith.constant 3 : index
    %c0_118 = arith.constant 0 : index
    %c0_119 = arith.constant 0 : index
    %139 = vector.load %arg10[%c3_117, %c0_118, %c0_119] : memref<25x64x64xbf16, #tpu.memory_space<vmem>>, vector<1x64x64xbf16>
    %140 = vector.shape_cast %139 : vector<1x64x64xbf16> to vector<64x64xbf16>
    %cst_120 = arith.constant dense<0.000000e+00> : vector<256x64xf32>
    %141 = tpu.matmul %138, %140, %cst_120 {dimension_numbers = #tpu.dot_dimension_numbers<[1], [0], [0], [1], [0, 0, 1, 1], [], []>} : vector<256x64xbf16>, vector<64x64xbf16>, vector<256x64xf32> -> vector<256x64xf32>
    %142 = arith.addf %135, %141 : vector<256x64xf32>
    %c0_121 = arith.constant 0 : index
    %c4_122 = arith.constant 4 : index
    %c0_123 = arith.constant 0 : index
    %143 = vector.load %arg14[%c0_121, %c4_122, %c0_123] : memref<20x20x64xf32, #tpu.memory_space<vmem>>, vector<16x16x64xf32>
    %144 = vector.shape_cast %143 : vector<16x16x64xf32> to vector<256x64xf32>
    %145 = arith.truncf %144 : vector<256x64xf32> to vector<256x64xbf16>
    %c4_124 = arith.constant 4 : index
    %c0_125 = arith.constant 0 : index
    %c0_126 = arith.constant 0 : index
    %146 = vector.load %arg10[%c4_124, %c0_125, %c0_126] : memref<25x64x64xbf16, #tpu.memory_space<vmem>>, vector<1x64x64xbf16>
    %147 = vector.shape_cast %146 : vector<1x64x64xbf16> to vector<64x64xbf16>
    %cst_127 = arith.constant dense<0.000000e+00> : vector<256x64xf32>
    %148 = tpu.matmul %145, %147, %cst_127 {dimension_numbers = #tpu.dot_dimension_numbers<[1], [0], [0], [1], [0, 0, 1, 1], [], []>} : vector<256x64xbf16>, vector<64x64xbf16>, vector<256x64xf32> -> vector<256x64xf32>
    %149 = arith.addf %142, %148 : vector<256x64xf32>
    %c1_128 = arith.constant 1 : index
    %c0_129 = arith.constant 0 : index
    %c0_130 = arith.constant 0 : index
    %150 = vector.load %arg14[%c1_128, %c0_129, %c0_130] : memref<20x20x64xf32, #tpu.memory_space<vmem>>, vector<16x16x64xf32>
    %151 = vector.shape_cast %150 : vector<16x16x64xf32> to vector<256x64xf32>
    %152 = arith.truncf %151 : vector<256x64xf32> to vector<256x64xbf16>
    %c5_131 = arith.constant 5 : index
    %c0_132 = arith.constant 0 : index
    %c0_133 = arith.constant 0 : index
    %153 = vector.load %arg10[%c5_131, %c0_132, %c0_133] : memref<25x64x64xbf16, #tpu.memory_space<vmem>>, vector<1x64x64xbf16>
    %154 = vector.shape_cast %153 : vector<1x64x64xbf16> to vector<64x64xbf16>
    %cst_134 = arith.constant dense<0.000000e+00> : vector<256x64xf32>
    %155 = tpu.matmul %152, %154, %cst_134 {dimension_numbers = #tpu.dot_dimension_numbers<[1], [0], [0], [1], [0, 0, 1, 1], [], []>} : vector<256x64xbf16>, vector<64x64xbf16>, vector<256x64xf32> -> vector<256x64xf32>
    %156 = arith.addf %149, %155 : vector<256x64xf32>
    %c1_135 = arith.constant 1 : index
    %c1_136 = arith.constant 1 : index
    %c0_137 = arith.constant 0 : index
    %157 = vector.load %arg14[%c1_135, %c1_136, %c0_137] : memref<20x20x64xf32, #tpu.memory_space<vmem>>, vector<16x16x64xf32>
    %158 = vector.shape_cast %157 : vector<16x16x64xf32> to vector<256x64xf32>
    %159 = arith.truncf %158 : vector<256x64xf32> to vector<256x64xbf16>
    %c6_138 = arith.constant 6 : index
    %c0_139 = arith.constant 0 : index
    %c0_140 = arith.constant 0 : index
    %160 = vector.load %arg10[%c6_138, %c0_139, %c0_140] : memref<25x64x64xbf16, #tpu.memory_space<vmem>>, vector<1x64x64xbf16>
    %161 = vector.shape_cast %160 : vector<1x64x64xbf16> to vector<64x64xbf16>
    %cst_141 = arith.constant dense<0.000000e+00> : vector<256x64xf32>
    %162 = tpu.matmul %159, %161, %cst_141 {dimension_numbers = #tpu.dot_dimension_numbers<[1], [0], [0], [1], [0, 0, 1, 1], [], []>} : vector<256x64xbf16>, vector<64x64xbf16>, vector<256x64xf32> -> vector<256x64xf32>
    %163 = arith.addf %156, %162 : vector<256x64xf32>
    %c1_142 = arith.constant 1 : index
    %c2_143 = arith.constant 2 : index
    %c0_144 = arith.constant 0 : index
    %164 = vector.load %arg14[%c1_142, %c2_143, %c0_144] : memref<20x20x64xf32, #tpu.memory_space<vmem>>, vector<16x16x64xf32>
    %165 = vector.shape_cast %164 : vector<16x16x64xf32> to vector<256x64xf32>
    %166 = arith.truncf %165 : vector<256x64xf32> to vector<256x64xbf16>
    %c7_145 = arith.constant 7 : index
    %c0_146 = arith.constant 0 : index
    %c0_147 = arith.constant 0 : index
    %167 = vector.load %arg10[%c7_145, %c0_146, %c0_147] : memref<25x64x64xbf16, #tpu.memory_space<vmem>>, vector<1x64x64xbf16>
    %168 = vector.shape_cast %167 : vector<1x64x64xbf16> to vector<64x64xbf16>
    %cst_148 = arith.constant dense<0.000000e+00> : vector<256x64xf32>
    %169 = tpu.matmul %166, %168, %cst_148 {dimension_numbers = #tpu.dot_dimension_numbers<[1], [0], [0], [1], [0, 0, 1, 1], [], []>} : vector<256x64xbf16>, vector<64x64xbf16>, vector<256x64xf32> -> vector<256x64xf32>
    %170 = arith.addf %163, %169 : vector<256x64xf32>
    %c1_149 = arith.constant 1 : index
    %c3_150 = arith.constant 3 : index
    %c0_151 = arith.constant 0 : index
    %171 = vector.load %arg14[%c1_149, %c3_150, %c0_151] : memref<20x20x64xf32, #tpu.memory_space<vmem>>, vector<16x16x64xf32>
    %172 = vector.shape_cast %171 : vector<16x16x64xf32> to vector<256x64xf32>
    %173 = arith.truncf %172 : vector<256x64xf32> to vector<256x64xbf16>
    %c8_152 = arith.constant 8 : index
    %c0_153 = arith.constant 0 : index
    %c0_154 = arith.constant 0 : index
    %174 = vector.load %arg10[%c8_152, %c0_153, %c0_154] : memref<25x64x64xbf16, #tpu.memory_space<vmem>>, vector<1x64x64xbf16>
    %175 = vector.shape_cast %174 : vector<1x64x64xbf16> to vector<64x64xbf16>
    %cst_155 = arith.constant dense<0.000000e+00> : vector<256x64xf32>
    %176 = tpu.matmul %173, %175, %cst_155 {dimension_numbers = #tpu.dot_dimension_numbers<[1], [0], [0], [1], [0, 0, 1, 1], [], []>} : vector<256x64xbf16>, vector<64x64xbf16>, vector<256x64xf32> -> vector<256x64xf32>
    %177 = arith.addf %170, %176 : vector<256x64xf32>
    %c1_156 = arith.constant 1 : index
    %c4_157 = arith.constant 4 : index
    %c0_158 = arith.constant 0 : index
    %178 = vector.load %arg14[%c1_156, %c4_157, %c0_158] : memref<20x20x64xf32, #tpu.memory_space<vmem>>, vector<16x16x64xf32>
    %179 = vector.shape_cast %178 : vector<16x16x64xf32> to vector<256x64xf32>
    %180 = arith.truncf %179 : vector<256x64xf32> to vector<256x64xbf16>
    %c9 = arith.constant 9 : index
    %c0_159 = arith.constant 0 : index
    %c0_160 = arith.constant 0 : index
    %181 = vector.load %arg10[%c9, %c0_159, %c0_160] : memref<25x64x64xbf16, #tpu.memory_space<vmem>>, vector<1x64x64xbf16>
    %182 = vector.shape_cast %181 : vector<1x64x64xbf16> to vector<64x64xbf16>
    %cst_161 = arith.constant dense<0.000000e+00> : vector<256x64xf32>
    %183 = tpu.matmul %180, %182, %cst_161 {dimension_numbers = #tpu.dot_dimension_numbers<[1], [0], [0], [1], [0, 0, 1, 1], [], []>} : vector<256x64xbf16>, vector<64x64xbf16>, vector<256x64xf32> -> vector<256x64xf32>
    %184 = arith.addf %177, %183 : vector<256x64xf32>
    %c2_162 = arith.constant 2 : index
    %c0_163 = arith.constant 0 : index
    %c0_164 = arith.constant 0 : index
    %185 = vector.load %arg14[%c2_162, %c0_163, %c0_164] : memref<20x20x64xf32, #tpu.memory_space<vmem>>, vector<16x16x64xf32>
    %186 = vector.shape_cast %185 : vector<16x16x64xf32> to vector<256x64xf32>
    %187 = arith.truncf %186 : vector<256x64xf32> to vector<256x64xbf16>
    %c10 = arith.constant 10 : index
    %c0_165 = arith.constant 0 : index
    %c0_166 = arith.constant 0 : index
    %188 = vector.load %arg10[%c10, %c0_165, %c0_166] : memref<25x64x64xbf16, #tpu.memory_space<vmem>>, vector<1x64x64xbf16>
    %189 = vector.shape_cast %188 : vector<1x64x64xbf16> to vector<64x64xbf16>
    %cst_167 = arith.constant dense<0.000000e+00> : vector<256x64xf32>
    %190 = tpu.matmul %187, %189, %cst_167 {dimension_numbers = #tpu.dot_dimension_numbers<[1], [0], [0], [1], [0, 0, 1, 1], [], []>} : vector<256x64xbf16>, vector<64x64xbf16>, vector<256x64xf32> -> vector<256x64xf32>
    %191 = arith.addf %184, %190 : vector<256x64xf32>
    %c2_168 = arith.constant 2 : index
    %c1_169 = arith.constant 1 : index
    %c0_170 = arith.constant 0 : index
    %192 = vector.load %arg14[%c2_168, %c1_169, %c0_170] : memref<20x20x64xf32, #tpu.memory_space<vmem>>, vector<16x16x64xf32>
    %193 = vector.shape_cast %192 : vector<16x16x64xf32> to vector<256x64xf32>
    %194 = arith.truncf %193 : vector<256x64xf32> to vector<256x64xbf16>
    %c11 = arith.constant 11 : index
    %c0_171 = arith.constant 0 : index
    %c0_172 = arith.constant 0 : index
    %195 = vector.load %arg10[%c11, %c0_171, %c0_172] : memref<25x64x64xbf16, #tpu.memory_space<vmem>>, vector<1x64x64xbf16>
    %196 = vector.shape_cast %195 : vector<1x64x64xbf16> to vector<64x64xbf16>
    %cst_173 = arith.constant dense<0.000000e+00> : vector<256x64xf32>
    %197 = tpu.matmul %194, %196, %cst_173 {dimension_numbers = #tpu.dot_dimension_numbers<[1], [0], [0], [1], [0, 0, 1, 1], [], []>} : vector<256x64xbf16>, vector<64x64xbf16>, vector<256x64xf32> -> vector<256x64xf32>
    %198 = arith.addf %191, %197 : vector<256x64xf32>
    %c2_174 = arith.constant 2 : index
    %c2_175 = arith.constant 2 : index
    %c0_176 = arith.constant 0 : index
    %199 = vector.load %arg14[%c2_174, %c2_175, %c0_176] : memref<20x20x64xf32, #tpu.memory_space<vmem>>, vector<16x16x64xf32>
    %200 = vector.shape_cast %199 : vector<16x16x64xf32> to vector<256x64xf32>
    %201 = arith.truncf %200 : vector<256x64xf32> to vector<256x64xbf16>
    %c12 = arith.constant 12 : index
    %c0_177 = arith.constant 0 : index
    %c0_178 = arith.constant 0 : index
    %202 = vector.load %arg10[%c12, %c0_177, %c0_178] : memref<25x64x64xbf16, #tpu.memory_space<vmem>>, vector<1x64x64xbf16>
    %203 = vector.shape_cast %202 : vector<1x64x64xbf16> to vector<64x64xbf16>
    %cst_179 = arith.constant dense<0.000000e+00> : vector<256x64xf32>
    %204 = tpu.matmul %201, %203, %cst_179 {dimension_numbers = #tpu.dot_dimension_numbers<[1], [0], [0], [1], [0, 0, 1, 1], [], []>} : vector<256x64xbf16>, vector<64x64xbf16>, vector<256x64xf32> -> vector<256x64xf32>
    %205 = arith.addf %198, %204 : vector<256x64xf32>
    %c2_180 = arith.constant 2 : index
    %c3_181 = arith.constant 3 : index
    %c0_182 = arith.constant 0 : index
    %206 = vector.load %arg14[%c2_180, %c3_181, %c0_182] : memref<20x20x64xf32, #tpu.memory_space<vmem>>, vector<16x16x64xf32>
    %207 = vector.shape_cast %206 : vector<16x16x64xf32> to vector<256x64xf32>
    %208 = arith.truncf %207 : vector<256x64xf32> to vector<256x64xbf16>
    %c13 = arith.constant 13 : index
    %c0_183 = arith.constant 0 : index
    %c0_184 = arith.constant 0 : index
    %209 = vector.load %arg10[%c13, %c0_183, %c0_184] : memref<25x64x64xbf16, #tpu.memory_space<vmem>>, vector<1x64x64xbf16>
    %210 = vector.shape_cast %209 : vector<1x64x64xbf16> to vector<64x64xbf16>
    %cst_185 = arith.constant dense<0.000000e+00> : vector<256x64xf32>
    %211 = tpu.matmul %208, %210, %cst_185 {dimension_numbers = #tpu.dot_dimension_numbers<[1], [0], [0], [1], [0, 0, 1, 1], [], []>} : vector<256x64xbf16>, vector<64x64xbf16>, vector<256x64xf32> -> vector<256x64xf32>
    %212 = arith.addf %205, %211 : vector<256x64xf32>
    %c2_186 = arith.constant 2 : index
    %c4_187 = arith.constant 4 : index
    %c0_188 = arith.constant 0 : index
    %213 = vector.load %arg14[%c2_186, %c4_187, %c0_188] : memref<20x20x64xf32, #tpu.memory_space<vmem>>, vector<16x16x64xf32>
    %214 = vector.shape_cast %213 : vector<16x16x64xf32> to vector<256x64xf32>
    %215 = arith.truncf %214 : vector<256x64xf32> to vector<256x64xbf16>
    %c14 = arith.constant 14 : index
    %c0_189 = arith.constant 0 : index
    %c0_190 = arith.constant 0 : index
    %216 = vector.load %arg10[%c14, %c0_189, %c0_190] : memref<25x64x64xbf16, #tpu.memory_space<vmem>>, vector<1x64x64xbf16>
    %217 = vector.shape_cast %216 : vector<1x64x64xbf16> to vector<64x64xbf16>
    %cst_191 = arith.constant dense<0.000000e+00> : vector<256x64xf32>
    %218 = tpu.matmul %215, %217, %cst_191 {dimension_numbers = #tpu.dot_dimension_numbers<[1], [0], [0], [1], [0, 0, 1, 1], [], []>} : vector<256x64xbf16>, vector<64x64xbf16>, vector<256x64xf32> -> vector<256x64xf32>
    %219 = arith.addf %212, %218 : vector<256x64xf32>
    %c3_192 = arith.constant 3 : index
    %c0_193 = arith.constant 0 : index
    %c0_194 = arith.constant 0 : index
    %220 = vector.load %arg14[%c3_192, %c0_193, %c0_194] : memref<20x20x64xf32, #tpu.memory_space<vmem>>, vector<16x16x64xf32>
    %221 = vector.shape_cast %220 : vector<16x16x64xf32> to vector<256x64xf32>
    %222 = arith.truncf %221 : vector<256x64xf32> to vector<256x64xbf16>
    %c15 = arith.constant 15 : index
    %c0_195 = arith.constant 0 : index
    %c0_196 = arith.constant 0 : index
    %223 = vector.load %arg10[%c15, %c0_195, %c0_196] : memref<25x64x64xbf16, #tpu.memory_space<vmem>>, vector<1x64x64xbf16>
    %224 = vector.shape_cast %223 : vector<1x64x64xbf16> to vector<64x64xbf16>
    %cst_197 = arith.constant dense<0.000000e+00> : vector<256x64xf32>
    %225 = tpu.matmul %222, %224, %cst_197 {dimension_numbers = #tpu.dot_dimension_numbers<[1], [0], [0], [1], [0, 0, 1, 1], [], []>} : vector<256x64xbf16>, vector<64x64xbf16>, vector<256x64xf32> -> vector<256x64xf32>
    %226 = arith.addf %219, %225 : vector<256x64xf32>
    %c3_198 = arith.constant 3 : index
    %c1_199 = arith.constant 1 : index
    %c0_200 = arith.constant 0 : index
    %227 = vector.load %arg14[%c3_198, %c1_199, %c0_200] : memref<20x20x64xf32, #tpu.memory_space<vmem>>, vector<16x16x64xf32>
    %228 = vector.shape_cast %227 : vector<16x16x64xf32> to vector<256x64xf32>
    %229 = arith.truncf %228 : vector<256x64xf32> to vector<256x64xbf16>
    %c16 = arith.constant 16 : index
    %c0_201 = arith.constant 0 : index
    %c0_202 = arith.constant 0 : index
    %230 = vector.load %arg10[%c16, %c0_201, %c0_202] : memref<25x64x64xbf16, #tpu.memory_space<vmem>>, vector<1x64x64xbf16>
    %231 = vector.shape_cast %230 : vector<1x64x64xbf16> to vector<64x64xbf16>
    %cst_203 = arith.constant dense<0.000000e+00> : vector<256x64xf32>
    %232 = tpu.matmul %229, %231, %cst_203 {dimension_numbers = #tpu.dot_dimension_numbers<[1], [0], [0], [1], [0, 0, 1, 1], [], []>} : vector<256x64xbf16>, vector<64x64xbf16>, vector<256x64xf32> -> vector<256x64xf32>
    %233 = arith.addf %226, %232 : vector<256x64xf32>
    %c3_204 = arith.constant 3 : index
    %c2_205 = arith.constant 2 : index
    %c0_206 = arith.constant 0 : index
    %234 = vector.load %arg14[%c3_204, %c2_205, %c0_206] : memref<20x20x64xf32, #tpu.memory_space<vmem>>, vector<16x16x64xf32>
    %235 = vector.shape_cast %234 : vector<16x16x64xf32> to vector<256x64xf32>
    %236 = arith.truncf %235 : vector<256x64xf32> to vector<256x64xbf16>
    %c17 = arith.constant 17 : index
    %c0_207 = arith.constant 0 : index
    %c0_208 = arith.constant 0 : index
    %237 = vector.load %arg10[%c17, %c0_207, %c0_208] : memref<25x64x64xbf16, #tpu.memory_space<vmem>>, vector<1x64x64xbf16>
    %238 = vector.shape_cast %237 : vector<1x64x64xbf16> to vector<64x64xbf16>
    %cst_209 = arith.constant dense<0.000000e+00> : vector<256x64xf32>
    %239 = tpu.matmul %236, %238, %cst_209 {dimension_numbers = #tpu.dot_dimension_numbers<[1], [0], [0], [1], [0, 0, 1, 1], [], []>} : vector<256x64xbf16>, vector<64x64xbf16>, vector<256x64xf32> -> vector<256x64xf32>
    %240 = arith.addf %233, %239 : vector<256x64xf32>
    %c3_210 = arith.constant 3 : index
    %c3_211 = arith.constant 3 : index
    %c0_212 = arith.constant 0 : index
    %241 = vector.load %arg14[%c3_210, %c3_211, %c0_212] : memref<20x20x64xf32, #tpu.memory_space<vmem>>, vector<16x16x64xf32>
    %242 = vector.shape_cast %241 : vector<16x16x64xf32> to vector<256x64xf32>
    %243 = arith.truncf %242 : vector<256x64xf32> to vector<256x64xbf16>
    %c18 = arith.constant 18 : index
    %c0_213 = arith.constant 0 : index
    %c0_214 = arith.constant 0 : index
    %244 = vector.load %arg10[%c18, %c0_213, %c0_214] : memref<25x64x64xbf16, #tpu.memory_space<vmem>>, vector<1x64x64xbf16>
    %245 = vector.shape_cast %244 : vector<1x64x64xbf16> to vector<64x64xbf16>
    %cst_215 = arith.constant dense<0.000000e+00> : vector<256x64xf32>
    %246 = tpu.matmul %243, %245, %cst_215 {dimension_numbers = #tpu.dot_dimension_numbers<[1], [0], [0], [1], [0, 0, 1, 1], [], []>} : vector<256x64xbf16>, vector<64x64xbf16>, vector<256x64xf32> -> vector<256x64xf32>
    %247 = arith.addf %240, %246 : vector<256x64xf32>
    %c3_216 = arith.constant 3 : index
    %c4_217 = arith.constant 4 : index
    %c0_218 = arith.constant 0 : index
    %248 = vector.load %arg14[%c3_216, %c4_217, %c0_218] : memref<20x20x64xf32, #tpu.memory_space<vmem>>, vector<16x16x64xf32>
    %249 = vector.shape_cast %248 : vector<16x16x64xf32> to vector<256x64xf32>
    %250 = arith.truncf %249 : vector<256x64xf32> to vector<256x64xbf16>
    %c19 = arith.constant 19 : index
    %c0_219 = arith.constant 0 : index
    %c0_220 = arith.constant 0 : index
    %251 = vector.load %arg10[%c19, %c0_219, %c0_220] : memref<25x64x64xbf16, #tpu.memory_space<vmem>>, vector<1x64x64xbf16>
    %252 = vector.shape_cast %251 : vector<1x64x64xbf16> to vector<64x64xbf16>
    %cst_221 = arith.constant dense<0.000000e+00> : vector<256x64xf32>
    %253 = tpu.matmul %250, %252, %cst_221 {dimension_numbers = #tpu.dot_dimension_numbers<[1], [0], [0], [1], [0, 0, 1, 1], [], []>} : vector<256x64xbf16>, vector<64x64xbf16>, vector<256x64xf32> -> vector<256x64xf32>
    %254 = arith.addf %247, %253 : vector<256x64xf32>
    %c4_222 = arith.constant 4 : index
    %c0_223 = arith.constant 0 : index
    %c0_224 = arith.constant 0 : index
    %255 = vector.load %arg14[%c4_222, %c0_223, %c0_224] : memref<20x20x64xf32, #tpu.memory_space<vmem>>, vector<16x16x64xf32>
    %256 = vector.shape_cast %255 : vector<16x16x64xf32> to vector<256x64xf32>
    %257 = arith.truncf %256 : vector<256x64xf32> to vector<256x64xbf16>
    %c20 = arith.constant 20 : index
    %c0_225 = arith.constant 0 : index
    %c0_226 = arith.constant 0 : index
    %258 = vector.load %arg10[%c20, %c0_225, %c0_226] : memref<25x64x64xbf16, #tpu.memory_space<vmem>>, vector<1x64x64xbf16>
    %259 = vector.shape_cast %258 : vector<1x64x64xbf16> to vector<64x64xbf16>
    %cst_227 = arith.constant dense<0.000000e+00> : vector<256x64xf32>
    %260 = tpu.matmul %257, %259, %cst_227 {dimension_numbers = #tpu.dot_dimension_numbers<[1], [0], [0], [1], [0, 0, 1, 1], [], []>} : vector<256x64xbf16>, vector<64x64xbf16>, vector<256x64xf32> -> vector<256x64xf32>
    %261 = arith.addf %254, %260 : vector<256x64xf32>
    %c4_228 = arith.constant 4 : index
    %c1_229 = arith.constant 1 : index
    %c0_230 = arith.constant 0 : index
    %262 = vector.load %arg14[%c4_228, %c1_229, %c0_230] : memref<20x20x64xf32, #tpu.memory_space<vmem>>, vector<16x16x64xf32>
    %263 = vector.shape_cast %262 : vector<16x16x64xf32> to vector<256x64xf32>
    %264 = arith.truncf %263 : vector<256x64xf32> to vector<256x64xbf16>
    %c21 = arith.constant 21 : index
    %c0_231 = arith.constant 0 : index
    %c0_232 = arith.constant 0 : index
    %265 = vector.load %arg10[%c21, %c0_231, %c0_232] : memref<25x64x64xbf16, #tpu.memory_space<vmem>>, vector<1x64x64xbf16>
    %266 = vector.shape_cast %265 : vector<1x64x64xbf16> to vector<64x64xbf16>
    %cst_233 = arith.constant dense<0.000000e+00> : vector<256x64xf32>
    %267 = tpu.matmul %264, %266, %cst_233 {dimension_numbers = #tpu.dot_dimension_numbers<[1], [0], [0], [1], [0, 0, 1, 1], [], []>} : vector<256x64xbf16>, vector<64x64xbf16>, vector<256x64xf32> -> vector<256x64xf32>
    %268 = arith.addf %261, %267 : vector<256x64xf32>
    %c4_234 = arith.constant 4 : index
    %c2_235 = arith.constant 2 : index
    %c0_236 = arith.constant 0 : index
    %269 = vector.load %arg14[%c4_234, %c2_235, %c0_236] : memref<20x20x64xf32, #tpu.memory_space<vmem>>, vector<16x16x64xf32>
    %270 = vector.shape_cast %269 : vector<16x16x64xf32> to vector<256x64xf32>
    %271 = arith.truncf %270 : vector<256x64xf32> to vector<256x64xbf16>
    %c22 = arith.constant 22 : index
    %c0_237 = arith.constant 0 : index
    %c0_238 = arith.constant 0 : index
    %272 = vector.load %arg10[%c22, %c0_237, %c0_238] : memref<25x64x64xbf16, #tpu.memory_space<vmem>>, vector<1x64x64xbf16>
    %273 = vector.shape_cast %272 : vector<1x64x64xbf16> to vector<64x64xbf16>
    %cst_239 = arith.constant dense<0.000000e+00> : vector<256x64xf32>
    %274 = tpu.matmul %271, %273, %cst_239 {dimension_numbers = #tpu.dot_dimension_numbers<[1], [0], [0], [1], [0, 0, 1, 1], [], []>} : vector<256x64xbf16>, vector<64x64xbf16>, vector<256x64xf32> -> vector<256x64xf32>
    %275 = arith.addf %268, %274 : vector<256x64xf32>
    %c4_240 = arith.constant 4 : index
    %c3_241 = arith.constant 3 : index
    %c0_242 = arith.constant 0 : index
    %276 = vector.load %arg14[%c4_240, %c3_241, %c0_242] : memref<20x20x64xf32, #tpu.memory_space<vmem>>, vector<16x16x64xf32>
    %277 = vector.shape_cast %276 : vector<16x16x64xf32> to vector<256x64xf32>
    %278 = arith.truncf %277 : vector<256x64xf32> to vector<256x64xbf16>
    %c23 = arith.constant 23 : index
    %c0_243 = arith.constant 0 : index
    %c0_244 = arith.constant 0 : index
    %279 = vector.load %arg10[%c23, %c0_243, %c0_244] : memref<25x64x64xbf16, #tpu.memory_space<vmem>>, vector<1x64x64xbf16>
    %280 = vector.shape_cast %279 : vector<1x64x64xbf16> to vector<64x64xbf16>
    %cst_245 = arith.constant dense<0.000000e+00> : vector<256x64xf32>
    %281 = tpu.matmul %278, %280, %cst_245 {dimension_numbers = #tpu.dot_dimension_numbers<[1], [0], [0], [1], [0, 0, 1, 1], [], []>} : vector<256x64xbf16>, vector<64x64xbf16>, vector<256x64xf32> -> vector<256x64xf32>
    %282 = arith.addf %275, %281 : vector<256x64xf32>
    %c4_246 = arith.constant 4 : index
    %c4_247 = arith.constant 4 : index
    %c0_248 = arith.constant 0 : index
    %283 = vector.load %arg14[%c4_246, %c4_247, %c0_248] : memref<20x20x64xf32, #tpu.memory_space<vmem>>, vector<16x16x64xf32>
    %284 = vector.shape_cast %283 : vector<16x16x64xf32> to vector<256x64xf32>
    %285 = arith.truncf %284 : vector<256x64xf32> to vector<256x64xbf16>
    %c24 = arith.constant 24 : index
    %c0_249 = arith.constant 0 : index
    %c0_250 = arith.constant 0 : index
    %286 = vector.load %arg10[%c24, %c0_249, %c0_250] : memref<25x64x64xbf16, #tpu.memory_space<vmem>>, vector<1x64x64xbf16>
    %287 = vector.shape_cast %286 : vector<1x64x64xbf16> to vector<64x64xbf16>
    %cst_251 = arith.constant dense<0.000000e+00> : vector<256x64xf32>
    %288 = tpu.matmul %285, %287, %cst_251 {dimension_numbers = #tpu.dot_dimension_numbers<[1], [0], [0], [1], [0, 0, 1, 1], [], []>} : vector<256x64xbf16>, vector<64x64xbf16>, vector<256x64xf32> -> vector<256x64xf32>
    %289 = arith.addf %282, %288 : vector<256x64xf32>
    %c0_252 = arith.constant 0 : index
    %c0_253 = arith.constant 0 : index
    %290 = vector.load %arg11[%c0_252, %c0_253] : memref<1x64xf32, #tpu.memory_space<vmem>>, vector<1x64xf32>
    %291 = vector.broadcast %290 : vector<1x64xf32> to vector<256x64xf32>
    %292 = arith.addf %289, %291 : vector<256x64xf32>
    %cst_254 = arith.constant 0.000000e+00 : f32
    %293 = vector.broadcast %cst_254 : f32 to vector<256x64xf32>
    %294 = arith.maximumf %292, %293 : vector<256x64xf32>
    %295 = tpu.concatenate %36, %10, %109, %294 in 1 : vector<256x64xf32>, vector<256x64xf32>, vector<256x64xf32>, vector<256x64xf32> -> vector<256x256xf32>
    %c0_255 = arith.constant 0 : index
    %c0_256 = arith.constant 0 : index
    %c0_257 = arith.constant 0 : index
    %296 = vector.load %arg12[%c0_255, %c0_256, %c0_257] : memref<1x256x256xf32, #tpu.memory_space<vmem>>, vector<1x256x256xf32>
    %297 = vector.shape_cast %296 : vector<1x256x256xf32> to vector<256x256xf32>
    %298 = vector.shape_cast %295 : vector<256x256xf32> to vector<1x256x256xf32>
    tpu.vector_store %arg12[%c0_255, %c0_256, %c0_257], %298 {strides = array<i32>} : memref<1x256x256xf32, #tpu.memory_space<vmem>>, vector<1x256x256xf32>,
    return
  }
  func.func @transform_0(%arg0: i32) -> (i32, i32, i32) {
    %c0_i32 = arith.constant 0 : i32
    %c0_i32_0 = arith.constant 0 : i32
    %c0_i32_1 = arith.constant 0 : i32
    return %arg0, %c0_i32, %c0_i32_0 : i32, i32, i32
  }
  func.func @transform_1(%arg0: i32) -> (i32, i32, i32, i32) {
    %c0_i32 = arith.constant 0 : i32
    %c0_i32_0 = arith.constant 0 : i32
    %c0_i32_1 = arith.constant 0 : i32
    %c0_i32_2 = arith.constant 0 : i32
    return %arg0, %c0_i32, %c0_i32_0, %c0_i32_1 : i32, i32, i32, i32
  }
  func.func @transform_2(%arg0: i32) -> (i32, i32) {
    %c0_i32 = arith.constant 0 : i32
    %c0_i32_0 = arith.constant 0 : i32
    %c0_i32_1 = arith.constant 0 : i32
    return %c0_i32, %c0_i32_0 : i32, i32
  }
  func.func @transform_3(%arg0: i32) -> (i32, i32) {
    %c0_i32 = arith.constant 0 : i32
    %c0_i32_0 = arith.constant 0 : i32
    %c0_i32_1 = arith.constant 0 : i32
    return %c0_i32, %c0_i32_0 : i32, i32
  }
  func.func @transform_4(%arg0: i32) -> (i32, i32) {
    %c0_i32 = arith.constant 0 : i32
    %c0_i32_0 = arith.constant 0 : i32
    %c0_i32_1 = arith.constant 0 : i32
    return %c0_i32, %c0_i32_0 : i32, i32
  }
  func.func @transform_5(%arg0: i32) -> (i32, i32) {
    %c0_i32 = arith.constant 0 : i32
    %c0_i32_0 = arith.constant 0 : i32
    %c0_i32_1 = arith.constant 0 : i32
    return %c0_i32, %c0_i32_0 : i32, i32
  }
  func.func @transform_6(%arg0: i32) -> (i32, i32) {
    %c0_i32 = arith.constant 0 : i32
    %c0_i32_0 = arith.constant 0 : i32
    %c0_i32_1 = arith.constant 0 : i32
    return %c0_i32, %c0_i32_0 : i32, i32
  }
  func.func @transform_7(%arg0: i32) -> (i32, i32, i32) {
    %c0_i32 = arith.constant 0 : i32
    %c0_i32_0 = arith.constant 0 : i32
    %c0_i32_1 = arith.constant 0 : i32
    %c0_i32_2 = arith.constant 0 : i32
    return %c0_i32, %c0_i32_0, %c0_i32_1 : i32, i32, i32
  }
  func.func @transform_8(%arg0: i32) -> (i32, i32) {
    %c0_i32 = arith.constant 0 : i32
    %c0_i32_0 = arith.constant 0 : i32
    %c0_i32_1 = arith.constant 0 : i32
    return %c0_i32, %c0_i32_0 : i32, i32
  }
  func.func @transform_9(%arg0: i32) -> (i32, i32, i32) {
    %c0_i32 = arith.constant 0 : i32
    %c0_i32_0 = arith.constant 0 : i32
    %c0_i32_1 = arith.constant 0 : i32
    %c0_i32_2 = arith.constant 0 : i32
    return %c0_i32, %c0_i32_0, %c0_i32_1 : i32, i32, i32
  }
  func.func @transform_10(%arg0: i32) -> (i32, i32) {
    %c0_i32 = arith.constant 0 : i32
    %c0_i32_0 = arith.constant 0 : i32
    %c0_i32_1 = arith.constant 0 : i32
    return %c0_i32, %c0_i32_0 : i32, i32
  }
  func.func @transform_11(%arg0: i32) -> (i32, i32, i32) {
    %c0_i32 = arith.constant 0 : i32
    %c0_i32_0 = arith.constant 0 : i32
    %c0_i32_1 = arith.constant 0 : i32
    return %arg0, %c0_i32, %c0_i32_0 : i32, i32, i32
  }
}

</mosaic_0001>

<bundles_post_ra>
// kernel: inception_a_forward.1
= control target key start
LH: loop header
LB: loop body
LE: loop exit
PB: predicated region body
PF: predicated region fallthrough
CT: control target
= control target key end

     0   :  { %16 = vsyncpa [#allocation5], 0  ;;  %s21250_s0 = inlined_call_operand.vmem [shape: f32[2,256,64], index: 0, kind: input, shape index: {}]   ;;  %s21251_s1 = inlined_call_operand.vmem [shape: f32[2,18,18,64], index: 1, kind: input, shape index: {}]   ;;  %s21252_s2 = inlined_call_operand.vmem [shape: f32[256,1], index: 2, kind: input, shape index: {}]   ;;  %s21253_s3 = inlined_call_operand.vmem [shape: bf16[64,192], index: 3, kind: input, shape index: {}]   ;;  %s21254_s4 = inlined_call_operand.vmem [shape: f32[1,192], index: 4, kind: input, shape index: {}]   ;;  %s21255_s5 = inlined_call_operand.vmem [shape: bf16[64,64], index: 5, kind: input, shape index: {}]   ;;  %s21256_s6 = inlined_call_operand.vmem [shape: f32[1,64], index: 6, kind: input, shape index: {}]   ;;  %s21257_s7 = inlined_call_operand.vmem [shape: bf16[9,64,64], index: 7, kind: input, shape index: {}]   ;;  %s21258_s8 = inlined_call_operand.vmem [shape: f32[1,64], index: 8, kind: input, shape index: {}]   ;;  %s21259_s9 = inlined_call_operand.vmem [shape: bf16[25,64,64], index: 9, kind: input, shape index: {}]   ;;  %s21260_s10 = inlined_call_operand.vmem [shape: f32[1,64], index: 10, kind: input, shape index: {}]   ;;  %s21261_s11 = inlined_call_operand.hbm [shape: f32[2,256,256], index: 11, kind: output, shape index: {}]  }
   0x1   :  { %18 = vsyncpa [#allocation5 + $0x1], 0  ;;  %s17909_s17 = smov 0   ;;  %s17911_s18 = smov 0  }
   0x2   :  { %s17913_s19 = smov 0   ;;  %s17915_s20 = smov 0  }
   0x3 LB: > { %21267 = sst [smem:[#allocation7_spill]] %s17837_s19  ;;  %s17930_s21 = sadd.s32 4294967295, %s17841_s20   ;;  %s17841_s20 = sphi %s17915_s20, %s21383_s20   ;;  %s17837_s19 = sphi %s17913_s19, %s21385_s19   ;;  %s17833_s18 = sphi %s17911_s18, %s21387_s18   ;;  %s17829_s17 = sphi %s17909_s17, %s21386_s17  }
   0x4   : > { %s13446_s22 = sadd.s32 4294967294, %s17841_s20   ;;  %s17934_s23 = sadd.s32 1, %s17841_s20  }
   0x5   : > { %21268 = sst [smem:[#allocation8_spill]] %s17934_s23  ;;  %s272_s24 = sadd.s32 1, %s17837_s19 }
   0x6   : > { %s269_s25 = ssub.s32 %s17841_s20, %s17934_s23  ;;  %p282_p0 = scmp.ne.s32.totalorder %s17837_s19, %s17833_s18 }
   0x7   : > { %p270_p1 = scmp.eq.s32.totalorder %s269_s25, 0  ;;  %p283_p2 = scmp.eq.s32.totalorder %s17930_s21, 1 }
   0x8   : > { %p288_p3 = scmp.ne.s32.totalorder %s17833_s18, %s17829_s17  ;;  %p289_p4 = scmp.eq.s32.totalorder %s13446_s22, 1 }
   0x9   : > { %s17945_s26 = scalar_select %p270_p1, %s17837_s19, %s272_s24  }
   0xa   : > { %p17947_p5 = por %p283_p2, %p282_p0  ;;  %p17951_p6 = por %p289_p4, %p288_p3 }
   0xb   : > { %21269 = sst [smem:[#allocation9_spill]] %s17945_s26  ;;  %p13449_p7 = scmp.ge.s32.totalorder %s17841_s20, 1 }
   0xc   : > { %p350_p8 = scmp.lt.s32.totalorder %s17841_s20, 3 }
   0xe   : > { %p351_p9 = pnand %p13449_p7, %p350_p8 }
  0x10   : > { %354 = sbr.rel (%p351_p9) target bundleno = 1826 (0x722), region = 64 }
  0x17   : > { %v17623_v0 = vld [vmem:[%s21253_s3 + $0x4] ss:$8 sps:$4 sm:$0xff]   ;;  %p395_p10 = scmp.lt.s32.totalorder %s17930_s21, 1  ;;  %v17625_v1 = vld [vmem:[%s21253_s3] ss:$8 sps:$4 sm:$0xff]   ;;  %v17843_v2 = vmov 0  }
  0x18   : > { %17621 = vset.pattern.permute.xlu0 %v17843_v2  ;;  %17622 = vset.pattern.permute.xlu1 %v17843_v2  ;;  %v17626_v3 = vld [vmem:[%s21253_s3 + $0x14] ss:$8 sps:$4 sm:$0xff]   ;;  %v17628_v4 = vld [vmem:[%s21253_s3 + $0x10] ss:$8 sps:$4 sm:$0xff]   ;;  %v1308_v5 = vld [vmem:[%s21252_s2] sm:$0xff]  ;;  %vm514_vm0 = vcmask 523264  }
  0x19   : > { %563 = vmatprep.subr.bf16.mxu1 %v17623_v0  ;;  %595 = vmatprep.mubr.bf16.mxu1 %v17843_v2  ;;  %s17977_s29 = scalar_select %p395_p10, %s17930_s21, 1  ;;  %v1310_v6 = vld [vmem:[%s21252_s2 + $0x10] sm:$0xff]  ;;  %v17629_v7 = vld [vmem:[%s21253_s3 + $0x24] ss:$8 sps:$4 sm:$0xff]   ;;  %v1311_v9 = vld [vmem:[%s21252_s2 + $0x18] sm:$0xff]  ;;  %vm4951_vm1 = vcmask 519168  }
  0x1a   : > { %564 = vmatpush1.bf16.msra.mxu1 %v17625_v1  ;;  %1342 = vperm.xlu0 %17621, %v1308_v5   ;;  %v1309_v8 = vld [vmem:[%s21252_s2 + $0x8] sm:$0xff]  ;;  %v17632_v11 = vld [vmem:[%s21253_s3 + $0x34] ss:$8 sps:$4 sm:$0xff]   ;;  %v1312_v12 = vld [vmem:[%s21252_s2 + $0x20] sm:$0xff]  ;;  %vm1018_vm2 = vcmask 1046528   ;;  %vm1163_vm3 = vcmask 1045504  }
  0x1b   : > { %565 = vmatprep.subr.bf16.mxu1 %v17626_v3  ;;  %1352 = vperm.xlu1 %17622, %v1310_v6   ;;  %s14442_s25 = sshll.u32 %s17977_s29, 8  ;;  %v17631_v10 = vld [vmem:[%s21253_s3 + $0x20] ss:$8 sps:$4 sm:$0xff]   ;;  %v17634_v14 = vld [vmem:[%s21253_s3 + $0x30] ss:$8 sps:$4 sm:$0xff]   ;;  %s17576_s19 = smul.u32 432, %s17977_s29 }
  0x1c   : > { %s18004_s22 = scalar_lea.vmem %s21250_s0, %s14442_s25  ;;  %v1313_v13 = vld [vmem:[%s21252_s2 + $0x28] sm:$0xff]  ;;  %v1314_v17 = vld [vmem:[%s21252_s2 + $0x30] sm:$0xff]  ;;  %v1315_v18 = vld [vmem:[%s21252_s2 + $0x38] sm:$0xff]  ;;  %vm1830_vm4 = vcmask 517120   ;;  %s17845_s13 = smov 64  }
  0x1d   : > { %v406_v15 = vld [vmem:[%s18004_s22] sm:$0xff]  ;;  %v407_v16 = vld [vmem:[%s18004_s22 + $0x8] sm:$0xff]  ;;  %v408_v22 = vld [vmem:[%s18004_s22 + $0x10] sm:$0xff]  ;;  %s18103_s14 = scalar_lea.vmem %s21251_s1, %s17576_s19  ;;  %s392_s19 = sand.u32 1, %s17833_s18  }
  0x1e   : > { %566 = vmatpush1.bf16.msra.mxu1 %v17628_v4  ;;  %1347 = vperm.xlu0 %17621, %v1309_v8   ;;  %v438_v19 = vpack.c.bf16 %v407_v16, %v406_v15  ;;  %v1316_v20 = vld [vmem:[%s21252_s2 + $0x40] sm:$0xff]  ;;  %v1317_v21 = vld [vmem:[%s21252_s2 + $0x48] sm:$0xff]  ;;  %v409_v23 = vld [vmem:[%s18004_s22 + $0x18] sm:$0xff]  ;;  %s13450_s30 = sshll.u32 %s392_s19, 9 }
  0x1f   : > { %567 = vmatprep.subr.bf16.mxu1 %v17629_v7  ;;  %1357 = vperm.xlu1 %17622, %v1311_v9   ;;  %v1318_v24 = vld [vmem:[%s21252_s2 + $0x50] sm:$0xff]  ;;  %v1319_v25 = vld [vmem:[%s21252_s2 + $0x58] sm:$0xff]  ;;  %v439_v26 = vpack.c.bf16 %v409_v23, %v408_v22  ;;  %v1320_v27 = vld [vmem:[%s21252_s2 + $0x60] sm:$0xff] }
  0x20   : > { %v410_v28 = vld [vmem:[%s18004_s22 + $0x20] sm:$0xff]  ;;  %v411_v29 = vld [vmem:[%s18004_s22 + $0x28] sm:$0xff]  ;;  %v1322_v33 = vld [vmem:[%s21252_s2 + $0x70] sm:$0xff] }
  0x21   : > { %v1321_v30 = vld [vmem:[%s21252_s2 + $0x68] sm:$0xff]  ;;  %v17635_v31 = vld [vmem:[%s21255_s5] sm:$0xff]   ;;  %v1323_v34 = vld [vmem:[%s21252_s2 + $0x78] sm:$0xff]  ;;  %v440_v35 = vpack.c.bf16 %v411_v29, %v410_v28 }
  0x22   : > { %568 = vmatpush1.bf16.msra.mxu1 %v17631_v10  ;;  %1362 = vperm.xlu0 %17621, %v1312_v12   ;;  %v17636_v32 = vld [vmem:[%s21255_s5 + $0x8] sm:$0xff]   ;;  %v1324_v36 = vld [vmem:[%s21252_s2 + $0x80] sm:$0xff]  ;;  %v17637_v37 = vld [vmem:[%s21255_s5 + $0x10] sm:$0xff]  }
  0x23   : > { %569 = vmatprep.subr.bf16.mxu1 %v17632_v11  ;;  %1367 = vperm.xlu1 %17622, %v1313_v13   ;;  %v1325_v38 = vld [vmem:[%s21252_s2 + $0x88] sm:$0xff]  ;;  %v412_v39 = vld [vmem:[%s18004_s22 + $0x30] sm:$0xff]  ;;  %v413_v40 = vld [vmem:[%s18004_s22 + $0x38] sm:$0xff] }
  0x24   : > { %v17638_v41 = vld [vmem:[%s21255_s5 + $0x18] sm:$0xff]   ;;  %v1326_v42 = vld [vmem:[%s21252_s2 + $0x90] sm:$0xff]  ;;  %v441_v44 = vpack.c.bf16 %v413_v40, %v412_v39  ;;  %v1328_v45 = vld [vmem:[%s21252_s2 + $0xa0] sm:$0xff] }
  0x25   : > { %v1327_v43 = vld [vmem:[%s21252_s2 + $0x98] sm:$0xff]  ;;  %v1329_v46 = vld [vmem:[%s21252_s2 + $0xa8] sm:$0xff]  ;;  %v414_v47 = vld [vmem:[%s18004_s22 + $0x40] sm:$0xff] }
  0x26   : > { %570 = vmatpush1.bf16.msra.mxu1 %v17634_v14  ;;  %1372 = vperm.xlu0 %17621, %v1314_v17   ;;  %v415_v48 = vld [vmem:[%s18004_s22 + $0x48] sm:$0xff]  ;;  %v1331_v49 = vld [vmem:[%s21252_s2 + $0xb8] sm:$0xff]  ;;  %v1330_v50 = vld [vmem:[%s21252_s2 + $0xb0] sm:$0xff] }
  0x27   : > { %1377 = vperm.xlu1 %17622, %v1315_v18   ;;  %15144 = vmatprep.subr.bf16.mxu1 %v17635_v31  ;;  %v442_v51 = vpack.c.bf16 %v415_v48, %v414_v47  ;;  %v1332_v52 = vld [vmem:[%s21252_s2 + $0xc0] sm:$0xff]  ;;  %v1333_v53 = vld [vmem:[%s21252_s2 + $0xc8] sm:$0xff]  ;;  %v416_v54 = vld [vmem:[%s18004_s22 + $0x50] sm:$0xff] }
  0x28   : > { %v417_v55 = vld [vmem:[%s18004_s22 + $0x58] sm:$0xff]  ;;  %v1334_v57 = vld [vmem:[%s21252_s2 + $0xd0] sm:$0xff]  ;;  %v820_v58 = vld [vmem:[%s18103_s14] sm:$0xff] }
  0x29   : > { %13462 = vmatmul.mubr.msk.bf16.vlgmr.msra.gmra.mrb[0].mxu1 %vm514_vm0, %v438_v19  ;;  %v1335_v56 = vld [vmem:[%s21252_s2 + $0xd8] sm:$0xff]  ;;  %v821_v60 = vld [vmem:[%s18103_s14 + $0x8] sm:$0xff]  ;;  %v824_v61 = vld [vmem:[%s18103_s14 + $0x20] sm:$0xff]  ;;  %v443_v62 = vpack.c.bf16 %v417_v55, %v416_v54 }
  0x2a   : > { %605 = vmatprep.mubr.bf16.mxu1 %v17843_v2  ;;  %1382 = vperm.xlu0 %17621, %v1316_v20   ;;  %v823_v59 = vld [vmem:[%s18103_s14 + $0x18] sm:$0xff]  ;;  %v1336_v63 = vld [vmem:[%s21252_s2 + $0xe0] sm:$0xff]  ;;  %v826_v0 = vld [vmem:[%s18103_s14 + $0x30] sm:$0xff]  ;;  %v875_v7 = vadd.f32 %v824_v61, %v821_v60 }
  0x2b   : > { %1387 = vperm.xlu1 %17622, %v1317_v21   ;;  %15145 = vmatpush3.bf16.msra.mxu1 %v17635_v31  ;;  %v874_v1 = vadd.f32 %v823_v59, %v820_v58  ;;  %v827_v3 = vld [vmem:[%s18103_s14 + $0x38] sm:$0xff]  ;;  %v1337_v4 = vld [vmem:[%s21252_s2 + $0xe8] sm:$0xff]  ;;  %v418_v5 = vld [vmem:[%s18004_s22 + $0x60] sm:$0xff]  ;;  %v877_v13 = vadd.f32 %v826_v0, %v823_v59 }
  0x2c   : > { %15146 = vmatprep.subr.bf16.mxu1 %v17636_v32  ;;  %v419_v6 = vld [vmem:[%s18004_s22 + $0x68] sm:$0xff]  ;;  %v1339_v8 = vld [vmem:[%s21252_s2 + $0xf8] sm:$0xff]  ;;  %v1338_v9 = vld [vmem:[%s21252_s2 + $0xf0] sm:$0xff]  ;;  %v878_v14 = vadd.f32 %v827_v3, %v824_v61  ;;  %v18146_v18 = vadd.f32 %v875_v7, %v827_v3 }
  0x2d   : > { %v18140_v10 = vadd.f32 %v874_v1, %v826_v0  ;;  %v829_v11 = vld [vmem:[%s18103_s14 + $0x48] sm:$0xff]  ;;  %v830_v12 = vld [vmem:[%s18103_s14 + $0x50] sm:$0xff]  ;;  %v444_v17 = vpack.c.bf16 %v419_v6, %v418_v5  ;;  %v828_v23 = vld [vmem:[%s18103_s14 + $0x40] sm:$0x3] }
  0x2e   : > { %1392 = vperm.xlu0 %17621, %v1318_v24   ;;  %v822_v15 = vld [vmem:[%s18103_s14 + $0x10] sm:$0x3]  ;;  %v825_v16 = vld [vmem:[%s18103_s14 + $0x28] sm:$0x3]  ;;  %v18150_v21 = vadd.f32 %v877_v13, %v829_v11  ;;  %v18152_v22 = vadd.f32 %v878_v14, %v830_v12  ;;  %v1165_v28 = vrot.slane %v18146_v18, 2  ;;  %v880_v40 = vadd.f32 %v829_v11, %v826_v0  ;;  %v839_v1 = vld [vmem:[%s18103_s14 + $0x98] sm:$0xff] }
  0x2f   : > { %1397 = vperm.xlu1 %17622, %v1319_v25   ;;  %15147 = vmatpush3.bf16.msra.mxu1 %v17636_v32  ;;  %v1019_v19 = vrot.slane %v18140_v10, 1  ;;  %v1164_v20 = vrot.slane %v18140_v10, 2  ;;  %v876_v24 = vadd.f32 %v825_v16, %v822_v15  ;;  %v420_v25 = vld [vmem:[%s18004_s22 + $0x70] sm:$0xff]  ;;  %v831_v29 = vld [vmem:[%s18103_s14 + $0x58] sm:$0x3]  ;;  %v879_v32 = vadd.f32 %v828_v23, %v825_v16 }
  0x30   : > { %15148 = vmatprep.subr.bf16.mxu1 %v17637_v37  ;;  %v1025_v31 = vrot.slane %v18152_v22, 1  ;;  %v840_v5 = vld [vmem:[%s18103_s14 + $0xa0] sm:$0x3]  ;;  %v425_v13 = vld [vmem:[%s18004_s22 + $0x98] sm:$0xff]  ;;  %v18275_v14 = vld [vmem:[%s18103_s14 + $0x110] sm:$0xff] }
  0x31   : > { %13463 = vmatmul.mubr.msk.bf16.gmra.mrb[4].mxu1 %vm514_vm0, %v439_v26  ;;  %v421_v26 = vld [vmem:[%s18004_s22 + $0x78] sm:$0xff]  ;;  %v432_v59 = vld [vmem:[%s18004_s22 + $0xd0] sm:$0xff] }
  0x32   : > { %615 = vmatprep.mubr.bf16.mxu1 %v17843_v2  ;;  %1402 = vperm.xlu0 %17621, %v1320_v27   ;;  %v1020_v27 = vrot.slane %v18146_v18, 1  ;;  %v445_v39 = vpack.c.bf16 %v421_v26, %v420_v25  ;;  %v843_v25 = vld [vmem:[%s18103_s14 + $0xb8] sm:$0x3] }
  0x33   : > { %1407 = vperm.xlu1 %17622, %v1321_v30   ;;  %15149 = vmatpush3.bf16.msra.mxu1 %v17637_v37  ;;  %v1024_v30 = vrot.slane %v18150_v21, 1  ;;  %v882_v37 = vadd.f32 %v831_v29, %v828_v23 }
  0x34   : > { %15150 = vmatprep.subr.bf16.mxu1 %v17638_v41 }
  0x36   : > { %1412 = vperm.xlu0 %17621, %v1322_v33  }
  0x37   : > { %1417 = vperm.xlu1 %17622, %v1323_v34   ;;  %15151 = vmatpush3.bf16.msra.mxu1 %v17638_v41  ;;  %v18165_v34 = vadd.f32 %v876_v24, %v828_v23  ;;  %v842_v24 = vld [vmem:[%s18103_s14 + $0xb0] sm:$0xff] }
  0x39   : > { %13464 = vmatmul.mubr.msk.bf16.gmra.mrb[8].mxu1 %vm514_vm0, %v440_v35  ;;  %v833_v35 = vld [vmem:[%s18103_s14 + $0x68] sm:$0xff]  ;;  %v1167_v47 = vrot.slane %v18165_v34, 2 }
  0x3a   : > { %625 = vmatprep.mubr.bf16.mxu1 %v17843_v2  ;;  %1422 = vperm.xlu0 %17621, %v1324_v36   ;;  %v881_v36 = vadd.f32 %v830_v12, %v827_v3  ;;  %v435_v3 = vld [vmem:[%s18004_s22 + $0xe8] sm:$0xff] }
  0x3b   : > { %1427 = vperm.xlu1 %17622, %v1325_v38   ;;  %v834_v38 = vld [vmem:[%s18103_s14 + $0x70] sm:$0x3] }
  0x3c   : > { %v18177_v48 = vadd.f32 %v881_v36, %v833_v35  ;;  %v885_v54 = vadd.f32 %v834_v38, %v831_v29 }
  0x3e   : > { %1432 = vperm.xlu0 %17621, %v1326_v42   ;;  %v18170_v42 = vadd.f32 %v879_v32, %v831_v29  ;;  %v1030_v58 = vrot.slane %v18177_v48, 1  ;;  %v851_v29 = vld [vmem:[%s18103_s14 + $0xf8] sm:$0xff] }
  0x3f   : > { %1437 = vperm.xlu1 %17622, %v1327_v43   ;;  %v832_v43 = vld [vmem:[%s18103_s14 + $0x60] sm:$0xff] }
  0x40   : > { %v1027_v55 = vrot.slane %v18170_v42, 1  ;;  %v883_v60 = vadd.f32 %v832_v43, %v829_v11 }
  0x41   : > { %13465 = vmatmul.mubr.msk.bf16.gmra.mrb[12].mxu1 %vm514_vm0, %v441_v44  ;;  %v422_v44 = vld [vmem:[%s18004_s22 + $0x80] sm:$0xff] }
  0x42   : > { %635 = vmatprep.mubr.bf16.mxu1 %v17843_v2  ;;  %1442 = vperm.xlu0 %17621, %v1328_v45   ;;  %v423_v45 = vld [vmem:[%s18004_s22 + $0x88] sm:$0xff] }
  0x43   : > { %1447 = vperm.xlu1 %17622, %v1329_v46   ;;  %v1022_v46 = vrot.slane %v18165_v34, 1  ;;  %v446_v61 = vpack.c.bf16 %v423_v45, %v422_v44  ;;  %v893_v44 = vadd.f32 %v842_v24, %v839_v1 }
  0x46   : > { %1452 = vperm.xlu0 %17621, %v1330_v50   ;;  %v836_v50 = vld [vmem:[%s18103_s14 + $0x80] sm:$0xff] }
  0x47   : > { %1457 = vperm.xlu1 %17622, %v1331_v49   ;;  %v18179_v49 = vadd.f32 %v882_v37, %v834_v38  ;;  %v887_v6 = vadd.f32 %v836_v50, %v833_v35  ;;  %v890_v26 = vadd.f32 %v839_v1, %v836_v50  ;;  %v841_v37 = vld [vmem:[%s18103_s14 + $0xa8] sm:$0xff] }
  0x49   : > { %13466 = vmatmul.mubr.msk.bf16.gmra.mrb[16].mxu1 %vm514_vm0, %v442_v51  ;;  %v837_v51 = vld [vmem:[%s18103_s14 + $0x88] sm:$0x3] }
  0x4a   : > { %645 = vmatprep.mubr.bf16.mxu1 %v17843_v2  ;;  %1462 = vperm.xlu0 %17621, %v1332_v52   ;;  %v884_v52 = vadd.f32 %v833_v35, %v830_v12  ;;  %v888_v7 = vadd.f32 %v837_v51, %v834_v38  ;;  %v424_v12 = vld [vmem:[%s18004_s22 + $0x90] sm:$0xff]  ;;  %v891_v36 = vadd.f32 %v840_v5, %v837_v51 }
  0x4b   : > { %1467 = vperm.xlu1 %17622, %v1333_v53   ;;  %v18184_v53 = vadd.f32 %v880_v40, %v832_v43  ;;  %v447_v45 = vpack.c.bf16 %v425_v13, %v424_v12  ;;  %v426_v12 = vld [vmem:[%s18004_s22 + $0xa0] sm:$0xff]  ;;  %v427_v13 = vld [vmem:[%s18004_s22 + $0xa8] sm:$0xff] }
  0x4c   : > { %v18194_v0 = vadd.f32 %v884_v52, %v836_v50  ;;  %v18212_v23 = vadd.f32 %v888_v7, %v840_v5  ;;  %v848_v52 = vld [vmem:[%s18103_s14 + $0xe0] sm:$0xff]  ;;  %v847_v50 = vld [vmem:[%s18103_s14 + $0xd8] sm:$0xff] }
  0x4e   : > { %1472 = vperm.xlu0 %17621, %v1334_v57   ;;  %v835_v57 = vld [vmem:[%s18103_s14 + $0x78] sm:$0xff] }
  0x4f   : > { %1477 = vperm.xlu1 %17622, %v1335_v56   ;;  %v18202_v11 = vadd.f32 %v883_v60, %v835_v57 }
  0x51   : > { %13467 = vmatmul.mubr.msk.bf16.gmra.mrb[20].mxu1 %vm514_vm0, %v443_v62  ;;  %v18334_v62 = vld [vmem:[%s18004_s22 + $0xc8] sm:$0xff] }
  0x52   : > { %655 = vmatprep.mubr.bf16.mxu1 %v17843_v2  ;;  %1482 = vperm.xlu0 %17621, %v1336_v63  }
  0x53   : > { %1487 = vperm.xlu1 %17622, %v1337_v4   ;;  %v18198_v4 = vadd.f32 %v885_v54, %v837_v51  ;;  %v18227_v54 = vadd.f32 %v890_v26, %v842_v24  ;;  %v846_v51 = vld [vmem:[%s18103_s14 + $0xd0] sm:$0x3] }
  0x56   : > { %1492 = vperm.xlu0 %17621, %v1338_v9   ;;  %v886_v9 = vadd.f32 %v835_v57, %v832_v43  ;;  %v845_v43 = vld [vmem:[%s18103_s14 + $0xc8] sm:$0xff] }
  0x57   : > { %1497 = vperm.xlu1 %17622, %v1339_v8   ;;  %v838_v8 = vld [vmem:[%s18103_s14 + $0x90] sm:$0xff]  ;;  %v18240_v26 = vadd.f32 %v893_v44, %v845_v43  ;;  %v897_v44 = vadd.f32 %v846_v51, %v843_v25 }
  0x58   : > { %v18219_v35 = vadd.f32 %v886_v9, %v838_v8  ;;  %v889_v40 = vadd.f32 %v838_v8, %v835_v57  ;;  %v894_v9 = vadd.f32 %v843_v25, %v840_v5  ;;  %v849_v57 = vld [vmem:[%s18103_s14 + $0xe8] sm:$0x3] }
  0x59   : > { %13468 = vmatmul.mubr.msk.bf16.gmra.mrb[24].mxu1 %vm514_vm0, %v444_v17  ;;  %v18210_v17 = vadd.f32 %v887_v6, %v839_v1  ;;  %v18233_v6 = vadd.f32 %v891_v36, %v843_v25  ;;  %v844_v1 = vld [vmem:[%s18103_s14 + $0xc0] sm:$0xff]  ;;  %v896_v36 = vadd.f32 %v845_v43, %v842_v24  ;;  %v899_v24 = vadd.f32 %v848_v52, %v845_v43  ;;  %v429_v43 = vld [vmem:[%s18004_s22 + $0xb8] sm:$0xff] }
  0x5a   : > { %665 = vmatprep.mubr.bf16.mxu1 %v17843_v2  ;;  %v18236_v7 = vadd.f32 %v889_v40, %v841_v37  ;;  %v18254_v60 = vadd.f32 %v894_v9, %v846_v51  ;;  %v852_v25 = vld [vmem:[%s18103_s14 + $0x100] sm:$0x3]  ;;  %v900_v40 = vadd.f32 %v849_v57, %v846_v51  ;;  %v18263_v15 = vadd.f32 %v897_v44, %v849_v57  ;;  %v850_v9 = vld [vmem:[%s18103_s14 + $0xf0] sm:$0xff] }
  0x5b   : > { %v18261_v63 = vadd.f32 %v896_v36, %v848_v52  ;;  %v18272_v5 = vadd.f32 %v899_v24, %v851_v29  ;;  %v18282_v36 = vld [vmem:[%s18103_s14 + $0x118] sm:$0x3]  ;;  %v902_v44 = vadd.f32 %v851_v29, %v848_v52  ;;  %v903_v16 = vadd.f32 %v852_v25, %v849_v57  ;;  %v18297_v57 = vld [vmem:[%s18103_s14 + $0x108] sm:$0xff]  ;;  %v17639_v52 = vld [vmem:[%s21259_s9 + $0xc0] sm:$0xff]  }
  0x5c   : > { %v901_v24 = vadd.f32 %v850_v9, %v847_v50  ;;  %15784 = vmatprep.subr.bf16.mxu0 %v17639_v52 }
  0x5d   : > { %v18301_v51 = vadd.f32 %v902_v44, %v18275_v14  ;;  %v906_v44 = vadd.f32 %v18282_v36, %v852_v25  ;;  %15785 = vmatpush3.bf16.msra.mxu0 %v17639_v52 }
  0x61   : > { %13469 = vmatmul.mubr.msk.bf16.gmra.mrb[28].mxu1 %vm514_vm0, %v445_v39  ;;  %v892_v39 = vadd.f32 %v841_v37, %v838_v8  ;;  %v895_v8 = vadd.f32 %v844_v1, %v841_v37  ;;  %v448_v37 = vpack.c.bf16 %v427_v13, %v426_v12  ;;  %v18279_v13 = vadd.f32 %v900_v40, %v852_v25  ;;  %v18344_v12 = vld [vmem:[%s21259_s9 + $0xc8] sm:$0xff]  }
  0x62   : > { %675 = vmatprep.mubr.bf16.mxu1 %v17843_v2  ;;  %v905_v40 = vadd.f32 %v18275_v14, %v851_v29  ;;  %v18323_v29 = vadd.f32 %v18297_v57, %v850_v9  ;;  %v21265_v25 = vmov 0.0   ;;  %15786 = vmatprep.subr.bf16.mxu0 %v18344_v12 }
  0x63   : > { %v18258_v38 = vadd.f32 %v892_v39, %v844_v1  ;;  %v898_v39 = vadd.f32 %v847_v50, %v844_v1  ;;  %v18320_v1 = vld [vmem:[%s18103_s14 + $0x120] sm:$0xff]  ;;  %4956 = vst.msk [vmem:[#allocation3 + $0x30] sm:$0xff] %vm514_vm0, %v21265_v25  ;;  %4957 = vst.msk [vmem:[#allocation3 + $0x38] sm:$0xff] %vm514_vm0, %v21265_v25  ;;  %15787 = vmatpush3.bf16.msra.mxu0 %v18344_v12 }
  0x64   : > { %1828 = vst.msk [vmem:[#allocation2] sm:$0xff] %vm514_vm0, %v21265_v25  ;;  %1829 = vst.msk [vmem:[#allocation2 + $0x8] sm:$0xff] %vm514_vm0, %v21265_v25 }
  0x65   : > { %1832 = vst.msk [vmem:[#allocation2 + $0x18] sm:$0xff] %vm514_vm0, %v21265_v25  ;;  %1833 = vst.msk [vmem:[#allocation2 + $0x20] sm:$0xff] %vm514_vm0, %v21265_v25 }
  0x66   : > { %1835 = vst.msk [vmem:[#allocation2 + $0x30] sm:$0xff] %vm514_vm0, %v21265_v25  ;;  %1836 = vst.msk [vmem:[#allocation2 + $0x38] sm:$0xff] %vm514_vm0, %v21265_v25 }
  0x67   : > { %1838 = vst.msk [vmem:[#allocation2 + $0x48] sm:$0xff] %vm514_vm0, %v21265_v25  ;;  %1839 = vst.msk [vmem:[#allocation2 + $0x50] sm:$0xff] %vm514_vm0, %v21265_v25 }
  0x68   : > { %1841 = vst.msk [vmem:[#allocation2 + $0x60] sm:$0xff] %vm514_vm0, %v21265_v25  ;;  %1842 = vst.msk [vmem:[#allocation2 + $0x68] sm:$0xff] %vm514_vm0, %v21265_v25 }
  0x69   : > { %13470 = vmatmul.mubr.msk.bf16.gmra.mrb[32].mxu1 %vm514_vm0, %v446_v61  ;;  %v428_v61 = vld [vmem:[%s18004_s22 + $0xb0] sm:$0xff]  ;;  %1844 = vst.msk [vmem:[#allocation2 + $0x78] sm:$0xff] %vm514_vm0, %v21265_v25  ;;  %1845 = vst.msk [vmem:[#allocation2 + $0x80] sm:$0xff] %vm514_vm0, %v21265_v25 }
  0x6a   : > { %685 = vmatprep.mubr.bf16.mxu1 %v17843_v2  ;;  %v449_v32 = vpack.c.bf16 %v429_v43, %v428_v61  ;;  %v18313_v61 = vld [vmem:[%s18103_s14 + $0x128] sm:$0xff]  ;;  %v18316_v43 = vld [vmem:[%s18103_s14 + $0x130] sm:$0x3]  ;;  %1847 = vst.msk [vmem:[#allocation2 + $0x90] sm:$0xff] %vm514_vm0, %v21265_v25  ;;  %1848 = vst.msk [vmem:[#allocation2 + $0x98] sm:$0xff] %vm514_vm0, %v21265_v25 }
  0x6b   : > { %1850 = vst.msk [vmem:[#allocation2 + $0xa8] sm:$0xff] %vm514_vm0, %v21265_v25  ;;  %1851 = vst.msk [vmem:[#allocation2 + $0xb0] sm:$0xff] %vm514_vm0, %v21265_v25  ;;  %v908_v56 = vadd.f32 %v18313_v61, %v18275_v14  ;;  %v909_v52 = vadd.f32 %v18316_v43, %v18282_v36 }
  0x6c   : > { %1853 = vst.msk [vmem:[#allocation2 + $0xc0] sm:$0xff] %vm514_vm0, %v21265_v25  ;;  %1854 = vst.msk [vmem:[#allocation2 + $0xc8] sm:$0xff] %vm514_vm0, %v21265_v25 }
  0x6d   : > { %1856 = vst.msk [vmem:[#allocation2 + $0xd8] sm:$0xff] %vm514_vm0, %v21265_v25  ;;  %1857 = vst.msk [vmem:[#allocation2 + $0xe0] sm:$0xff] %vm514_vm0, %v21265_v25 }
  0x6e   : > { %1859 = vst.msk [vmem:[#allocation2 + $0xf0] sm:$0xff] %vm514_vm0, %v21265_v25  ;;  %1860 = vst.msk [vmem:[#allocation2 + $0xf8] sm:$0xff] %vm514_vm0, %v21265_v25 }
  0x6f   : > { %1862 = vst.msk [vmem:[#allocation2 + $0x108] sm:$0xff] %vm514_vm0, %v21265_v25  ;;  %1863 = vst.msk [vmem:[#allocation2 + $0x110] sm:$0xff] %vm514_vm0, %v21265_v25 }
  0x70   : > { %1865 = vst.msk [vmem:[#allocation2 + $0x120] sm:$0xff] %vm514_vm0, %v21265_v25  ;;  %1866 = vst.msk [vmem:[#allocation2 + $0x128] sm:$0xff] %vm514_vm0, %v21265_v25 }
  0x71   : > { %13471 = vmatmul.mubr.msk.bf16.gmra.mrb[36].mxu1 %vm514_vm0, %v447_v45  ;;  %v18265_v45 = vadd.f32 %v895_v8, %v847_v50  ;;  %v18294_v8 = vadd.f32 %v898_v39, %v850_v9  ;;  %v18310_v50 = vadd.f32 %v903_v16, %v18282_v36  ;;  %v18331_v16 = vld [vmem:[%s18004_s22 + $0xc0] sm:$0xff]  ;;  %v18339_v9 = vadd.f32 %v905_v40, %v18313_v61  ;;  %v17641_v36 = vld [vmem:[%s21259_s9 + $0xd0] sm:$0xff]  }
  0x72   : > { %695 = vmatprep.mubr.bf16.mxu1 %v17843_v2  ;;  %v18350_v39 = vadd.f32 %v906_v44, %v18316_v43  ;;  %1868 = vst.msk [vmem:[#allocation2 + $0x138] sm:$0xff] %vm514_vm0, %v21265_v25  ;;  %1869 = vst.msk [vmem:[#allocation2 + $0x140] sm:$0xff] %vm514_vm0, %v21265_v25  ;;  %v18510_v40 = vld [vmem:[%s18103_s14 + $0x140] sm:$0xff]  ;;  %v18513_v44 = vld [vmem:[%s18103_s14 + $0x148] sm:$0x3]  ;;  %15788 = vmatprep.subr.bf16.mxu0 %v17641_v36 }
  0x73   : > { %1871 = vst.msk [vmem:[#allocation2 + $0x150] sm:$0xff] %vm514_vm0, %v21265_v25  ;;  %1872 = vst.msk [vmem:[#allocation2 + $0x158] sm:$0xff] %vm514_vm0, %v21265_v25  ;;  %v18574_v12 = vadd.f32 %v908_v56, %v18510_v40  ;;  %v18577_v14 = vadd.f32 %v909_v52, %v18513_v44  ;;  %15789 = vmatpush3.bf16.msra.mxu0 %v17641_v36 }
  0x74   : > { %1874 = vst.msk [vmem:[#allocation2 + $0x168] sm:$0xff] %vm514_vm0, %v21265_v25  ;;  %1875 = vst.msk [vmem:[#allocation2 + $0x170] sm:$0xff] %vm514_vm0, %v21265_v25 }
  0x75   : > { %1877 = vst.msk [vmem:[#allocation2 + $0x180] sm:$0xff] %vm514_vm0, %v21265_v25  ;;  %1878 = vst.msk [vmem:[#allocation2 + $0x188] sm:$0xff] %vm514_vm0, %v21265_v25  ;;  %v1077_v52 = vrot.slane %v18577_v14, 1 }
  0x76   : > { %1880 = vst.msk [vmem:[#allocation2 + $0x198] sm:$0xff] %vm514_vm0, %v21265_v25  ;;  %1881 = vst.msk [vmem:[#allocation2 + $0x1a0] sm:$0xff] %vm514_vm0, %v21265_v25 }
  0x77   : > { %4949 = vst.msk [vmem:[#allocation3] sm:$0xff] %vm514_vm0, %v21265_v25  ;;  %4950 = vst.msk [vmem:[#allocation3 + $0x8] sm:$0xff] %vm514_vm0, %v21265_v25 }
  0x78   : > { %4953 = vst.msk [vmem:[#allocation3 + $0x18] sm:$0xff] %vm514_vm0, %v21265_v25  ;;  %4954 = vst.msk [vmem:[#allocation3 + $0x20] sm:$0xff] %vm514_vm0, %v21265_v25 }
  0x79   : > { %13472 = vmatmul.mubr.msk.bf16.gmra.mrb[40].mxu1 %vm514_vm0, %v448_v37  ;;  %v18328_v37 = vadd.f32 %v901_v24, %v18297_v57  ;;  %4959 = vst.msk [vmem:[#allocation3 + $0x48] sm:$0xff] %vm514_vm0, %v21265_v25  ;;  %4960 = vst.msk [vmem:[#allocation3 + $0x50] sm:$0xff] %vm514_vm0, %v21265_v25  ;;  %v17642_v24 = vld [vmem:[%s21259_s9 + $0xd8] sm:$0xff]  }
  0x7a   : > { %705 = vmatprep.mubr.bf16.mxu1 %v17843_v2  ;;  %4962 = vst.msk [vmem:[#allocation3 + $0x60] sm:$0xff] %vm514_vm0, %v21265_v25  ;;  %4963 = vst.msk [vmem:[#allocation3 + $0x68] sm:$0xff] %vm514_vm0, %v21265_v25  ;;  %15790 = vmatprep.subr.bf16.mxu0 %v17642_v24 }
  0x7b   : > { %4965 = vst.msk [vmem:[#allocation3 + $0x78] sm:$0xff] %vm514_vm0, %v21265_v25  ;;  %4966 = vst.msk [vmem:[#allocation3 + $0x80] sm:$0xff] %vm514_vm0, %v21265_v25  ;;  %15791 = vmatpush3.bf16.msra.mxu0 %v17642_v24 }
  0x7c   : > { %4968 = vst.msk [vmem:[#allocation3 + $0x90] sm:$0xff] %vm514_vm0, %v21265_v25  ;;  %4969 = vst.msk [vmem:[#allocation3 + $0x98] sm:$0xff] %vm514_vm0, %v21265_v25 }
  0x7d   : > { %4971 = vst.msk [vmem:[#allocation3 + $0xa8] sm:$0xff] %vm514_vm0, %v21265_v25  ;;  %4972 = vst.msk [vmem:[#allocation3 + $0xb0] sm:$0xff] %vm514_vm0, %v21265_v25 }
  0x7e   : > { %4974 = vst.msk [vmem:[#allocation3 + $0xc0] sm:$0xff] %vm514_vm0, %v21265_v25  ;;  %4975 = vst.msk [vmem:[#allocation3 + $0xc8] sm:$0xff] %vm514_vm0, %v21265_v25 }
  0x7f   : > { %4977 = vst.msk [vmem:[#allocation3 + $0xd8] sm:$0xff] %vm514_vm0, %v21265_v25  ;;  %4978 = vst.msk [vmem:[#allocation3 + $0xe0] sm:$0xff] %vm514_vm0, %v21265_v25  ;;  %v6911_v36 = vld [vmem:[#allocation3 + $0x19] sm:$0xff] }
  0x80   : > { %4980 = vst.msk [vmem:[#allocation3 + $0xf0] sm:$0xff] %vm514_vm0, %v21265_v25  ;;  %4981 = vst.msk [vmem:[#allocation3 + $0xf8] sm:$0xff] %vm514_vm0, %v21265_v25 }
  0x81   : > { %13473 = vmatmul.mubr.msk.bf16.gmra.mrb[44].mxu1 %vm514_vm0, %v449_v32  ;;  %4983 = vst.msk [vmem:[#allocation3 + $0x108] sm:$0xff] %vm514_vm0, %v21265_v25  ;;  %4984 = vst.msk [vmem:[#allocation3 + $0x110] sm:$0xff] %vm514_vm0, %v21265_v25  ;;  %v18507_v32 = vadd.f32 %v18323_v29, %v18320_v1  ;;  %v450_v29 = vpack.c.bf16 %v18334_v62, %v18331_v16  ;;  %v433_v62 = vld [vmem:[%s18004_s22 + $0xd8] sm:$0xff]  ;;  %v434_v16 = vld [vmem:[%s18004_s22 + $0xe0] sm:$0xff] }
  0x82   : > { %4986 = vst.msk [vmem:[#allocation3 + $0x120] sm:$0xff] %vm514_vm0, %v21265_v25  ;;  %4987 = vst.msk [vmem:[#allocation3 + $0x128] sm:$0xff] %vm514_vm0, %v21265_v25  ;;  %715 = vmatprep.mubr.bf16.mxu1 %v17843_v2  ;;  %v451_v33 = vpack.c.bf16 %v433_v62, %v432_v59  ;;  %v437_v62 = vld [vmem:[%s18004_s22 + $0xf8] sm:$0xff] }
  0x83   : > { %4989 = vst.msk [vmem:[#allocation3 + $0x138] sm:$0xff] %vm514_vm0, %v21265_v25  ;;  %4990 = vst.msk [vmem:[#allocation3 + $0x140] sm:$0xff] %vm514_vm0, %v21265_v25 }
  0x84   : > { %4992 = vst.msk [vmem:[#allocation3 + $0x150] sm:$0xff] %vm514_vm0, %v21265_v25  ;;  %4993 = vst.msk [vmem:[#allocation3 + $0x158] sm:$0xff] %vm514_vm0, %v21265_v25 }
  0x85   : > { %4995 = vst.msk [vmem:[#allocation3 + $0x168] sm:$0xff] %vm514_vm0, %v21265_v25  ;;  %4996 = vst.msk [vmem:[#allocation3 + $0x170] sm:$0xff] %vm514_vm0, %v21265_v25 }
  0x86   : > { %4998 = vst.msk [vmem:[#allocation3 + $0x180] sm:$0xff] %vm514_vm0, %v21265_v25  ;;  %4999 = vst.msk [vmem:[#allocation3 + $0x188] sm:$0xff] %vm514_vm0, %v21265_v25 }
  0x87   : > { %5001 = vst.msk [vmem:[#allocation3 + $0x198] sm:$0xff] %vm514_vm0, %v21265_v25  ;;  %5002 = vst.msk [vmem:[#allocation3 + $0x1a0] sm:$0xff] %vm514_vm0, %v21265_v25 }
  0x88   : > { %5004 = vst.msk [vmem:[#allocation3 + $0x1b0] sm:$0xff] %vm514_vm0, %v21265_v25  ;;  %5005 = vst.msk [vmem:[#allocation3 + $0x1b8] sm:$0xff] %vm514_vm0, %v21265_v25 }
  0x89   : > { %5007 = vst.msk [vmem:[#allocation3 + $0x1c8] sm:$0xff] %vm514_vm0, %v21265_v25  ;;  %5008 = vst.msk [vmem:[#allocation3 + $0x1d0] sm:$0xff] %vm514_vm0, %v21265_v25  ;;  %13474 = vmatmul.mubr.msk.bf16.gmra.mrb[48].mxu1 %vm514_vm0, %v450_v29  ;;  %v1021_v29 = vsel %vm1018_vm2, %v1019_v19, %v1020_v27  ;;  %v1026_v19 = vsel %vm1018_vm2, %v1024_v30, %v1025_v31 }
  0x8a   : > { %4958 = vst.msk [vmem:[#allocation3 + $0x40] sm:$0xf] %vm4951_vm1, %v21265_v25  ;;  %4952 = vst.msk [vmem:[#allocation3 + $0x10] sm:$0xf] %vm4951_vm1, %v21265_v25  ;;  %725 = vmatprep.mubr.bf16.mxu1 %v17843_v2  ;;  %v1131_v59 = vadd.f32 %v1021_v29, %v18140_v10  ;;  %v1168_v10 = vsel %vm1163_vm3, %v1165_v28, %v1167_v47 }
  0x8b   : > { %4955 = vst.msk [vmem:[#allocation3 + $0x28] sm:$0xf] %vm4951_vm1, %v21265_v25  ;;  %4961 = vst.msk [vmem:[#allocation3 + $0x58] sm:$0xf] %vm4951_vm1, %v21265_v25 }
  0x8c   : > { %4964 = vst.msk [vmem:[#allocation3 + $0x70] sm:$0xf] %vm4951_vm1, %v21265_v25  ;;  %4967 = vst.msk [vmem:[#allocation3 + $0x88] sm:$0xf] %vm4951_vm1, %v21265_v25 }
  0x8d   : > { %4970 = vst.msk [vmem:[#allocation3 + $0xa0] sm:$0xf] %vm4951_vm1, %v21265_v25  ;;  %4973 = vst.msk [vmem:[#allocation3 + $0xb8] sm:$0xf] %vm4951_vm1, %v21265_v25 }
  0x8e   : > { %4976 = vst.msk [vmem:[#allocation3 + $0xd0] sm:$0xf] %vm4951_vm1, %v21265_v25  ;;  %4979 = vst.msk [vmem:[#allocation3 + $0xe8] sm:$0xf] %vm4951_vm1, %v21265_v25 }
  0x8f   : > { %4982 = vst.msk [vmem:[#allocation3 + $0x100] sm:$0xf] %vm4951_vm1, %v21265_v25  ;;  %4985 = vst.msk [vmem:[#allocation3 + $0x118] sm:$0xf] %vm4951_vm1, %v21265_v25 }
  0x90   : > { %4988 = vst.msk [vmem:[#allocation3 + $0x130] sm:$0xf] %vm4951_vm1, %v21265_v25  ;;  %4991 = vst.msk [vmem:[#allocation3 + $0x148] sm:$0xf] %vm4951_vm1, %v21265_v25 }
  0x91   : > { %4994 = vst.msk [vmem:[#allocation3 + $0x160] sm:$0xf] %vm4951_vm1, %v21265_v25  ;;  %4997 = vst.msk [vmem:[#allocation3 + $0x178] sm:$0xf] %vm4951_vm1, %v21265_v25  ;;  %13475 = vmatmul.mubr.msk.bf16.gmra.mrb[52].mxu1 %vm514_vm0, %v451_v33  ;;  %v1166_v33 = vsel %vm1163_vm3, %v1164_v20, %v1165_v28  ;;  %v21272_v20 = vrot.slane %v18184_v53, 1  ;;  %v1133_v28 = vadd.f32 %v1026_v19, %v18150_v21 }
  0x92   : > { %5000 = vst.msk [vmem:[#allocation3 + $0x190] sm:$0xf] %vm4951_vm1, %v21265_v25  ;;  %5003 = vst.msk [vmem:[#allocation3 + $0x1a8] sm:$0xf] %vm4951_vm1, %v21265_v25  ;;  %735 = vmatprep.mubr.bf16.mxu1 %v17843_v2 }
  0x93   : > { %5006 = vst.msk [vmem:[#allocation3 + $0x1c0] sm:$0xf] %vm4951_vm1, %v21265_v25  ;;  %5009 = vst.msk [vmem:[#allocation3 + $0x1d8] sm:$0xf] %vm4951_vm1, %v21265_v25  ;;  %v6912_v25 = vld [vmem:[#allocation3 + $0x21] sm:$0xff]  ;;  %v1031_v30 = vsel %vm1018_vm2, %v21272_v20, %v1030_v58  ;;  %v21279_v20 = vrot.slane %v18184_v53, 2 }
  0x94   : > { %v6943_v41 = vpack.c.bf16 %v6912_v25, %v6911_v36  ;;  %v452_v25 = vpack.c.bf16 %v435_v3, %v434_v16  ;;  %v436_v3 = vld [vmem:[%s18004_s22 + $0xf0] sm:$0xff]  ;;  %v21273_v16 = vrot.slane %v18179_v49, 1  ;;  %v21275_v36 = vrot.slane %v18150_v21, 2  ;;  %s19233_s22 = scalar_lea.vmem [#allocation4], %s13450_s30 }
  0x95   : > { %s13372_s25 = sshll.u32 %s19233_s22, 4  ;;  %s21202_s25 = int_to_ptr.vmem [resolvable:$true] %s13372_s25 }
  0x96   : > { %15792 = vmatprep.mubr.msk.bf16.mxu0 %vm514_vm0, %v6943_v41  ;;  %v1023_v41 = vsel %vm1018_vm2, %v1020_v27, %v1022_v46  ;;  %v1028_v27 = vsel %vm1018_vm2, %v1025_v31, %v1027_v55  ;;  %v1276_v46 = vadd.f32 %v1166_v33, %v1131_v59  ;;  %v1033_v31 = vsel %vm1018_vm2, %v1030_v58, %v21273_v16  ;;  %s17779_s15 = scalar_lea.vmem %s21202_s25, 8192 }
  0x97   : > { %v1132_v24 = vadd.f32 %v1023_v41, %v18146_v18  ;;  %v1134_v34 = vadd.f32 %v1028_v27, %v18152_v22  ;;  %v21274_v55 = vrot.slane %v18152_v22, 2  ;;  %v21276_v59 = vrot.slane %v18170_v42, 2  ;;  %p17780_p11 = scmp.ne.s32.totalorder %s21202_s25, %s17779_s15 }
  0x98   : > { %v1135_v33 = vadd.f32 %v1031_v30, %v18184_v53  ;;  %v1136_v19 = vadd.f32 %v1033_v31, %v18177_v48  ;;  %v21278_v27 = vrot.slane %v18177_v48, 2  ;;  %v21280_v16 = vrot.slane %v18198_v4, 1 }
  0x99   : > { %13476 = vmatmul.mubr.msk.bf16.gmra.mrb[56].mxu1 %vm514_vm0, %v452_v25  ;;  %v1343_v18 = vpop.permute.xlu0 %1342  ;;  %v1171_v29 = vsel %vm1163_vm3, %v21275_v36, %v21274_v55  ;;  %v1277_v41 = vadd.f32 %v1168_v10, %v1132_v24  ;;  %v21277_v58 = vmov %v21274_v55  ;;  %v21282_v22 = vrot.slane %v18179_v49, 2  ;;  %p17781_p12 = pnand %p17780_p11, %p17947_p5 }
  0x9a   : > { %v1353_v47 = vpop.permute.xlu1 %1352  ;;  %745 = vmatprep.mubr.bf16.mxu1 %v17843_v2  ;;  %v1173_v25 = vsel %vm1163_vm3, %v21277_v58, %v21276_v59  ;;  %v1176_v21 = vsel %vm1163_vm3, %v21279_v20, %v21278_v27  ;;  %v21281_v2 = vrot.slane %v18194_v0, 1  ;;  %v1500_v24 = vmul.f32 %v1343_v18, %v1276_v46 }
  0x9b   : > { %v21283_v10 = vmov %v21278_v27  ;;  %v1278_v31 = vadd.f32 %v1171_v29, %v1133_v28  ;;  %v453_v55 = vpack.c.bf16 %v437_v62, %v436_v3  ;;  %v1279_v59 = vadd.f32 %v1173_v25, %v1134_v34  ;;  %p17782_p13 = pneg %p17781_p12 }
  0x9c   : > { %v1038_v42 = vsel %vm1018_vm2, %v21281_v2, %v21280_v16  ;;  %v1178_v30 = vsel %vm1163_vm3, %v21283_v10, %v21282_v22  ;;  %v1280_v27 = vadd.f32 %v1176_v21, %v1135_v33  ;;  %v21284_v56 = vmov %v21281_v2 }
  0x9d   : > { %v1348_v36 = vpop.permute.xlu0 %1347  ;;  %v1138_v20 = vadd.f32 %v1038_v42, %v18194_v0  ;;  %v21285_v16 = vrot.slane %v18202_v11, 1  ;;  %v1281_v49 = vadd.f32 %v1178_v30, %v1136_v19  ;;  %v21286_v48 = vrot.slane %v18198_v4, 2 }
  0x9e   : > { %v1501_v53 = vmul.f32 %v1348_v36, %v1277_v41  ;;  %v1358_v58 = vpop.permute.xlu1 %1357  ;;  %v21287_v18 = vrot.slane %v18194_v0, 2  ;;  %v21288_v62 = vrot.slane %v18210_v17, 1  ;;  %v21289_v28 = vrot.slane %v18219_v35, 1 }
  0x9f   : > { %v1036_v46 = vsel %vm1018_vm2, %v21285_v16, %v21284_v56  ;;  %v21290_v41 = vrot.slane %v18212_v23, 1  ;;  %v1502_v33 = vmul.f32 %v1353_v47, %v1278_v31  ;;  %v1503_v4 = vmul.f32 %v1358_v58, %v1279_v59 }
  0xa0   : > { %v1183_v3 = vsel %vm1163_vm3, %v21287_v18, %v21286_v48  ;;  %v1041_v34 = vsel %vm1018_vm2, %v21289_v28, %v21288_v62  ;;  %v1532_v29 = vpack.c.bf16 %v1501_v53, %v1500_v24  ;;  %v21291_v25 = vmov %v21288_v62 }
  0xa1   : > { %v1043_v56 = vsel %vm1018_vm2, %v21291_v25, %v21290_v41  ;;  %13477 = vmatmul.mubr.msk.bf16.gmra.mrb[60].mxu1 %vm514_vm0, %v453_v55  ;;  %v1363_v19 = vpop.permute.xlu0 %1362  ;;  %v1137_v21 = vadd.f32 %v1036_v46, %v18202_v11  ;;  %v21292_v2 = vrot.slane %v18233_v6, 1  ;;  %v21293_v42 = vrot.slane %v18227_v54, 1 }
  0xa2   : > { %v1368_v24 = vpop.permute.xlu1 %1367  ;;  %v1504_v10 = vmul.f32 %v1363_v19, %v1280_v27  ;;  %15152 = vmatprep.mubr.msk.bf16.mxu1 %vm514_vm0, %v1532_v29  ;;  %v1283_v30 = vadd.f32 %v1183_v3, %v1138_v20  ;;  %v21294_v36 = vmov %v21287_v18  ;;  %v21295_v47 = vrot.slane %v18202_v11, 2 }
  0xa3   : > { %v1048_v22 = vsel %vm1018_vm2, %v21293_v42, %v21292_v2  ;;  %v1139_v55 = vadd.f32 %v1041_v34, %v18219_v35  ;;  %v1505_v59 = vmul.f32 %v1368_v24, %v1281_v49  ;;  %v1140_v53 = vadd.f32 %v1043_v56, %v18210_v17 }
  0xa4   : > { %v1181_v31 = vsel %vm1163_vm3, %v21295_v47, %v21294_v36  ;;  %v21296_v58 = vrot.slane %v18210_v17, 2  ;;  %v21297_v16 = vrot.slane %v18219_v35, 2  ;;  %v21298_v46 = vmov %v21293_v42 }
  0xa5   : > { %v21299_v20 = vrot.slane %v18236_v7, 1  ;;  %v21300_v11 = vrot.slane %v18212_v23, 2  ;;  %v1142_v18 = vadd.f32 %v1048_v22, %v18227_v54  ;;  %v21302_v3 = vrot.slane %v18254_v60, 1  ;;  %v1373_v23 = vpop.permute.xlu0 %1372 }
  0xa6   : > { %v1186_v27 = vsel %vm1163_vm3, %v21297_v16, %v21296_v58  ;;  %v21301_v48 = vmov %v21296_v58  ;;  %v21303_v35 = vrot.slane %v18240_v26, 1  ;;  %v21305_v34 = vrot.slane %v18258_v38, 1  ;;  %v1378_v36 = vpop.permute.xlu1 %1377 }
  0xa7   : > { %v1046_v0 = vsel %vm1018_vm2, %v21299_v20, %v21298_v46  ;;  %v1188_v49 = vsel %vm1163_vm3, %v21301_v48, %v21300_v11  ;;  %v1533_v41 = vpack.c.bf16 %v1503_v4, %v1502_v33  ;;  %v1282_v25 = vadd.f32 %v1181_v31, %v1137_v21 }
  0xa8   : > { %v1053_v62 = vsel %vm1018_vm2, %v21303_v35, %v21302_v3  ;;  %v21304_v28 = vmov %v21303_v35  ;;  %v21306_v17 = vrot.slane %v18233_v6, 2  ;;  %v21307_v56 = vrot.slane %v18227_v54, 2  ;;  %v18772_v3 = vld [vmem:[%s18103_s14 + $0x138] sm:$0xff] }
  0xa9   : > { %v1051_v29 = vsel %vm1018_vm2, %v21305_v34, %v21304_v28  ;;  %v21308_v2 = vrot.slane %v18263_v15, 1  ;;  %v21309_v42 = vrot.slane %v18261_v63, 1  ;;  %v1534_v24 = vpack.c.bf16 %v1505_v59, %v1504_v10  ;;  %15153 = vmatmul.mubr.msk.bf16.vlgmr.msra.gmra.mrb[64].mxu1 %vm514_vm0, %v1533_v41  ;;  %v1383_v11 = vpop.permute.xlu0 %1382  ;;  %v18781_v34 = vld [vmem:[%s21259_s9 + $0xe0] sm:$0xff]  }
  0xaa   : > { %v1193_v19 = vsel %vm1163_vm3, %v21307_v56, %v21306_v17  ;;  %v1284_v47 = vadd.f32 %v1186_v27, %v1139_v55  ;;  %v1141_v33 = vadd.f32 %v1046_v0, %v18236_v7  ;;  %v1285_v4 = vadd.f32 %v1188_v49, %v1140_v53  ;;  %v1388_v35 = vpop.permute.xlu1 %1387  ;;  %15824 = vmatprep.subr.bf16.mxu0 %v18781_v34 }
  0xab   : > { %v1058_v22 = vsel %vm1018_vm2, %v21309_v42, %v21308_v2  ;;  %v21310_v21 = vmov %v21307_v56  ;;  %v21311_v6 = vrot.slane %v18236_v7, 2  ;;  %v1144_v58 = vadd.f32 %v1053_v62, %v18240_v26  ;;  %15156 = vmatprep.mubr.msk.bf16.mxu1 %vm514_vm0, %v1534_v24 }
  0xac   : > { %v1143_v16 = vadd.f32 %v1051_v29, %v18258_v38  ;;  %v1287_v46 = vadd.f32 %v1193_v19, %v1142_v18  ;;  %v21312_v20 = vrot.slane %v18254_v60, 2  ;;  %v21313_v10 = vrot.slane %v18240_v26, 2 }
  0xad   : > { %v1191_v31 = vsel %vm1163_vm3, %v21311_v6, %v21310_v21  ;;  %v21315_v53 = vrot.slane %v18258_v38, 2  ;;  %v1146_v7 = vadd.f32 %v1058_v22, %v18261_v63  ;;  %v1507_v27 = vmul.f32 %v1378_v36, %v1283_v30 }
  0xae   : > { %v1198_v55 = vsel %vm1163_vm3, %v21313_v10, %v21312_v20  ;;  %v21314_v59 = vmov %v21313_v10  ;;  %v1506_v0 = vmul.f32 %v1373_v23, %v1282_v25  ;;  %v21316_v48 = vrot.slane %v18263_v15, 2 }
  0xaf   : > { %v1196_v54 = vsel %vm1163_vm3, %v21315_v53, %v21314_v59  ;;  %v21317_v60 = vrot.slane %v18261_v63, 2  ;;  %v21318_v18 = vmov %v21309_v42  ;;  %v21319_v26 = vrot.slane %v18265_v45, 1  ;;  %v1398_v59 = vpop.permute.xlu1 %1397 }
  0xb0   : > { %v1508_v30 = vmul.f32 %v1383_v11, %v1284_v47  ;;  %v1286_v62 = vadd.f32 %v1191_v31, %v1141_v33  ;;  %v1220_v28 = vrot.slane %v18574_v12, 2  ;;  %v907_v15 = vadd.f32 %v18320_v1, %v18297_v57  ;;  %v18830_v11 = vld [vmem:[%s18103_s14 + $0x160] sm:$0x3] }
  0xb1   : > { %v1203_v49 = vsel %vm1163_vm3, %v21317_v60, %v21316_v48  ;;  %v1056_v38 = vsel %vm1018_vm2, %v21319_v26, %v21318_v18  ;;  %v1509_v29 = vmul.f32 %v1388_v35, %v1285_v4  ;;  %v1289_v41 = vadd.f32 %v1198_v55, %v1144_v58  ;;  %v1393_v4 = vpop.permute.xlu0 %1392 }
  0xb2   : > { %v1288_v23 = vadd.f32 %v1196_v54, %v1143_v16  ;;  %v21320_v25 = vrot.slane %v18279_v13, 1  ;;  %v21321_v17 = vrot.slane %v18272_v5, 1  ;;  %v18788_v19 = vadd.f32 %v1203_v49, %v1146_v7 }
  0xb3   : > { %v1145_v57 = vadd.f32 %v1056_v38, %v18265_v45  ;;  %v21322_v2 = vmov %v21317_v60  ;;  %v21323_v42 = vrot.slane %v18265_v45, 2  ;;  %v21325_v36 = vrot.slane %v18294_v8, 1  ;;  %v862_v38 = vld [vmem:[%s18103_s14 + $0x150] sm:$0xff] }
  0xb4   : > { %v1063_v56 = vsel %vm1018_vm2, %v21321_v17, %v21320_v25  ;;  %v21324_v24 = vmov %v21321_v17  ;;  %v1535_v33 = vpack.c.bf16 %v1507_v27, %v1506_v0  ;;  %v21326_v21 = vrot.slane %v18279_v13, 2  ;;  %v18827_v0 = vld [vmem:[%s18103_s14 + $0x158] sm:$0xff] }
  0xb5   : > { %v1201_v22 = vsel %vm1163_vm3, %v21323_v42, %v21322_v2  ;;  %v1061_v47 = vsel %vm1018_vm2, %v21325_v36, %v21324_v24  ;;  %v21327_v6 = vrot.slane %v18272_v5, 2  ;;  %v21328_v45 = vrot.slane %v18310_v50, 1 }
  0xb6   : > { %v21329_v31 = vrot.slane %v18301_v51, 1  ;;  %v21331_v20 = vrot.slane %v18328_v37, 1  ;;  %v1536_v55 = vpack.c.bf16 %v1509_v29, %v1508_v30  ;;  %v1148_v13 = vadd.f32 %v1063_v56, %v18272_v5  ;;  %15157 = vmatmul.mubr.msk.bf16.gmra.mrb[68].mxu1 %vm514_vm0, %v1535_v33  ;;  %v1403_v56 = vpop.permute.xlu0 %1402 }
  0xb7   : > { %v1208_v63 = vsel %vm1163_vm3, %v21327_v6, %v21326_v21  ;;  %v21332_v53 = vmov %v21327_v6  ;;  %v21333_v54 = vrot.slane %v18294_v8, 2  ;;  %v18824_v27 = vadd.f32 %v907_v15, %v18772_v3 }
  0xb8   : > { %v1068_v58 = vsel %vm1018_vm2, %v21329_v31, %v21328_v45  ;;  %v21330_v16 = vmov %v21329_v31  ;;  %v1147_v48 = vadd.f32 %v1061_v47, %v18294_v8  ;;  %v21334_v60 = vrot.slane %v18350_v39, 1  ;;  %15160 = vmatprep.mubr.msk.bf16.mxu1 %vm514_vm0, %v1536_v55 }
  0xb9   : > { %v1066_v10 = vsel %vm1018_vm2, %v21331_v20, %v21330_v16  ;;  %v1206_v7 = vsel %vm1163_vm3, %v21333_v54, %v21332_v53  ;;  %v21335_v49 = vrot.slane %v18339_v9, 1  ;;  %v911_v5 = vadd.f32 %v18510_v40, %v18313_v61 }
  0xba   : > { %v912_v26 = vadd.f32 %v18513_v44, %v18316_v43  ;;  %v1150_v35 = vadd.f32 %v1068_v58, %v18301_v51  ;;  %v21336_v30 = vrot.slane %v18310_v50, 2  ;;  %v21337_v15 = vrot.slane %v18301_v51, 2  ;;  %v1413_v20 = vpop.permute.xlu0 %1412 }
  0xbb   : > { %v1073_v18 = vsel %vm1018_vm2, %v21335_v49, %v21334_v60  ;;  %v1149_v29 = vadd.f32 %v1066_v10, %v18328_v37  ;;  %v910_v25 = vadd.f32 %v18772_v3, %v18320_v1  ;;  %v1511_v61 = vmul.f32 %v1398_v59, %v1287_v46  ;;  %v1408_v1 = vpop.permute.xlu1 %1407 }
  0xbc   : > { %v1213_v8 = vsel %vm1163_vm3, %v21337_v15, %v21336_v30  ;;  %v1510_v17 = vmul.f32 %v1393_v4, %v1286_v62  ;;  %v21338_v43 = vmov %v21337_v15  ;;  %v21339_v2 = vrot.slane %v18328_v37, 2  ;;  %v866_v15 = vld [vmem:[%s18103_s14 + $0x170] sm:$0xff] }
  0xbd   : > { %v21340_v42 = vrot.slane %v18350_v39, 2  ;;  %v21341_v24 = vrot.slane %v18339_v9, 2  ;;  %v1512_v47 = vmul.f32 %v1403_v56, %v1288_v23  ;;  %v1152_v46 = vadd.f32 %v1073_v18, %v18339_v9  ;;  %v865_v56 = vld [vmem:[%s18103_s14 + $0x168] sm:$0xff] }
  0xbe   : > { %v1211_v50 = vsel %vm1163_vm3, %v21339_v2, %v21338_v43  ;;  %v1222_v62 = vrot.slane %v18577_v14, 2  ;;  %v1074_v51 = vrot.slane %v18824_v27, 1  ;;  %v1513_v33 = vmul.f32 %v1408_v1, %v1289_v41  ;;  %v869_v1 = vld [vmem:[%s18103_s14 + $0x188] sm:$0xff] }
  0xbf   : > { %v1218_v36 = vsel %vm1163_vm3, %v21341_v24, %v21340_v42  ;;  %v21342_v37 = vmov %v21335_v49  ;;  %v21343_v4 = vrot.slane %v18507_v32, 1  ;;  %v18873_v21 = vadd.f32 %v911_v5, %v18827_v0  ;;  %v1418_v54 = vpop.permute.xlu1 %1417 }
  0xc0   : > { %v960_v6 = vadd.f32 %v912_v26, %v18830_v11  ;;  %v1290_v45 = vadd.f32 %v1201_v22, %v1145_v57  ;;  %v1293_v23 = vadd.f32 %v1208_v63, %v1148_v13  ;;  %v21344_v31 = vrot.slane %v18574_v12, 1 }
  0xc1   : > { %v1071_v39 = vsel %vm1018_vm2, %v21343_v4, %v21342_v37  ;;  %v958_v41 = vadd.f32 %v910_v25, %v862_v38  ;;  %v1537_v16 = vpack.c.bf16 %v1511_v61, %v1510_v17  ;;  %v1292_v10 = vadd.f32 %v1206_v7, %v1147_v48 }
  0xc2   : > { %v1078_v58 = vsel %vm1018_vm2, %v21344_v31, %v1077_v52  ;;  %v1295_v55 = vadd.f32 %v1213_v8, %v1150_v35  ;;  %v1294_v59 = vadd.f32 %v1211_v50, %v1149_v29  ;;  %v1538_v53 = vpack.c.bf16 %v1513_v33, %v1512_v47  ;;  %v1423_v35 = vpop.permute.xlu0 %1422  ;;  %v867_v8 = vld [vmem:[%s18103_s14 + $0x178] sm:$0x3] }
  0xc3   : > { %v18881_v60 = vadd.f32 %v1218_v36, %v1152_v46  ;;  %v1151_v57 = vadd.f32 %v1071_v39, %v18507_v32  ;;  %v21345_v22 = vmov %v21341_v24  ;;  %v21346_v14 = vrot.slane %v18507_v32, 2  ;;  %15161 = vmatmul.mubr.msk.bf16.gmra.mrb[72].mxu1 %vm514_vm0, %v1537_v16  ;;  %v868_v46 = vld [vmem:[%s18103_s14 + $0x180] sm:$0xff]  ;;  %v870_v39 = vld [vmem:[%s18103_s14 + $0x190] sm:$0x3] }
  0xc4   : > { %v1154_v63 = vadd.f32 %v1078_v58, %v18574_v12  ;;  %v1223_v13 = vsel %vm1163_vm3, %v1220_v28, %v1222_v62  ;;  %v1080_v7 = vrot.slane %v18873_v21, 1  ;;  %v1082_v48 = vrot.slane %v960_v6, 1  ;;  %15164 = vmatprep.mubr.msk.bf16.mxu1 %vm514_vm0, %v1538_v53 }
  0xc5   : > { %v1216_v52 = vsel %vm1163_vm3, %v21346_v14, %v21345_v22  ;;  %v1219_v49 = vrot.slane %v18824_v27, 2  ;;  %v1079_v18 = vrot.slane %v958_v41, 1  ;;  %v914_v9 = vadd.f32 %v18827_v0, %v18510_v40  ;;  %v1428_v40 = vpop.permute.xlu1 %1427 }
  0xc6   : > { %v915_v32 = vadd.f32 %v18830_v11, %v18513_v44  ;;  %v1515_v5 = vmul.f32 %v1418_v54, %v18788_v19  ;;  %v1514_v26 = vmul.f32 %v1413_v20, %v1290_v45  ;;  %v1225_v30 = vrot.slane %v18873_v21, 2 }
  0xc7   : > { %v913_v29 = vadd.f32 %v862_v38, %v18772_v3  ;;  %v1516_v25 = vmul.f32 %v1423_v35, %v1292_v10  ;;  %v21347_v44 = vmov %v21344_v31  ;;  %v1227_v17 = vrot.slane %v960_v6, 2 }
  0xc8   : > { %v1076_v61 = vsel %vm1018_vm2, %v1074_v51, %v21347_v44  ;;  %v1224_v19 = vrot.slane %v958_v41, 2  ;;  %v1517_v43 = vmul.f32 %v1428_v40, %v1293_v23  ;;  %v1083_v2 = vsel %vm1018_vm2, %v1080_v7, %v1082_v48  ;;  %v1433_v51 = vpop.permute.xlu0 %1432 }
  0xc9   : > { %v917_v50 = vadd.f32 %v866_v15, %v18827_v0  ;;  %v916_v42 = vadd.f32 %v865_v56, %v862_v38  ;;  %v1081_v3 = vsel %vm1018_vm2, %v1079_v18, %v1080_v7  ;;  %v18913_v24 = vadd.f32 %v914_v9, %v866_v15  ;;  %v1438_v45 = vpop.permute.xlu1 %1437  ;;  %v871_v18 = vld [vmem:[%s18103_s14 + $0x198] sm:$0xff] }
  0xca   : > { %v963_v36 = vadd.f32 %v915_v32, %v867_v8  ;;  %v918_v47 = vadd.f32 %v867_v8, %v18830_v11  ;;  %v1539_v62 = vpack.c.bf16 %v1515_v5, %v1514_v26  ;;  %v1296_v33 = vadd.f32 %v1216_v52, %v1151_v57  ;;  %v872_v52 = vld [vmem:[%s18103_s14 + $0x1a0] sm:$0xff] }
  0xcb   : > { %v1299_v37 = vadd.f32 %v1223_v13, %v1154_v63  ;;  %v961_v4 = vadd.f32 %v913_v29, %v865_v56  ;;  %v1540_v6 = vpack.c.bf16 %v1517_v43, %v1516_v25  ;;  %v1153_v0 = vadd.f32 %v1076_v61, %v18824_v27 }
  0xcc   : > { %v1221_v38 = vsel %vm1163_vm3, %v1219_v49, %v1220_v28  ;;  %v1156_v23 = vadd.f32 %v1083_v2, %v18873_v21  ;;  %v1228_v31 = vsel %vm1163_vm3, %v1225_v30, %v1227_v17  ;;  %v1155_v11 = vadd.f32 %v1081_v3, %v958_v41  ;;  %15165 = vmatmul.mubr.msk.bf16.gmra.mrb[76].mxu1 %vm514_vm0, %v1539_v62  ;;  %v1443_v27 = vpop.permute.xlu0 %1442 }
  0xcd   : > { %v18925_v58 = vadd.f32 %v917_v50, %v869_v1  ;;  %v964_v16 = vadd.f32 %v916_v42, %v868_v46  ;;  %v1226_v20 = vsel %vm1163_vm3, %v1224_v19, %v1225_v30  ;;  %v1085_v10 = vrot.slane %v18913_v24, 1  ;;  %15168 = vmatprep.mubr.msk.bf16.mxu1 %vm514_vm0, %v1540_v6  ;;  %v1448_v41 = vpop.permute.xlu1 %1447 }
  0xce   : > { %v1087_v53 = vrot.slane %v963_v36, 1  ;;  %v966_v54 = vadd.f32 %v918_v47, %v870_v39  ;;  %v1519_v12 = vmul.f32 %v1438_v45, %v1295_v55  ;;  %v1518_v28 = vmul.f32 %v1433_v51, %v1294_v59  ;;  %v873_v59 = vld [vmem:[%s18103_s14 + $0x1a8] sm:$0x3]  ;;  %s17846_s14 = smov [#allocation4]  }
  0xcf   : > { %v1084_v21 = vrot.slane %v961_v4, 1  ;;  %v920_v57 = vadd.f32 %v869_v1, %v866_v15  ;;  %v1520_v22 = vmul.f32 %v1443_v27, %v1296_v33  ;;  %v1230_v14 = vrot.slane %v18913_v24, 2  ;;  %s17783_s16 = sshll.u32 %s17846_s14, 4  ;;  %s17784_s16 = int_to_ptr.vmem [resolvable:$false] %s17783_s16 }
  0xd0   : > { %v921_v63 = vadd.f32 %v870_v39, %v867_v8  ;;  %v919_v13 = vadd.f32 %v868_v46, %v865_v56  ;;  %v1521_v7 = vmul.f32 %v1448_v41, %v18881_v60  ;;  %v1232_v48 = vrot.slane %v963_v36, 2  ;;  %v1453_v30 = vpop.permute.xlu0 %1452  ;;  %s17785_s29 = scalar_lea.vmem %s17784_s16, 16384  ;;  %p17786_p0 = scmp.lt.s32.totalorder %s21202_s25, %s17784_s16 }
  0xd1   : > { %v1090_v55 = vrot.slane %v18925_v58, 1  ;;  %v1089_v49 = vrot.slane %v964_v16, 1  ;;  %v1298_v9 = vadd.f32 %v1221_v38, %v1153_v0  ;;  %v1301_v32 = vadd.f32 %v1228_v31, %v1156_v23  ;;  %v1458_v25 = vpop.permute.xlu1 %1457  ;;  %p17787_p1 = scmp.lt.s32.totalorder %s17785_s29, %s17779_s15 }
  0xd2   : > { %v1229_v5 = vrot.slane %v961_v4, 2  ;;  %v1092_v26 = vrot.slane %v966_v54, 1  ;;  %v1541_v35 = vpack.c.bf16 %v1519_v12, %v1518_v28  ;;  %v1088_v15 = vsel %vm1018_vm2, %v1085_v10, %v1087_v53 }
  0xd3   : > { %v1086_v29 = vsel %vm1018_vm2, %v1084_v21, %v1085_v10  ;;  %v968_v8 = vadd.f32 %v920_v57, %v872_v52  ;;  %v1542_v40 = vpack.c.bf16 %v1521_v7, %v1520_v22  ;;  %v1300_v60 = vadd.f32 %v1226_v20, %v1155_v11  ;;  %p17788_p2 = por %p17787_p1, %p17786_p0 }
  0xd4   : > { %v969_v44 = vadd.f32 %v921_v63, %v873_v59  ;;  %v967_v61 = vadd.f32 %v919_v13, %v871_v18  ;;  %v1233_v17 = vsel %vm1163_vm3, %v1230_v14, %v1232_v48  ;;  %v1235_v19 = vrot.slane %v18925_v58, 2  ;;  %15169 = vmatmul.mubr.msk.bf16.gmra.mrb[80].mxu1 %vm514_vm0, %v1541_v35  ;;  %v1463_v47 = vpop.permute.xlu0 %1462 }
  0xd5   : > { %v1091_v56 = vsel %vm1018_vm2, %v1089_v49, %v1090_v55  ;;  %v1234_v43 = vrot.slane %v964_v16, 2  ;;  %v1158_v2 = vadd.f32 %v1088_v15, %v18913_v24  ;;  %v1157_v50 = vadd.f32 %v1086_v29, %v961_v4  ;;  %15172 = vmatprep.mubr.msk.bf16.mxu1 %vm514_vm0, %v1542_v40  ;;  %v1468_v51 = vpop.permute.xlu1 %1467  ;;  %v17650_v15 = vld [vmem:[%s21257_s7 + $0x20] sm:$0xff]   ;;  %p17789_p3 = pnand %p17788_p2, %p17782_p13 }
  0xd6   : > { %v1093_v42 = vsel %vm1018_vm2, %v1090_v55, %v1092_v26  ;;  %v1237_v3 = vrot.slane %v966_v54, 2  ;;  %v1523_v36 = vmul.f32 %v1458_v25, %v1299_v37  ;;  %v1522_v1 = vmul.f32 %v1453_v30, %v1298_v9  ;;  %15184 = vmatprep.subr.bf16.mxu1 %v17650_v15 }
  0xd7   : > { %v1231_v46 = vsel %vm1163_vm3, %v1229_v5, %v1230_v14  ;;  %v1095_v62 = vrot.slane %v968_v8, 1  ;;  %v1524_v33 = vmul.f32 %v1463_v47, %v1300_v60  ;;  %v1159_v39 = vadd.f32 %v1091_v56, %v964_v16  ;;  %15185 = vmatpush3.bf16.msra.mxu1 %v17650_v15  ;;  %v462_v60 = vld [vmem:[%s21254_s4] sm:$0x3]  ;;  %v17654_v56 = vld [vmem:[%s21257_s7 + $0x38] sm:$0xff]  }
  0xd8   : > { %v1097_v6 = vrot.slane %v969_v44, 1  ;;  %v1094_v45 = vrot.slane %v967_v61, 1  ;;  %v1525_v24 = vmul.f32 %v1468_v51, %v1301_v32  ;;  %v1160_v4 = vadd.f32 %v1093_v42, %v18925_v58  ;;  %v1473_v11 = vpop.permute.xlu0 %1472 }
  0xd9   : > { %v1236_v0 = vsel %vm1163_vm3, %v1234_v43, %v1235_v19  ;;  %v1303_v38 = vadd.f32 %v1233_v17, %v1158_v2  ;;  %v1302_v23 = vadd.f32 %v1231_v46, %v1157_v50  ;;  %v1238_v37 = vsel %vm1163_vm3, %v1235_v19, %v1237_v3  ;;  %v1478_v12 = vpop.permute.xlu1 %1477  ;;  %v2100_v2 = vld [vmem:[#allocation2 + $0x1] sm:$0xff] }
  0xda   : > { %v1543_v31 = vpack.c.bf16 %v1523_v36, %v1522_v1  ;;  %v1240_v20 = vrot.slane %v968_v8, 2  ;;  %v1242_v10 = vrot.slane %v969_v44, 2  ;;  %v1239_v53 = vrot.slane %v967_v61, 2 }
  0xdb   : > { %v1544_v54 = vpack.c.bf16 %v1525_v24, %v1524_v33  ;;  %v1304_v28 = vadd.f32 %v1236_v0, %v1159_v39  ;;  %v1098_v16 = vsel %vm1018_vm2, %v1095_v62, %v1097_v6  ;;  %v1096_v27 = vsel %vm1018_vm2, %v1094_v45, %v1095_v62 }
  0xdc   : > { %v1305_v21 = vadd.f32 %v1238_v37, %v1160_v4  ;;  %15173 = vmatmul.mubr.msk.bf16.gmra.mrb[84].mxu1 %vm514_vm0, %v1543_v31  ;;  %v1527_v58 = vmul.f32 %v1478_v12, %v1303_v38  ;;  %v1526_v57 = vmul.f32 %v1473_v11, %v1302_v23  ;;  %v1483_v41 = vpop.permute.xlu0 %1482  ;;  %v1162_v22 = vadd.f32 %v1098_v16, %v968_v8  ;;  %v17651_v8 = vld [vmem:[%s21257_s7 + $0x28] sm:$0xff]  }
  0xdd   : > { %v1161_v14 = vadd.f32 %v1096_v27, %v967_v61  ;;  %15176 = vmatprep.mubr.msk.bf16.mxu1 %vm514_vm0, %v1544_v54  ;;  %v1488_v52 = vpop.permute.xlu1 %1487  ;;  %v1528_v63 = vmul.f32 %v1483_v41, %v1304_v28  ;;  %v1243_v13 = vsel %vm1163_vm3, %v1240_v20, %v1242_v10  ;;  %v1241_v7 = vsel %vm1163_vm3, %v1239_v53, %v1240_v20  ;;  %v17653_v61 = vld [vmem:[%s21257_s7 + $0x30] sm:$0xff]  }
  0xde   : > { %v1529_v48 = vmul.f32 %v1488_v52, %v1305_v21  ;;  %v1545_v55 = vpack.c.bf16 %v1527_v58, %v1526_v57  ;;  %v1307_v49 = vadd.f32 %v1243_v13, %v1162_v22  ;;  %v464_v30 = vlaneseq  ;;  %15186 = vmatprep.subr.bf16.mxu1 %v17651_v8  ;;  %v17644_v21 = vld [vmem:[%s21259_s9 + $0xe8] sm:$0xff]  }
  0xdf   : > { %v1306_v59 = vadd.f32 %v1241_v7, %v1161_v14  ;;  %15187 = vmatpush3.bf16.msra.mxu1 %v17651_v8  ;;  %v21348_v25 = vmov 0.0  }
  0xe0   : > { %v1546_v18 = vpack.c.bf16 %v1529_v48, %v1528_v63  ;;  %v1493_v32 = vpop.permute.xlu0 %1492  ;;  %v465_v29 = vshrl.u32 %v464_v30, 7  ;;  %1834 = vst.msk [vmem:[#allocation2 + $0x28] sm:$0x3] %vm1830_vm4, %v21348_v25  ;;  %1831 = vst.msk [vmem:[#allocation2 + $0x10] sm:$0x3] %vm1830_vm4, %v21348_v25  ;;  %15188 = vmatprep.subr.bf16.mxu1 %v17653_v61  ;;  %v17645_v48 = vld [vmem:[%s21259_s9 + $0xf0] sm:$0xff]  }
  0xe1   : > { %v1498_v9 = vpop.permute.xlu1 %1497  ;;  %v1530_v26 = vmul.f32 %v1493_v32, %v1306_v59  ;;  %1837 = vst.msk [vmem:[#allocation2 + $0x40] sm:$0x3] %vm1830_vm4, %v21348_v25  ;;  %1840 = vst.msk [vmem:[#allocation2 + $0x58] sm:$0x3] %vm1830_vm4, %v21348_v25  ;;  %v17646_v32 = vld [vmem:[%s21259_s9 + $0xf8] sm:$0xff]  }
  0xe2   : > { %v1531_v5 = vmul.f32 %v1498_v9, %v1307_v49  ;;  %v466_v40 = vsub.s32 0, %v465_v29  ;;  %1843 = vst.msk [vmem:[#allocation2 + $0x70] sm:$0x3] %vm1830_vm4, %v21348_v25  ;;  %1846 = vst.msk [vmem:[#allocation2 + $0x88] sm:$0x3] %vm1830_vm4, %v21348_v25  ;;  %v470_v44 = vsub.s32 1, %v465_v29 }
  0xe3   : > { %1849 = vst.msk [vmem:[#allocation2 + $0xa0] sm:$0x3] %vm1830_vm4, %v21348_v25  ;;  %1852 = vst.msk [vmem:[#allocation2 + $0xb8] sm:$0x3] %vm1830_vm4, %v21348_v25  ;;  %15189 = vmatpush3.bf16.msra.mxu1 %v17653_v61 }
  0xe4   : > { %15177 = vmatmul.mubr.msk.bf16.gmra.mrb[88].mxu1 %vm514_vm0, %v1545_v55  ;;  %v1547_v35 = vpack.c.bf16 %v1531_v5, %v1530_v26  ;;  %1855 = vst.msk [vmem:[#allocation2 + $0xd0] sm:$0x3] %vm1830_vm4, %v21348_v25  ;;  %1858 = vst.msk [vmem:[#allocation2 + $0xe8] sm:$0x3] %vm1830_vm4, %v21348_v25  ;;  %v19007_v17 = vrot.slane %v462_v60, %v466_v40  ;;  %v19009_v19 = vrot.slane %v462_v60, %v470_v44  ;;  %v19058_v60 = vld [vmem:[%s21259_s9 + $0x100] sm:$0xff]  }
  0xe5   : > { %15180 = vmatprep.mubr.msk.bf16.mxu1 %vm514_vm0, %v1546_v18  ;;  %1861 = vst.msk [vmem:[#allocation2 + $0x100] sm:$0x3] %vm1830_vm4, %v21348_v25  ;;  %1864 = vst.msk [vmem:[#allocation2 + $0x118] sm:$0x3] %vm1830_vm4, %v21348_v25  ;;  %15190 = vmatprep.subr.bf16.mxu1 %v17654_v56 }
  0xe6   : > { %1867 = vst.msk [vmem:[#allocation2 + $0x130] sm:$0x3] %vm1830_vm4, %v21348_v25  ;;  %1870 = vst.msk [vmem:[#allocation2 + $0x148] sm:$0x3] %vm1830_vm4, %v21348_v25 }
  0xe7   : > { %1873 = vst.msk [vmem:[#allocation2 + $0x160] sm:$0x3] %vm1830_vm4, %v21348_v25  ;;  %1876 = vst.msk [vmem:[#allocation2 + $0x178] sm:$0x3] %vm1830_vm4, %v21348_v25  ;;  %v2101_v50 = vld [vmem:[#allocation2 + $0x9] sm:$0xff]  ;;  %15191 = vmatpush3.bf16.msra.mxu1 %v17654_v56 }
  0xe8   : > { %1879 = vst.msk [vmem:[#allocation2 + $0x190] sm:$0x3] %vm1830_vm4, %v21348_v25  ;;  %1882 = vst.msk [vmem:[#allocation2 + $0x1a8] sm:$0x3] %vm1830_vm4, %v21348_v25  ;;  %v2132_v36 = vpack.c.bf16 %v2101_v50, %v2100_v2 }
  0xec   : > { %15181 = vmatmul.mubr.msk.bf16.gmra.mrb[92].mxu1 %vm514_vm0, %v1547_v35 }
  0xed   : > { %15192 = vmatprep.mubr.msk.bf16.mxu1 %vm514_vm0, %v2132_v36 }
  0xfc   : > { %v597_v43 = vpop.f32.mrb[0].mxu1 }
  0xfd   : > { %v598_v42 = vadd.f32 %v597_v43, %v19007_v17  ;;  %v599_v3 = vpop.f32.mrb[1].mxu1 }
  0xfe   : > { %v600_v1 = vadd.f32 %v599_v3, %v19009_v19  ;;  %v601_v47 = vpop.f32.mrb[2].mxu1 }
  0xff   : > { %v756_v46 = vmax.f32 %v598_v42, 0.0  ;;  %v602_v62 = vadd.f32 %v601_v47, %v19007_v17  ;;  %v603_v51 = vpop.f32.mrb[3].mxu1 }
 0x100   : > { %v757_v33 = vmax.f32 %v600_v1, 0.0  ;;  %v604_v39 = vadd.f32 %v603_v51, %v19009_v19 }
 0x101   : > { %v758_v6 = vmax.f32 %v602_v62, 0.0  ;;  %1915 = vrot.lane.b32.xlu0 %v756_v46, %s17845_s13 }
 0x102   : > { %5011 = vst.msk [vmem:[#allocation3 + $0x32] sm:$0xff] %vm514_vm0, %v757_v33  ;;  %v759_v45 = vmax.f32 %v604_v39, 0.0 }
 0x103   : > { %1917 = vrot.lane.b32.xlu1 %v758_v6, %s17845_s13 }
 0x104   : > { %5012 = vst.msk [vmem:[#allocation3 + $0x3a] sm:$0xff] %vm514_vm0, %v759_v45  ;;  %v607_v24 = vpop.f32.mrb[4].mxu1 }
 0x105   : > { %v608_v4 = vadd.f32 %v607_v24, %v19007_v17  ;;  %v609_v0 = vpop.f32.mrb[5].mxu1 }
 0x106   : > { %v610_v38 = vadd.f32 %v609_v0, %v19009_v19  ;;  %v611_v23 = vpop.f32.mrb[6].mxu1 }
 0x107   : > { %v760_v37 = vmax.f32 %v608_v4, 0.0  ;;  %v612_v31 = vadd.f32 %v611_v23, %v19007_v17  ;;  %v613_v11 = vpop.f32.mrb[7].mxu1 }
 0x108   : > { %v761_v20 = vmax.f32 %v610_v38, 0.0  ;;  %v614_v10 = vadd.f32 %v613_v11, %v19009_v19 }
 0x109   : > { %v762_v53 = vmax.f32 %v612_v31, 0.0  ;;  %1919 = vrot.lane.b32.xlu0 %v760_v37, %s17845_s13  ;;  %v6913_v12 = vld [vmem:[#allocation3 + $0x31] sm:$0xff] }
 0x10a   : > { %5013 = vst.msk [vmem:[#allocation3 + $0x4a] sm:$0xff] %vm514_vm0, %v761_v20  ;;  %v763_v54 = vmax.f32 %v614_v10, 0.0 }
 0x10b   : > { %1921 = vrot.lane.b32.xlu1 %v762_v53, %s17845_s13  ;;  %v6914_v28 = vld [vmem:[#allocation3 + $0x39] sm:$0xff] }
 0x10c   : > { %5014 = vst.msk [vmem:[#allocation3 + $0x52] sm:$0xff] %vm514_vm0, %v763_v54  ;;  %v617_v16 = vpop.f32.mrb[8].mxu1  ;;  %v6944_v27 = vpack.c.bf16 %v6914_v28, %v6913_v12 }
 0x10d   : > { %v618_v58 = vadd.f32 %v617_v16, %v19007_v17  ;;  %v619_v57 = vpop.f32.mrb[9].mxu1 }
 0x10e   : > { %v620_v41 = vadd.f32 %v619_v57, %v19009_v19  ;;  %v621_v22 = vpop.f32.mrb[10].mxu1  ;;  %15793 = vmatmul.mubr.msk.bf16.vlgmr.msra.gmra.mrb[0].mxu0 %vm514_vm0, %v6944_v27 }
 0x10f   : > { %v764_v14 = vmax.f32 %v618_v58, 0.0  ;;  %v622_v52 = vadd.f32 %v621_v22, %v19007_v17  ;;  %v623_v63 = vpop.f32.mrb[11].mxu1  ;;  %15825 = vmatpush3.bf16.msra.mxu0 %v18781_v34 }
 0x110   : > { %v765_v13 = vmax.f32 %v620_v41, 0.0  ;;  %v624_v7 = vadd.f32 %v623_v63, %v19009_v19  ;;  %15826 = vmatprep.subr.bf16.mxu0 %v17644_v21 }
 0x111   : > { %v766_v55 = vmax.f32 %v622_v52, 0.0  ;;  %1923 = vrot.lane.b32.xlu0 %v764_v14, %s17845_s13  ;;  %v6915_v59 = vld [vmem:[#allocation3 + $0x49] sm:$0xff] }
 0x112   : > { %5015 = vst.msk [vmem:[#allocation3 + $0x62] sm:$0xff] %vm514_vm0, %v765_v13  ;;  %v767_v49 = vmax.f32 %v624_v7, 0.0 }
 0x113   : > { %1925 = vrot.lane.b32.xlu1 %v766_v55, %s17845_s13  ;;  %v6916_v18 = vld [vmem:[#allocation3 + $0x51] sm:$0xff]  ;;  %15827 = vmatpush3.bf16.msra.mxu0 %v17644_v21 }
 0x114   : > { %5016 = vst.msk [vmem:[#allocation3 + $0x6a] sm:$0xff] %vm514_vm0, %v767_v49  ;;  %v627_v34 = vpop.f32.mrb[12].mxu1  ;;  %v6945_v9 = vpack.c.bf16 %v6916_v18, %v6915_v59  ;;  %15828 = vmatprep.subr.bf16.mxu0 %v17645_v48 }
 0x115   : > { %v628_v5 = vadd.f32 %v627_v34, %v19007_v17  ;;  %v629_v26 = vpop.f32.mrb[13].mxu1 }
 0x116   : > { %v630_v35 = vadd.f32 %v629_v26, %v19009_v19  ;;  %v631_v30 = vpop.f32.mrb[14].mxu1  ;;  %15796 = vmatprep.mubr.msk.bf16.mxu0 %vm514_vm0, %v6945_v9 }
 0x117   : > { %v768_v15 = vmax.f32 %v628_v5, 0.0  ;;  %v632_v29 = vadd.f32 %v631_v30, %v19007_v17  ;;  %v633_v8 = vpop.f32.mrb[15].mxu1  ;;  %15829 = vmatpush3.bf16.msra.mxu0 %v17645_v48 }
 0x118   : > { %v769_v40 = vmax.f32 %v630_v35, 0.0  ;;  %v634_v25 = vadd.f32 %v633_v8, %v19009_v19  ;;  %15830 = vmatprep.subr.bf16.mxu0 %v17646_v32 }
 0x119   : > { %v770_v44 = vmax.f32 %v632_v29, 0.0  ;;  %1927 = vrot.lane.b32.xlu0 %v768_v15, %s17845_s13  ;;  %v6917_v56 = vld [vmem:[#allocation3 + $0x61] sm:$0xff] }
 0x11a   : > { %5017 = vst.msk [vmem:[#allocation3 + $0x7a] sm:$0xff] %vm514_vm0, %v769_v40  ;;  %v771_v61 = vmax.f32 %v634_v25, 0.0  ;;  %v7233_v25 = vld [vmem:[#allocation3 + $0x1a] sm:$0xff] }
 0x11b   : > { %1929 = vrot.lane.b32.xlu1 %v770_v44, %s17845_s13  ;;  %v6918_v43 = vld [vmem:[#allocation3 + $0x69] sm:$0xff]  ;;  %15831 = vmatpush3.bf16.msra.mxu0 %v17646_v32 }
 0x11c   : > { %5018 = vst.msk [vmem:[#allocation3 + $0x82] sm:$0xff] %vm514_vm0, %v771_v61  ;;  %v637_v2 = vpop.f32.mrb[16].mxu1  ;;  %v6946_v50 = vpack.c.bf16 %v6918_v43, %v6917_v56  ;;  %15864 = vmatprep.subr.bf16.mxu0 %v19058_v60  ;;  %v7234_v44 = vld [vmem:[#allocation3 + $0x22] sm:$0xff] }
 0x11d   : > { %v638_v42 = vadd.f32 %v637_v2, %v19007_v17  ;;  %v639_v3 = vpop.f32.mrb[17].mxu1 }
 0x11e   : > { %v640_v36 = vadd.f32 %v639_v3, %v19009_v19  ;;  %v641_v1 = vpop.f32.mrb[18].mxu1  ;;  %15797 = vmatmul.mubr.msk.bf16.gmra.mrb[4].mxu0 %vm514_vm0, %v6946_v50  ;;  %v7265_v50 = vpack.c.bf16 %v7234_v44, %v7233_v25 }
 0x11f   : > { %v772_v47 = vmax.f32 %v638_v42, 0.0  ;;  %v642_v46 = vadd.f32 %v641_v1, %v19007_v17  ;;  %v643_v62 = vpop.f32.mrb[19].mxu1 }
 0x120   : > { %v773_v51 = vmax.f32 %v640_v36, 0.0  ;;  %v644_v33 = vadd.f32 %v643_v62, %v19009_v19 }
 0x121   : > { %v774_v39 = vmax.f32 %v642_v46, 0.0  ;;  %1931 = vrot.lane.b32.xlu0 %v772_v47, %s17845_s13  ;;  %v6919_v45 = vld [vmem:[#allocation3 + $0x79] sm:$0xff] }
 0x122   : > { %5019 = vst.msk [vmem:[#allocation3 + $0x92] sm:$0xff] %vm514_vm0, %v773_v51  ;;  %v775_v6 = vmax.f32 %v644_v33, 0.0 }
 0x123   : > { %1933 = vrot.lane.b32.xlu1 %v774_v39, %s17845_s13  ;;  %v6920_v24 = vld [vmem:[#allocation3 + $0x81] sm:$0xff] }
 0x124   : > { %5020 = vst.msk [vmem:[#allocation3 + $0x9a] sm:$0xff] %vm514_vm0, %v775_v6  ;;  %v647_v4 = vpop.f32.mrb[20].mxu1  ;;  %v6947_v0 = vpack.c.bf16 %v6920_v24, %v6919_v45  ;;  %v7236_v24 = vld [vmem:[#allocation3 + $0x3a] sm:$0xff] }
 0x125   : > { %v648_v38 = vadd.f32 %v647_v4, %v19007_v17  ;;  %v649_v23 = vpop.f32.mrb[21].mxu1 }
 0x126   : > { %v650_v37 = vadd.f32 %v649_v23, %v19009_v19  ;;  %v651_v31 = vpop.f32.mrb[22].mxu1  ;;  %15800 = vmatprep.mubr.msk.bf16.mxu0 %vm514_vm0, %v6947_v0  ;;  %v7238_v0 = vld [vmem:[#allocation3 + $0x52] sm:$0xff] }
 0x127   : > { %v776_v11 = vmax.f32 %v648_v38, 0.0  ;;  %v652_v20 = vadd.f32 %v651_v31, %v19007_v17  ;;  %v653_v10 = vpop.f32.mrb[23].mxu1  ;;  %v7235_v38 = vld [vmem:[#allocation3 + $0x32] sm:$0xff]  ;;  %v7237_v31 = vld [vmem:[#allocation3 + $0x4a] sm:$0xff] }
 0x128   : > { %v777_v53 = vmax.f32 %v650_v37, 0.0  ;;  %v654_v54 = vadd.f32 %v653_v10, %v19009_v19  ;;  %v7266_v37 = vpack.c.bf16 %v7236_v24, %v7235_v38 }
 0x129   : > { %v778_v12 = vmax.f32 %v652_v20, 0.0  ;;  %1935 = vrot.lane.b32.xlu0 %v776_v11, %s17845_s13  ;;  %v6921_v16 = vld [vmem:[#allocation3 + $0x91] sm:$0xff] }
 0x12a   : > { %5021 = vst.msk [vmem:[#allocation3 + $0xaa] sm:$0xff] %vm514_vm0, %v777_v53  ;;  %v779_v28 = vmax.f32 %v654_v54, 0.0  ;;  %v17648_v11 = vld [vmem:[%s21259_s9 + $0x108] sm:$0xff]   ;;  %v7267_v53 = vpack.c.bf16 %v7238_v0, %v7237_v31 }
 0x12b   : > { %1937 = vrot.lane.b32.xlu1 %v778_v12, %s17845_s13  ;;  %v6922_v27 = vld [vmem:[#allocation3 + $0x99] sm:$0xff] }
 0x12c   : > { %5022 = vst.msk [vmem:[#allocation3 + $0xb2] sm:$0xff] %vm514_vm0, %v779_v28  ;;  %v657_v21 = vpop.f32.mrb[24].mxu1  ;;  %v6948_v58 = vpack.c.bf16 %v6922_v27, %v6921_v16  ;;  %v7243_v25 = vld [vmem:[#allocation3 + $0x92] sm:$0xff] }
 0x12d   : > { %v658_v57 = vadd.f32 %v657_v21, %v19007_v17  ;;  %v659_v41 = vpop.f32.mrb[25].mxu1 }
 0x12e   : > { %v660_v22 = vadd.f32 %v659_v41, %v19009_v19  ;;  %v661_v14 = vpop.f32.mrb[26].mxu1  ;;  %15801 = vmatmul.mubr.msk.bf16.gmra.mrb[8].mxu0 %vm514_vm0, %v6948_v58 }
 0x12f   : > { %v780_v52 = vmax.f32 %v658_v57, 0.0  ;;  %v662_v63 = vadd.f32 %v661_v14, %v19007_v17  ;;  %v663_v13 = vpop.f32.mrb[27].mxu1  ;;  %v17649_v57 = vld [vmem:[%s21259_s9 + $0x110] sm:$0xff]  }
 0x130   : > { %v781_v7 = vmax.f32 %v660_v22, 0.0  ;;  %v664_v48 = vadd.f32 %v663_v13, %v19009_v19  ;;  %v7240_v22 = vld [vmem:[#allocation3 + $0x6a] sm:$0xff] }
 0x131   : > { %v782_v55 = vmax.f32 %v662_v63, 0.0  ;;  %1939 = vrot.lane.b32.xlu0 %v780_v52, %s17845_s13  ;;  %v6923_v59 = vld [vmem:[#allocation3 + $0xa9] sm:$0xff] }
 0x132   : > { %5023 = vst.msk [vmem:[#allocation3 + $0xc2] sm:$0xff] %vm514_vm0, %v781_v7  ;;  %v783_v49 = vmax.f32 %v664_v48, 0.0  ;;  %v7242_v52 = vld [vmem:[#allocation3 + $0x82] sm:$0xff]  ;;  %v7241_v7 = vld [vmem:[#allocation3 + $0x7a] sm:$0xff] }
 0x133   : > { %1941 = vrot.lane.b32.xlu1 %v782_v55, %s17845_s13  ;;  %v6924_v18 = vld [vmem:[#allocation3 + $0xb1] sm:$0xff]  ;;  %v17652_v48 = vld [vmem:[%s21259_s9 + $0x118] sm:$0xff]  }
 0x134   : > { %5024 = vst.msk [vmem:[#allocation3 + $0xca] sm:$0xff] %vm514_vm0, %v783_v49  ;;  %v667_v34 = vpop.f32.mrb[28].mxu1  ;;  %v6949_v9 = vpack.c.bf16 %v6924_v18, %v6923_v59  ;;  %v7269_v59 = vpack.c.bf16 %v7242_v52, %v7241_v7 }
 0x135   : > { %v668_v32 = vadd.f32 %v667_v34, %v19007_v17  ;;  %v669_v5 = vpop.f32.mrb[29].mxu1 }
 0x136   : > { %v670_v26 = vadd.f32 %v669_v5, %v19009_v19  ;;  %v671_v35 = vpop.f32.mrb[30].mxu1  ;;  %15804 = vmatprep.mubr.msk.bf16.mxu0 %vm514_vm0, %v6949_v9 }
 0x137   : > { %v784_v30 = vmax.f32 %v668_v32, 0.0  ;;  %v672_v15 = vadd.f32 %v671_v35, %v19007_v17  ;;  %v673_v29 = vpop.f32.mrb[31].mxu1 }
 0x138   : > { %v785_v8 = vmax.f32 %v670_v26, 0.0  ;;  %v674_v40 = vadd.f32 %v673_v29, %v19009_v19  ;;  %v7244_v29 = vld [vmem:[#allocation3 + $0x9a] sm:$0xff] }
 0x139   : > { %v786_v61 = vmax.f32 %v672_v15, 0.0  ;;  %1943 = vrot.lane.b32.xlu0 %v784_v30, %s17845_s13  ;;  %v6925_v43 = vld [vmem:[#allocation3 + $0xc1] sm:$0xff]  ;;  %v19140_v30 = vld [vmem:[%s21259_s9 + $0x120] sm:$0xff]  }
 0x13a   : > { %5025 = vst.msk [vmem:[#allocation3 + $0xda] sm:$0xff] %vm514_vm0, %v785_v8  ;;  %v787_v56 = vmax.f32 %v674_v40, 0.0  ;;  %v7246_v40 = vld [vmem:[#allocation3 + $0xb2] sm:$0xff] }
 0x13b   : > { %1945 = vrot.lane.b32.xlu1 %v786_v61, %s17845_s13  ;;  %v6926_v2 = vld [vmem:[#allocation3 + $0xc9] sm:$0xff]  ;;  %v7270_v61 = vpack.c.bf16 %v7244_v29, %v7243_v25 }
 0x13c   : > { %5026 = vst.msk [vmem:[#allocation3 + $0xe2] sm:$0xff] %vm514_vm0, %v787_v56  ;;  %v677_v42 = vpop.f32.mrb[32].mxu1  ;;  %v6950_v3 = vpack.c.bf16 %v6926_v2, %v6925_v43  ;;  %v7245_v56 = vld [vmem:[#allocation3 + $0xaa] sm:$0xff] }
 0x13d   : > { %v678_v36 = vadd.f32 %v677_v42, %v19007_v17  ;;  %v679_v1 = vpop.f32.mrb[33].mxu1 }
 0x13e   : > { %v680_v47 = vadd.f32 %v679_v1, %v19009_v19  ;;  %v681_v46 = vpop.f32.mrb[34].mxu1  ;;  %15805 = vmatmul.mubr.msk.bf16.gmra.mrb[12].mxu0 %vm514_vm0, %v6950_v3 }
 0x13f   : > { %v788_v62 = vmax.f32 %v678_v36, 0.0  ;;  %v682_v51 = vadd.f32 %v681_v46, %v19007_v17  ;;  %v683_v33 = vpop.f32.mrb[35].mxu1  ;;  %15832 = vmatprep.mubr.msk.bf16.mxu0 %vm514_vm0, %v7265_v50  ;;  %v7271_v50 = vpack.c.bf16 %v7246_v40, %v7245_v56 }
 0x140   : > { %v789_v39 = vmax.f32 %v680_v47, 0.0  ;;  %v684_v6 = vadd.f32 %v683_v33, %v19009_v19  ;;  %v7248_v33 = vld [vmem:[#allocation3 + $0xca] sm:$0xff] }
 0x141   : > { %v790_v45 = vmax.f32 %v682_v51, 0.0  ;;  %1947 = vrot.lane.b32.xlu0 %v788_v62, %s17845_s13  ;;  %v7249_v0 = vld [vmem:[#allocation3 + $0xda] sm:$0xff] }
 0x142   : > { %5027 = vst.msk [vmem:[#allocation3 + $0xf2] sm:$0xff] %vm514_vm0, %v789_v39  ;;  %v791_v4 = vmax.f32 %v684_v6, 0.0 }
 0x143   : > { %1949 = vrot.lane.b32.xlu1 %v790_v45, %s17845_s13  ;;  %v7250_v6 = vld [vmem:[#allocation3 + $0xe2] sm:$0xff] }
 0x144   : > { %5028 = vst.msk [vmem:[#allocation3 + $0xfa] sm:$0xff] %vm514_vm0, %v791_v4  ;;  %v687_v23 = vpop.f32.mrb[36].mxu1  ;;  %v7247_v45 = vld [vmem:[#allocation3 + $0xc2] sm:$0xff] }
 0x145   : > { %v688_v20 = vadd.f32 %v687_v23, %v19007_v17  ;;  %v689_v10 = vpop.f32.mrb[37].mxu1  ;;  %v7272_v4 = vpack.c.bf16 %v7248_v33, %v7247_v45 }
 0x146   : > { %v690_v54 = vadd.f32 %v689_v10, %v19009_v19  ;;  %v691_v12 = vpop.f32.mrb[38].mxu1  ;;  %15833 = vmatmul.mubr.msk.bf16.vlgmr.msra.gmra.mrb[0].mxu0 %vm514_vm0, %v7266_v37  ;;  %v7273_v37 = vpack.c.bf16 %v7250_v6, %v7249_v0 }
 0x147   : > { %v792_v28 = vmax.f32 %v688_v20, 0.0  ;;  %v692_v16 = vadd.f32 %v691_v12, %v19007_v17  ;;  %15865 = vmatpush3.bf16.msra.mxu0 %v19058_v60  ;;  %v693_v27 = vpop.f32.mrb[39].mxu1  ;;  %15836 = vmatprep.mubr.msk.bf16.mxu0 %vm514_vm0, %v7267_v53  ;;  %v7239_v60 = vld [vmem:[#allocation3 + $0x62] sm:$0xff] }
 0x148   : > { %v793_v21 = vmax.f32 %v690_v54, 0.0  ;;  %v694_v58 = vadd.f32 %v693_v27, %v19009_v19  ;;  %15866 = vmatprep.subr.bf16.mxu0 %v17648_v11  ;;  %v7268_v13 = vpack.c.bf16 %v7240_v22, %v7239_v60 }
 0x149   : > { %v794_v41 = vmax.f32 %v692_v16, 0.0  ;;  %1951 = vrot.lane.b32.xlu0 %v792_v28, %s17845_s13 }
 0x14a   : > { %5029 = vst.msk [vmem:[#allocation3 + $0x10a] sm:$0xff] %vm514_vm0, %v793_v21  ;;  %v795_v14 = vmax.f32 %v694_v58, 0.0  ;;  %v7251_v58 = vld [vmem:[#allocation3 + $0xf2] sm:$0xff] }
 0x14b   : > { %1953 = vrot.lane.b32.xlu1 %v794_v41, %s17845_s13  ;;  %15867 = vmatpush3.bf16.msra.mxu0 %v17648_v11  ;;  %v7252_v16 = vld [vmem:[#allocation3 + $0xfa] sm:$0xff] }
 0x14c   : > { %5030 = vst.msk [vmem:[#allocation3 + $0x112] sm:$0xff] %vm514_vm0, %v795_v14  ;;  %v697_v63 = vpop.f32.mrb[40].mxu1  ;;  %15868 = vmatprep.subr.bf16.mxu0 %v17649_v57  ;;  %v7274_v41 = vpack.c.bf16 %v7252_v16, %v7251_v58 }
 0x14d   : > { %v698_v55 = vadd.f32 %v697_v63, %v19007_v17  ;;  %v699_v49 = vpop.f32.mrb[41].mxu1  ;;  %v19171_v63 = vld [vmem:[%s21257_s7] sm:$0xff]  }
 0x14e   : > { %v700_v18 = vadd.f32 %v699_v49, %v19009_v19  ;;  %v701_v34 = vpop.f32.mrb[42].mxu1  ;;  %15837 = vmatmul.mubr.msk.bf16.gmra.mrb[4].mxu0 %vm514_vm0, %v7268_v13  ;;  %15224 = vmatprep.subr.bf16.mxu1 %v19171_v63 }
 0x14f   : > { %v796_v9 = vmax.f32 %v698_v55, 0.0  ;;  %v702_v32 = vadd.f32 %v701_v34, %v19007_v17  ;;  %v703_v5 = vpop.f32.mrb[43].mxu1  ;;  %15840 = vmatprep.mubr.msk.bf16.mxu0 %vm514_vm0, %v7269_v59  ;;  %15869 = vmatpush3.bf16.msra.mxu0 %v17649_v57 }
 0x150   : > { %v797_v26 = vmax.f32 %v700_v18, 0.0  ;;  %v704_v35 = vadd.f32 %v703_v5, %v19009_v19  ;;  %15870 = vmatprep.subr.bf16.mxu0 %v17652_v48 }
 0x151   : > { %v798_v15 = vmax.f32 %v702_v32, 0.0  ;;  %1955 = vrot.lane.b32.xlu0 %v796_v9, %s17845_s13  ;;  %v7253_v22 = vld [vmem:[#allocation3 + $0x10a] sm:$0xff] }
 0x152   : > { %5031 = vst.msk [vmem:[#allocation3 + $0x122] sm:$0xff] %vm514_vm0, %v797_v26  ;;  %v799_v8 = vmax.f32 %v704_v35, 0.0 }
 0x153   : > { %1957 = vrot.lane.b32.xlu1 %v798_v15, %s17845_s13  ;;  %15871 = vmatpush3.bf16.msra.mxu0 %v17652_v48  ;;  %v7254_v21 = vld [vmem:[#allocation3 + $0x112] sm:$0xff] }
 0x154   : > { %5032 = vst.msk [vmem:[#allocation3 + $0x12a] sm:$0xff] %vm514_vm0, %v799_v8  ;;  %v707_v44 = vpop.f32.mrb[44].mxu1  ;;  %15904 = vmatprep.subr.bf16.mxu0 %v19140_v30  ;;  %v7275_v60 = vpack.c.bf16 %v7254_v21, %v7253_v22 }
 0x155   : > { %v708_v43 = vadd.f32 %v707_v44, %v19007_v17  ;;  %v709_v2 = vpop.f32.mrb[45].mxu1 }
 0x156   : > { %v710_v42 = vadd.f32 %v709_v2, %v19009_v19  ;;  %v711_v3 = vpop.f32.mrb[46].mxu1  ;;  %15841 = vmatmul.mubr.msk.bf16.gmra.mrb[8].mxu0 %vm514_vm0, %v7270_v61 }
 0x157   : > { %v800_v36 = vmax.f32 %v708_v43, 0.0  ;;  %v712_v1 = vadd.f32 %v711_v3, %v19007_v17  ;;  %v713_v47 = vpop.f32.mrb[47].mxu1  ;;  %15844 = vmatprep.mubr.msk.bf16.mxu0 %vm514_vm0, %v7271_v50 }
 0x158   : > { %v801_v46 = vmax.f32 %v710_v42, 0.0  ;;  %v714_v62 = vadd.f32 %v713_v47, %v19009_v19 }
 0x159   : > { %v802_v51 = vmax.f32 %v712_v1, 0.0  ;;  %1959 = vrot.lane.b32.xlu0 %v800_v36, %s17845_s13  ;;  %v7255_v26 = vld [vmem:[#allocation3 + $0x122] sm:$0xff] }
 0x15a   : > { %5033 = vst.msk [vmem:[#allocation3 + $0x13a] sm:$0xff] %vm514_vm0, %v801_v46  ;;  %v803_v39 = vmax.f32 %v714_v62, 0.0 }
 0x15b   : > { %1961 = vrot.lane.b32.xlu1 %v802_v51, %s17845_s13  ;;  %v7256_v9 = vld [vmem:[#allocation3 + $0x12a] sm:$0xff] }
 0x15c   : > { %5034 = vst.msk [vmem:[#allocation3 + $0x142] sm:$0xff] %vm514_vm0, %v803_v39  ;;  %v717_v24 = vpop.f32.mrb[48].mxu1  ;;  %v7276_v15 = vpack.c.bf16 %v7256_v9, %v7255_v26  ;;  %v7558_v26 = vld [vmem:[#allocation3 + $0x3b] sm:$0xff] }
 0x15d   : > { %v718_v38 = vadd.f32 %v717_v24, %v19007_v17  ;;  %v719_v23 = vpop.f32.mrb[49].mxu1 }
 0x15e   : > { %v720_v31 = vadd.f32 %v719_v23, %v19009_v19  ;;  %v721_v11 = vpop.f32.mrb[50].mxu1  ;;  %15845 = vmatmul.mubr.msk.bf16.gmra.mrb[12].mxu0 %vm514_vm0, %v7272_v4 }
 0x15f   : > { %v804_v20 = vmax.f32 %v718_v38, 0.0  ;;  %v722_v10 = vadd.f32 %v721_v11, %v19007_v17  ;;  %v723_v53 = vpop.f32.mrb[51].mxu1  ;;  %15848 = vmatprep.mubr.msk.bf16.mxu0 %vm514_vm0, %v7273_v37 }
 0x160   : > { %v805_v54 = vmax.f32 %v720_v31, 0.0  ;;  %v724_v12 = vadd.f32 %v723_v53, %v19009_v19  ;;  %v7556_v53 = vld [vmem:[#allocation3 + $0x23] sm:$0xff] }
 0x161   : > { %v806_v28 = vmax.f32 %v722_v10, 0.0  ;;  %1963 = vrot.lane.b32.xlu0 %v804_v20, %s17845_s13  ;;  %v7257_v29 = vld [vmem:[#allocation3 + $0x13a] sm:$0xff] }
 0x162   : > { %5035 = vst.msk [vmem:[#allocation3 + $0x152] sm:$0xff] %vm514_vm0, %v805_v54  ;;  %v807_v27 = vmax.f32 %v724_v12, 0.0  ;;  %v7555_v10 = vld [vmem:[#allocation3 + $0x1b] sm:$0xff] }
 0x163   : > { %1965 = vrot.lane.b32.xlu1 %v806_v28, %s17845_s13  ;;  %v7258_v5 = vld [vmem:[#allocation3 + $0x142] sm:$0xff]  ;;  %v19213_v28 = vld [vmem:[%s21256_s6] ss:$0 sm:$0xff]  ;;  %v7587_v21 = vpack.c.bf16 %v7556_v53, %v7555_v10 }
 0x164   : > { %5036 = vst.msk [vmem:[#allocation3 + $0x15a] sm:$0xff] %vm514_vm0, %v807_v27  ;;  %v727_v57 = vpop.f32.mrb[52].mxu1  ;;  %v7277_v25 = vpack.c.bf16 %v7258_v5, %v7257_v29  ;;  %v7557_v5 = vld [vmem:[#allocation3 + $0x33] sm:$0xff]  ;;  %v7559_v29 = vld [vmem:[#allocation3 + $0x4b] sm:$0xff] }
 0x165   : > { %v728_v14 = vadd.f32 %v727_v57, %v19007_v17  ;;  %v729_v52 = vpop.f32.mrb[53].mxu1 }
 0x166   : > { %v730_v13 = vadd.f32 %v729_v52, %v19009_v19  ;;  %v731_v7 = vpop.f32.mrb[54].mxu1  ;;  %15849 = vmatmul.mubr.msk.bf16.gmra.mrb[16].mxu0 %vm514_vm0, %v7274_v41 }
 0x167   : > { %v808_v48 = vmax.f32 %v728_v14, 0.0  ;;  %v732_v55 = vadd.f32 %v731_v7, %v19007_v17  ;;  %v733_v49 = vpop.f32.mrb[55].mxu1  ;;  %15852 = vmatprep.mubr.msk.bf16.mxu0 %vm514_vm0, %v7275_v60 }
 0x168   : > { %v809_v59 = vmax.f32 %v730_v13, 0.0  ;;  %v734_v18 = vadd.f32 %v733_v49, %v19009_v19 }
 0x169   : > { %v810_v34 = vmax.f32 %v732_v55, 0.0  ;;  %1967 = vrot.lane.b32.xlu0 %v808_v48, %s17845_s13  ;;  %v7259_v46 = vld [vmem:[#allocation3 + $0x152] sm:$0xff] }
 0x16a   : > { %5037 = vst.msk [vmem:[#allocation3 + $0x16a] sm:$0xff] %vm514_vm0, %v809_v59  ;;  %v811_v32 = vmax.f32 %v734_v18, 0.0  ;;  %v17663_v48 = vld [vmem:[%s21257_s7 + $0x8] sm:$0xff]  }
 0x16b   : > { %1969 = vrot.lane.b32.xlu1 %v810_v34, %s17845_s13  ;;  %v7260_v36 = vld [vmem:[#allocation3 + $0x15a] sm:$0xff] }
 0x16c   : > { %5038 = vst.msk [vmem:[#allocation3 + $0x172] sm:$0xff] %vm514_vm0, %v811_v32  ;;  %v737_v35 = vpop.f32.mrb[56].mxu1  ;;  %v7278_v33 = vpack.c.bf16 %v7260_v36, %v7259_v46 }
 0x16d   : > { %v738_v8 = vadd.f32 %v737_v35, %v19007_v17  ;;  %v739_v40 = vpop.f32.mrb[57].mxu1 }
 0x16e   : > { %v740_v44 = vadd.f32 %v739_v40, %v19009_v19  ;;  %v741_v61 = vpop.f32.mrb[58].mxu1  ;;  %15853 = vmatmul.mubr.msk.bf16.gmra.mrb[20].mxu0 %vm514_vm0, %v7276_v15  ;;  %v17664_v40 = vld [vmem:[%s21257_s7 + $0x10] sm:$0xff]  }
 0x16f   : > { %v812_v56 = vmax.f32 %v738_v8, 0.0  ;;  %v742_v43 = vadd.f32 %v741_v61, %v19007_v17  ;;  %v743_v2 = vpop.f32.mrb[59].mxu1  ;;  %15856 = vmatprep.mubr.msk.bf16.mxu0 %vm514_vm0, %v7277_v25  ;;  %v7560_v8 = vld [vmem:[#allocation3 + $0x53] sm:$0xff] }
 0x170   : > { %v813_v50 = vmax.f32 %v740_v44, 0.0  ;;  %v744_v42 = vadd.f32 %v743_v2, %v19009_v19 }
 0x171   : > { %v814_v3 = vmax.f32 %v742_v43, 0.0  ;;  %1971 = vrot.lane.b32.xlu0 %v812_v56, %s17845_s13  ;;  %v7261_v62 = vld [vmem:[#allocation3 + $0x16a] sm:$0xff]  ;;  %v7588_v56 = vpack.c.bf16 %v7558_v26, %v7557_v5  ;;  %v17656_v43 = vld [vmem:[%s21259_s9 + $0x128] sm:$0xff]  }
 0x172   : > { %5039 = vst.msk [vmem:[#allocation3 + $0x182] sm:$0xff] %vm514_vm0, %v813_v50  ;;  %v815_v1 = vmax.f32 %v744_v42, 0.0 }
 0x173   : > { %1973 = vrot.lane.b32.xlu1 %v814_v3, %s17845_s13  ;;  %v19192_v47 = vpop.permute.xlu0 %1915  ;;  %v7262_v51 = vld [vmem:[#allocation3 + $0x172] sm:$0xff]  ;;  %v7589_v3 = vpack.c.bf16 %v7560_v8, %v7559_v29 }
 0x174   : > { %5040 = vst.msk [vmem:[#allocation3 + $0x18a] sm:$0xff] %vm514_vm0, %v815_v1  ;;  %2012 = vst.msk [vmem:[#allocation2 + $0x19] sm:$0xff] %vm514_vm0, %v19192_v47  ;;  %v7279_v39 = vpack.c.bf16 %v7262_v51, %v7261_v62  ;;  %v747_v6 = vpop.f32.mrb[60].mxu1  ;;  %v17665_v51 = vld [vmem:[%s21257_s7 + $0x18] sm:$0xff]  }
 0x175   : > { %v19197_v45 = vpop.permute.xlu1 %1917  ;;  %v748_v24 = vadd.f32 %v747_v6, %v19007_v17  ;;  %v749_v4 = vpop.f32.mrb[61].mxu1 }
 0x176   : > { %2013 = vst.msk [vmem:[#allocation2 + $0x21] sm:$0xff] %vm514_vm0, %v19197_v45  ;;  %15857 = vmatmul.mubr.msk.bf16.gmra.mrb[24].mxu0 %vm514_vm0, %v7278_v33  ;;  %v750_v0 = vadd.f32 %v749_v4, %v19009_v19  ;;  %v751_v38 = vpop.f32.mrb[62].mxu1  ;;  %v17657_v4 = vld [vmem:[%s21259_s9 + $0x130] sm:$0xff]  }
 0x177   : > { %15860 = vmatprep.mubr.msk.bf16.mxu0 %vm514_vm0, %v7279_v39  ;;  %v816_v23 = vmax.f32 %v748_v24, 0.0  ;;  %v752_v37 = vadd.f32 %v751_v38, %v19007_v17  ;;  %v753_v31 = vpop.f32.mrb[63].mxu1  ;;  %v7562_v38 = vld [vmem:[#allocation3 + $0x6b] sm:$0xff] }
 0x178   : > { %v817_v11 = vmax.f32 %v750_v0, 0.0  ;;  %v754_v20 = vadd.f32 %v753_v31, %v19009_v19  ;;  %v7561_v0 = vld [vmem:[#allocation3 + $0x63] sm:$0xff]  ;;  %v7563_v31 = vld [vmem:[#allocation3 + $0x7b] sm:$0xff] }
 0x179   : > { %v818_v54 = vmax.f32 %v752_v37, 0.0  ;;  %1975 = vrot.lane.b32.xlu0 %v816_v23, %s17845_s13  ;;  %v7263_v16 = vld [vmem:[#allocation3 + $0x182] sm:$0xff] }
 0x17a   : > { %5041 = vst.msk [vmem:[#allocation3 + $0x19a] sm:$0xff] %vm514_vm0, %v817_v11  ;;  %v819_v12 = vmax.f32 %v754_v20, 0.0  ;;  %v7564_v11 = vld [vmem:[#allocation3 + $0x83] sm:$0xff] }
 0x17b   : > { %v1920_v17 = vpop.permute.xlu0 %1919  ;;  %v7264_v27 = vld [vmem:[#allocation3 + $0x18a] sm:$0xff]  ;;  %1977 = vrot.lane.b32.xlu1 %v818_v54, %s17845_s13 }
 0x17c   : > { %5042 = vst.msk [vmem:[#allocation3 + $0x1a2] sm:$0xff] %vm514_vm0, %v819_v12  ;;  %2014 = vst.msk [vmem:[#allocation2 + $0x31] sm:$0xff] %vm514_vm0, %v1920_v17  ;;  %v15154_v19 = vpop.f32.mrb[64].mxu1  ;;  %v7280_v58 = vpack.c.bf16 %v7264_v27, %v7263_v16  ;;  %v2102_v14 = vld [vmem:[#allocation2 + $0x19] sm:$0xff]  ;;  %v7590_v12 = vpack.c.bf16 %v7562_v38, %v7561_v0 }
 0x17d   : > { %v1678_v57 = vadd.f32 %v15154_v19, %v19213_v28  ;;  %v1669_v41 = vpop.f32.mrb[65].mxu1  ;;  %v1922_v22 = vpop.permute.xlu1 %1921  ;;  %v2103_v52 = vld [vmem:[#allocation2 + $0x21] sm:$0xff] }
 0x17e   : > { %v1670_v60 = vadd.f32 %v19213_v28, %v1669_v41  ;;  %2015 = vst.msk [vmem:[#allocation2 + $0x39] sm:$0xff] %vm514_vm0, %v1922_v22  ;;  %v15155_v13 = vpop.f32.mrb[66].mxu1  ;;  %15861 = vmatmul.mubr.msk.bf16.gmra.mrb[28].mxu0 %vm514_vm0, %v7280_v58  ;;  %v2133_v7 = vpack.c.bf16 %v2103_v52, %v2102_v14 }
 0x17f   : > { %v1798_v55 = vmax.f32 %v1678_v57, 0.0  ;;  %v1681_v49 = vadd.f32 %v15155_v13, %v19213_v28  ;;  %v1672_v59 = vpop.f32.mrb[67].mxu1  ;;  %15872 = vmatprep.mubr.msk.bf16.mxu0 %vm514_vm0, %v7587_v21  ;;  %v7591_v21 = vpack.c.bf16 %v7564_v11, %v7563_v31  ;;  %v7573_v31 = vld [vmem:[#allocation3 + $0xf3] sm:$0xff]  ;;  %v7574_v11 = vld [vmem:[#allocation3 + $0xfb] sm:$0xff] }
 0x180   : > { %v1796_v18 = vmax.f32 %v1670_v60, 0.0  ;;  %v1673_v34 = vadd.f32 %v19213_v28, %v1672_v59  ;;  %15193 = vmatmul.mubr.msk.bf16.vlgmr.msra.gmra.mrb[96].mxu1 %vm514_vm0, %v2133_v7  ;;  %v19287_v7 = vld [vmem:[%s21259_s9 + $0x140] sm:$0xff]  }
 0x181   : > { %v13232_v9 = vsel %vm514_vm0, %v1798_v55, %v1920_v17  ;;  %v1799_v32 = vmax.f32 %v1681_v49, 0.0  ;;  %15225 = vmatpush3.bf16.msra.mxu1 %v19171_v63  ;;  %v17658_v17 = vld [vmem:[%s21259_s9 + $0x138] sm:$0xff]   ;;  %v7566_v55 = vld [vmem:[#allocation3 + $0x9b] sm:$0xff] }
 0x182   : > { %13298 = vst [vmem:[%s19233_s22 + $0x20] sm:$0xff] %v13232_v9  ;;  %v13230_v35 = vsel %vm514_vm0, %v1796_v18, %v19192_v47  ;;  %v1797_v15 = vmax.f32 %v1673_v34, 0.0  ;;  %15226 = vmatprep.subr.bf16.mxu1 %v17663_v48  ;;  %v7567_v59 = vld [vmem:[#allocation3 + $0xab] sm:$0xff]  ;;  %v7568_v18 = vld [vmem:[#allocation3 + $0xb3] sm:$0xff] }
 0x183   : > { %13294 = vst [vmem:[%s19233_s22] sm:$0xff] %v13230_v35  ;;  %v13233_v63 = vsel %vm514_vm0, %v1799_v32, %v1922_v22  ;;  %v1924_v25 = vpop.permute.xlu0 %1923  ;;  %v2104_v36 = vld [vmem:[#allocation2 + $0x31] sm:$0xff] }
 0x184   : > { %13300 = vst [vmem:[%s19233_s22 + $0x30] sm:$0xff] %v13233_v63  ;;  %v13231_v44 = vsel %vm514_vm0, %v1797_v15, %v19197_v45  ;;  %2016 = vst.msk [vmem:[#allocation2 + $0x49] sm:$0xff] %vm514_vm0, %v1924_v25  ;;  %v7593_v15 = vpack.c.bf16 %v7568_v18, %v7567_v59 }
 0x185   : > { %13296 = vst [vmem:[%s19233_s22 + $0x10] sm:$0xff] %v13231_v44  ;;  %v1926_v42 = vpop.permute.xlu1 %1925  ;;  %v2105_v1 = vld [vmem:[#allocation2 + $0x39] sm:$0xff]  ;;  %15227 = vmatpush3.bf16.msra.mxu1 %v17663_v48  ;;  %v7565_v48 = vld [vmem:[#allocation3 + $0x93] sm:$0xff] }
 0x186   : > { %2017 = vst.msk [vmem:[#allocation2 + $0x51] sm:$0xff] %vm514_vm0, %v1926_v42  ;;  %15873 = vmatmul.mubr.msk.bf16.vlgmr.msra.gmra.mrb[0].mxu0 %vm514_vm0, %v7588_v56  ;;  %v2134_v62 = vpack.c.bf16 %v2105_v1, %v2104_v36  ;;  %15228 = vmatprep.subr.bf16.mxu1 %v17664_v40  ;;  %v7592_v5 = vpack.c.bf16 %v7566_v55, %v7565_v48  ;;  %v7572_v36 = vld [vmem:[#allocation3 + $0xe3] sm:$0xff] }
 0x187   : > { %15905 = vmatpush3.bf16.msra.mxu0 %v19140_v30  ;;  %15876 = vmatprep.mubr.msk.bf16.mxu0 %vm514_vm0, %v7589_v3  ;;  %v7571_v3 = vld [vmem:[#allocation3 + $0xdb] sm:$0xff] }
 0x188   : > { %15196 = vmatprep.mubr.msk.bf16.mxu1 %vm514_vm0, %v2134_v62  ;;  %15906 = vmatprep.subr.bf16.mxu0 %v17656_v43 }
 0x189   : > { %v15158_v61 = vpop.f32.mrb[68].mxu1  ;;  %15229 = vmatpush3.bf16.msra.mxu1 %v17664_v40 }
 0x18a   : > { %v1694_v2 = vadd.f32 %v15158_v61, %v19213_v28  ;;  %v1685_v50 = vpop.f32.mrb[69].mxu1  ;;  %15230 = vmatprep.subr.bf16.mxu1 %v17665_v51 }
 0x18b   : > { %v1686_v47 = vadd.f32 %v19213_v28, %v1685_v50  ;;  %v15159_v46 = vpop.f32.mrb[70].mxu1  ;;  %v1928_v20 = vpop.permute.xlu0 %1927  ;;  %15907 = vmatpush3.bf16.msra.mxu0 %v17656_v43  ;;  %v2106_v19 = vld [vmem:[#allocation2 + $0x49] sm:$0xff]  ;;  %v7570_v50 = vld [vmem:[#allocation3 + $0xcb] sm:$0xff] }
 0x18c   : > { %v1697_v33 = vadd.f32 %v15159_v46, %v19213_v28  ;;  %v1688_v39 = vpop.f32.mrb[71].mxu1  ;;  %v1802_v6 = vmax.f32 %v1694_v2, 0.0  ;;  %2018 = vst.msk [vmem:[#allocation2 + $0x61] sm:$0xff] %vm514_vm0, %v1928_v20  ;;  %15908 = vmatprep.subr.bf16.mxu0 %v17657_v4  ;;  %v7569_v2 = vld [vmem:[#allocation3 + $0xc3] sm:$0xff] }
 0x18d   : > { %v1800_v45 = vmax.f32 %v1686_v47, 0.0  ;;  %v1689_v24 = vadd.f32 %v19213_v28, %v1688_v39  ;;  %v1930_v16 = vpop.permute.xlu1 %1929  ;;  %v2107_v58 = vld [vmem:[#allocation2 + $0x51] sm:$0xff]  ;;  %15231 = vmatpush3.bf16.msra.mxu1 %v17665_v51  ;;  %v7594_v46 = vpack.c.bf16 %v7570_v50, %v7569_v2  ;;  %v7595_v39 = vpack.c.bf16 %v7572_v36, %v7571_v3 }
 0x18e   : > { %v1803_v23 = vmax.f32 %v1697_v33, 0.0  ;;  %v13236_v53 = vsel %vm514_vm0, %v1802_v6, %v1928_v20  ;;  %2019 = vst.msk [vmem:[#allocation2 + $0x69] sm:$0xff] %vm514_vm0, %v1930_v16  ;;  %15877 = vmatmul.mubr.msk.bf16.gmra.mrb[4].mxu0 %vm514_vm0, %v7590_v12  ;;  %v2135_v14 = vpack.c.bf16 %v2107_v58, %v2106_v19  ;;  %v19319_v20 = vld [vmem:[%s21257_s7 + $0x40] sm:$0xff]  }
 0x18f   : > { %v13234_v30 = vsel %vm514_vm0, %v1800_v45, %v1924_v25  ;;  %v1801_v37 = vmax.f32 %v1689_v24, 0.0  ;;  %13306 = vst [vmem:[%s19233_s22 + $0x60] sm:$0xff] %v13236_v53  ;;  %15880 = vmatprep.mubr.msk.bf16.mxu0 %vm514_vm0, %v7591_v21  ;;  %15909 = vmatpush3.bf16.msra.mxu0 %v17657_v4  ;;  %v7575_v53 = vld [vmem:[#allocation3 + $0x10b] sm:$0xff] }
 0x190   : > { %13302 = vst [vmem:[%s19233_s22 + $0x40] sm:$0xff] %v13234_v30  ;;  %v13237_v57 = vsel %vm514_vm0, %v1803_v23, %v1930_v16  ;;  %15197 = vmatmul.mubr.msk.bf16.gmra.mrb[100].mxu1 %vm514_vm0, %v2135_v14  ;;  %15910 = vmatprep.subr.bf16.mxu0 %v17658_v17 }
 0x191   : > { %v13235_v10 = vsel %vm514_vm0, %v1801_v37, %v1926_v42  ;;  %13308 = vst [vmem:[%s19233_s22 + $0x70] sm:$0xff] %v13237_v57  ;;  %15264 = vmatprep.subr.bf16.mxu1 %v19319_v20 }
 0x192   : > { %13304 = vst [vmem:[%s19233_s22 + $0x50] sm:$0xff] %v13235_v10 }
 0x193   : > { %v1932_v34 = vpop.permute.xlu0 %1931  ;;  %15911 = vmatpush3.bf16.msra.mxu0 %v17658_v17  ;;  %v2108_v29 = vld [vmem:[#allocation2 + $0x61] sm:$0xff] }
 0x194   : > { %2020 = vst.msk [vmem:[#allocation2 + $0x79] sm:$0xff] %vm514_vm0, %v1932_v34  ;;  %15944 = vmatprep.subr.bf16.mxu0 %v19287_v7 }
 0x195   : > { %v1934_v35 = vpop.permute.xlu1 %1933  ;;  %v2109_v8 = vld [vmem:[#allocation2 + $0x69] sm:$0xff] }
 0x196   : > { %v15162_v54 = vpop.f32.mrb[72].mxu1  ;;  %2021 = vst.msk [vmem:[#allocation2 + $0x81] sm:$0xff] %vm514_vm0, %v1934_v35  ;;  %15881 = vmatmul.mubr.msk.bf16.gmra.mrb[8].mxu0 %vm514_vm0, %v7592_v5  ;;  %v2136_v44 = vpack.c.bf16 %v2109_v8, %v2108_v29 }
 0x197   : > { %v1701_v27 = vpop.f32.mrb[73].mxu1  ;;  %v1710_v9 = vadd.f32 %v15162_v54, %v19213_v28  ;;  %15884 = vmatprep.mubr.msk.bf16.mxu0 %vm514_vm0, %v7593_v15  ;;  %v7576_v54 = vld [vmem:[#allocation3 + $0x113] sm:$0xff] }
 0x198   : > { %v1702_v41 = vadd.f32 %v19213_v28, %v1701_v27  ;;  %v15163_v22 = vpop.f32.mrb[74].mxu1  ;;  %15200 = vmatprep.mubr.msk.bf16.mxu1 %vm514_vm0, %v2136_v44  ;;  %v7596_v27 = vpack.c.bf16 %v7574_v11, %v7573_v31  ;;  %v7597_v58 = vpack.c.bf16 %v7576_v54, %v7575_v53 }
 0x199   : > { %v1704_v52 = vpop.f32.mrb[75].mxu1  ;;  %v1713_v63 = vadd.f32 %v15163_v22, %v19213_v28  ;;  %v1806_v43 = vmax.f32 %v1710_v9, 0.0  ;;  %v7577_v9 = vld [vmem:[#allocation3 + $0x123] sm:$0xff] }
 0x19a   : > { %v1804_v60 = vmax.f32 %v1702_v41, 0.0  ;;  %v1705_v13 = vadd.f32 %v19213_v28, %v1704_v52 }
 0x19b   : > { %v1807_v42 = vmax.f32 %v1713_v63, 0.0  ;;  %v1936_v1 = vpop.permute.xlu0 %1935  ;;  %v2110_v6 = vld [vmem:[#allocation2 + $0x79] sm:$0xff] }
 0x19c   : > { %v1805_v49 = vmax.f32 %v1705_v13, 0.0  ;;  %v13238_v32 = vsel %vm514_vm0, %v1804_v60, %v1932_v34  ;;  %2022 = vst.msk [vmem:[#allocation2 + $0x91] sm:$0xff] %vm514_vm0, %v1936_v1  ;;  %v13240_v47 = vsel %vm514_vm0, %v1806_v43, %v1936_v1 }
 0x19d   : > { %13310 = vst [vmem:[%s19233_s22 + $0x80] sm:$0xff] %v13238_v32  ;;  %13314 = vst [vmem:[%s19233_s22 + $0xa0] sm:$0xff] %v13240_v47  ;;  %v1938_v33 = vpop.permute.xlu1 %1937  ;;  %v2111_v45 = vld [vmem:[#allocation2 + $0x81] sm:$0xff] }
 0x19e   : > { %v13239_v25 = vsel %vm514_vm0, %v1805_v49, %v1934_v35  ;;  %2023 = vst.msk [vmem:[#allocation2 + $0x99] sm:$0xff] %vm514_vm0, %v1938_v33  ;;  %v13241_v4 = vsel %vm514_vm0, %v1807_v42, %v1938_v33  ;;  %15885 = vmatmul.mubr.msk.bf16.gmra.mrb[12].mxu0 %vm514_vm0, %v7594_v46  ;;  %v2137_v0 = vpack.c.bf16 %v2111_v45, %v2110_v6  ;;  %v7578_v32 = vld [vmem:[#allocation3 + $0x12b] sm:$0xff]  ;;  %v7580_v35 = vld [vmem:[#allocation3 + $0x143] sm:$0xff]  ;;  %v7582_v6 = vld [vmem:[#allocation3 + $0x15b] sm:$0xff] }
 0x19f   : > { %v15166_v26 = vpop.f32.mrb[76].mxu1  ;;  %13312 = vst [vmem:[%s19233_s22 + $0x90] sm:$0xff] %v13239_v25  ;;  %13316 = vst [vmem:[%s19233_s22 + $0xb0] sm:$0xff] %v13241_v4  ;;  %15888 = vmatprep.mubr.msk.bf16.mxu0 %vm514_vm0, %v7595_v39  ;;  %v7598_v8 = vpack.c.bf16 %v7578_v32, %v7577_v9  ;;  %v7581_v39 = vld [vmem:[#allocation3 + $0x153] sm:$0xff] }
 0x1a0   : > { %v1717_v40 = vpop.f32.mrb[77].mxu1  ;;  %15201 = vmatmul.mubr.msk.bf16.gmra.mrb[104].mxu1 %vm514_vm0, %v2137_v0  ;;  %v1726_v17 = vadd.f32 %v15166_v26, %v19213_v28  ;;  %v7579_v26 = vld [vmem:[#allocation3 + $0x13b] sm:$0xff]  ;;  %v7584_v4 = vld [vmem:[#allocation3 + $0x173] sm:$0xff] }
 0x1a1   : > { %v15167_v61 = vpop.f32.mrb[78].mxu1  ;;  %v1718_v62 = vadd.f32 %v19213_v28, %v1717_v40  ;;  %v7599_v44 = vpack.c.bf16 %v7580_v35, %v7579_v26 }
 0x1a2   : > { %v1720_v56 = vpop.f32.mrb[79].mxu1  ;;  %v1729_v52 = vadd.f32 %v15167_v61, %v19213_v28  ;;  %v1810_v18 = vmax.f32 %v1726_v17, 0.0 }
 0x1a3   : > { %v1721_v38 = vadd.f32 %v19213_v28, %v1720_v56  ;;  %v1808_v37 = vmax.f32 %v1718_v62, 0.0  ;;  %v1940_v12 = vpop.permute.xlu0 %1939  ;;  %v2112_v57 = vld [vmem:[#allocation2 + $0x91] sm:$0xff] }
 0x1a4   : > { %2024 = vst.msk [vmem:[#allocation2 + $0xa9] sm:$0xff] %vm514_vm0, %v1940_v12  ;;  %v1811_v5 = vmax.f32 %v1729_v52, 0.0 }
 0x1a5   : > { %v1809_v10 = vmax.f32 %v1721_v38, 0.0  ;;  %v13242_v16 = vsel %vm514_vm0, %v1808_v37, %v1940_v12  ;;  %v1942_v19 = vpop.permute.xlu1 %1941  ;;  %v2113_v41 = vld [vmem:[#allocation2 + $0x99] sm:$0xff]  ;;  %v7600_v37 = vpack.c.bf16 %v7582_v6, %v7581_v39  ;;  %v17662_v39 = vld [vmem:[%s21259_s9 + $0x150] sm:$0xff]  }
 0x1a6   : > { %13318 = vst [vmem:[%s19233_s22 + $0xc0] sm:$0xff] %v13242_v16  ;;  %2025 = vst.msk [vmem:[#allocation2 + $0xb1] sm:$0xff] %vm514_vm0, %v1942_v19  ;;  %15889 = vmatmul.mubr.msk.bf16.gmra.mrb[16].mxu0 %vm514_vm0, %v7596_v27  ;;  %v2138_v13 = vpack.c.bf16 %v2113_v41, %v2112_v57  ;;  %v7877_v41 = vld [vmem:[#allocation3 + $0x1c] sm:$0xff]  ;;  %v7883_v6 = vld [vmem:[#allocation3 + $0x64] sm:$0xff] }
 0x1a7   : > { %v19304_v51 = vpop.f32.mrb[80].mxu1  ;;  %v13243_v60 = vsel %vm514_vm0, %v1809_v10, %v1942_v19  ;;  %15892 = vmatprep.mubr.msk.bf16.mxu0 %vm514_vm0, %v7597_v58 }
 0x1a8   : > { %v1733_v24 = vpop.f32.mrb[81].mxu1  ;;  %13320 = vst [vmem:[%s19233_s22 + $0xd0] sm:$0xff] %v13243_v60  ;;  %15204 = vmatprep.mubr.msk.bf16.mxu1 %vm514_vm0, %v2138_v13  ;;  %v1742_v38 = vadd.f32 %v19304_v51, %v19213_v28  ;;  %v7585_v60 = vld [vmem:[#allocation3 + $0x183] sm:$0xff]  ;;  %v7586_v13 = vld [vmem:[#allocation3 + $0x18b] sm:$0xff] }
 0x1a9   : > { %v19311_v30 = vpop.f32.mrb[82].mxu1  ;;  %v1734_v40 = vadd.f32 %v19213_v28, %v1733_v24  ;;  %v7583_v24 = vld [vmem:[#allocation3 + $0x16b] sm:$0xff]  ;;  %v7602_v32 = vpack.c.bf16 %v7586_v13, %v7585_v60 }
 0x1aa   : > { %v1736_v23 = vpop.f32.mrb[83].mxu1  ;;  %v7601_v10 = vpack.c.bf16 %v7584_v4, %v7583_v24  ;;  %v1745_v16 = vadd.f32 %v19311_v30, %v19213_v28  ;;  %v1814_v30 = vmax.f32 %v1742_v38, 0.0  ;;  %v7885_v4 = vld [vmem:[#allocation3 + $0x7c] sm:$0xff] }
 0x1ab   : > { %v1944_v15 = vpop.permute.xlu0 %1943  ;;  %v2114_v61 = vld [vmem:[#allocation2 + $0xa9] sm:$0xff]  ;;  %v1737_v3 = vadd.f32 %v19213_v28, %v1736_v23  ;;  %v1812_v62 = vmax.f32 %v1734_v40, 0.0 }
 0x1ac   : > { %2026 = vst.msk [vmem:[#allocation2 + $0xc1] sm:$0xff] %vm514_vm0, %v1944_v15  ;;  %v13244_v29 = vsel %vm514_vm0, %v1810_v18, %v1944_v15  ;;  %v7880_v40 = vld [vmem:[#allocation3 + $0x3c] sm:$0xff] }
 0x1ad   : > { %13322 = vst [vmem:[%s19233_s22 + $0xe0] sm:$0xff] %v13244_v29  ;;  %v1946_v25 = vpop.permute.xlu1 %1945  ;;  %v2115_v56 = vld [vmem:[#allocation2 + $0xb1] sm:$0xff]  ;;  %v1813_v45 = vmax.f32 %v1737_v3, 0.0 }
 0x1ae   : > { %2027 = vst.msk [vmem:[#allocation2 + $0xc9] sm:$0xff] %vm514_vm0, %v1946_v25  ;;  %v13245_v50 = vsel %vm514_vm0, %v1811_v5, %v1946_v25  ;;  %15893 = vmatmul.mubr.msk.bf16.gmra.mrb[20].mxu0 %vm514_vm0, %v7598_v8  ;;  %v2139_v42 = vpack.c.bf16 %v2115_v56, %v2114_v61  ;;  %v7879_v8 = vld [vmem:[#allocation3 + $0x34] sm:$0xff]  ;;  %v7881_v25 = vld [vmem:[#allocation3 + $0x4c] sm:$0xff] }
 0x1af   : > { %v15174_v21 = vpop.f32.mrb[84].mxu1  ;;  %13324 = vst [vmem:[%s19233_s22 + $0xf0] sm:$0xff] %v13245_v50  ;;  %15896 = vmatprep.mubr.msk.bf16.mxu0 %vm514_vm0, %v7599_v44  ;;  %v7882_v44 = vld [vmem:[#allocation3 + $0x54] sm:$0xff] }
 0x1b0   : > { %v19327_v22 = vadd.f32 %v15174_v21, %v19213_v28  ;;  %v1749_v14 = vpop.f32.mrb[85].mxu1  ;;  %15205 = vmatmul.mubr.msk.bf16.gmra.mrb[108].mxu1 %vm514_vm0, %v2139_v42  ;;  %v17660_v50 = vld [vmem:[%s21259_s9 + $0x148] sm:$0xff]   ;;  %v7911_v42 = vpack.c.bf16 %v7882_v44, %v7881_v25 }
 0x1b1   : > { %v19334_v48 = vadd.f32 %v19213_v28, %v1749_v14  ;;  %v15175_v55 = vpop.f32.mrb[86].mxu1  ;;  %v7878_v14 = vld [vmem:[#allocation3 + $0x24] sm:$0xff] }
 0x1b2   : > { %v19339_v49 = vadd.f32 %v15175_v55, %v19213_v28  ;;  %v1752_v59 = vpop.f32.mrb[87].mxu1  ;;  %v1815_v55 = vmax.f32 %v1745_v16, 0.0  ;;  %v7909_v18 = vpack.c.bf16 %v7878_v14, %v7877_v41  ;;  %v7887_v16 = vld [vmem:[#allocation3 + $0x94] sm:$0xff] }
 0x1b3   : > { %v19343_v34 = vadd.f32 %v19213_v28, %v1752_v59  ;;  %v1948_v0 = vpop.permute.xlu0 %1947  ;;  %v2116_v53 = vld [vmem:[#allocation2 + $0xc1] sm:$0xff]  ;;  %v1816_v29 = vmax.f32 %v19334_v48, 0.0 }
 0x1b4   : > { %2028 = vst.msk [vmem:[#allocation2 + $0xd9] sm:$0xff] %vm514_vm0, %v1948_v0  ;;  %v13246_v23 = vsel %vm514_vm0, %v1812_v62, %v1948_v0  ;;  %v1818_v62 = vmax.f32 %v19327_v22, 0.0  ;;  %v1819_v24 = vmax.f32 %v19339_v49, 0.0  ;;  %v7886_v0 = vld [vmem:[#allocation3 + $0x84] sm:$0xff] }
 0x1b5   : > { %13326 = vst [vmem:[%s19233_s22 + $0x100] sm:$0xff] %v13246_v23  ;;  %v1950_v11 = vpop.permute.xlu1 %1949  ;;  %v2117_v54 = vld [vmem:[#allocation2 + $0xc9] sm:$0xff]  ;;  %v17666_v23 = vld [vmem:[%s21259_s9 + $0x158] sm:$0xff]  }
 0x1b6   : > { %2029 = vst.msk [vmem:[#allocation2 + $0xe1] sm:$0xff] %vm514_vm0, %v1950_v11  ;;  %v13247_v51 = vsel %vm514_vm0, %v1813_v45, %v1950_v11  ;;  %15897 = vmatmul.mubr.msk.bf16.gmra.mrb[24].mxu0 %vm514_vm0, %v7600_v37  ;;  %v2140_v27 = vpack.c.bf16 %v2117_v54, %v2116_v53  ;;  %v7884_v45 = vld [vmem:[#allocation3 + $0x6c] sm:$0xff] }
 0x1b7   : > { %v15178_v63 = vpop.f32.mrb[88].mxu1  ;;  %13328 = vst [vmem:[%s19233_s22 + $0x110] sm:$0xff] %v13247_v51  ;;  %15900 = vmatprep.mubr.msk.bf16.mxu0 %vm514_vm0, %v7601_v10  ;;  %v7912_v22 = vpack.c.bf16 %v7884_v45, %v7883_v6  ;;  %v7888_v51 = vld [vmem:[#allocation3 + $0x9c] sm:$0xff]  ;;  %v7899_v6 = vld [vmem:[#allocation3 + $0x124] sm:$0xff]  ;;  %v7900_v45 = vld [vmem:[#allocation3 + $0x12c] sm:$0xff] }
 0x1b8   : > { %v19350_v43 = vadd.f32 %v15178_v63, %v19213_v28  ;;  %v1765_v2 = vpop.f32.mrb[89].mxu1  ;;  %15208 = vmatprep.mubr.msk.bf16.mxu1 %vm514_vm0, %v2140_v27  ;;  %v1817_v63 = vmax.f32 %v19343_v34, 0.0  ;;  %v7914_v41 = vpack.c.bf16 %v7888_v51, %v7887_v16  ;;  %v2047_v51 = vld [vmem:[#allocation2 + $0x20] sm:$0xff] }
 0x1b9   : > { %v19357_v36 = vadd.f32 %v19213_v28, %v1765_v2  ;;  %v15179_v1 = vpop.f32.mrb[90].mxu1  ;;  %v7910_v2 = vpack.c.bf16 %v7880_v40, %v7879_v8 }
 0x1ba   : > { %v19362_v47 = vadd.f32 %v15179_v1, %v19213_v28  ;;  %v1768_v46 = vpop.f32.mrb[91].mxu1 }
 0x1bb   : > { %v19366_v33 = vadd.f32 %v19213_v28, %v1768_v46  ;;  %v1952_v59 = vpop.permute.xlu0 %1951  ;;  %v2118_v26 = vld [vmem:[#allocation2 + $0xd9] sm:$0xff]  ;;  %v1820_v54 = vmax.f32 %v19357_v36, 0.0 }
 0x1bc   : > { %2030 = vst.msk [vmem:[#allocation2 + $0xf1] sm:$0xff] %vm514_vm0, %v1952_v59  ;;  %v13248_v9 = vsel %vm514_vm0, %v1814_v30, %v1952_v59 }
 0x1bd   : > { %13330 = vst [vmem:[%s19233_s22 + $0x120] sm:$0xff] %v13248_v9  ;;  %v1954_v5 = vpop.permute.xlu1 %1953  ;;  %v2119_v35 = vld [vmem:[#allocation2 + $0xe1] sm:$0xff]  ;;  %v1821_v27 = vmax.f32 %v19366_v33, 0.0  ;;  %v7891_v9 = vld [vmem:[#allocation3 + $0xc4] sm:$0xff] }
 0x1be   : > { %2031 = vst.msk [vmem:[#allocation2 + $0xf9] sm:$0xff] %vm514_vm0, %v1954_v5  ;;  %15901 = vmatmul.mubr.msk.bf16.gmra.mrb[28].mxu0 %vm514_vm0, %v7602_v32  ;;  %v2141_v15 = vpack.c.bf16 %v2119_v35, %v2118_v26  ;;  %v7892_v32 = vld [vmem:[#allocation3 + $0xcc] sm:$0xff]  ;;  %v7893_v26 = vld [vmem:[#allocation3 + $0xdc] sm:$0xff]  ;;  %v7894_v35 = vld [vmem:[#allocation3 + $0xe4] sm:$0xff] }
 0x1bf   : > { %v15182_v31 = vpop.f32.mrb[92].mxu1  ;;  %15912 = vmatprep.mubr.msk.bf16.mxu0 %vm514_vm0, %v7909_v18  ;;  %v1822_v18 = vmax.f32 %v19350_v43, 0.0  ;;  %v7917_v40 = vpack.c.bf16 %v7894_v35, %v7893_v26  ;;  %v8199_v35 = vld [vmem:[#allocation3 + $0x30] sm:$0xff] }
 0x1c0   : > { %v19374_v12 = vadd.f32 %v15182_v31, %v19213_v28  ;;  %v1781_v17 = vpop.f32.mrb[93].mxu1  ;;  %15209 = vmatmul.mubr.msk.bf16.gmra.mrb[112].mxu1 %vm514_vm0, %v2141_v15  ;;  %v7913_v31 = vpack.c.bf16 %v7886_v0, %v7885_v4  ;;  %v7902_v4 = vld [vmem:[#allocation3 + $0x144] sm:$0xff]  ;;  %v2044_v0 = vld [vmem:[#allocation2] sm:$0xff] }
 0x1c1   : > { %v19382_v21 = vadd.f32 %v19213_v28, %v1781_v17  ;;  %v15183_v19 = vpop.f32.mrb[94].mxu1  ;;  %v19438_v17 = vld [vmem:[%s21259_s9 + $0x160] sm:$0xff]  }
 0x1c2   : > { %v19387_v58 = vadd.f32 %v15183_v19, %v19213_v28  ;;  %v1784_v57 = vpop.f32.mrb[95].mxu1  ;;  %v7889_v19 = vld [vmem:[#allocation3 + $0xac] sm:$0xff] }
 0x1c3   : > { %v19391_v52 = vadd.f32 %v19213_v28, %v1784_v57  ;;  %v13249_v28 = vsel %vm514_vm0, %v1815_v55, %v1954_v5  ;;  %v1956_v61 = vpop.permute.xlu0 %1955  ;;  %v2120_v3 = vld [vmem:[#allocation2 + $0xf1] sm:$0xff]  ;;  %v7890_v57 = vld [vmem:[#allocation3 + $0xb4] sm:$0xff]  ;;  %v1823_v5 = vmax.f32 %v19362_v47, 0.0  ;;  %v1824_v44 = vmax.f32 %v19382_v21, 0.0 }
 0x1c4   : > { %13332 = vst [vmem:[%s19233_s22 + $0x130] sm:$0xff] %v13249_v28  ;;  %2032 = vst.msk [vmem:[#allocation2 + $0x109] sm:$0xff] %vm514_vm0, %v1956_v61  ;;  %v13250_v56 = vsel %vm514_vm0, %v1816_v29, %v1956_v61  ;;  %v7915_v60 = vpack.c.bf16 %v7890_v57, %v7889_v19  ;;  %v7916_v29 = vpack.c.bf16 %v7892_v32, %v7891_v9  ;;  %v7895_v61 = vld [vmem:[#allocation3 + $0xf4] sm:$0xff]  ;;  %v1827_v16 = vmax.f32 %v19387_v58, 0.0  ;;  %v2049_v57 = vld [vmem:[#allocation2 + $0x38] sm:$0xff] }
 0x1c5   : > { %13334 = vst [vmem:[%s19233_s22 + $0x140] sm:$0xff] %v13250_v56  ;;  %v1958_v48 = vpop.permute.xlu1 %1957  ;;  %v2121_v1 = vld [vmem:[#allocation2 + $0xf9] sm:$0xff]  ;;  %v7896_v56 = vld [vmem:[#allocation3 + $0xfc] sm:$0xff] }
 0x1c6   : > { %2033 = vst.msk [vmem:[#allocation2 + $0x111] sm:$0xff] %vm514_vm0, %v1958_v48  ;;  %v13251_v34 = vsel %vm514_vm0, %v1817_v63, %v1958_v48  ;;  %15913 = vmatmul.mubr.msk.bf16.vlgmr.msra.gmra.mrb[0].mxu0 %vm514_vm0, %v7910_v2  ;;  %v2142_v46 = vpack.c.bf16 %v2121_v1, %v2120_v3  ;;  %v1825_v2 = vmax.f32 %v19391_v52, 0.0  ;;  %v7898_v48 = vld [vmem:[#allocation3 + $0x114] sm:$0xff]  ;;  %v7918_v1 = vpack.c.bf16 %v7896_v56, %v7895_v61  ;;  %v17672_v32 = vld [vmem:[%s21257_s7 + $0x50] sm:$0xff]  }
 0x1c7   : > { %13336 = vst [vmem:[%s19233_s22 + $0x150] sm:$0xff] %v13251_v34  ;;  %15945 = vmatpush3.bf16.msra.mxu0 %v19287_v7  ;;  %15916 = vmatprep.mubr.msk.bf16.mxu0 %vm514_vm0, %v7911_v42  ;;  %v8200_v9 = vld [vmem:[#allocation3 + $0x38] sm:$0xff]  ;;  %v2055_v61 = vld [vmem:[#allocation2 + $0x80] sm:$0xff] }
 0x1c8   : > { %15212 = vmatprep.mubr.msk.bf16.mxu1 %vm514_vm0, %v2142_v46  ;;  %15946 = vmatprep.subr.bf16.mxu0 %v17660_v50 }
 0x1cb   : > { %v1960_v38 = vpop.permute.xlu0 %1959  ;;  %15947 = vmatpush3.bf16.msra.mxu0 %v17660_v50  ;;  %v2122_v11 = vld [vmem:[#allocation2 + $0x109] sm:$0xff]  ;;  %v7897_v50 = vld [vmem:[#allocation3 + $0x10c] sm:$0xff] }
 0x1cc   : > { %2034 = vst.msk [vmem:[#allocation2 + $0x121] sm:$0xff] %vm514_vm0, %v1960_v38  ;;  %v13252_v7 = vsel %vm514_vm0, %v1818_v62, %v1960_v38  ;;  %15948 = vmatprep.subr.bf16.mxu0 %v17662_v39  ;;  %v7919_v46 = vpack.c.bf16 %v7898_v48, %v7897_v50  ;;  %v2045_v38 = vld [vmem:[#allocation2 + $0x8] sm:$0xff]  ;;  %v2057_v50 = vld [vmem:[#allocation2 + $0x98] sm:$0xff] }
 0x1cd   : > { %13338 = vst [vmem:[%s19233_s22 + $0x160] sm:$0xff] %v13252_v7  ;;  %v1962_v37 = vpop.permute.xlu1 %1961  ;;  %v2123_v49 = vld [vmem:[#allocation2 + $0x111] sm:$0xff]  ;;  %v7920_v7 = vpack.c.bf16 %v7900_v45, %v7899_v6  ;;  %v17668_v48 = vld [vmem:[%s21259_s9 + $0x168] sm:$0xff]   ;;  %v8207_v45 = vld [vmem:[#allocation3 + $0x90] sm:$0xff] }
 0x1ce   : > { %2035 = vst.msk [vmem:[#allocation2 + $0x129] sm:$0xff] %vm514_vm0, %v1962_v37  ;;  %v13253_v10 = vsel %vm514_vm0, %v1819_v24, %v1962_v37  ;;  %15917 = vmatmul.mubr.msk.bf16.gmra.mrb[4].mxu0 %vm514_vm0, %v7912_v22  ;;  %v2143_v53 = vpack.c.bf16 %v2123_v49, %v2122_v11  ;;  %v7901_v24 = vld [vmem:[#allocation3 + $0x13c] sm:$0xff]  ;;  %v7903_v49 = vld [vmem:[#allocation3 + $0x154] sm:$0xff] }
 0x1cf   : > { %13340 = vst [vmem:[%s19233_s22 + $0x170] sm:$0xff] %v13253_v10  ;;  %15920 = vmatprep.mubr.msk.bf16.mxu0 %vm514_vm0, %v7913_v31  ;;  %15949 = vmatpush3.bf16.msra.mxu0 %v17662_v39  ;;  %v7921_v22 = vpack.c.bf16 %v7902_v4, %v7901_v24  ;;  %v2076_v31 = vpack.c.bf16 %v2045_v38, %v2044_v0  ;;  %v7904_v10 = vld [vmem:[#allocation3 + $0x15c] sm:$0xff]  ;;  %v17674_v4 = vld [vmem:[%s21259_s9 + $0x178] sm:$0xff]  }
 0x1d0   : > { %15213 = vmatmul.mubr.msk.bf16.gmra.mrb[116].mxu1 %vm514_vm0, %v2143_v53  ;;  %15950 = vmatprep.subr.bf16.mxu0 %v17666_v23  ;;  %v7905_v53 = vld [vmem:[#allocation3 + $0x16c] sm:$0xff]  ;;  %v7922_v19 = vpack.c.bf16 %v7904_v10, %v7903_v49  ;;  %v2059_v6 = vld [vmem:[#allocation2 + $0xb0] sm:$0xff]  ;;  %v2061_v24 = vld [vmem:[#allocation2 + $0xc8] sm:$0xff] }
 0x1d1   : > { %v2058_v38 = vld [vmem:[#allocation2 + $0xa8] sm:$0xff]  ;;  %v8209_v49 = vld [vmem:[#allocation3 + $0xa8] sm:$0xff]  ;;  %v2063_v10 = vld [vmem:[#allocation2 + $0xe0] sm:$0xff] }
 0x1d3   : > { %v1964_v30 = vpop.permute.xlu0 %1963  ;;  %15951 = vmatpush3.bf16.msra.mxu0 %v17666_v23  ;;  %v2124_v13 = vld [vmem:[#allocation2 + $0x121] sm:$0xff] }
 0x1d4   : > { %2036 = vst.msk [vmem:[#allocation2 + $0x139] sm:$0xff] %vm514_vm0, %v1964_v30  ;;  %v13254_v36 = vsel %vm514_vm0, %v1820_v54, %v1964_v30  ;;  %15984 = vmatprep.subr.bf16.mxu0 %v19438_v17  ;;  %v7906_v54 = vld [vmem:[#allocation3 + $0x174] sm:$0xff] }
 0x1d5   : > { %13342 = vst [vmem:[%s19233_s22 + $0x180] sm:$0xff] %v13254_v36  ;;  %v1966_v14 = vpop.permute.xlu1 %1965  ;;  %v2125_v55 = vld [vmem:[#allocation2 + $0x129] sm:$0xff]  ;;  %v7923_v30 = vpack.c.bf16 %v7906_v54, %v7905_v53  ;;  %v2046_v36 = vld [vmem:[#allocation2 + $0x18] sm:$0xff] }
 0x1d6   : > { %2037 = vst.msk [vmem:[#allocation2 + $0x141] sm:$0xff] %vm514_vm0, %v1966_v14  ;;  %v13255_v33 = vsel %vm514_vm0, %v1821_v27, %v1966_v14  ;;  %15921 = vmatmul.mubr.msk.bf16.gmra.mrb[8].mxu0 %vm514_vm0, %v7914_v41  ;;  %v2144_v59 = vpack.c.bf16 %v2125_v55, %v2124_v13  ;;  %v1826_v27 = vmax.f32 %v19374_v12, 0.0  ;;  %v19480_v41 = vpack.c.bf16 %v2047_v51, %v2046_v36  ;;  %v2048_v14 = vld [vmem:[#allocation2 + $0x30] sm:$0xff] }
 0x1d7   : > { %13344 = vst [vmem:[%s19233_s22 + $0x190] sm:$0xff] %v13255_v33  ;;  %15924 = vmatprep.mubr.msk.bf16.mxu0 %vm514_vm0, %v7915_v60  ;;  %v17671_v60 = vld [vmem:[%s21257_s7 + $0x48] sm:$0xff]   ;;  %v19486_v58 = vpack.c.bf16 %v2049_v57, %v2048_v14  ;;  %v8211_v54 = vld [vmem:[#allocation3 + $0xc0] sm:$0xff] }
 0x1d8   : > { %15216 = vmatprep.mubr.msk.bf16.mxu1 %vm514_vm0, %v2144_v59  ;;  %v7907_v59 = vld [vmem:[#allocation3 + $0x184] sm:$0xff]  ;;  %v8216_v14 = vld [vmem:[#allocation3 + $0xf8] sm:$0xff] }
 0x1d9   : > { %v2064_v57 = vld [vmem:[#allocation2 + $0xf0] sm:$0xff] }
 0x1da   : > { %v8214_v36 = vld [vmem:[#allocation3 + $0xe0] sm:$0xff] }
 0x1db   : > { %v1968_v28 = vpop.permute.xlu0 %1967  ;;  %v2126_v63 = vld [vmem:[#allocation2 + $0x139] sm:$0xff] }
 0x1dc   : > { %2038 = vst.msk [vmem:[#allocation2 + $0x151] sm:$0xff] %vm514_vm0, %v1968_v28  ;;  %v13256_v15 = vsel %vm514_vm0, %v1822_v18, %v1968_v28  ;;  %v7908_v18 = vld [vmem:[#allocation3 + $0x18c] sm:$0xff]  ;;  %v2053_v28 = vld [vmem:[#allocation2 + $0x68] sm:$0xff] }
 0x1dd   : > { %13346 = vst [vmem:[%s19233_s22 + $0x1a0] sm:$0xff] %v13256_v15  ;;  %v1970_v8 = vpop.permute.xlu1 %1969  ;;  %v2127_v43 = vld [vmem:[#allocation2 + $0x141] sm:$0xff]  ;;  %v7924_v26 = vpack.c.bf16 %v7908_v18, %v7907_v59  ;;  %v8231_v15 = vpack.c.bf16 %v8200_v9, %v8199_v35  ;;  %v8220_v35 = vld [vmem:[#allocation3 + $0x128] sm:$0xff] }
 0x1de   : > { %2039 = vst.msk [vmem:[#allocation2 + $0x159] sm:$0xff] %vm514_vm0, %v1970_v8  ;;  %v13257_v25 = vsel %vm514_vm0, %v1823_v5, %v1970_v8  ;;  %15925 = vmatmul.mubr.msk.bf16.gmra.mrb[12].mxu0 %vm514_vm0, %v7916_v29  ;;  %v2145_v47 = vpack.c.bf16 %v2127_v43, %v2126_v63  ;;  %v2051_v5 = vld [vmem:[#allocation2 + $0x50] sm:$0xff]  ;;  %v2050_v29 = vld [vmem:[#allocation2 + $0x48] sm:$0xff]  ;;  %v8202_v43 = vld [vmem:[#allocation3 + $0x50] sm:$0xff] }
 0x1df   : > { %13348 = vst [vmem:[%s19233_s22 + $0x1b0] sm:$0xff] %v13257_v25  ;;  %15928 = vmatprep.mubr.msk.bf16.mxu0 %vm514_vm0, %v7917_v40  ;;  %v19503_v8 = vpack.c.bf16 %v2051_v5, %v2050_v29  ;;  %v2052_v40 = vld [vmem:[#allocation2 + $0x60] sm:$0xff]  ;;  %v8204_v25 = vld [vmem:[#allocation3 + $0x68] sm:$0xff]  ;;  %v2066_v18 = vld [vmem:[#allocation2 + $0x108] sm:$0xff] }
 0x1e0   : > { %15217 = vmatmul.mubr.msk.bf16.gmra.mrb[120].mxu1 %vm514_vm0, %v2145_v47  ;;  %v19509_v63 = vpack.c.bf16 %v2053_v28, %v2052_v40  ;;  %v19518_v47 = vld [vmem:[%s21257_s7 + $0x60] sm:$0xff]   ;;  %v8217_v28 = vld [vmem:[#allocation3 + $0x108] sm:$0xff]  ;;  %v8219_v40 = vld [vmem:[#allocation3 + $0x120] sm:$0xff] }
 0x1e3   : > { %v1972_v42 = vpop.permute.xlu0 %1971  ;;  %v2128_v62 = vld [vmem:[#allocation2 + $0x151] sm:$0xff] }
 0x1e4   : > { %2040 = vst.msk [vmem:[#allocation2 + $0x169] sm:$0xff] %vm514_vm0, %v1972_v42  ;;  %v13258_v3 = vsel %vm514_vm0, %v1824_v44, %v1972_v42  ;;  %v8201_v44 = vld [vmem:[#allocation3 + $0x48] sm:$0xff] }
 0x1e5   : > { %13350 = vst [vmem:[%s19233_s22 + $0x1c0] sm:$0xff] %v13258_v3  ;;  %v1974_v34 = vpop.permute.xlu1 %1973  ;;  %v2129_v21 = vld [vmem:[#allocation2 + $0x159] sm:$0xff]  ;;  %v8232_v56 = vpack.c.bf16 %v8202_v43, %v8201_v44  ;;  %v8241_v43 = vpack.c.bf16 %v8220_v35, %v8219_v40 }
 0x1e6   : > { %2041 = vst.msk [vmem:[#allocation2 + $0x171] sm:$0xff] %vm514_vm0, %v1974_v34  ;;  %v13259_v39 = vsel %vm514_vm0, %v1825_v2, %v1974_v34  ;;  %15929 = vmatmul.mubr.msk.bf16.gmra.mrb[16].mxu0 %vm514_vm0, %v7918_v1  ;;  %v2146_v52 = vpack.c.bf16 %v2129_v21, %v2128_v62  ;;  %v8203_v2 = vld [vmem:[#allocation3 + $0x60] sm:$0xff]  ;;  %v2054_v3 = vld [vmem:[#allocation2 + $0x78] sm:$0xff] }
 0x1e7   : > { %13352 = vst [vmem:[%s19233_s22 + $0x1d0] sm:$0xff] %v13259_v39  ;;  %15932 = vmatprep.mubr.msk.bf16.mxu0 %vm514_vm0, %v7919_v46  ;;  %v8233_v42 = vpack.c.bf16 %v8204_v25, %v8203_v2  ;;  %v19524_v1 = vpack.c.bf16 %v2055_v61, %v2054_v3  ;;  %v2056_v34 = vld [vmem:[#allocation2 + $0x90] sm:$0xff]  ;;  %v8208_v39 = vld [vmem:[#allocation3 + $0x98] sm:$0xff]  ;;  %v2070_v25 = vld [vmem:[#allocation2 + $0x138] sm:$0xff] }
 0x1e8   : > { %15220 = vmatprep.mubr.msk.bf16.mxu1 %vm514_vm0, %v2146_v52  ;;  %v19529_v46 = vpack.c.bf16 %v2057_v50, %v2056_v34  ;;  %v17670_v62 = vld [vmem:[%s21259_s9 + $0x170] sm:$0xff]   ;;  %v8205_v52 = vld [vmem:[#allocation3 + $0x78] sm:$0xff]  ;;  %v8235_v0 = vpack.c.bf16 %v8208_v39, %v8207_v45  ;;  %v8226_v45 = vld [vmem:[#allocation3 + $0x170] sm:$0xff] }
 0x1e9   : > { %v8206_v21 = vld [vmem:[#allocation3 + $0x80] sm:$0xff]  ;;  %v8224_v50 = vld [vmem:[#allocation3 + $0x158] sm:$0xff]  ;;  %v8523_v35 = vld [vmem:[#allocation3 + $0x49] sm:$0xff] }
 0x1ea   : > { %v2072_v61 = vld [vmem:[#allocation2 + $0x150] sm:$0xff]  ;;  %v8221_v3 = vld [vmem:[#allocation3 + $0x138] sm:$0xff]  ;;  %v2633_v40 = vld [vmem:[#allocation2 + $0x7a] sm:$0xff] }
 0x1eb   : > { %v2130_v23 = vld [vmem:[#allocation2 + $0x169] sm:$0xff]  ;;  %v1976_v55 = vpop.permute.xlu0 %1975 }
 0x1ec   : > { %2042 = vst.msk [vmem:[#allocation2 + $0x181] sm:$0xff] %vm514_vm0, %v1976_v55  ;;  %v13260_v33 = vsel %vm514_vm0, %v1826_v27, %v1976_v55  ;;  %v2062_v27 = vld [vmem:[#allocation2 + $0xd8] sm:$0xff]  ;;  %v8215_v55 = vld [vmem:[#allocation3 + $0xf0] sm:$0xff]  ;;  %v8222_v2 = vld [vmem:[#allocation3 + $0x140] sm:$0xff] }
 0x1ed   : > { %v2131_v37 = vld [vmem:[#allocation2 + $0x171] sm:$0xff]  ;;  %v1978_v13 = vpop.permute.xlu1 %1977  ;;  %13354 = vst [vmem:[%s19233_s22 + $0x1e0] sm:$0xff] %v13260_v33  ;;  %v2069_v33 = vld [vmem:[#allocation2 + $0x128] sm:$0xff]  ;;  %v8239_v59 = vpack.c.bf16 %v8216_v14, %v8215_v55 }
 0x1ee   : > { %15933 = vmatmul.mubr.msk.bf16.gmra.mrb[20].mxu0 %vm514_vm0, %v7920_v7  ;;  %v2147_v11 = vpack.c.bf16 %v2131_v37, %v2130_v23  ;;  %2043 = vst.msk [vmem:[#allocation2 + $0x189] sm:$0xff] %vm514_vm0, %v1978_v13  ;;  %v13261_v12 = vsel %vm514_vm0, %v1827_v16, %v1978_v13  ;;  %v19542_v7 = vpack.c.bf16 %v2059_v6, %v2058_v38  ;;  %v19552_v37 = vld [vmem:[%s21259_s9 + $0x180] sm:$0xff]   ;;  %v2065_v16 = vld [vmem:[#allocation2 + $0xf8] sm:$0xff]  ;;  %v2067_v13 = vld [vmem:[#allocation2 + $0x110] sm:$0xff] }
 0x1ef   : > { %15936 = vmatprep.mubr.msk.bf16.mxu0 %vm514_vm0, %v7921_v22  ;;  %13356 = vst [vmem:[%s19233_s22 + $0x1f0] sm:$0xff] %v13261_v12  ;;  %v2060_v22 = vld [vmem:[#allocation2 + $0xc0] sm:$0xff]  ;;  %v19568_v9 = vpack.c.bf16 %v2067_v13, %v2066_v18  ;;  %v2075_v34 = vld [vmem:[#allocation2 + $0x170] sm:$0xff] }
 0x1f0   : > { %15221 = vmatmul.mubr.msk.bf16.gmra.mrb[124].mxu1 %vm514_vm0, %v2147_v11  ;;  %v19545_v23 = vpack.c.bf16 %v2061_v24, %v2060_v22  ;;  %v8212_v11 = vld [vmem:[#allocation3 + $0xc8] sm:$0xff]  ;;  %v2626_v38 = vld [vmem:[#allocation2 + $0x22] sm:$0xff]  ;;  %v2629_v14 = vld [vmem:[#allocation2 + $0x4a] sm:$0xff] }
 0x1f1   : > { %15232 = vmatprep.mubr.msk.bf16.mxu1 %vm514_vm0, %v2076_v31  ;;  %v8210_v31 = vld [vmem:[#allocation3 + $0xb0] sm:$0xff]  ;;  %v8237_v51 = vpack.c.bf16 %v8212_v11, %v8211_v54  ;;  %v8228_v24 = vld [vmem:[#allocation3 + $0x188] sm:$0xff]  ;;  %v17679_v54 = vld [vmem:[%s21257_s7 + $0x68] sm:$0xff]  }
 0x1f2   : > { %v8236_v53 = vpack.c.bf16 %v8210_v31, %v8209_v49  ;;  %v8227_v31 = vld [vmem:[#allocation3 + $0x180] sm:$0xff]  ;;  %v2628_v49 = vld [vmem:[#allocation2 + $0x3a] sm:$0xff]  ;;  %v2631_v55 = vld [vmem:[#allocation2 + $0x62] sm:$0xff] }
 0x1f3   : > { %v2627_v11 = vld [vmem:[#allocation2 + $0x32] sm:$0xff] }
 0x1f6   : > { %15937 = vmatmul.mubr.msk.bf16.gmra.mrb[24].mxu0 %vm514_vm0, %v7922_v19  ;;  %v19558_v19 = vpack.c.bf16 %v2063_v10, %v2062_v27  ;;  %v8245_v10 = vpack.c.bf16 %v8228_v24, %v8227_v31  ;;  %v8230_v27 = vld [vmem:[#allocation3 + $0x1a0] sm:$0xff]  ;;  %v19661_v31 = vld [vmem:[%s21259_s9 + $0x1a0] sm:$0xff]  }
 0x1f7   : > { %15940 = vmatprep.mubr.msk.bf16.mxu0 %vm514_vm0, %v7923_v30  ;;  %v19561_v30 = vpack.c.bf16 %v2065_v16, %v2064_v57  ;;  %v19601_v16 = vpack.c.bf16 %v2628_v49, %v2627_v11  ;;  %v8522_v57 = vld [vmem:[#allocation3 + $0x39] sm:$0xff]  ;;  %v8532_v11 = vld [vmem:[#allocation3 + $0xb1] sm:$0xff]  ;;  %v8534_v49 = vld [vmem:[#allocation3 + $0xc9] sm:$0xff] }
 0x1f8   : > { %15233 = vmatmul.mubr.msk.bf16.vlgmr.msra.gmra.mrb[96].mxu1 %vm514_vm0, %v19480_v41  ;;  %v2640_v24 = vld [vmem:[#allocation2 + $0xca] sm:$0xff] }
 0x1f9   : > { %15236 = vmatprep.mubr.msk.bf16.mxu1 %vm514_vm0, %v19486_v58  ;;  %15265 = vmatpush3.bf16.msra.mxu1 %v19319_v20  ;;  %v17673_v20 = vld [vmem:[%s21257_s7 + $0x58] sm:$0xff]  }
 0x1fa   : > { %15266 = vmatprep.subr.bf16.mxu1 %v17671_v60 }
 0x1fd   : > { %15267 = vmatpush3.bf16.msra.mxu1 %v17671_v60  ;;  %v8213_v60 = vld [vmem:[#allocation3 + $0xd8] sm:$0xff] }
 0x1fe   : > { %15941 = vmatmul.mubr.msk.bf16.gmra.mrb[28].mxu0 %vm514_vm0, %v7924_v26  ;;  %15268 = vmatprep.subr.bf16.mxu1 %v17672_v32  ;;  %v8238_v12 = vpack.c.bf16 %v8214_v36, %v8213_v60  ;;  %v8218_v26 = vld [vmem:[#allocation3 + $0x110] sm:$0xff]  ;;  %v17680_v36 = vld [vmem:[%s21257_s7 + $0x70] sm:$0xff]  }
 0x1ff   : > { %15952 = vmatprep.mubr.msk.bf16.mxu0 %vm514_vm0, %v8231_v15  ;;  %v2071_v15 = vld [vmem:[#allocation2 + $0x140] sm:$0xff]  ;;  %v8240_v29 = vpack.c.bf16 %v8218_v26, %v8217_v28  ;;  %v2630_v60 = vld [vmem:[#allocation2 + $0x52] sm:$0xff] }
 0x200   : > { %15237 = vmatmul.mubr.msk.bf16.gmra.mrb[100].mxu1 %vm514_vm0, %v19503_v8  ;;  %v19578_v44 = vpack.c.bf16 %v2071_v15, %v2070_v25  ;;  %v19612_v18 = vpack.c.bf16 %v2630_v60, %v2629_v14  ;;  %v8524_v26 = vld [vmem:[#allocation3 + $0x51] sm:$0xff]  ;;  %v8526_v28 = vld [vmem:[#allocation3 + $0x69] sm:$0xff] }
 0x201   : > { %15240 = vmatprep.mubr.msk.bf16.mxu1 %vm514_vm0, %v19509_v63  ;;  %15269 = vmatpush3.bf16.msra.mxu1 %v17672_v32  ;;  %v2068_v32 = vld [vmem:[#allocation2 + $0x120] sm:$0xff]  ;;  %v2635_v25 = vld [vmem:[#allocation2 + $0x92] sm:$0xff] }
 0x202   : > { %15270 = vmatprep.subr.bf16.mxu1 %v17673_v20  ;;  %v19571_v5 = vpack.c.bf16 %v2069_v33, %v2068_v32  ;;  %v2632_v33 = vld [vmem:[#allocation2 + $0x6a] sm:$0xff]  ;;  %v19627_v15 = vld [vmem:[%s21257_s7 + $0x80] sm:$0xff]  }
 0x203   : > { %v19618_v32 = vpack.c.bf16 %v2632_v33, %v2631_v55  ;;  %v2644_v14 = vld [vmem:[#allocation2 + $0xfa] sm:$0xff]  ;;  %v8536_v55 = vld [vmem:[#allocation3 + $0xe1] sm:$0xff]  ;;  %v8538_v33 = vld [vmem:[#allocation3 + $0xf9] sm:$0xff] }
 0x205   : > { %15271 = vmatpush3.bf16.msra.mxu1 %v17673_v20  ;;  %v2073_v20 = vld [vmem:[#allocation2 + $0x158] sm:$0xff] }
 0x206   : > { %15953 = vmatmul.mubr.msk.bf16.vlgmr.msra.gmra.mrb[0].mxu0 %vm514_vm0, %v8232_v56  ;;  %15304 = vmatprep.subr.bf16.mxu1 %v19518_v47  ;;  %v19581_v56 = vpack.c.bf16 %v2073_v20, %v2072_v61  ;;  %v2634_v20 = vld [vmem:[#allocation2 + $0x82] sm:$0xff]  ;;  %v2636_v61 = vld [vmem:[#allocation2 + $0x9a] sm:$0xff] }
 0x207   : > { %15985 = vmatpush3.bf16.msra.mxu0 %v19438_v17  ;;  %15956 = vmatprep.mubr.msk.bf16.mxu0 %vm514_vm0, %v8233_v42  ;;  %v8234_v17 = vpack.c.bf16 %v8206_v21, %v8205_v52  ;;  %v2624_v42 = vld [vmem:[#allocation2 + $0xa] sm:$0xff]  ;;  %v8223_v21 = vld [vmem:[#allocation3 + $0x150] sm:$0xff] }
 0x208   : > { %15241 = vmatmul.mubr.msk.bf16.gmra.mrb[104].mxu1 %vm514_vm0, %v19524_v1  ;;  %15986 = vmatprep.subr.bf16.mxu0 %v17668_v48  ;;  %v8243_v39 = vpack.c.bf16 %v8224_v50, %v8223_v21  ;;  %v2074_v52 = vld [vmem:[#allocation2 + $0x168] sm:$0xff] }
 0x209   : > { %15244 = vmatprep.mubr.msk.bf16.mxu1 %vm514_vm0, %v19529_v46  ;;  %v8530_v21 = vld [vmem:[#allocation3 + $0x99] sm:$0xff] }
 0x20b   : > { %15987 = vmatpush3.bf16.msra.mxu0 %v17668_v48  ;;  %v2623_v48 = vld [vmem:[#allocation2 + $0x2] sm:$0xff] }
 0x20c   : > { %15988 = vmatprep.subr.bf16.mxu0 %v17670_v62  ;;  %v2655_v6 = vpack.c.bf16 %v2624_v42, %v2623_v48  ;;  %v19633_v48 = vpack.c.bf16 %v2634_v20, %v2633_v40  ;;  %v19638_v42 = vpack.c.bf16 %v2636_v61, %v2635_v25  ;;  %v2648_v40 = vld [vmem:[#allocation2 + $0x12a] sm:$0xff]  ;;  %v8540_v61 = vld [vmem:[#allocation3 + $0x111] sm:$0xff] }
 0x20e   : > { %15957 = vmatmul.mubr.msk.bf16.gmra.mrb[4].mxu0 %vm514_vm0, %v8234_v17  ;;  %v19588_v17 = vpack.c.bf16 %v2075_v34, %v2074_v52  ;;  %v8528_v34 = vld [vmem:[#allocation3 + $0x81] sm:$0xff] }
 0x20f   : > { %15960 = vmatprep.mubr.msk.bf16.mxu0 %vm514_vm0, %v8235_v0  ;;  %15989 = vmatpush3.bf16.msra.mxu0 %v17670_v62  ;;  %v8242_v62 = vpack.c.bf16 %v8222_v2, %v8221_v3  ;;  %v2625_v0 = vld [vmem:[#allocation2 + $0x1a] sm:$0xff]  ;;  %v17676_v2 = vld [vmem:[%s21259_s9 + $0x188] sm:$0xff]   ;;  %v17678_v3 = vld [vmem:[%s21259_s9 + $0x190] sm:$0xff]  }
 0x210   : > { %15245 = vmatmul.mubr.msk.bf16.gmra.mrb[108].mxu1 %vm514_vm0, %v19542_v7  ;;  %15990 = vmatprep.subr.bf16.mxu0 %v17674_v4  ;;  %v2638_v52 = vld [vmem:[#allocation2 + $0xb2] sm:$0xff] }
 0x211   : > { %15248 = vmatprep.mubr.msk.bf16.mxu1 %vm514_vm0, %v19545_v23 }
 0x213   : > { %15991 = vmatpush3.bf16.msra.mxu0 %v17674_v4  ;;  %v8225_v4 = vld [vmem:[#allocation3 + $0x168] sm:$0xff] }
 0x214   : > { %16024 = vmatprep.subr.bf16.mxu0 %v19552_v37  ;;  %v8244_v22 = vpack.c.bf16 %v8226_v45, %v8225_v4  ;;  %v2639_v45 = vld [vmem:[#allocation2 + $0xc2] sm:$0xff]  ;;  %v17682_v4 = vld [vmem:[%s21259_s9 + $0x198] sm:$0xff]  }
 0x216   : > { %15961 = vmatmul.mubr.msk.bf16.gmra.mrb[8].mxu0 %vm514_vm0, %v8236_v53  ;;  %v19595_v53 = vpack.c.bf16 %v2626_v38, %v2625_v0 }
 0x217   : > { %15964 = vmatprep.mubr.msk.bf16.mxu0 %vm514_vm0, %v8237_v51  ;;  %v8229_v51 = vld [vmem:[#allocation3 + $0x198] sm:$0xff] }
 0x218   : > { %15249 = vmatmul.mubr.msk.bf16.gmra.mrb[112].mxu1 %vm514_vm0, %v19558_v19  ;;  %v8246_v13 = vpack.c.bf16 %v8230_v27, %v8229_v51  ;;  %v2642_v51 = vld [vmem:[#allocation2 + $0xe2] sm:$0xff] }
 0x219   : > { %15252 = vmatprep.mubr.msk.bf16.mxu1 %vm514_vm0, %v19561_v30 }
 0x21e   : > { %15965 = vmatmul.mubr.msk.bf16.gmra.mrb[12].mxu0 %vm514_vm0, %v8238_v12  ;;  %v8521_v12 = vld [vmem:[#allocation3 + $0x31] sm:$0xff] }
 0x21f   : > { %15968 = vmatprep.mubr.msk.bf16.mxu0 %vm514_vm0, %v8239_v59  ;;  %v8553_v59 = vpack.c.bf16 %v8522_v57, %v8521_v12  ;;  %v8533_v57 = vld [vmem:[#allocation3 + $0xc1] sm:$0xff] }
 0x220   : > { %15253 = vmatmul.mubr.msk.bf16.gmra.mrb[116].mxu1 %vm514_vm0, %v19568_v9  ;;  %v8559_v60 = vpack.c.bf16 %v8534_v49, %v8533_v57  ;;  %v2654_v49 = vld [vmem:[#allocation2 + $0x172] sm:$0xff]  ;;  %v8548_v57 = vld [vmem:[#allocation3 + $0x171] sm:$0xff] }
 0x221   : > { %15256 = vmatprep.mubr.msk.bf16.mxu1 %vm514_vm0, %v19571_v5 }
 0x226   : > { %15969 = vmatmul.mubr.msk.bf16.gmra.mrb[16].mxu0 %vm514_vm0, %v8240_v29  ;;  %v8525_v29 = vld [vmem:[#allocation3 + $0x61] sm:$0xff] }
 0x227   : > { %15972 = vmatprep.mubr.msk.bf16.mxu0 %vm514_vm0, %v8241_v43  ;;  %v8554_v43 = vpack.c.bf16 %v8524_v26, %v8523_v35  ;;  %v8555_v50 = vpack.c.bf16 %v8526_v28, %v8525_v29  ;;  %v2646_v26 = vld [vmem:[#allocation2 + $0x112] sm:$0xff]  ;;  %v8537_v28 = vld [vmem:[#allocation3 + $0xf1] sm:$0xff] }
 0x228   : > { %15257 = vmatmul.mubr.msk.bf16.gmra.mrb[120].mxu1 %vm514_vm0, %v19578_v44  ;;  %v2647_v29 = vld [vmem:[#allocation2 + $0x122] sm:$0xff]  ;;  %v8561_v20 = vpack.c.bf16 %v8538_v33, %v8537_v28 }
 0x229   : > { %15260 = vmatprep.mubr.msk.bf16.mxu1 %vm514_vm0, %v19581_v56  ;;  %v19680_v25 = vpack.c.bf16 %v2648_v40, %v2647_v29  ;;  %v8843_v29 = vld [vmem:[#allocation3 + $0x32] sm:$0xff] }
 0x22e   : > { %15973 = vmatmul.mubr.msk.bf16.gmra.mrb[20].mxu0 %vm514_vm0, %v8242_v62  ;;  %v8527_v62 = vld [vmem:[#allocation3 + $0x79] sm:$0xff] }
 0x22f   : > { %15976 = vmatprep.mubr.msk.bf16.mxu0 %vm514_vm0, %v8243_v39  ;;  %v8529_v39 = vld [vmem:[#allocation3 + $0x91] sm:$0xff] }
 0x230   : > { %15261 = vmatmul.mubr.msk.bf16.gmra.mrb[124].mxu1 %vm514_vm0, %v19588_v17  ;;  %v8557_v0 = vpack.c.bf16 %v8530_v21, %v8529_v39  ;;  %v8541_v21 = vld [vmem:[#allocation3 + $0x121] sm:$0xff] }
 0x231   : > { %15272 = vmatprep.mubr.msk.bf16.mxu1 %vm514_vm0, %v2655_v6  ;;  %v8556_v6 = vpack.c.bf16 %v8528_v34, %v8527_v62  ;;  %v2650_v34 = vld [vmem:[#allocation2 + $0x142] sm:$0xff]  ;;  %v2651_v39 = vld [vmem:[#allocation2 + $0x152] sm:$0xff] }
 0x236   : > { %15977 = vmatmul.mubr.msk.bf16.gmra.mrb[24].mxu0 %vm514_vm0, %v8244_v22  ;;  %v19654_v22 = vpack.c.bf16 %v2640_v24, %v2639_v45  ;;  %v8544_v24 = vld [vmem:[#allocation3 + $0x141] sm:$0xff] }
 0x237   : > { %15980 = vmatprep.mubr.msk.bf16.mxu0 %vm514_vm0, %v8245_v10  ;;  %v8531_v10 = vld [vmem:[#allocation3 + $0xa9] sm:$0xff] }
 0x238   : > { %15273 = vmatmul.mubr.msk.bf16.vlgmr.msra.gmra.mrb[96].mxu1 %vm514_vm0, %v19595_v53  ;;  %v8558_v27 = vpack.c.bf16 %v8532_v11, %v8531_v10  ;;  %v2653_v11 = vld [vmem:[#allocation2 + $0x16a] sm:$0xff] }
 0x239   : > { %15276 = vmatprep.mubr.msk.bf16.mxu1 %vm514_vm0, %v19601_v16  ;;  %15305 = vmatpush3.bf16.msra.mxu1 %v19518_v47  ;;  %v17681_v47 = vld [vmem:[%s21257_s7 + $0x78] sm:$0xff]  }
 0x23a   : > { %15306 = vmatprep.subr.bf16.mxu1 %v17679_v54 }
 0x23d   : > { %15307 = vmatpush3.bf16.msra.mxu1 %v17679_v54  ;;  %v2641_v54 = vld [vmem:[#allocation2 + $0xda] sm:$0xff] }
 0x23e   : > { %15981 = vmatmul.mubr.msk.bf16.gmra.mrb[28].mxu0 %vm514_vm0, %v8246_v13  ;;  %15308 = vmatprep.subr.bf16.mxu1 %v17680_v36  ;;  %v19667_v13 = vpack.c.bf16 %v2642_v51, %v2641_v54  ;;  %v8545_v54 = vld [vmem:[#allocation3 + $0x151] sm:$0xff] }
 0x23f   : > { %15992 = vmatprep.mubr.msk.bf16.mxu0 %vm514_vm0, %v8553_v59  ;;  %v8535_v59 = vld [vmem:[#allocation3 + $0xd9] sm:$0xff] }
 0x240   : > { %15277 = vmatmul.mubr.msk.bf16.gmra.mrb[100].mxu1 %vm514_vm0, %v19612_v18  ;;  %v8560_v35 = vpack.c.bf16 %v8536_v55, %v8535_v59  ;;  %v8549_v55 = vld [vmem:[#allocation3 + $0x181] sm:$0xff]  ;;  %v17687_v59 = vld [vmem:[%s21257_s7 + $0x88] sm:$0xff]  }
 0x241   : > { %15280 = vmatprep.mubr.msk.bf16.mxu1 %vm514_vm0, %v19618_v32  ;;  %15309 = vmatpush3.bf16.msra.mxu1 %v17680_v36  ;;  %v2643_v36 = vld [vmem:[#allocation2 + $0xf2] sm:$0xff] }
 0x242   : > { %15310 = vmatprep.subr.bf16.mxu1 %v17681_v47  ;;  %v19670_v12 = vpack.c.bf16 %v2644_v14, %v2643_v36  ;;  %v8550_v36 = vld [vmem:[#allocation3 + $0x189] sm:$0xff] }
 0x243   : > { %v8547_v14 = vld [vmem:[#allocation3 + $0x169] sm:$0xff]  ;;  %v8567_v33 = vpack.c.bf16 %v8550_v36, %v8549_v55 }
 0x244   : > { %v8864_v36 = vld [vmem:[#allocation3 + $0x12a] sm:$0xff] }
 0x245   : > { %15311 = vmatpush3.bf16.msra.mxu1 %v17681_v47  ;;  %v2645_v47 = vld [vmem:[#allocation2 + $0x10a] sm:$0xff] }
 0x246   : > { %15993 = vmatmul.mubr.msk.bf16.vlgmr.msra.gmra.mrb[0].mxu0 %vm514_vm0, %v8554_v43  ;;  %15344 = vmatprep.subr.bf16.mxu1 %v19627_v15  ;;  %v19677_v43 = vpack.c.bf16 %v2646_v26, %v2645_v47  ;;  %v8552_v47 = vld [vmem:[#allocation3 + $0x1a1] sm:$0xff] }
 0x247   : > { %16025 = vmatpush3.bf16.msra.mxu0 %v19552_v37  ;;  %15996 = vmatprep.mubr.msk.bf16.mxu0 %vm514_vm0, %v8555_v50  ;;  %v2637_v37 = vld [vmem:[#allocation2 + $0xaa] sm:$0xff]  ;;  %v8539_v50 = vld [vmem:[#allocation3 + $0x109] sm:$0xff] }
 0x248   : > { %15281 = vmatmul.mubr.msk.bf16.gmra.mrb[104].mxu1 %vm514_vm0, %v19633_v48  ;;  %16026 = vmatprep.subr.bf16.mxu0 %v17676_v2  ;;  %v19651_v38 = vpack.c.bf16 %v2638_v52, %v2637_v37  ;;  %v8562_v62 = vpack.c.bf16 %v8540_v61, %v8539_v50  ;;  %v2652_v37 = vld [vmem:[#allocation2 + $0x15a] sm:$0xff]  ;;  %v8844_v26 = vld [vmem:[#allocation3 + $0x3a] sm:$0xff]  ;;  %v8847_v50 = vld [vmem:[#allocation3 + $0x62] sm:$0xff] }
 0x249   : > { %15284 = vmatprep.mubr.msk.bf16.mxu1 %vm514_vm0, %v19638_v42  ;;  %v19690_v45 = vpack.c.bf16 %v2652_v37, %v2651_v39  ;;  %v8875_v40 = vpack.c.bf16 %v8844_v26, %v8843_v29  ;;  %v8845_v61 = vld [vmem:[#allocation3 + $0x4a] sm:$0xff]  ;;  %v8851_v37 = vld [vmem:[#allocation3 + $0x92] sm:$0xff] }
 0x24a   : > { %v8867_v26 = vld [vmem:[#allocation3 + $0x152] sm:$0xff] }
 0x24b   : > { %16027 = vmatpush3.bf16.msra.mxu0 %v17676_v2  ;;  %v8542_v2 = vld [vmem:[#allocation3 + $0x129] sm:$0xff] }
 0x24c   : > { %16028 = vmatprep.subr.bf16.mxu0 %v17678_v3  ;;  %v8563_v52 = vpack.c.bf16 %v8542_v2, %v8541_v21  ;;  %v8849_v21 = vld [vmem:[#allocation3 + $0x7a] sm:$0xff] }
 0x24e   : > { %15997 = vmatmul.mubr.msk.bf16.gmra.mrb[4].mxu0 %vm514_vm0, %v8556_v6 }
 0x24f   : > { %16000 = vmatprep.mubr.msk.bf16.mxu0 %vm514_vm0, %v8557_v0  ;;  %16029 = vmatpush3.bf16.msra.mxu0 %v17678_v3  ;;  %v2649_v3 = vld [vmem:[#allocation2 + $0x13a] sm:$0xff]  ;;  %v8543_v0 = vld [vmem:[#allocation3 + $0x139] sm:$0xff] }
 0x250   : > { %15285 = vmatmul.mubr.msk.bf16.gmra.mrb[108].mxu1 %vm514_vm0, %v19651_v38  ;;  %16030 = vmatprep.subr.bf16.mxu0 %v17682_v4  ;;  %v19687_v6 = vpack.c.bf16 %v2650_v34, %v2649_v3  ;;  %v8564_v10 = vpack.c.bf16 %v8544_v24, %v8543_v0  ;;  %v17684_v3 = vld [vmem:[%s21259_s9 + $0x1a8] sm:$0xff]   ;;  %v8850_v34 = vld [vmem:[#allocation3 + $0x82] sm:$0xff]  ;;  %v8856_v24 = vld [vmem:[#allocation3 + $0xca] sm:$0xff] }
 0x251   : > { %15288 = vmatprep.mubr.msk.bf16.mxu1 %vm514_vm0, %v19654_v22  ;;  %v8878_v39 = vpack.c.bf16 %v8850_v34, %v8849_v21  ;;  %v3271_v34 = vld [vmem:[#allocation2 + $0x49] sm:$0xff] }
 0x253   : > { %16031 = vmatpush3.bf16.msra.mxu0 %v17682_v4  ;;  %v8546_v4 = vld [vmem:[#allocation3 + $0x159] sm:$0xff] }
 0x254   : > { %16064 = vmatprep.subr.bf16.mxu0 %v19661_v31  ;;  %v8565_v51 = vpack.c.bf16 %v8546_v4, %v8545_v54  ;;  %v8853_v4 = vld [vmem:[#allocation3 + $0xaa] sm:$0xff] }
 0x256   : > { %16001 = vmatmul.mubr.msk.bf16.gmra.mrb[8].mxu0 %vm514_vm0, %v8558_v27  ;;  %v19697_v27 = vpack.c.bf16 %v2654_v49, %v2653_v11  ;;  %v8855_v11 = vld [vmem:[#allocation3 + $0xc2] sm:$0xff] }
 0x257   : > { %16004 = vmatprep.mubr.msk.bf16.mxu0 %vm514_vm0, %v8559_v60  ;;  %v8566_v60 = vpack.c.bf16 %v8548_v57, %v8547_v14  ;;  %v8881_v49 = vpack.c.bf16 %v8856_v24, %v8855_v11  ;;  %v8861_v14 = vld [vmem:[#allocation3 + $0x10a] sm:$0xff]  ;;  %v3274_v24 = vld [vmem:[#allocation2 + $0x69] sm:$0xff] }
 0x258   : > { %15289 = vmatmul.mubr.msk.bf16.gmra.mrb[112].mxu1 %vm514_vm0, %v19667_v13 }
 0x259   : > { %15292 = vmatprep.mubr.msk.bf16.mxu1 %vm514_vm0, %v19670_v12 }
 0x25e   : > { %16005 = vmatmul.mubr.msk.bf16.gmra.mrb[12].mxu0 %vm514_vm0, %v8560_v35  ;;  %v17688_v35 = vld [vmem:[%s21257_s7 + $0x90] sm:$0xff]  }
 0x25f   : > { %16008 = vmatprep.mubr.msk.bf16.mxu0 %vm514_vm0, %v8561_v20  ;;  %v19729_v20 = vld [vmem:[%s21257_s7 + $0xa0] sm:$0xff]  }
 0x260   : > { %15293 = vmatmul.mubr.msk.bf16.gmra.mrb[116].mxu1 %vm514_vm0, %v19677_v43 }
 0x261   : > { %15296 = vmatprep.mubr.msk.bf16.mxu1 %vm514_vm0, %v19680_v25 }
 0x266   : > { %16009 = vmatmul.mubr.msk.bf16.gmra.mrb[16].mxu0 %vm514_vm0, %v8562_v62  ;;  %v8852_v62 = vld [vmem:[#allocation3 + $0x9a] sm:$0xff] }
 0x267   : > { %16012 = vmatprep.mubr.msk.bf16.mxu0 %vm514_vm0, %v8563_v52  ;;  %v8854_v52 = vld [vmem:[#allocation3 + $0xb2] sm:$0xff] }
 0x268   : > { %15297 = vmatmul.mubr.msk.bf16.gmra.mrb[120].mxu1 %vm514_vm0, %v19687_v6  ;;  %v8880_v0 = vpack.c.bf16 %v8854_v52, %v8853_v4  ;;  %v17696_v52 = vld [vmem:[%s21257_s7 + $0xb0] sm:$0xff]  }
 0x269   : > { %15300 = vmatprep.mubr.msk.bf16.mxu1 %vm514_vm0, %v19690_v45 }
 0x26e   : > { %16013 = vmatmul.mubr.msk.bf16.gmra.mrb[20].mxu0 %vm514_vm0, %v8564_v10  ;;  %v8857_v10 = vld [vmem:[#allocation3 + $0xda] sm:$0xff] }
 0x26f   : > { %16016 = vmatprep.mubr.msk.bf16.mxu0 %vm514_vm0, %v8565_v51  ;;  %v8859_v51 = vld [vmem:[#allocation3 + $0xf2] sm:$0xff] }
 0x270   : > { %15301 = vmatmul.mubr.msk.bf16.gmra.mrb[124].mxu1 %vm514_vm0, %v19697_v27 }
 0x271   : > { %15312 = vmatprep.mubr.msk.bf16.mxu1 %vm514_vm0, %v19480_v41  ;;  %v8551_v41 = vld [vmem:[#allocation3 + $0x199] sm:$0xff] }
 0x272   : > { %v8568_v28 = vpack.c.bf16 %v8552_v47, %v8551_v41  ;;  %v2976_v41 = vld [vmem:[#allocation2 + $0x188] sm:$0xff] }
 0x276   : > { %16017 = vmatmul.mubr.msk.bf16.gmra.mrb[24].mxu0 %vm514_vm0, %v8566_v60  ;;  %v8863_v60 = vld [vmem:[#allocation3 + $0x122] sm:$0xff] }
 0x277   : > { %16020 = vmatprep.mubr.msk.bf16.mxu0 %vm514_vm0, %v8567_v33  ;;  %v8885_v55 = vpack.c.bf16 %v8864_v36, %v8863_v60  ;;  %v8868_v33 = vld [vmem:[#allocation3 + $0x15a] sm:$0xff]  ;;  %v19818_v36 = vld [vmem:[%s21257_s7 + $0xc0] sm:$0xff]  }
 0x278   : > { %15313 = vmatmul.mubr.msk.bf16.vlgmr.msra.gmra.mrb[96].mxu1 %vm514_vm0, %v19486_v58  ;;  %v17689_v58 = vld [vmem:[%s21257_s7 + $0x98] sm:$0xff]  }
 0x279   : > { %15316 = vmatprep.mubr.msk.bf16.mxu1 %vm514_vm0, %v19503_v8  ;;  %15345 = vmatpush3.bf16.msra.mxu1 %v19627_v15  ;;  %v8846_v8 = vld [vmem:[#allocation3 + $0x52] sm:$0xff]  ;;  %v8848_v15 = vld [vmem:[#allocation3 + $0x6a] sm:$0xff]  ;;  %v3280_v60 = vld [vmem:[#allocation2 + $0xb1] sm:$0xff] }
 0x27a   : > { %15346 = vmatprep.subr.bf16.mxu1 %v17687_v59  ;;  %v8876_v2 = vpack.c.bf16 %v8846_v8, %v8845_v61  ;;  %v8869_v8 = vld [vmem:[#allocation3 + $0x16a] sm:$0xff] }
 0x27d   : > { %15347 = vmatpush3.bf16.msra.mxu1 %v17687_v59  ;;  %v8865_v59 = vld [vmem:[#allocation3 + $0x13a] sm:$0xff] }
 0x27e   : > { %16021 = vmatmul.mubr.msk.bf16.gmra.mrb[28].mxu0 %vm514_vm0, %v8568_v28  ;;  %15348 = vmatprep.subr.bf16.mxu1 %v17688_v35  ;;  %v8887_v28 = vpack.c.bf16 %v8868_v33, %v8867_v26  ;;  %v3277_v33 = vld [vmem:[#allocation2 + $0x91] sm:$0xff] }
 0x27f   : > { %16032 = vmatprep.mubr.msk.bf16.mxu0 %vm514_vm0, %v8875_v40  ;;  %v3267_v40 = vld [vmem:[#allocation2 + $0x19] sm:$0xff]  ;;  %v9171_v26 = vld [vmem:[#allocation3 + $0x7b] sm:$0xff] }
 0x280   : > { %15317 = vmatmul.mubr.msk.bf16.gmra.mrb[100].mxu1 %vm514_vm0, %v19509_v63  ;;  %v8877_v63 = vpack.c.bf16 %v8848_v15, %v8847_v50  ;;  %v3270_v15 = vld [vmem:[#allocation2 + $0x39] sm:$0xff]  ;;  %v3272_v50 = vld [vmem:[#allocation2 + $0x51] sm:$0xff] }
 0x281   : > { %15320 = vmatprep.mubr.msk.bf16.mxu1 %vm514_vm0, %v19524_v1  ;;  %15349 = vmatpush3.bf16.msra.mxu1 %v17688_v35  ;;  %v17686_v1 = vld [vmem:[%s21259_s9 + $0x1b0] sm:$0xff]   ;;  %v3268_v35 = vld [vmem:[#allocation2 + $0x21] sm:$0xff]  ;;  %v19792_v21 = vpack.c.bf16 %v3272_v50, %v3271_v34 }
 0x282   : > { %15350 = vmatprep.subr.bf16.mxu1 %v17689_v58  ;;  %v9176_v34 = vld [vmem:[#allocation3 + $0xb3] sm:$0xff] }
 0x285   : > { %15351 = vmatpush3.bf16.msra.mxu1 %v17689_v58  ;;  %v8872_v58 = vld [vmem:[#allocation3 + $0x18a] sm:$0xff] }
 0x286   : > { %16033 = vmatmul.mubr.msk.bf16.vlgmr.msra.gmra.mrb[0].mxu0 %vm514_vm0, %v8876_v2  ;;  %15384 = vmatprep.subr.bf16.mxu1 %v19729_v20  ;;  %v8871_v2 = vld [vmem:[#allocation3 + $0x182] sm:$0xff] }
 0x287   : > { %16065 = vmatpush3.bf16.msra.mxu0 %v19661_v31  ;;  %16036 = vmatprep.mubr.msk.bf16.mxu0 %vm514_vm0, %v8877_v63  ;;  %v17690_v31 = vld [vmem:[%s21259_s9 + $0x1b8] sm:$0xff]  }
 0x288   : > { %15321 = vmatmul.mubr.msk.bf16.gmra.mrb[104].mxu1 %vm514_vm0, %v19529_v46  ;;  %16066 = vmatprep.subr.bf16.mxu0 %v17684_v3  ;;  %v8879_v46 = vpack.c.bf16 %v8852_v62, %v8851_v37  ;;  %v3269_v63 = vld [vmem:[#allocation2 + $0x31] sm:$0xff]  ;;  %v17695_v62 = vld [vmem:[%s21257_s7 + $0xa8] sm:$0xff]  }
 0x289   : > { %15324 = vmatprep.mubr.msk.bf16.mxu1 %vm514_vm0, %v19542_v7  ;;  %v19755_v7 = vld [vmem:[%s21259_s9 + $0x1c0] sm:$0xff]   ;;  %v8874_v37 = vld [vmem:[#allocation3 + $0x1a2] sm:$0xff] }
 0x28b   : > { %16067 = vmatpush3.bf16.msra.mxu0 %v17684_v3  ;;  %v8889_v3 = vpack.c.bf16 %v8872_v58, %v8871_v2  ;;  %v17698_v58 = vld [vmem:[%s21259_s9 + $0x1d8] sm:$0xff]  }
 0x28c   : > { %16068 = vmatprep.subr.bf16.mxu0 %v17686_v1  ;;  %v3283_v2 = vld [vmem:[#allocation2 + $0xd9] sm:$0xff] }
 0x28e   : > { %16037 = vmatmul.mubr.msk.bf16.gmra.mrb[4].mxu0 %vm514_vm0, %v8878_v39  ;;  %v8873_v39 = vld [vmem:[#allocation3 + $0x19a] sm:$0xff] }
 0x28f   : > { %16040 = vmatprep.mubr.msk.bf16.mxu0 %vm514_vm0, %v8879_v46  ;;  %16069 = vmatpush3.bf16.msra.mxu0 %v17686_v1  ;;  %v19786_v1 = vpack.c.bf16 %v3270_v15, %v3269_v63  ;;  %v9166_v46 = vld [vmem:[#allocation3 + $0x3b] sm:$0xff]  ;;  %v8890_v4 = vpack.c.bf16 %v8874_v37, %v8873_v39  ;;  %v3281_v15 = vld [vmem:[#allocation2 + $0xc1] sm:$0xff]  ;;  %v3286_v37 = vld [vmem:[#allocation2 + $0xf9] sm:$0xff] }
 0x290   : > { %15325 = vmatmul.mubr.msk.bf16.gmra.mrb[108].mxu1 %vm514_vm0, %v19545_v23  ;;  %16070 = vmatprep.subr.bf16.mxu0 %v17690_v31  ;;  %v8858_v23 = vld [vmem:[#allocation3 + $0xe2] sm:$0xff]  ;;  %v9175_v63 = vld [vmem:[#allocation3 + $0xab] sm:$0xff] }
 0x291   : > { %15328 = vmatprep.mubr.msk.bf16.mxu1 %vm514_vm0, %v19558_v19  ;;  %v8860_v19 = vld [vmem:[#allocation3 + $0xfa] sm:$0xff]  ;;  %v8882_v54 = vpack.c.bf16 %v8858_v23, %v8857_v10  ;;  %v9178_v39 = vld [vmem:[#allocation3 + $0xcb] sm:$0xff] }
 0x292   : > { %v8883_v57 = vpack.c.bf16 %v8860_v19, %v8859_v51  ;;  %v3275_v19 = vld [vmem:[#allocation2 + $0x79] sm:$0xff]  ;;  %v9168_v51 = vld [vmem:[#allocation3 + $0x53] sm:$0xff] }
 0x293   : > { %16071 = vmatpush3.bf16.msra.mxu0 %v17690_v31  ;;  %v9165_v31 = vld [vmem:[#allocation3 + $0x33] sm:$0xff] }
 0x294   : > { %16104 = vmatprep.subr.bf16.mxu0 %v19755_v7  ;;  %v9197_v11 = vpack.c.bf16 %v9166_v46, %v9165_v31  ;;  %v9202_v31 = vpack.c.bf16 %v9176_v34, %v9175_v63  ;;  %v3288_v46 = vld [vmem:[#allocation2 + $0x111] sm:$0xff]  ;;  %v9189_v63 = vld [vmem:[#allocation3 + $0x153] sm:$0xff] }
 0x295   : > { %v9190_v34 = vld [vmem:[#allocation3 + $0x15b] sm:$0xff] }
 0x296   : > { %16041 = vmatmul.mubr.msk.bf16.gmra.mrb[8].mxu0 %vm514_vm0, %v8880_v0  ;;  %v3276_v0 = vld [vmem:[#allocation2 + $0x81] sm:$0xff] }
 0x297   : > { %16044 = vmatprep.mubr.msk.bf16.mxu0 %vm514_vm0, %v8881_v49  ;;  %v3273_v49 = vld [vmem:[#allocation2 + $0x61] sm:$0xff]  ;;  %v19809_v10 = vpack.c.bf16 %v3276_v0, %v3275_v19  ;;  %v3287_v0 = vld [vmem:[#allocation2 + $0x109] sm:$0xff]  ;;  %v9180_v19 = vld [vmem:[#allocation3 + $0xe3] sm:$0xff] }
 0x298   : > { %15329 = vmatmul.mubr.msk.bf16.gmra.mrb[112].mxu1 %vm514_vm0, %v19561_v30  ;;  %v8862_v30 = vld [vmem:[#allocation3 + $0x112] sm:$0xff]  ;;  %v19803_v23 = vpack.c.bf16 %v3274_v24, %v3273_v49  ;;  %v3285_v24 = vld [vmem:[#allocation2 + $0xf1] sm:$0xff] }
 0x299   : > { %15332 = vmatprep.mubr.msk.bf16.mxu1 %vm514_vm0, %v19568_v9  ;;  %v8884_v9 = vpack.c.bf16 %v8862_v30, %v8861_v14  ;;  %v9170_v30 = vld [vmem:[#allocation3 + $0x6b] sm:$0xff]  ;;  %v9179_v49 = vld [vmem:[#allocation3 + $0xdb] sm:$0xff] }
 0x29a   : > { %v3278_v14 = vld [vmem:[#allocation2 + $0x99] sm:$0xff] }
 0x29e   : > { %16045 = vmatmul.mubr.msk.bf16.gmra.mrb[12].mxu0 %vm514_vm0, %v8882_v54  ;;  %v9167_v54 = vld [vmem:[#allocation3 + $0x4b] sm:$0xff] }
 0x29f   : > { %16048 = vmatprep.mubr.msk.bf16.mxu0 %vm514_vm0, %v8883_v57  ;;  %v9169_v57 = vld [vmem:[#allocation3 + $0x63] sm:$0xff] }
 0x2a0   : > { %15333 = vmatmul.mubr.msk.bf16.gmra.mrb[116].mxu1 %vm514_vm0, %v19571_v5  ;;  %v8866_v5 = vld [vmem:[#allocation3 + $0x142] sm:$0xff] }
 0x2a1   : > { %15336 = vmatprep.mubr.msk.bf16.mxu1 %vm514_vm0, %v19578_v44  ;;  %v2975_v44 = vld [vmem:[#allocation2 + $0x180] sm:$0xff]  ;;  %v8886_v47 = vpack.c.bf16 %v8866_v5, %v8865_v59  ;;  %v9199_v5 = vpack.c.bf16 %v9170_v30, %v9169_v57  ;;  %v19824_v59 = vpack.c.bf16 %v3278_v14, %v3277_v33  ;;  %v9204_v57 = vpack.c.bf16 %v9180_v19, %v9179_v49 }
 0x2a2   : > { %v19779_v29 = vpack.c.bf16 %v2976_v41, %v2975_v44  ;;  %v3279_v44 = vld [vmem:[#allocation2 + $0xa9] sm:$0xff]  ;;  %v3292_v30 = vld [vmem:[#allocation2 + $0x141] sm:$0xff] }
 0x2a3   : > { %v19829_v41 = vpack.c.bf16 %v3280_v60, %v3279_v44  ;;  %v9183_v33 = vld [vmem:[#allocation3 + $0x10b] sm:$0xff]  ;;  %v9184_v44 = vld [vmem:[#allocation3 + $0x113] sm:$0xff] }
 0x2a4   : > { %v9194_v49 = vld [vmem:[#allocation3 + $0x18b] sm:$0xff] }
 0x2a6   : > { %16049 = vmatmul.mubr.msk.bf16.gmra.mrb[16].mxu0 %vm514_vm0, %v8884_v9  ;;  %v9198_v9 = vpack.c.bf16 %v9168_v51, %v9167_v54  ;;  %v9182_v54 = vld [vmem:[#allocation3 + $0xfb] sm:$0xff] }
 0x2a7   : > { %16052 = vmatprep.mubr.msk.bf16.mxu0 %vm514_vm0, %v8885_v55  ;;  %v17692_v55 = vld [vmem:[%s21259_s9 + $0x1c8] sm:$0xff]  }
 0x2a8   : > { %15337 = vmatmul.mubr.msk.bf16.gmra.mrb[120].mxu1 %vm514_vm0, %v19581_v56  ;;  %v3299_v56 = vpack.c.bf16 %v3268_v35, %v3267_v40  ;;  %v9172_v35 = vld [vmem:[#allocation3 + $0x83] sm:$0xff]  ;;  %v9174_v40 = vld [vmem:[#allocation3 + $0x9b] sm:$0xff] }
 0x2a9   : > { %15340 = vmatprep.mubr.msk.bf16.mxu1 %vm514_vm0, %v19588_v17  ;;  %v8870_v17 = vld [vmem:[#allocation3 + $0x172] sm:$0xff] }
 0x2aa   : > { %v8888_v61 = vpack.c.bf16 %v8870_v17, %v8869_v8  ;;  %v3284_v17 = vld [vmem:[#allocation2 + $0xe1] sm:$0xff]  ;;  %v3290_v51 = vld [vmem:[#allocation2 + $0x129] sm:$0xff] }
 0x2ab   : > { %v19845_v50 = vpack.c.bf16 %v3284_v17, %v3283_v2  ;;  %v9188_v2 = vld [vmem:[#allocation3 + $0x143] sm:$0xff] }
 0x2ae   : > { %16053 = vmatmul.mubr.msk.bf16.gmra.mrb[20].mxu0 %vm514_vm0, %v8886_v47  ;;  %v17694_v47 = vld [vmem:[%s21259_s9 + $0x1d0] sm:$0xff]  }
 0x2af   : > { %16056 = vmatprep.mubr.msk.bf16.mxu0 %vm514_vm0, %v8887_v28  ;;  %v9173_v28 = vld [vmem:[#allocation3 + $0x93] sm:$0xff] }
 0x2b0   : > { %15341 = vmatmul.mubr.msk.bf16.gmra.mrb[124].mxu1 %vm514_vm0, %v19779_v29  ;;  %v9201_v8 = vpack.c.bf16 %v9174_v40, %v9173_v28  ;;  %v9206_v28 = vpack.c.bf16 %v9184_v44, %v9183_v33  ;;  %v3296_v40 = vld [vmem:[#allocation2 + $0x171] sm:$0xff]  ;;  %v9492_v44 = vld [vmem:[#allocation3 + $0x6c] sm:$0xff] }
 0x2b1   : > { %15352 = vmatprep.mubr.msk.bf16.mxu1 %vm514_vm0, %v3299_v56  ;;  %v9200_v56 = vpack.c.bf16 %v9172_v35, %v9171_v26  ;;  %v9186_v26 = vld [vmem:[#allocation3 + $0x12b] sm:$0xff] }
 0x2b2   : > { %v3294_v35 = vld [vmem:[#allocation2 + $0x159] sm:$0xff] }
 0x2b3   : > { %v9491_v33 = vld [vmem:[#allocation3 + $0x64] sm:$0xff] }
 0x2b6   : > { %16057 = vmatmul.mubr.msk.bf16.gmra.mrb[24].mxu0 %vm514_vm0, %v8888_v61 }
 0x2b7   : > { %16060 = vmatprep.mubr.msk.bf16.mxu0 %vm514_vm0, %v8889_v3  ;;  %v19852_v3 = vld [vmem:[%s21259_s9 + $0x1e0] sm:$0xff]  }
 0x2b8   : > { %15353 = vmatmul.mubr.msk.bf16.vlgmr.msra.gmra.mrb[96].mxu1 %vm514_vm0, %v19786_v1 }
 0x2b9   : > { %15356 = vmatprep.mubr.msk.bf16.mxu1 %vm514_vm0, %v19792_v21  ;;  %15385 = vmatpush3.bf16.msra.mxu1 %v19729_v20  ;;  %v17697_v20 = vld [vmem:[%s21257_s7 + $0xb8] sm:$0xff]  }
 0x2ba   : > { %15386 = vmatprep.subr.bf16.mxu1 %v17695_v62 }
 0x2bd   : > { %15387 = vmatpush3.bf16.msra.mxu1 %v17695_v62  ;;  %v9177_v62 = vld [vmem:[#allocation3 + $0xc3] sm:$0xff] }
 0x2be   : > { %16061 = vmatmul.mubr.msk.bf16.gmra.mrb[28].mxu0 %vm514_vm0, %v8890_v4  ;;  %15388 = vmatprep.subr.bf16.mxu1 %v17696_v52  ;;  %v19858_v4 = vpack.c.bf16 %v3286_v37, %v3285_v24  ;;  %v9192_v24 = vld [vmem:[#allocation3 + $0x173] sm:$0xff] }
 0x2bf   : > { %16072 = vmatprep.mubr.msk.bf16.mxu0 %vm514_vm0, %v9197_v11  ;;  %v19861_v11 = vpack.c.bf16 %v3288_v46, %v3287_v0  ;;  %v9193_v0 = vld [vmem:[#allocation3 + $0x183] sm:$0xff] }
 0x2c0   : > { %15357 = vmatmul.mubr.msk.bf16.gmra.mrb[100].mxu1 %vm514_vm0, %v19803_v23 }
 0x2c1   : > { %15360 = vmatprep.mubr.msk.bf16.mxu1 %vm514_vm0, %v19809_v10  ;;  %15389 = vmatpush3.bf16.msra.mxu1 %v17696_v52  ;;  %v9203_v52 = vpack.c.bf16 %v9178_v39, %v9177_v62  ;;  %v3297_v62 = vld [vmem:[#allocation2 + $0x181] sm:$0xff]  ;;  %v3298_v39 = vld [vmem:[#allocation2 + $0x189] sm:$0xff] }
 0x2c2   : > { %15390 = vmatprep.subr.bf16.mxu1 %v17697_v20  ;;  %v19888_v46 = vpack.c.bf16 %v3298_v39, %v3297_v62 }
 0x2c5   : > { %15391 = vmatpush3.bf16.msra.mxu1 %v17697_v20  ;;  %v9181_v20 = vld [vmem:[#allocation3 + $0xf3] sm:$0xff] }
 0x2c6   : > { %16073 = vmatmul.mubr.msk.bf16.vlgmr.msra.gmra.mrb[0].mxu0 %vm514_vm0, %v9198_v9  ;;  %15424 = vmatprep.subr.bf16.mxu1 %v19818_v36  ;;  %v9205_v14 = vpack.c.bf16 %v9182_v54, %v9181_v20  ;;  %v3289_v9 = vld [vmem:[#allocation2 + $0x121] sm:$0xff]  ;;  %v9211_v20 = vpack.c.bf16 %v9194_v49, %v9193_v0  ;;  %v9507_v49 = vld [vmem:[#allocation3 + $0x124] sm:$0xff] }
 0x2c7   : > { %16105 = vmatpush3.bf16.msra.mxu0 %v19755_v7  ;;  %16076 = vmatprep.mubr.msk.bf16.mxu0 %vm514_vm0, %v9199_v5  ;;  %v3282_v7 = vld [vmem:[#allocation2 + $0xc9] sm:$0xff]  ;;  %v19868_v60 = vpack.c.bf16 %v3290_v51, %v3289_v9  ;;  %v9196_v51 = vld [vmem:[#allocation3 + $0x1a3] sm:$0xff] }
 0x2c8   : > { %15361 = vmatmul.mubr.msk.bf16.gmra.mrb[104].mxu1 %vm514_vm0, %v19824_v59  ;;  %16106 = vmatprep.subr.bf16.mxu0 %v17692_v55  ;;  %v19842_v61 = vpack.c.bf16 %v3282_v7, %v3281_v15  ;;  %v9187_v15 = vld [vmem:[#allocation3 + $0x13b] sm:$0xff] }
 0x2c9   : > { %15364 = vmatprep.mubr.msk.bf16.mxu1 %vm514_vm0, %v19829_v41  ;;  %v9208_v37 = vpack.c.bf16 %v9188_v2, %v9187_v15  ;;  %v17703_v54 = vld [vmem:[%s21257_s7 + $0xc8] sm:$0xff]   ;;  %v9497_v15 = vld [vmem:[#allocation3 + $0xac] sm:$0xff] }
 0x2ca   : > { %v9498_v2 = vld [vmem:[#allocation3 + $0xb4] sm:$0xff] }
 0x2cb   : > { %16107 = vmatpush3.bf16.msra.mxu0 %v17692_v55  ;;  %v3291_v55 = vld [vmem:[#allocation2 + $0x139] sm:$0xff]  ;;  %v9524_v62 = vpack.c.bf16 %v9498_v2, %v9497_v15  ;;  %v9506_v0 = vld [vmem:[#allocation3 + $0x114] sm:$0xff]  ;;  %v17712_v15 = vld [vmem:[%s21257_s7 + $0xf0] sm:$0xff]  }
 0x2cc   : > { %16108 = vmatprep.subr.bf16.mxu0 %v17694_v47  ;;  %v19871_v5 = vpack.c.bf16 %v3292_v30, %v3291_v55  ;;  %v9488_v30 = vld [vmem:[#allocation3 + $0x3c] sm:$0xff]  ;;  %v3919_v2 = vld [vmem:[#allocation2 + $0x80] sm:$0xff] }
 0x2ce   : > { %16077 = vmatmul.mubr.msk.bf16.gmra.mrb[4].mxu0 %vm514_vm0, %v9200_v56  ;;  %v3293_v56 = vld [vmem:[#allocation2 + $0x151] sm:$0xff] }
 0x2cf   : > { %16080 = vmatprep.mubr.msk.bf16.mxu0 %vm514_vm0, %v9201_v8  ;;  %16109 = vmatpush3.bf16.msra.mxu0 %v17694_v47  ;;  %v9185_v47 = vld [vmem:[#allocation3 + $0x123] sm:$0xff]  ;;  %v19878_v17 = vpack.c.bf16 %v3294_v35, %v3293_v56  ;;  %v17700_v35 = vld [vmem:[%s21259_s9 + $0x1e8] sm:$0xff]  }
 0x2d0   : > { %15365 = vmatmul.mubr.msk.bf16.gmra.mrb[108].mxu1 %vm514_vm0, %v19842_v61  ;;  %16110 = vmatprep.subr.bf16.mxu0 %v17698_v58  ;;  %v9207_v7 = vpack.c.bf16 %v9186_v26, %v9185_v47  ;;  %v19920_v47 = vld [vmem:[%s21257_s7 + $0xe0] sm:$0xff]   ;;  %v9496_v56 = vld [vmem:[#allocation3 + $0x9c] sm:$0xff] }
 0x2d1   : > { %15368 = vmatprep.mubr.msk.bf16.mxu1 %vm514_vm0, %v19845_v50 }
 0x2d3   : > { %16111 = vmatpush3.bf16.msra.mxu0 %v17698_v58  ;;  %v3295_v58 = vld [vmem:[#allocation2 + $0x169] sm:$0xff] }
 0x2d4   : > { %16144 = vmatprep.subr.bf16.mxu0 %v19852_v3  ;;  %v19881_v8 = vpack.c.bf16 %v3296_v40, %v3295_v58  ;;  %v9494_v40 = vld [vmem:[#allocation3 + $0x84] sm:$0xff] }
 0x2d6   : > { %16081 = vmatmul.mubr.msk.bf16.gmra.mrb[8].mxu0 %vm514_vm0, %v9202_v31  ;;  %v9209_v31 = vpack.c.bf16 %v9190_v34, %v9189_v63  ;;  %v9499_v63 = vld [vmem:[#allocation3 + $0xc4] sm:$0xff]  ;;  %v9500_v34 = vld [vmem:[#allocation3 + $0xcc] sm:$0xff] }
 0x2d7   : > { %16084 = vmatprep.mubr.msk.bf16.mxu0 %vm514_vm0, %v9203_v52  ;;  %v9191_v52 = vld [vmem:[#allocation3 + $0x16b] sm:$0xff]  ;;  %v9525_v39 = vpack.c.bf16 %v9500_v34, %v9499_v63 }
 0x2d8   : > { %15369 = vmatmul.mubr.msk.bf16.gmra.mrb[112].mxu1 %vm514_vm0, %v19858_v4  ;;  %v9210_v19 = vpack.c.bf16 %v9192_v24, %v9191_v52  ;;  %v9810_v34 = vld [vmem:[#allocation3 + $0x48] sm:$0xff] }
 0x2d9   : > { %15372 = vmatprep.mubr.msk.bf16.mxu1 %vm514_vm0, %v19861_v11 }
 0x2de   : > { %16085 = vmatmul.mubr.msk.bf16.gmra.mrb[12].mxu0 %vm514_vm0, %v9204_v57  ;;  %v9487_v57 = vld [vmem:[#allocation3 + $0x34] sm:$0xff] }
 0x2df   : > { %16088 = vmatprep.mubr.msk.bf16.mxu0 %vm514_vm0, %v9205_v14  ;;  %v17704_v14 = vld [vmem:[%s21257_s7 + $0xd0] sm:$0xff]   ;;  %v9519_v55 = vpack.c.bf16 %v9488_v30, %v9487_v57 }
 0x2e0   : > { %15373 = vmatmul.mubr.msk.bf16.gmra.mrb[116].mxu1 %vm514_vm0, %v19868_v60  ;;  %v3620_v57 = vld [vmem:[#allocation2 + $0x18a] sm:$0xff] }
 0x2e1   : > { %15376 = vmatprep.mubr.msk.bf16.mxu1 %vm514_vm0, %v19871_v5 }
 0x2e6   : > { %16089 = vmatmul.mubr.msk.bf16.gmra.mrb[16].mxu0 %vm514_vm0, %v9206_v28  ;;  %v9493_v28 = vld [vmem:[#allocation3 + $0x7c] sm:$0xff] }
 0x2e7   : > { %16092 = vmatprep.mubr.msk.bf16.mxu0 %vm514_vm0, %v9207_v7  ;;  %v9495_v7 = vld [vmem:[#allocation3 + $0x94] sm:$0xff]  ;;  %v9522_v58 = vpack.c.bf16 %v9494_v40, %v9493_v28 }
 0x2e8   : > { %15377 = vmatmul.mubr.msk.bf16.gmra.mrb[120].mxu1 %vm514_vm0, %v19878_v17  ;;  %v3916_v40 = vld [vmem:[#allocation2 + $0x60] sm:$0xff] }
 0x2e9   : > { %15380 = vmatprep.mubr.msk.bf16.mxu1 %vm514_vm0, %v19881_v8 }
 0x2ee   : > { %16093 = vmatmul.mubr.msk.bf16.gmra.mrb[20].mxu0 %vm514_vm0, %v9208_v37  ;;  %v9503_v37 = vld [vmem:[#allocation3 + $0xf4] sm:$0xff] }
 0x2ef   : > { %16096 = vmatprep.mubr.msk.bf16.mxu0 %vm514_vm0, %v9209_v31  ;;  %v9504_v31 = vld [vmem:[#allocation3 + $0xfc] sm:$0xff] }
 0x2f0   : > { %15381 = vmatmul.mubr.msk.bf16.gmra.mrb[124].mxu1 %vm514_vm0, %v19888_v46  ;;  %v9527_v24 = vpack.c.bf16 %v9504_v31, %v9503_v37  ;;  %v3920_v37 = vld [vmem:[#allocation2 + $0x90] sm:$0xff] }
 0x2f1   : > { %15392 = vmatprep.mubr.msk.bf16.mxu1 %vm514_vm0, %v19595_v53  ;;  %v9195_v53 = vld [vmem:[#allocation3 + $0x19b] sm:$0xff] }
 0x2f2   : > { %v9212_v9 = vpack.c.bf16 %v9196_v51, %v9195_v53  ;;  %v9511_v53 = vld [vmem:[#allocation3 + $0x154] sm:$0xff] }
 0x2f3   : > { %v3619_v51 = vld [vmem:[#allocation2 + $0x182] sm:$0xff] }
 0x2f6   : > { %16097 = vmatmul.mubr.msk.bf16.gmra.mrb[24].mxu0 %vm514_vm0, %v9210_v19 }
 0x2f7   : > { %16100 = vmatprep.mubr.msk.bf16.mxu0 %vm514_vm0, %v9211_v20 }
 0x2f8   : > { %15393 = vmatmul.mubr.msk.bf16.vlgmr.msra.gmra.mrb[96].mxu1 %vm514_vm0, %v19601_v16  ;;  %v17705_v16 = vld [vmem:[%s21257_s7 + $0xd8] sm:$0xff]  }
 0x2f9   : > { %15396 = vmatprep.mubr.msk.bf16.mxu1 %vm514_vm0, %v19612_v18  ;;  %15425 = vmatpush3.bf16.msra.mxu1 %v19818_v36  ;;  %v9489_v18 = vld [vmem:[#allocation3 + $0x4c] sm:$0xff]  ;;  %v9490_v36 = vld [vmem:[#allocation3 + $0x54] sm:$0xff] }
 0x2fa   : > { %15426 = vmatprep.subr.bf16.mxu1 %v17703_v54  ;;  %v9520_v26 = vpack.c.bf16 %v9490_v36, %v9489_v18  ;;  %v9514_v18 = vld [vmem:[#allocation3 + $0x174] sm:$0xff]  ;;  %v9515_v36 = vld [vmem:[#allocation3 + $0x184] sm:$0xff] }
 0x2fd   : > { %15427 = vmatpush3.bf16.msra.mxu1 %v17703_v54  ;;  %v9510_v54 = vld [vmem:[#allocation3 + $0x144] sm:$0xff] }
 0x2fe   : > { %16101 = vmatmul.mubr.msk.bf16.gmra.mrb[28].mxu0 %vm514_vm0, %v9212_v9  ;;  %15428 = vmatprep.subr.bf16.mxu1 %v17704_v14 }
 0x2ff   : > { %16112 = vmatprep.mubr.msk.bf16.mxu0 %vm514_vm0, %v9519_v55  ;;  %v19970_v55 = vpack.c.bf16 %v3620_v57, %v3619_v51  ;;  %v3924_v51 = vld [vmem:[#allocation2 + $0xc0] sm:$0xff] }
 0x300   : > { %15397 = vmatmul.mubr.msk.bf16.gmra.mrb[100].mxu1 %vm514_vm0, %v19618_v32  ;;  %v9521_v32 = vpack.c.bf16 %v9492_v44, %v9491_v33  ;;  %v9516_v33 = vld [vmem:[#allocation3 + $0x18c] sm:$0xff]  ;;  %v3915_v44 = vld [vmem:[#allocation2 + $0x50] sm:$0xff] }
 0x301   : > { %15400 = vmatprep.mubr.msk.bf16.mxu1 %vm514_vm0, %v19633_v48  ;;  %15429 = vmatpush3.bf16.msra.mxu1 %v17704_v14  ;;  %v17702_v48 = vld [vmem:[%s21259_s9 + $0x1f0] sm:$0xff]   ;;  %v3913_v14 = vld [vmem:[#allocation2 + $0x38] sm:$0xff] }
 0x302   : > { %15430 = vmatprep.subr.bf16.mxu1 %v17705_v16 }
 0x305   : > { %15431 = vmatpush3.bf16.msra.mxu1 %v17705_v16  ;;  %v3912_v16 = vld [vmem:[#allocation2 + $0x30] sm:$0xff] }
 0x306   : > { %16113 = vmatmul.mubr.msk.bf16.vlgmr.msra.gmra.mrb[0].mxu0 %vm514_vm0, %v9520_v26  ;;  %15464 = vmatprep.subr.bf16.mxu1 %v19920_v47 }
 0x307   : > { %16145 = vmatpush3.bf16.msra.mxu0 %v19852_v3  ;;  %16116 = vmatprep.mubr.msk.bf16.mxu0 %vm514_vm0, %v9521_v32  ;;  %v17706_v3 = vld [vmem:[%s21259_s9 + $0x1f8] sm:$0xff]   ;;  %v9533_v32 = vpack.c.bf16 %v9516_v33, %v9515_v36 }
 0x308   : > { %15401 = vmatmul.mubr.msk.bf16.gmra.mrb[104].mxu1 %vm514_vm0, %v19638_v42  ;;  %16146 = vmatprep.subr.bf16.mxu0 %v17700_v35  ;;  %v9523_v42 = vpack.c.bf16 %v9496_v56, %v9495_v7  ;;  %v17711_v7 = vld [vmem:[%s21257_s7 + $0xe8] sm:$0xff]   ;;  %v17714_v36 = vld [vmem:[%s21259_s9 + $0x218] sm:$0xff]  }
 0x309   : > { %15404 = vmatprep.mubr.msk.bf16.mxu1 %vm514_vm0, %v19651_v38  ;;  %v19946_v38 = vld [vmem:[%s21259_s9 + $0x200] sm:$0xff]  }
 0x30b   : > { %16147 = vmatpush3.bf16.msra.mxu0 %v17700_v35  ;;  %v3917_v35 = vld [vmem:[#allocation2 + $0x68] sm:$0xff] }
 0x30c   : > { %16148 = vmatprep.subr.bf16.mxu0 %v17702_v48  ;;  %v3946_v56 = vpack.c.bf16 %v3917_v35, %v3916_v40  ;;  %v3928_v35 = vld [vmem:[#allocation2 + $0xf0] sm:$0xff] }
 0x30d   : > { %v9823_v40 = vld [vmem:[#allocation3 + $0xe0] sm:$0xff] }
 0x30e   : > { %16117 = vmatmul.mubr.msk.bf16.gmra.mrb[4].mxu0 %vm514_vm0, %v9522_v58  ;;  %v9517_v58 = vld [vmem:[#allocation3 + $0x19c] sm:$0xff] }
 0x30f   : > { %16120 = vmatprep.mubr.msk.bf16.mxu0 %vm514_vm0, %v9523_v42  ;;  %16149 = vmatpush3.bf16.msra.mxu0 %v17702_v48  ;;  %v3914_v48 = vld [vmem:[#allocation2 + $0x48] sm:$0xff]  ;;  %v9811_v42 = vld [vmem:[#allocation3 + $0x50] sm:$0xff] }
 0x310   : > { %15405 = vmatmul.mubr.msk.bf16.gmra.mrb[108].mxu1 %vm514_vm0, %v19654_v22  ;;  %16150 = vmatprep.subr.bf16.mxu0 %v17706_v3  ;;  %v9501_v22 = vld [vmem:[#allocation3 + $0xdc] sm:$0xff]  ;;  %v3945_v28 = vpack.c.bf16 %v3915_v44, %v3914_v48  ;;  %v3926_v44 = vld [vmem:[#allocation2 + $0xd8] sm:$0xff]  ;;  %v20020_v48 = vld [vmem:[%s21259_s9 + $0x220] sm:$0xff]  }
 0x311   : > { %15408 = vmatprep.mubr.msk.bf16.mxu1 %vm514_vm0, %v19667_v13  ;;  %v9502_v13 = vld [vmem:[#allocation3 + $0xe4] sm:$0xff] }
 0x312   : > { %v9526_v52 = vpack.c.bf16 %v9502_v13, %v9501_v22  ;;  %v3918_v22 = vld [vmem:[#allocation2 + $0x78] sm:$0xff] }
 0x313   : > { %16151 = vmatpush3.bf16.msra.mxu0 %v17706_v3  ;;  %v9518_v3 = vld [vmem:[#allocation3 + $0x1a4] sm:$0xff]  ;;  %v3947_v13 = vpack.c.bf16 %v3919_v2, %v3918_v22  ;;  %v3930_v2 = vld [vmem:[#allocation2 + $0x108] sm:$0xff]  ;;  %v9827_v22 = vld [vmem:[#allocation3 + $0x110] sm:$0xff] }
 0x314   : > { %16184 = vmatprep.subr.bf16.mxu0 %v19946_v38  ;;  %v9534_v63 = vpack.c.bf16 %v9518_v3, %v9517_v58  ;;  %v9822_v3 = vld [vmem:[#allocation3 + $0xd8] sm:$0xff] }
 0x316   : > { %16121 = vmatmul.mubr.msk.bf16.gmra.mrb[8].mxu0 %vm514_vm0, %v9524_v62  ;;  %v3921_v62 = vld [vmem:[#allocation2 + $0x98] sm:$0xff] }
 0x317   : > { %16124 = vmatprep.mubr.msk.bf16.mxu0 %vm514_vm0, %v9525_v39  ;;  %v9842_v39 = vpack.c.bf16 %v9811_v42, %v9810_v34  ;;  %v3948_v31 = vpack.c.bf16 %v3921_v62, %v3920_v37  ;;  %v3933_v42 = vld [vmem:[#allocation2 + $0x128] sm:$0xff]  ;;  %v3932_v34 = vld [vmem:[#allocation2 + $0x120] sm:$0xff] }
 0x318   : > { %15409 = vmatmul.mubr.msk.bf16.gmra.mrb[112].mxu1 %vm514_vm0, %v19670_v12  ;;  %v9505_v12 = vld [vmem:[#allocation3 + $0x10c] sm:$0xff]  ;;  %v3954_v62 = vpack.c.bf16 %v3933_v42, %v3932_v34  ;;  %v17720_v42 = vld [vmem:[%s21257_s7 + $0x110] sm:$0xff]  }
 0x319   : > { %15412 = vmatprep.mubr.msk.bf16.mxu1 %vm514_vm0, %v19677_v43  ;;  %v9508_v43 = vld [vmem:[#allocation3 + $0x12c] sm:$0xff]  ;;  %v9528_v19 = vpack.c.bf16 %v9506_v0, %v9505_v12  ;;  %v9812_v0 = vld [vmem:[#allocation3 + $0x60] sm:$0xff] }
 0x31a   : > { %v9529_v20 = vpack.c.bf16 %v9508_v43, %v9507_v49  ;;  %v19997_v12 = vld [vmem:[%s21257_s7 + $0x100] sm:$0xff]   ;;  %v3923_v49 = vld [vmem:[#allocation2 + $0xb0] sm:$0xff] }
 0x31b   : > { %v3935_v37 = vld [vmem:[#allocation2 + $0x140] sm:$0xff]  ;;  %v10134_v34 = vld [vmem:[#allocation3 + $0x61] sm:$0xff] }
 0x31e   : > { %16125 = vmatmul.mubr.msk.bf16.gmra.mrb[12].mxu0 %vm514_vm0, %v9526_v52  ;;  %v9813_v52 = vld [vmem:[#allocation3 + $0x68] sm:$0xff] }
 0x31f   : > { %16128 = vmatprep.mubr.msk.bf16.mxu0 %vm514_vm0, %v9527_v24  ;;  %v9815_v24 = vld [vmem:[#allocation3 + $0x80] sm:$0xff]  ;;  %v9843_v43 = vpack.c.bf16 %v9813_v52, %v9812_v0  ;;  %v3937_v52 = vld [vmem:[#allocation2 + $0x158] sm:$0xff] }
 0x320   : > { %15413 = vmatmul.mubr.msk.bf16.gmra.mrb[116].mxu1 %vm514_vm0, %v19680_v25  ;;  %v9509_v25 = vld [vmem:[#allocation3 + $0x13c] sm:$0xff]  ;;  %v3934_v0 = vld [vmem:[#allocation2 + $0x138] sm:$0xff] }
 0x321   : > { %15416 = vmatprep.mubr.msk.bf16.mxu1 %vm514_vm0, %v19687_v6  ;;  %v9512_v6 = vld [vmem:[#allocation3 + $0x15c] sm:$0xff]  ;;  %v9530_v30 = vpack.c.bf16 %v9510_v54, %v9509_v25 }
 0x322   : > { %v9531_v9 = vpack.c.bf16 %v9512_v6, %v9511_v53  ;;  %v17708_v25 = vld [vmem:[%s21259_s9 + $0x208] sm:$0xff]  }
 0x323   : > { %v3922_v53 = vld [vmem:[#allocation2 + $0xa8] sm:$0xff] }
 0x324   : > { %v3949_v6 = vpack.c.bf16 %v3923_v49, %v3922_v53  ;;  %v3955_v49 = vpack.c.bf16 %v3935_v37, %v3934_v0  ;;  %v3939_v53 = vld [vmem:[#allocation2 + $0x170] sm:$0xff]  ;;  %v10141_v37 = vld [vmem:[#allocation3 + $0xb1] sm:$0xff] }
 0x325   : > { %v10145_v0 = vld [vmem:[#allocation3 + $0xe1] sm:$0xff] }
 0x326   : > { %16129 = vmatmul.mubr.msk.bf16.gmra.mrb[16].mxu0 %vm514_vm0, %v9528_v19  ;;  %v9814_v19 = vld [vmem:[#allocation3 + $0x78] sm:$0xff] }
 0x327   : > { %16132 = vmatprep.mubr.msk.bf16.mxu0 %vm514_vm0, %v9529_v20  ;;  %v3925_v20 = vld [vmem:[#allocation2 + $0xc8] sm:$0xff]  ;;  %v9844_v54 = vpack.c.bf16 %v9815_v24, %v9814_v19 }
 0x328   : > { %15417 = vmatmul.mubr.msk.bf16.gmra.mrb[120].mxu1 %vm514_vm0, %v19690_v45  ;;  %v3944_v45 = vpack.c.bf16 %v3913_v14, %v3912_v16  ;;  %v3950_v57 = vpack.c.bf16 %v3925_v20, %v3924_v51  ;;  %v9817_v14 = vld [vmem:[#allocation3 + $0x98] sm:$0xff]  ;;  %v9816_v16 = vld [vmem:[#allocation3 + $0x90] sm:$0xff]  ;;  %v9829_v20 = vld [vmem:[#allocation3 + $0x128] sm:$0xff] }
 0x329   : > { %15420 = vmatprep.mubr.msk.bf16.mxu1 %vm514_vm0, %v19697_v27  ;;  %v9513_v27 = vld [vmem:[#allocation3 + $0x16c] sm:$0xff]  ;;  %v9830_v51 = vld [vmem:[#allocation3 + $0x138] sm:$0xff] }
 0x32a   : > { %v9532_v26 = vpack.c.bf16 %v9514_v18, %v9513_v27  ;;  %v9845_v27 = vpack.c.bf16 %v9817_v14, %v9816_v16  ;;  %v9818_v18 = vld [vmem:[#allocation3 + $0xa8] sm:$0xff] }
 0x32b   : > { %v3942_v16 = vld [vmem:[#allocation2 + $0x198] sm:$0xff] }
 0x32e   : > { %16133 = vmatmul.mubr.msk.bf16.gmra.mrb[20].mxu0 %vm514_vm0, %v9530_v30  ;;  %v17710_v30 = vld [vmem:[%s21259_s9 + $0x210] sm:$0xff]  }
 0x32f   : > { %16136 = vmatprep.mubr.msk.bf16.mxu0 %vm514_vm0, %v9531_v9  ;;  %v9819_v9 = vld [vmem:[#allocation3 + $0xb0] sm:$0xff] }
 0x330   : > { %15421 = vmatmul.mubr.msk.bf16.gmra.mrb[124].mxu1 %vm514_vm0, %v19970_v55  ;;  %v9846_v33 = vpack.c.bf16 %v9819_v9, %v9818_v18  ;;  %v9833_v9 = vld [vmem:[#allocation3 + $0x158] sm:$0xff]  ;;  %v9832_v18 = vld [vmem:[#allocation3 + $0x150] sm:$0xff] }
 0x331   : > { %15432 = vmatprep.mubr.msk.bf16.mxu1 %vm514_vm0, %v3944_v45  ;;  %v3927_v45 = vld [vmem:[#allocation2 + $0xe0] sm:$0xff] }
 0x336   : > { %16137 = vmatmul.mubr.msk.bf16.gmra.mrb[24].mxu0 %vm514_vm0, %v9532_v26  ;;  %v3951_v26 = vpack.c.bf16 %v3927_v45, %v3926_v44  ;;  %v3943_v45 = vld [vmem:[#allocation2 + $0x1a0] sm:$0xff] }
 0x337   : > { %16140 = vmatprep.mubr.msk.bf16.mxu0 %vm514_vm0, %v9533_v32 }
 0x338   : > { %15433 = vmatmul.mubr.msk.bf16.vlgmr.msra.gmra.mrb[96].mxu1 %vm514_vm0, %v3945_v28  ;;  %v9821_v28 = vld [vmem:[#allocation3 + $0xc8] sm:$0xff] }
 0x339   : > { %15436 = vmatprep.mubr.msk.bf16.mxu1 %vm514_vm0, %v3946_v56  ;;  %15465 = vmatpush3.bf16.msra.mxu1 %v19920_v47  ;;  %v17713_v47 = vld [vmem:[%s21257_s7 + $0xf8] sm:$0xff]   ;;  %v3931_v56 = vld [vmem:[#allocation2 + $0x110] sm:$0xff] }
 0x33a   : > { %15466 = vmatprep.subr.bf16.mxu1 %v17711_v7 }
 0x33d   : > { %15467 = vmatpush3.bf16.msra.mxu1 %v17711_v7  ;;  %v9820_v7 = vld [vmem:[#allocation3 + $0xc0] sm:$0xff] }
 0x33e   : > { %16141 = vmatmul.mubr.msk.bf16.gmra.mrb[28].mxu0 %vm514_vm0, %v9534_v63  ;;  %15468 = vmatprep.subr.bf16.mxu1 %v17712_v15  ;;  %v9847_v58 = vpack.c.bf16 %v9821_v28, %v9820_v7  ;;  %v3953_v63 = vpack.c.bf16 %v3931_v56, %v3930_v2  ;;  %v17719_v7 = vld [vmem:[%s21257_s7 + $0x108] sm:$0xff]   ;;  %v9840_v56 = vld [vmem:[#allocation3 + $0x1b0] sm:$0xff] }
 0x33f   : > { %16152 = vmatprep.mubr.msk.bf16.mxu0 %vm514_vm0, %v9842_v39  ;;  %v9825_v39 = vld [vmem:[#allocation3 + $0xf8] sm:$0xff] }
 0x340   : > { %15437 = vmatmul.mubr.msk.bf16.gmra.mrb[100].mxu1 %vm514_vm0, %v3947_v13  ;;  %v9824_v13 = vld [vmem:[#allocation3 + $0xf0] sm:$0xff] }
 0x341   : > { %15440 = vmatprep.mubr.msk.bf16.mxu1 %vm514_vm0, %v3948_v31  ;;  %15469 = vmatpush3.bf16.msra.mxu1 %v17712_v15  ;;  %v9848_v15 = vpack.c.bf16 %v9823_v40, %v9822_v3  ;;  %v9826_v31 = vld [vmem:[#allocation3 + $0x108] sm:$0xff]  ;;  %v10133_v3 = vld [vmem:[#allocation3 + $0x51] sm:$0xff] }
 0x342   : > { %15470 = vmatprep.subr.bf16.mxu1 %v17713_v47  ;;  %v9850_v24 = vpack.c.bf16 %v9827_v22, %v9826_v31 }
 0x345   : > { %15471 = vmatpush3.bf16.msra.mxu1 %v17713_v47  ;;  %v9849_v47 = vpack.c.bf16 %v9825_v39, %v9824_v13  ;;  %v10136_v39 = vld [vmem:[#allocation3 + $0x79] sm:$0xff] }
 0x346   : > { %16153 = vmatmul.mubr.msk.bf16.vlgmr.msra.gmra.mrb[0].mxu0 %vm514_vm0, %v9843_v43  ;;  %15504 = vmatprep.subr.bf16.mxu1 %v19997_v12  ;;  %v3936_v43 = vld [vmem:[#allocation2 + $0x150] sm:$0xff] }
 0x347   : > { %16185 = vmatpush3.bf16.msra.mxu0 %v19946_v38  ;;  %16156 = vmatprep.mubr.msk.bf16.mxu0 %vm514_vm0, %v9844_v54  ;;  %v3929_v38 = vld [vmem:[#allocation2 + $0xf8] sm:$0xff]  ;;  %v3956_v19 = vpack.c.bf16 %v3937_v52, %v3936_v43  ;;  %v9828_v54 = vld [vmem:[#allocation3 + $0x120] sm:$0xff] }
 0x348   : > { %15441 = vmatmul.mubr.msk.bf16.gmra.mrb[104].mxu1 %vm514_vm0, %v3949_v6  ;;  %16186 = vmatprep.subr.bf16.mxu0 %v17708_v25  ;;  %v3952_v32 = vpack.c.bf16 %v3929_v38, %v3928_v35  ;;  %v9851_v6 = vpack.c.bf16 %v9829_v20, %v9828_v54  ;;  %v9853_v38 = vpack.c.bf16 %v9833_v9, %v9832_v18  ;;  %v9839_v35 = vld [vmem:[#allocation3 + $0x1a0] sm:$0xff]  ;;  %v4265_v9 = vld [vmem:[#allocation2 + $0x1a1] sm:$0xff]  ;;  %v10156_v18 = vld [vmem:[#allocation3 + $0x169] sm:$0xff] }
 0x349   : > { %15444 = vmatprep.mubr.msk.bf16.mxu1 %vm514_vm0, %v3950_v57  ;;  %v10139_v13 = vld [vmem:[#allocation3 + $0x99] sm:$0xff] }
 0x34b   : > { %16187 = vmatpush3.bf16.msra.mxu0 %v17708_v25  ;;  %v9831_v25 = vld [vmem:[#allocation3 + $0x140] sm:$0xff] }
 0x34c   : > { %16188 = vmatprep.subr.bf16.mxu0 %v17710_v30  ;;  %v9852_v57 = vpack.c.bf16 %v9831_v25, %v9830_v51  ;;  %v10146_v25 = vld [vmem:[#allocation3 + $0xf1] sm:$0xff]  ;;  %v10150_v51 = vld [vmem:[#allocation3 + $0x121] sm:$0xff] }
 0x34e   : > { %16157 = vmatmul.mubr.msk.bf16.gmra.mrb[4].mxu0 %vm514_vm0, %v9845_v27  ;;  %v9835_v27 = vld [vmem:[#allocation3 + $0x170] sm:$0xff] }
 0x34f   : > { %16160 = vmatprep.mubr.msk.bf16.mxu0 %vm514_vm0, %v9846_v33  ;;  %16189 = vmatpush3.bf16.msra.mxu0 %v17710_v30  ;;  %v3938_v30 = vld [vmem:[#allocation2 + $0x168] sm:$0xff]  ;;  %v3959_v33 = vpack.c.bf16 %v3943_v45, %v3942_v16 }
 0x350   : > { %15445 = vmatmul.mubr.msk.bf16.gmra.mrb[108].mxu1 %vm514_vm0, %v3951_v26  ;;  %16190 = vmatprep.subr.bf16.mxu0 %v17714_v36  ;;  %v3957_v14 = vpack.c.bf16 %v3939_v53, %v3938_v30  ;;  %v9837_v26 = vld [vmem:[#allocation3 + $0x188] sm:$0xff]  ;;  %v10152_v30 = vld [vmem:[#allocation3 + $0x139] sm:$0xff]  ;;  %v10157_v16 = vld [vmem:[#allocation3 + $0x171] sm:$0xff] }
 0x351   : > { %15448 = vmatprep.mubr.msk.bf16.mxu1 %vm514_vm0, %v3952_v32  ;;  %v9836_v32 = vld [vmem:[#allocation3 + $0x180] sm:$0xff]  ;;  %v10148_v53 = vld [vmem:[#allocation3 + $0x109] sm:$0xff]  ;;  %v10154_v45 = vld [vmem:[#allocation3 + $0x151] sm:$0xff] }
 0x352   : > { %v9855_v28 = vpack.c.bf16 %v9837_v26, %v9836_v32  ;;  %v10160_v26 = vld [vmem:[#allocation3 + $0x199] sm:$0xff] }
 0x353   : > { %16191 = vmatpush3.bf16.msra.mxu0 %v17714_v36  ;;  %v9834_v36 = vld [vmem:[#allocation3 + $0x168] sm:$0xff]  ;;  %v4558_v32 = vld [vmem:[#allocation2 + $0x4a] sm:$0xff] }
 0x354   : > { %16224 = vmatprep.subr.bf16.mxu0 %v20020_v48  ;;  %v9854_v44 = vpack.c.bf16 %v9835_v27, %v9834_v36  ;;  %v4556_v36 = vld [vmem:[#allocation2 + $0x32] sm:$0xff] }
 0x356   : > { %16161 = vmatmul.mubr.msk.bf16.gmra.mrb[8].mxu0 %vm514_vm0, %v9847_v58  ;;  %v9841_v58 = vld [vmem:[#allocation3 + $0x1b8] sm:$0xff] }
 0x357   : > { %16164 = vmatprep.mubr.msk.bf16.mxu0 %vm514_vm0, %v9848_v15  ;;  %v10132_v15 = vld [vmem:[#allocation3 + $0x49] sm:$0xff] }
 0x358   : > { %15449 = vmatmul.mubr.msk.bf16.gmra.mrb[112].mxu1 %vm514_vm0, %v3953_v63  ;;  %v20055_v2 = vpack.c.bf16 %v10133_v3, %v10132_v15  ;;  %v20070_v63 = vld [vmem:[%s21259_s9 + $0x20] sm:$0xff]   ;;  %v17727_v3 = vld [vmem:[%s21259_s9 + $0x28] sm:$0xff]  }
 0x359   : > { %15452 = vmatprep.mubr.msk.bf16.mxu1 %vm514_vm0, %v3954_v62  ;;  %v10162_v15 = vld [vmem:[#allocation3 + $0x1b1] sm:$0xff] }
 0x35e   : > { %16165 = vmatmul.mubr.msk.bf16.gmra.mrb[12].mxu0 %vm514_vm0, %v9849_v47  ;;  %v10138_v47 = vld [vmem:[#allocation3 + $0x91] sm:$0xff] }
 0x35f   : > { %16168 = vmatprep.mubr.msk.bf16.mxu0 %vm514_vm0, %v9850_v24  ;;  %v20092_v31 = vpack.c.bf16 %v10139_v13, %v10138_v47  ;;  %v10143_v24 = vld [vmem:[#allocation3 + $0xc9] sm:$0xff] }
 0x360   : > { %15453 = vmatmul.mubr.msk.bf16.gmra.mrb[116].mxu1 %vm514_vm0, %v3955_v49  ;;  %v10142_v49 = vld [vmem:[#allocation3 + $0xc1] sm:$0xff] }
 0x361   : > { %15456 = vmatprep.mubr.msk.bf16.mxu1 %vm514_vm0, %v3956_v19  ;;  %v20112_v43 = vpack.c.bf16 %v10143_v24, %v10142_v49  ;;  %v10144_v19 = vld [vmem:[#allocation3 + $0xd9] sm:$0xff]  ;;  %v4564_v13 = vld [vmem:[#allocation2 + $0x92] sm:$0xff]  ;;  %v10457_v24 = vld [vmem:[#allocation3 + $0x6a] sm:$0xff] }
 0x362   : > { %v20115_v20 = vpack.c.bf16 %v10145_v0, %v10144_v19  ;;  %v10456_v0 = vld [vmem:[#allocation3 + $0x62] sm:$0xff]  ;;  %v20183_v19 = vld [vmem:[%s21259_s9] sm:$0xff]  }
 0x363   : > { %v10459_v49 = vld [vmem:[#allocation3 + $0x82] sm:$0xff] }
 0x366   : > { %16169 = vmatmul.mubr.msk.bf16.gmra.mrb[16].mxu0 %vm514_vm0, %v9851_v6 }
 0x367   : > { %16172 = vmatprep.mubr.msk.bf16.mxu0 %vm514_vm0, %v9852_v57 }
 0x368   : > { %15457 = vmatmul.mubr.msk.bf16.gmra.mrb[120].mxu1 %vm514_vm0, %v3957_v14 }
 0x369   : > { %15460 = vmatprep.mubr.msk.bf16.mxu1 %vm514_vm0, %v19779_v29  ;;  %v9838_v29 = vld [vmem:[#allocation3 + $0x198] sm:$0xff] }
 0x36a   : > { %v9856_v40 = vpack.c.bf16 %v9839_v35, %v9838_v29  ;;  %v10161_v29 = vld [vmem:[#allocation3 + $0x1a1] sm:$0xff] }
 0x36b   : > { %v10158_v35 = vld [vmem:[#allocation3 + $0x181] sm:$0xff] }
 0x36e   : > { %16173 = vmatmul.mubr.msk.bf16.gmra.mrb[20].mxu0 %vm514_vm0, %v9853_v38 }
 0x36f   : > { %16176 = vmatprep.mubr.msk.bf16.mxu0 %vm514_vm0, %v9854_v44  ;;  %v20151_v44 = vpack.c.bf16 %v10157_v16, %v10156_v18  ;;  %v10461_v16 = vld [vmem:[#allocation3 + $0x9a] sm:$0xff]  ;;  %v10463_v18 = vld [vmem:[#allocation3 + $0xb2] sm:$0xff] }
 0x370   : > { %15461 = vmatmul.mubr.msk.bf16.gmra.mrb[124].mxu1 %vm514_vm0, %v3959_v33  ;;  %v4557_v33 = vld [vmem:[#allocation2 + $0x3a] sm:$0xff] }
 0x371   : > { %15472 = vmatprep.mubr.msk.bf16.mxu1 %vm514_vm0, %v19786_v1  ;;  %v9857_v1 = vpack.c.bf16 %v9841_v58, %v9840_v56  ;;  %v4561_v56 = vld [vmem:[#allocation2 + $0x6a] sm:$0xff]  ;;  %v10178_v58 = vpack.c.bf16 %v10161_v29, %v10160_v26  ;;  %v17730_v26 = vld [vmem:[%s21259_s9 + $0x258] sm:$0xff]  }
 0x376   : > { %16177 = vmatmul.mubr.msk.bf16.gmra.mrb[24].mxu0 %vm514_vm0, %v9855_v28  ;;  %v4559_v28 = vld [vmem:[#allocation2 + $0x52] sm:$0xff] }
 0x377   : > { %16180 = vmatprep.mubr.msk.bf16.mxu0 %vm514_vm0, %v9856_v40 }
 0x378   : > { %15473 = vmatmul.mubr.msk.bf16.vlgmr.msra.gmra.mrb[96].mxu1 %vm514_vm0, %v19792_v21  ;;  %v17721_v21 = vld [vmem:[%s21257_s7 + $0x118] sm:$0xff]  }
 0x379   : > { %15476 = vmatprep.mubr.msk.bf16.mxu1 %vm514_vm0, %v19803_v23  ;;  %15505 = vmatpush3.bf16.msra.mxu1 %v19997_v12  ;;  %v10135_v23 = vld [vmem:[#allocation3 + $0x69] sm:$0xff]  ;;  %v10137_v12 = vld [vmem:[#allocation3 + $0x81] sm:$0xff] }
 0x37a   : > { %15506 = vmatprep.subr.bf16.mxu1 %v17719_v7  ;;  %v20072_v62 = vpack.c.bf16 %v10135_v23, %v10134_v34  ;;  %v20077_v22 = vpack.c.bf16 %v10137_v12, %v10136_v39  ;;  %v10455_v12 = vld [vmem:[#allocation3 + $0x52] sm:$0xff]  ;;  %v17728_v34 = vld [vmem:[%s21259_s9 + $0x30] sm:$0xff]   ;;  %v4562_v39 = vld [vmem:[#allocation2 + $0x7a] sm:$0xff] }
 0x37d   : > { %15507 = vmatpush3.bf16.msra.mxu1 %v17719_v7  ;;  %v4560_v7 = vld [vmem:[#allocation2 + $0x62] sm:$0xff] }
 0x37e   : > { %16181 = vmatmul.mubr.msk.bf16.gmra.mrb[28].mxu0 %vm514_vm0, %v9857_v1  ;;  %15508 = vmatprep.subr.bf16.mxu1 %v17720_v42  ;;  %v4589_v1 = vpack.c.bf16 %v4559_v28, %v4558_v32  ;;  %v20215_v28 = vld [vmem:[%s21259_s9 + $0x260] sm:$0xff]  }
 0x37f   : > { %16192 = vmatprep.mubr.msk.bf16.mxu0 %vm514_vm0, %v20055_v2 }
 0x380   : > { %15477 = vmatmul.mubr.msk.bf16.gmra.mrb[100].mxu1 %vm514_vm0, %v19809_v10  ;;  %v17716_v10 = vld [vmem:[%s21259_s9 + $0x228] sm:$0xff]  }
 0x381   : > { %15480 = vmatprep.mubr.msk.bf16.mxu1 %vm514_vm0, %v19824_v59  ;;  %15509 = vmatpush3.bf16.msra.mxu1 %v17720_v42  ;;  %v17718_v59 = vld [vmem:[%s21259_s9 + $0x230] sm:$0xff]   ;;  %v4590_v42 = vpack.c.bf16 %v4561_v56, %v4560_v7 }
 0x382   : > { %15510 = vmatprep.subr.bf16.mxu1 %v17721_v21  ;;  %v10467_v7 = vld [vmem:[#allocation3 + $0xe2] sm:$0xff] }
 0x383   : > { %v10464_v56 = vld [vmem:[#allocation3 + $0xc2] sm:$0xff] }
 0x385   : > { %15511 = vmatpush3.bf16.msra.mxu1 %v17721_v21  ;;  %v10163_v21 = vld [vmem:[#allocation3 + $0x1b9] sm:$0xff] }
 0x386   : > { %16193 = vmatmul.mubr.msk.bf16.vlgmr.msra.gmra.mrb[0].mxu0 %vm514_vm0, %v20072_v62  ;;  %15544 = vmatprep.subr.bf16.mxu1 %v20070_v63  ;;  %v10179_v23 = vpack.c.bf16 %v10163_v21, %v10162_v15  ;;  %v4576_v15 = vld [vmem:[#allocation2 + $0x122] sm:$0xff]  ;;  %v4577_v21 = vld [vmem:[#allocation2 + $0x12a] sm:$0xff] }
 0x387   : > { %16225 = vmatpush3.bf16.msra.mxu0 %v20020_v48  ;;  %16196 = vmatprep.mubr.msk.bf16.mxu0 %vm514_vm0, %v20077_v22  ;;  %v10140_v48 = vld [vmem:[#allocation3 + $0xa9] sm:$0xff] }
 0x388   : > { %15481 = vmatmul.mubr.msk.bf16.gmra.mrb[104].mxu1 %vm514_vm0, %v19829_v41  ;;  %16226 = vmatprep.subr.bf16.mxu0 %v17716_v10  ;;  %v17722_v41 = vld [vmem:[%s21259_s9 + $0x238] sm:$0xff]   ;;  %v20097_v52 = vpack.c.bf16 %v10141_v37, %v10140_v48 }
 0x389   : > { %15484 = vmatprep.mubr.msk.bf16.mxu1 %vm514_vm0, %v19842_v61  ;;  %v20108_v61 = vld [vmem:[%s21259_s9 + $0x240] sm:$0xff]  }
 0x38a   : > { %v4565_v37 = vld [vmem:[#allocation2 + $0x9a] sm:$0xff] }
 0x38b   : > { %16227 = vmatpush3.bf16.msra.mxu0 %v17716_v10  ;;  %v4563_v10 = vld [vmem:[#allocation2 + $0x82] sm:$0xff] }
 0x38c   : > { %16228 = vmatprep.subr.bf16.mxu0 %v17718_v59  ;;  %v4591_v48 = vpack.c.bf16 %v4563_v10, %v4562_v39  ;;  %v10469_v39 = vld [vmem:[#allocation3 + $0xfa] sm:$0xff]  ;;  %v10471_v10 = vld [vmem:[#allocation3 + $0x112] sm:$0xff] }
 0x38e   : > { %16197 = vmatmul.mubr.msk.bf16.gmra.mrb[4].mxu0 %vm514_vm0, %v20092_v31 }
 0x38f   : > { %16200 = vmatprep.mubr.msk.bf16.mxu0 %vm514_vm0, %v20097_v52  ;;  %16229 = vmatpush3.bf16.msra.mxu0 %v17718_v59  ;;  %v10454_v59 = vld [vmem:[#allocation3 + $0x4a] sm:$0xff] }
 0x390   : > { %15485 = vmatmul.mubr.msk.bf16.gmra.mrb[108].mxu1 %vm514_vm0, %v19845_v50  ;;  %16230 = vmatprep.subr.bf16.mxu0 %v17722_v41  ;;  %v10147_v50 = vld [vmem:[#allocation3 + $0xf9] sm:$0xff]  ;;  %v20170_v47 = vpack.c.bf16 %v10455_v12, %v10454_v59 }
 0x391   : > { %15488 = vmatprep.mubr.msk.bf16.mxu1 %vm514_vm0, %v19858_v4  ;;  %v10149_v4 = vld [vmem:[#allocation3 + $0x111] sm:$0xff]  ;;  %v20125_v54 = vpack.c.bf16 %v10147_v50, %v10146_v25  ;;  %v10458_v50 = vld [vmem:[#allocation3 + $0x7a] sm:$0xff]  ;;  %v4567_v25 = vld [vmem:[#allocation2 + $0xb2] sm:$0xff] }
 0x392   : > { %v20127_v6 = vpack.c.bf16 %v10149_v4, %v10148_v53  ;;  %v4566_v4 = vld [vmem:[#allocation2 + $0xaa] sm:$0xff]  ;;  %v20185_v53 = vpack.c.bf16 %v10457_v24, %v10456_v0  ;;  %v10468_v59 = vld [vmem:[#allocation3 + $0xf2] sm:$0xff]  ;;  %v4581_v24 = vld [vmem:[#allocation2 + $0x15a] sm:$0xff] }
 0x393   : > { %16231 = vmatpush3.bf16.msra.mxu0 %v17722_v41  ;;  %v4592_v41 = vpack.c.bf16 %v4565_v37, %v4564_v13  ;;  %v4578_v13 = vld [vmem:[#allocation2 + $0x13a] sm:$0xff]  ;;  %v4579_v37 = vld [vmem:[#allocation2 + $0x142] sm:$0xff] }
 0x394   : > { %16264 = vmatprep.subr.bf16.mxu0 %v20108_v61 }
 0x396   : > { %16201 = vmatmul.mubr.msk.bf16.gmra.mrb[8].mxu0 %vm514_vm0, %v20112_v43 }
 0x397   : > { %16204 = vmatprep.mubr.msk.bf16.mxu0 %vm514_vm0, %v20115_v20 }
 0x398   : > { %15489 = vmatmul.mubr.msk.bf16.gmra.mrb[112].mxu1 %vm514_vm0, %v19861_v11  ;;  %v10151_v11 = vld [vmem:[#allocation3 + $0x129] sm:$0xff] }
 0x399   : > { %15492 = vmatprep.mubr.msk.bf16.mxu1 %vm514_vm0, %v19868_v60  ;;  %v10153_v60 = vld [vmem:[#allocation3 + $0x141] sm:$0xff]  ;;  %v20137_v57 = vpack.c.bf16 %v10151_v11, %v10150_v51  ;;  %v4568_v11 = vld [vmem:[#allocation2 + $0xc2] sm:$0xff] }
 0x39a   : > { %v20139_v14 = vpack.c.bf16 %v10153_v60, %v10152_v30  ;;  %v4569_v60 = vld [vmem:[#allocation2 + $0xca] sm:$0xff]  ;;  %v20190_v30 = vpack.c.bf16 %v10459_v49, %v10458_v50  ;;  %v4599_v49 = vpack.c.bf16 %v4579_v37, %v4578_v13 }
 0x39b   : > { %v17724_v51 = vld [vmem:[%s21259_s9 + $0x248] sm:$0xff]  }
 0x39c   : > { %v10485_v13 = vld [vmem:[#allocation3 + $0x1ba] sm:$0xff] }
 0x39e   : > { %16205 = vmatmul.mubr.msk.bf16.gmra.mrb[12].mxu0 %vm514_vm0, %v20125_v54 }
 0x39f   : > { %16208 = vmatprep.mubr.msk.bf16.mxu0 %vm514_vm0, %v20127_v6 }
 0x3a0   : > { %15493 = vmatmul.mubr.msk.bf16.gmra.mrb[116].mxu1 %vm514_vm0, %v19871_v5  ;;  %v10155_v5 = vld [vmem:[#allocation3 + $0x159] sm:$0xff] }
 0x3a1   : > { %15496 = vmatprep.mubr.msk.bf16.mxu1 %vm514_vm0, %v19878_v17  ;;  %v4264_v17 = vld [vmem:[#allocation2 + $0x199] sm:$0xff]  ;;  %v20149_v27 = vpack.c.bf16 %v10155_v5, %v10154_v45  ;;  %v4593_v5 = vpack.c.bf16 %v4567_v25, %v4566_v4  ;;  %v10460_v45 = vld [vmem:[#allocation3 + $0x92] sm:$0xff] }
 0x3a2   : > { %v4281_v38 = vpack.c.bf16 %v4265_v9, %v4264_v17  ;;  %v4594_v17 = vpack.c.bf16 %v4569_v60, %v4568_v11  ;;  %v17726_v9 = vld [vmem:[%s21259_s9 + $0x250] sm:$0xff]   ;;  %v10473_v4 = vld [vmem:[#allocation3 + $0x12a] sm:$0xff] }
 0x3a3   : > { %v10475_v25 = vld [vmem:[#allocation3 + $0x142] sm:$0xff]  ;;  %v4582_v60 = vld [vmem:[#allocation2 + $0x16a] sm:$0xff] }
 0x3a4   : > { %v10472_v11 = vld [vmem:[#allocation3 + $0x122] sm:$0xff] }
 0x3a6   : > { %16209 = vmatmul.mubr.msk.bf16.gmra.mrb[16].mxu0 %vm514_vm0, %v20137_v57 }
 0x3a7   : > { %16212 = vmatprep.mubr.msk.bf16.mxu0 %vm514_vm0, %v20139_v14 }
 0x3a8   : > { %15497 = vmatmul.mubr.msk.bf16.gmra.mrb[120].mxu1 %vm514_vm0, %v19881_v8  ;;  %v4588_v8 = vpack.c.bf16 %v4557_v33, %v4556_v36  ;;  %v4570_v36 = vld [vmem:[#allocation2 + $0xda] sm:$0xff]  ;;  %v4571_v33 = vld [vmem:[#allocation2 + $0xe2] sm:$0xff] }
 0x3a9   : > { %15500 = vmatprep.mubr.msk.bf16.mxu1 %vm514_vm0, %v19888_v46  ;;  %v10159_v46 = vld [vmem:[#allocation3 + $0x189] sm:$0xff] }
 0x3aa   : > { %v10177_v40 = vpack.c.bf16 %v10159_v46, %v10158_v35  ;;  %v4573_v46 = vld [vmem:[#allocation2 + $0xfa] sm:$0xff]  ;;  %v4595_v35 = vpack.c.bf16 %v4571_v33, %v4570_v36  ;;  %v10479_v36 = vld [vmem:[#allocation3 + $0x172] sm:$0xff]  ;;  %v5099_v33 = vld [vmem:[#allocation3 + $0x1] sm:$0xff] }
 0x3ae   : > { %16213 = vmatmul.mubr.msk.bf16.gmra.mrb[20].mxu0 %vm514_vm0, %v20149_v27 }
 0x3af   : > { %16216 = vmatprep.mubr.msk.bf16.mxu0 %vm514_vm0, %v20151_v44 }
 0x3b0   : > { %15501 = vmatmul.mubr.msk.bf16.gmra.mrb[124].mxu1 %vm514_vm0, %v4281_v38  ;;  %v10462_v38 = vld [vmem:[#allocation3 + $0xaa] sm:$0xff] }
 0x3b1   : > { %15512 = vmatprep.mubr.msk.bf16.mxu1 %vm514_vm0, %v4588_v8  ;;  %v4572_v8 = vld [vmem:[#allocation2 + $0xf2] sm:$0xff]  ;;  %v10490_v29 = vpack.c.bf16 %v10463_v18, %v10462_v38  ;;  %v4586_v18 = vld [vmem:[#allocation2 + $0x19a] sm:$0xff]  ;;  %v4587_v38 = vld [vmem:[#allocation2 + $0x1a2] sm:$0xff] }
 0x3b2   : > { %v4596_v32 = vpack.c.bf16 %v4573_v46, %v4572_v8  ;;  %v5100_v8 = vld [vmem:[#allocation3 + $0x9] sm:$0xff]  ;;  %v10476_v46 = vld [vmem:[#allocation3 + $0x152] sm:$0xff] }
 0x3b6   : > { %16217 = vmatmul.mubr.msk.bf16.gmra.mrb[24].mxu0 %vm514_vm0, %v10177_v40  ;;  %v10465_v40 = vld [vmem:[#allocation3 + $0xca] sm:$0xff] }
 0x3b7   : > { %16220 = vmatprep.mubr.msk.bf16.mxu0 %vm514_vm0, %v10178_v58  ;;  %v4574_v58 = vld [vmem:[#allocation2 + $0x10a] sm:$0xff] }
 0x3b8   : > { %15513 = vmatmul.mubr.msk.bf16.vlgmr.msra.gmra.mrb[96].mxu1 %vm514_vm0, %v4589_v1  ;;  %v4575_v1 = vld [vmem:[#allocation2 + $0x112] sm:$0xff] }
 0x3b9   : > { %15516 = vmatprep.mubr.msk.bf16.mxu1 %vm514_vm0, %v4590_v42  ;;  %15545 = vmatpush3.bf16.msra.mxu1 %v20070_v63  ;;  %v17729_v63 = vld [vmem:[%s21259_s9 + $0x38] sm:$0xff]   ;;  %v10466_v42 = vld [vmem:[#allocation3 + $0xda] sm:$0xff]  ;;  %v4597_v12 = vpack.c.bf16 %v4575_v1, %v4574_v58 }
 0x3ba   : > { %15546 = vmatprep.subr.bf16.mxu1 %v17727_v3  ;;  %v10482_v58 = vld [vmem:[#allocation3 + $0x19a] sm:$0xff]  ;;  %v10483_v1 = vld [vmem:[#allocation3 + $0x1a2] sm:$0xff] }
 0x3bd   : > { %15547 = vmatpush3.bf16.msra.mxu1 %v17727_v3  ;;  %v20218_v3 = vpack.c.bf16 %v10465_v40, %v10464_v56  ;;  %v5131_v40 = vpack.c.bf16 %v5100_v8, %v5099_v33  ;;  %v5102_v56 = vld [vmem:[#allocation3 + $0x21] sm:$0xff] }
 0x3be   : > { %16221 = vmatmul.mubr.msk.bf16.gmra.mrb[28].mxu0 %vm514_vm0, %v10179_v23  ;;  %15548 = vmatprep.subr.bf16.mxu1 %v17728_v34  ;;  %v10492_v23 = vpack.c.bf16 %v10467_v7, %v10466_v42  ;;  %v10481_v7 = vld [vmem:[#allocation3 + $0x18a] sm:$0xff]  ;;  %v10480_v42 = vld [vmem:[#allocation3 + $0x182] sm:$0xff] }
 0x3bf   : > { %16232 = vmatprep.mubr.msk.bf16.mxu0 %vm514_vm0, %v20170_v47 }
 0x3c0   : > { %15517 = vmatmul.mubr.msk.bf16.gmra.mrb[100].mxu1 %vm514_vm0, %v4591_v48  ;;  %v10493_v48 = vpack.c.bf16 %v10469_v39, %v10468_v59  ;;  %v17735_v39 = vld [vmem:[%s21259_s9 + $0x8] sm:$0xff]  }
 0x3c1   : > { %15520 = vmatprep.mubr.msk.bf16.mxu1 %vm514_vm0, %v4592_v41  ;;  %15549 = vmatpush3.bf16.msra.mxu1 %v17728_v34  ;;  %v4598_v34 = vpack.c.bf16 %v4577_v21, %v4576_v15  ;;  %v4580_v41 = vld [vmem:[#allocation2 + $0x152] sm:$0xff]  ;;  %v10499_v15 = vpack.c.bf16 %v10481_v7, %v10480_v42  ;;  %v10484_v59 = vld [vmem:[#allocation3 + $0x1b2] sm:$0xff] }
 0x3c2   : > { %15550 = vmatprep.subr.bf16.mxu1 %v17729_v63  ;;  %v4600_v50 = vpack.c.bf16 %v4581_v24, %v4580_v41  ;;  %v10501_v37 = vpack.c.bf16 %v10485_v13, %v10484_v59  ;;  %v17736_v41 = vld [vmem:[%s21259_s9 + $0x10] sm:$0xff]   ;;  %v5044_v42 = vld [vmem:[#allocation3 + $0x8] sm:$0xff] }
 0x3c5   : > { %15551 = vmatpush3.bf16.msra.mxu1 %v17729_v63  ;;  %v10470_v63 = vld [vmem:[#allocation3 + $0x10a] sm:$0xff] }
 0x3c6   : > { %16233 = vmatmul.mubr.msk.bf16.vlgmr.msra.gmra.mrb[0].mxu0 %vm514_vm0, %v20185_v53  ;;  %15584 = vmatprep.subr.bf16.mxu1 %v20183_v19  ;;  %v10494_v0 = vpack.c.bf16 %v10471_v10, %v10470_v63  ;;  %v10777_v63 = vld [vmem:[#allocation3 + $0x53] sm:$0xff] }
 0x3c7   : > { %16265 = vmatpush3.bf16.msra.mxu0 %v20108_v61  ;;  %16236 = vmatprep.mubr.msk.bf16.mxu0 %vm514_vm0, %v20190_v30  ;;  %v20203_v61 = vpack.c.bf16 %v10461_v16, %v10460_v45  ;;  %v10477_v45 = vld [vmem:[#allocation3 + $0x15a] sm:$0xff] }
 0x3c8   : > { %15521 = vmatmul.mubr.msk.bf16.gmra.mrb[104].mxu1 %vm514_vm0, %v4593_v5  ;;  %16266 = vmatprep.subr.bf16.mxu0 %v17724_v51  ;;  %v10495_v5 = vpack.c.bf16 %v10473_v4, %v10472_v11  ;;  %v10781_v4 = vld [vmem:[#allocation3 + $0x83] sm:$0xff] }
 0x3c9   : > { %15524 = vmatprep.mubr.msk.bf16.mxu1 %vm514_vm0, %v4594_v17  ;;  %v10474_v17 = vld [vmem:[#allocation3 + $0x13a] sm:$0xff] }
 0x3cb   : > { %16267 = vmatpush3.bf16.msra.mxu0 %v17724_v51  ;;  %v4583_v51 = vld [vmem:[#allocation2 + $0x172] sm:$0xff] }
 0x3cc   : > { %16268 = vmatprep.subr.bf16.mxu0 %v17726_v9  ;;  %v4601_v16 = vpack.c.bf16 %v4583_v51, %v4582_v60  ;;  %v17732_v60 = vld [vmem:[%s21259_s9 + $0x268] sm:$0xff]  }
 0x3cd   : > { %v10782_v51 = vld [vmem:[#allocation3 + $0x93] sm:$0xff] }
 0x3ce   : > { %16237 = vmatmul.mubr.msk.bf16.gmra.mrb[4].mxu0 %vm514_vm0, %v20203_v61 }
 0x3cf   : > { %16240 = vmatprep.mubr.msk.bf16.mxu0 %vm514_vm0, %v10490_v29  ;;  %16269 = vmatpush3.bf16.msra.mxu0 %v17726_v9  ;;  %v10496_v9 = vpack.c.bf16 %v10475_v25, %v10474_v17  ;;  %v10478_v29 = vld [vmem:[#allocation3 + $0x16a] sm:$0xff] }
 0x3d0   : > { %15525 = vmatmul.mubr.msk.bf16.gmra.mrb[108].mxu1 %vm514_vm0, %v4595_v35  ;;  %16270 = vmatprep.subr.bf16.mxu0 %v17730_v26  ;;  %v4603_v35 = vpack.c.bf16 %v4587_v38, %v4586_v18  ;;  %v20262_v25 = vld [vmem:[%s21259_s9 + $0x40] sm:$0xff]   ;;  %v10788_v38 = vld [vmem:[#allocation3 + $0xdb] sm:$0xff] }
 0x3d1   : > { %15528 = vmatprep.mubr.msk.bf16.mxu1 %vm514_vm0, %v4596_v32  ;;  %v10498_v32 = vpack.c.bf16 %v10479_v36, %v10478_v29  ;;  %v10784_v17 = vld [vmem:[#allocation3 + $0xab] sm:$0xff]  ;;  %v10789_v36 = vld [vmem:[#allocation3 + $0xe3] sm:$0xff] }
 0x3d2   : > { %v10787_v18 = vld [vmem:[#allocation3 + $0xcb] sm:$0xff]  ;;  %v10814_v8 = vpack.c.bf16 %v10789_v36, %v10788_v38  ;;  %v5056_v36 = vld [vmem:[#allocation3 + $0x98] sm:$0xff] }
 0x3d3   : > { %16271 = vmatpush3.bf16.msra.mxu0 %v17730_v26  ;;  %v10497_v26 = vpack.c.bf16 %v10477_v45, %v10476_v46  ;;  %v10786_v45 = vld [vmem:[#allocation3 + $0xc3] sm:$0xff]  ;;  %v10792_v46 = vld [vmem:[#allocation3 + $0x10b] sm:$0xff] }
 0x3d4   : > { %16304 = vmatprep.subr.bf16.mxu0 %v20215_v28  ;;  %v10813_v33 = vpack.c.bf16 %v10787_v18, %v10786_v45  ;;  %v20340_v45 = vld [vmem:[%s21259_s9 + $0x60] sm:$0xff]   ;;  %v5054_v18 = vld [vmem:[#allocation3 + $0x80] sm:$0xff] }
 0x3d6   : > { %16241 = vmatmul.mubr.msk.bf16.gmra.mrb[8].mxu0 %vm514_vm0, %v20218_v3 }
 0x3d7   : > { %16244 = vmatprep.mubr.msk.bf16.mxu0 %vm514_vm0, %v10492_v23  ;;  %v5104_v23 = vld [vmem:[#allocation3 + $0x39] sm:$0xff] }
 0x3d8   : > { %15529 = vmatmul.mubr.msk.bf16.gmra.mrb[112].mxu1 %vm514_vm0, %v4597_v12  ;;  %v10500_v12 = vpack.c.bf16 %v10483_v1, %v10482_v58  ;;  %v10800_v58 = vld [vmem:[#allocation3 + $0x16b] sm:$0xff]  ;;  %v5043_v1 = vld [vmem:[#allocation3] sm:$0xff] }
 0x3d9   : > { %15532 = vmatprep.mubr.msk.bf16.mxu1 %vm514_vm0, %v4598_v34  ;;  %v5103_v34 = vld [vmem:[#allocation3 + $0x31] sm:$0xff] }
 0x3da   : > { %v5133_v10 = vpack.c.bf16 %v5104_v23, %v5103_v34  ;;  %v5075_v23 = vpack.c.bf16 %v5044_v42, %v5043_v1  ;;  %v5046_v34 = vld [vmem:[#allocation3 + $0x20] sm:$0xff]  ;;  %v20374_v42 = vld [vmem:[%s21259_s9 + $0x2a0] sm:$0xff]  }
 0x3de   : > { %16245 = vmatmul.mubr.msk.bf16.gmra.mrb[12].mxu0 %vm514_vm0, %v10493_v48  ;;  %v10776_v48 = vld [vmem:[#allocation3 + $0x4b] sm:$0xff] }
 0x3df   : > { %16248 = vmatprep.mubr.msk.bf16.mxu0 %vm514_vm0, %v10494_v0  ;;  %v10808_v24 = vpack.c.bf16 %v10777_v63, %v10776_v48  ;;  %v17737_v0 = vld [vmem:[%s21259_s9 + $0x18] sm:$0xff]   ;;  %v5047_v63 = vld [vmem:[#allocation3 + $0x30] sm:$0xff] }
 0x3e0   : > { %15533 = vmatmul.mubr.msk.bf16.gmra.mrb[116].mxu1 %vm514_vm0, %v4599_v49  ;;  %v10779_v49 = vld [vmem:[#allocation3 + $0x6b] sm:$0xff] }
 0x3e1   : > { %15536 = vmatprep.mubr.msk.bf16.mxu1 %vm514_vm0, %v4600_v50  ;;  %v10780_v50 = vld [vmem:[#allocation3 + $0x7b] sm:$0xff] }
 0x3e6   : > { %16249 = vmatmul.mubr.msk.bf16.gmra.mrb[16].mxu0 %vm514_vm0, %v10495_v5  ;;  %v10783_v5 = vld [vmem:[#allocation3 + $0x9b] sm:$0xff] }
 0x3e7   : > { %16252 = vmatprep.mubr.msk.bf16.mxu0 %vm514_vm0, %v10496_v9  ;;  %v10785_v9 = vld [vmem:[#allocation3 + $0xb3] sm:$0xff] }
 0x3e8   : > { %15537 = vmatmul.mubr.msk.bf16.gmra.mrb[120].mxu1 %vm514_vm0, %v4601_v16  ;;  %v10811_v16 = vpack.c.bf16 %v10783_v5, %v10782_v51  ;;  %v5051_v5 = vld [vmem:[#allocation3 + $0x60] sm:$0xff] }
 0x3e9   : > { %15540 = vmatprep.mubr.msk.bf16.mxu1 %vm514_vm0, %v19970_v55  ;;  %v5101_v55 = vld [vmem:[#allocation3 + $0x19] sm:$0xff] }
 0x3ea   : > { %v5132_v21 = vpack.c.bf16 %v5102_v56, %v5101_v55  ;;  %v10799_v56 = vld [vmem:[#allocation3 + $0x15b] sm:$0xff] }
 0x3ee   : > { %16253 = vmatmul.mubr.msk.bf16.gmra.mrb[20].mxu0 %vm514_vm0, %v10497_v26  ;;  %v10793_v26 = vld [vmem:[#allocation3 + $0x113] sm:$0xff] }
 0x3ef   : > { %16256 = vmatprep.mubr.msk.bf16.mxu0 %vm514_vm0, %v10498_v32  ;;  %v10795_v32 = vld [vmem:[#allocation3 + $0x12b] sm:$0xff] }
 0x3f0   : > { %15541 = vmatmul.mubr.msk.bf16.gmra.mrb[124].mxu1 %vm514_vm0, %v4603_v35  ;;  %v10816_v35 = vpack.c.bf16 %v10793_v26, %v10792_v46  ;;  %v5055_v46 = vld [vmem:[#allocation3 + $0x90] sm:$0xff] }
 0x3f1   : > { %15552 = vmatprep.mubr.msk.bf16.mxu1 %vm514_vm0, %v5131_v40  ;;  %v10796_v40 = vld [vmem:[#allocation3 + $0x13b] sm:$0xff]  ;;  %v20351_v26 = vpack.c.bf16 %v5056_v36, %v5055_v46 }
 0x3f2   : > { %v11123_v46 = vld [vmem:[#allocation3 + $0x174] sm:$0xff] }
 0x3f6   : > { %16257 = vmatmul.mubr.msk.bf16.gmra.mrb[24].mxu0 %vm514_vm0, %v10499_v15 }
 0x3f7   : > { %16260 = vmatprep.mubr.msk.bf16.mxu0 %vm514_vm0, %v10500_v12  ;;  %v10803_v12 = vld [vmem:[#allocation3 + $0x18b] sm:$0xff] }
 0x3f8   : > { %15553 = vmatmul.mubr.msk.bf16.vlgmr.msra.gmra.mrb[128].mxu1 %vm514_vm0, %v5132_v21 }
 0x3f9   : > { %15556 = vmatprep.mubr.msk.bf16.mxu1 %vm514_vm0, %v5133_v10  ;;  %15585 = vmatpush3.bf16.msra.mxu1 %v20183_v19  ;;  %v10778_v19 = vld [vmem:[#allocation3 + $0x63] sm:$0xff] }
 0x3fa   : > { %15586 = vmatprep.subr.bf16.mxu1 %v17735_v39  ;;  %v10809_v11 = vpack.c.bf16 %v10779_v49, %v10778_v19  ;;  %v10805_v10 = vld [vmem:[#allocation3 + $0x1a3] sm:$0xff]  ;;  %v11098_v49 = vld [vmem:[#allocation3 + $0x4c] sm:$0xff] }
 0x3fd   : > { %15587 = vmatpush3.bf16.msra.mxu1 %v17735_v39  ;;  %v10804_v39 = vld [vmem:[#allocation3 + $0x19b] sm:$0xff] }
 0x3fe   : > { %16261 = vmatmul.mubr.msk.bf16.gmra.mrb[28].mxu0 %vm514_vm0, %v10501_v37  ;;  %15588 = vmatprep.subr.bf16.mxu1 %v17736_v41  ;;  %v5048_v37 = vld [vmem:[#allocation3 + $0x38] sm:$0xff]  ;;  %v10822_v48 = vpack.c.bf16 %v10805_v10, %v10804_v39 }
 0x3ff   : > { %16272 = vmatprep.mubr.msk.bf16.mxu0 %vm514_vm0, %v10808_v24  ;;  %v10806_v24 = vld [vmem:[#allocation3 + $0x1b3] sm:$0xff] }
 0x400   : > { %15557 = vmatmul.mubr.msk.bf16.gmra.mrb[132].mxu1 %vm514_vm0, %v20055_v2  ;;  %v10810_v2 = vpack.c.bf16 %v10781_v4, %v10780_v50  ;;  %v11099_v50 = vld [vmem:[#allocation3 + $0x54] sm:$0xff]  ;;  %v17744_v4 = vld [vmem:[%s21259_s9 + $0x50] sm:$0xff]  }
 0x401   : > { %15560 = vmatprep.mubr.msk.bf16.mxu1 %vm514_vm0, %v20072_v62  ;;  %15589 = vmatpush3.bf16.msra.mxu1 %v17736_v41  ;;  %v17734_v62 = vld [vmem:[%s21259_s9 + $0x270] sm:$0xff]   ;;  %v17743_v41 = vld [vmem:[%s21259_s9 + $0x48] sm:$0xff]  }
 0x402   : > { %15590 = vmatprep.subr.bf16.mxu1 %v17737_v0  ;;  %v5061_v10 = vld [vmem:[#allocation3 + $0xd8] sm:$0xff] }
 0x405   : > { %15591 = vmatpush3.bf16.msra.mxu1 %v17737_v0  ;;  %v10807_v0 = vld [vmem:[#allocation3 + $0x1bb] sm:$0xff] }
 0x406   : > { %16273 = vmatmul.mubr.msk.bf16.vlgmr.msra.gmra.mrb[0].mxu0 %vm514_vm0, %v10809_v11  ;;  %15624 = vmatprep.subr.bf16.mxu1 %v20262_v25  ;;  %v10823_v19 = vpack.c.bf16 %v10807_v0, %v10806_v24  ;;  %v5050_v11 = vld [vmem:[#allocation3 + $0x50] sm:$0xff] }
 0x407   : > { %16305 = vmatpush3.bf16.msra.mxu0 %v20215_v28  ;;  %16276 = vmatprep.mubr.msk.bf16.mxu0 %vm514_vm0, %v10810_v2  ;;  %v17738_v28 = vld [vmem:[%s21259_s9 + $0x278] sm:$0xff]   ;;  %v11130_v2 = vpack.c.bf16 %v11099_v50, %v11098_v49  ;;  %v5066_v24 = vld [vmem:[#allocation3 + $0x110] sm:$0xff] }
 0x408   : > { %15561 = vmatmul.mubr.msk.bf16.gmra.mrb[136].mxu1 %vm514_vm0, %v20077_v22  ;;  %16306 = vmatprep.subr.bf16.mxu0 %v17732_v60  ;;  %v10812_v22 = vpack.c.bf16 %v10785_v9, %v10784_v17  ;;  %v11100_v9 = vld [vmem:[#allocation3 + $0x64] sm:$0xff] }
 0x409   : > { %15564 = vmatprep.mubr.msk.bf16.mxu1 %vm514_vm0, %v20092_v31  ;;  %v20288_v31 = vld [vmem:[%s21259_s9 + $0x280] sm:$0xff]   ;;  %v5065_v50 = vld [vmem:[#allocation3 + $0x108] sm:$0xff] }
 0x40b   : > { %16307 = vmatpush3.bf16.msra.mxu0 %v17732_v60  ;;  %v5052_v60 = vld [vmem:[#allocation3 + $0x68] sm:$0xff] }
 0x40c   : > { %16308 = vmatprep.subr.bf16.mxu0 %v17734_v62  ;;  %v20332_v17 = vpack.c.bf16 %v5052_v60, %v5051_v5  ;;  %v11119_v5 = vld [vmem:[#allocation3 + $0x144] sm:$0xff] }
 0x40e   : > { %16277 = vmatmul.mubr.msk.bf16.gmra.mrb[4].mxu0 %vm514_vm0, %v10811_v16  ;;  %v11101_v16 = vld [vmem:[#allocation3 + $0x6c] sm:$0xff] }
 0x40f   : > { %16280 = vmatprep.mubr.msk.bf16.mxu0 %vm514_vm0, %v10812_v22  ;;  %16309 = vmatpush3.bf16.msra.mxu0 %v17734_v62  ;;  %v5049_v62 = vld [vmem:[#allocation3 + $0x48] sm:$0xff]  ;;  %v11131_v38 = vpack.c.bf16 %v11101_v16, %v11100_v9  ;;  %v5072_v16 = vld [vmem:[#allocation3 + $0x158] sm:$0xff] }
 0x410   : > { %15565 = vmatmul.mubr.msk.bf16.gmra.mrb[140].mxu1 %vm514_vm0, %v20097_v52  ;;  %16310 = vmatprep.subr.bf16.mxu0 %v17738_v28  ;;  %v10790_v52 = vld [vmem:[#allocation3 + $0xf3] sm:$0xff]  ;;  %v5078_v51 = vpack.c.bf16 %v5050_v11, %v5049_v62  ;;  %v11103_v22 = vld [vmem:[#allocation3 + $0x84] sm:$0xff] }
 0x411   : > { %15568 = vmatprep.mubr.msk.bf16.mxu1 %vm514_vm0, %v20112_v43  ;;  %v10791_v43 = vld [vmem:[#allocation3 + $0xfb] sm:$0xff]  ;;  %v11117_v62 = vld [vmem:[#allocation3 + $0x12c] sm:$0xff] }
 0x412   : > { %v10815_v29 = vpack.c.bf16 %v10791_v43, %v10790_v52  ;;  %v5053_v52 = vld [vmem:[#allocation3 + $0x78] sm:$0xff]  ;;  %v5067_v11 = vld [vmem:[#allocation3 + $0x120] sm:$0xff] }
 0x413   : > { %16311 = vmatpush3.bf16.msra.mxu0 %v17738_v28  ;;  %v11102_v28 = vld [vmem:[#allocation3 + $0x7c] sm:$0xff]  ;;  %v20346_v43 = vpack.c.bf16 %v5054_v18, %v5053_v52  ;;  %v11122_v52 = vld [vmem:[#allocation3 + $0x16c] sm:$0xff] }
 0x414   : > { %16344 = vmatprep.subr.bf16.mxu0 %v20288_v31 }
 0x416   : > { %16281 = vmatmul.mubr.msk.bf16.gmra.mrb[8].mxu0 %vm514_vm0, %v10813_v33  ;;  %v17740_v33 = vld [vmem:[%s21259_s9 + $0x288] sm:$0xff]  }
 0x417   : > { %16284 = vmatprep.mubr.msk.bf16.mxu0 %vm514_vm0, %v10814_v8  ;;  %v11132_v8 = vpack.c.bf16 %v11103_v22, %v11102_v28  ;;  %v5069_v22 = vld [vmem:[#allocation3 + $0x138] sm:$0xff] }
 0x418   : > { %15569 = vmatmul.mubr.msk.bf16.gmra.mrb[144].mxu1 %vm514_vm0, %v20115_v20  ;;  %v10794_v20 = vld [vmem:[#allocation3 + $0x123] sm:$0xff] }
 0x419   : > { %15572 = vmatprep.mubr.msk.bf16.mxu1 %vm514_vm0, %v20125_v54  ;;  %v10797_v54 = vld [vmem:[#allocation3 + $0x143] sm:$0xff]  ;;  %v10817_v7 = vpack.c.bf16 %v10795_v32, %v10794_v20  ;;  %v11106_v32 = vld [vmem:[#allocation3 + $0xac] sm:$0xff] }
 0x41a   : > { %v10818_v55 = vpack.c.bf16 %v10797_v54, %v10796_v40  ;;  %v11105_v20 = vld [vmem:[#allocation3 + $0x9c] sm:$0xff]  ;;  %v11107_v40 = vld [vmem:[#allocation3 + $0xb4] sm:$0xff] }
 0x41e   : > { %16285 = vmatmul.mubr.msk.bf16.gmra.mrb[12].mxu0 %vm514_vm0, %v10815_v29  ;;  %v17742_v29 = vld [vmem:[%s21259_s9 + $0x290] sm:$0xff]  }
 0x41f   : > { %16288 = vmatprep.mubr.msk.bf16.mxu0 %vm514_vm0, %v10816_v35  ;;  %v11104_v35 = vld [vmem:[#allocation3 + $0x94] sm:$0xff] }
 0x420   : > { %15573 = vmatmul.mubr.msk.bf16.gmra.mrb[148].mxu1 %vm514_vm0, %v20127_v6  ;;  %v10798_v6 = vld [vmem:[#allocation3 + $0x153] sm:$0xff]  ;;  %v11133_v54 = vpack.c.bf16 %v11105_v20, %v11104_v35  ;;  %v5623_v35 = vld [vmem:[#allocation3 + $0xa] sm:$0xff] }
 0x421   : > { %15576 = vmatprep.mubr.msk.bf16.mxu1 %vm514_vm0, %v20137_v57  ;;  %v10801_v57 = vld [vmem:[#allocation3 + $0x173] sm:$0xff]  ;;  %v10819_v15 = vpack.c.bf16 %v10799_v56, %v10798_v6  ;;  %v11134_v6 = vpack.c.bf16 %v11107_v40, %v11106_v32  ;;  %v5057_v56 = vld [vmem:[#allocation3 + $0xa8] sm:$0xff]  ;;  %v11142_v40 = vpack.c.bf16 %v11123_v46, %v11122_v52 }
 0x422   : > { %v10820_v21 = vpack.c.bf16 %v10801_v57, %v10800_v58  ;;  %v5059_v57 = vld [vmem:[#allocation3 + $0xc0] sm:$0xff]  ;;  %v5074_v20 = vld [vmem:[#allocation3 + $0x170] sm:$0xff] }
 0x423   : > { %v5649_v46 = vld [vmem:[#allocation3 + $0x142] sm:$0xff] }
 0x426   : > { %16289 = vmatmul.mubr.msk.bf16.gmra.mrb[16].mxu0 %vm514_vm0, %v10817_v7  ;;  %v5060_v7 = vld [vmem:[#allocation3 + $0xc8] sm:$0xff] }
 0x427   : > { %16292 = vmatprep.mubr.msk.bf16.mxu0 %vm514_vm0, %v10818_v55  ;;  %v17746_v55 = vld [vmem:[%s21259_s9 + $0x298] sm:$0xff]   ;;  %v20367_v1 = vpack.c.bf16 %v5060_v7, %v5059_v57 }
 0x428   : > { %15577 = vmatmul.mubr.msk.bf16.gmra.mrb[152].mxu1 %vm514_vm0, %v20139_v14  ;;  %v10802_v14 = vld [vmem:[#allocation3 + $0x183] sm:$0xff] }
 0x429   : > { %15580 = vmatprep.mubr.msk.bf16.mxu1 %vm514_vm0, %v20149_v27  ;;  %v5045_v27 = vld [vmem:[#allocation3 + $0x18] sm:$0xff]  ;;  %v10821_v59 = vpack.c.bf16 %v10803_v12, %v10802_v14  ;;  %v11111_v14 = vld [vmem:[#allocation3 + $0xe4] sm:$0xff] }
 0x42a   : > { %v5076_v13 = vpack.c.bf16 %v5046_v34, %v5045_v27  ;;  %v5062_v12 = vld [vmem:[#allocation3 + $0xe0] sm:$0xff]  ;;  %v5064_v34 = vld [vmem:[#allocation3 + $0xf8] sm:$0xff] }
 0x42b   : > { %v5625_v57 = vld [vmem:[#allocation3 + $0x22] sm:$0xff] }
 0x42e   : > { %16293 = vmatmul.mubr.msk.bf16.gmra.mrb[20].mxu0 %vm514_vm0, %v10819_v15  ;;  %v11108_v15 = vld [vmem:[#allocation3 + $0xc4] sm:$0xff] }
 0x42f   : > { %16296 = vmatprep.mubr.msk.bf16.mxu0 %vm514_vm0, %v10820_v21  ;;  %v11109_v21 = vld [vmem:[#allocation3 + $0xcc] sm:$0xff] }
 0x430   : > { %15581 = vmatmul.mubr.msk.bf16.gmra.mrb[156].mxu1 %vm514_vm0, %v20151_v44  ;;  %v5077_v44 = vpack.c.bf16 %v5048_v37, %v5047_v63  ;;  %v11135_v27 = vpack.c.bf16 %v11109_v21, %v11108_v15  ;;  %v11113_v63 = vld [vmem:[#allocation3 + $0xfc] sm:$0xff]  ;;  %v11127_v21 = vld [vmem:[#allocation3 + $0x1a4] sm:$0xff] }
 0x431   : > { %15592 = vmatprep.mubr.msk.bf16.mxu1 %vm514_vm0, %v5075_v23  ;;  %v11110_v23 = vld [vmem:[#allocation3 + $0xdc] sm:$0xff] }
 0x432   : > { %v11136_v39 = vpack.c.bf16 %v11111_v14, %v11110_v23  ;;  %v11126_v15 = vld [vmem:[#allocation3 + $0x19c] sm:$0xff] }
 0x436   : > { %16297 = vmatmul.mubr.msk.bf16.gmra.mrb[24].mxu0 %vm514_vm0, %v10821_v59  ;;  %v20380_v59 = vpack.c.bf16 %v5062_v12, %v5061_v10  ;;  %v5627_v12 = vld [vmem:[#allocation3 + $0x3a] sm:$0xff] }
 0x437   : > { %16300 = vmatprep.mubr.msk.bf16.mxu0 %vm514_vm0, %v10822_v48  ;;  %v11112_v48 = vld [vmem:[#allocation3 + $0xf4] sm:$0xff] }
 0x438   : > { %15593 = vmatmul.mubr.msk.bf16.vlgmr.msra.gmra.mrb[128].mxu1 %vm514_vm0, %v5076_v13  ;;  %v5063_v13 = vld [vmem:[#allocation3 + $0xf0] sm:$0xff]  ;;  %v11137_v0 = vpack.c.bf16 %v11113_v63, %v11112_v48  ;;  %v11129_v48 = vld [vmem:[#allocation3 + $0x1bc] sm:$0xff] }
 0x439   : > { %15596 = vmatprep.mubr.msk.bf16.mxu1 %vm514_vm0, %v5077_v44  ;;  %15625 = vmatpush3.bf16.msra.mxu1 %v20262_v25  ;;  %v17745_v25 = vld [vmem:[%s21259_s9 + $0x58] sm:$0xff]   ;;  %v20383_v37 = vpack.c.bf16 %v5064_v34, %v5063_v13  ;;  %v11115_v44 = vld [vmem:[#allocation3 + $0x114] sm:$0xff] }
 0x43a   : > { %15626 = vmatprep.subr.bf16.mxu1 %v17743_v41  ;;  %v5626_v34 = vld [vmem:[#allocation3 + $0x32] sm:$0xff] }
 0x43b   : > { %v5656_v10 = vpack.c.bf16 %v5627_v12, %v5626_v34  ;;  %v11128_v13 = vld [vmem:[#allocation3 + $0x1b4] sm:$0xff] }
 0x43c   : > { %v11145_v63 = vpack.c.bf16 %v11129_v48, %v11128_v13  ;;  %v11447_v34 = vld [vmem:[#allocation3 + $0x198] sm:$0xff]  ;;  %v11448_v13 = vld [vmem:[#allocation3 + $0x1a0] sm:$0xff] }
 0x43d   : > { %15627 = vmatpush3.bf16.msra.mxu1 %v17743_v41  ;;  %v11114_v41 = vld [vmem:[#allocation3 + $0x10c] sm:$0xff]  ;;  %v5946_v48 = vld [vmem:[#allocation3 + $0x1b] sm:$0xff] }
 0x43e   : > { %16301 = vmatmul.mubr.msk.bf16.gmra.mrb[28].mxu0 %vm514_vm0, %v10823_v19  ;;  %15628 = vmatprep.subr.bf16.mxu1 %v17744_v4  ;;  %v5068_v19 = vld [vmem:[#allocation3 + $0x128] sm:$0xff]  ;;  %v11138_v49 = vpack.c.bf16 %v11115_v44, %v11114_v41  ;;  %v17752_v41 = vld [vmem:[%s21259_s9 + $0x70] sm:$0xff]  }
 0x43f   : > { %16312 = vmatprep.mubr.msk.bf16.mxu0 %vm514_vm0, %v11130_v2  ;;  %v20393_v60 = vpack.c.bf16 %v5068_v19, %v5067_v11  ;;  %v11116_v2 = vld [vmem:[#allocation3 + $0x124] sm:$0xff]  ;;  %v20480_v19 = vld [vmem:[%s21259_s9 + $0x2c0] sm:$0xff]  }
 0x440   : > { %15597 = vmatmul.mubr.msk.bf16.gmra.mrb[132].mxu1 %vm514_vm0, %v5078_v51  ;;  %v11118_v51 = vld [vmem:[#allocation3 + $0x13c] sm:$0xff]  ;;  %v11139_v9 = vpack.c.bf16 %v11117_v62, %v11116_v2  ;;  %v17753_v44 = vld [vmem:[%s21259_s9 + $0x78] sm:$0xff]  }
 0x441   : > { %15600 = vmatprep.mubr.msk.bf16.mxu1 %vm514_vm0, %v20332_v17  ;;  %15629 = vmatpush3.bf16.msra.mxu1 %v17744_v4  ;;  %v20390_v4 = vpack.c.bf16 %v5066_v24, %v5065_v50  ;;  %v11140_v28 = vpack.c.bf16 %v11119_v5, %v11118_v51  ;;  %v17748_v24 = vld [vmem:[%s21259_s9 + $0x2a8] sm:$0xff]  }
 0x442   : > { %15630 = vmatprep.subr.bf16.mxu1 %v17745_v25  ;;  %v5640_v2 = vld [vmem:[#allocation3 + $0xda] sm:$0xff] }
 0x445   : > { %15631 = vmatpush3.bf16.msra.mxu1 %v17745_v25  ;;  %v5070_v25 = vld [vmem:[#allocation3 + $0x140] sm:$0xff] }
 0x446   : > { %16313 = vmatmul.mubr.msk.bf16.vlgmr.msra.gmra.mrb[0].mxu0 %vm514_vm0, %v11131_v38  ;;  %15664 = vmatprep.subr.bf16.mxu1 %v20340_v45  ;;  %v20400_v18 = vpack.c.bf16 %v5070_v25, %v5069_v22  ;;  %v5071_v38 = vld [vmem:[#allocation3 + $0x150] sm:$0xff] }
 0x447   : > { %16345 = vmatpush3.bf16.msra.mxu0 %v20288_v31  ;;  %16316 = vmatprep.mubr.msk.bf16.mxu0 %vm514_vm0, %v11132_v8  ;;  %v5058_v31 = vld [vmem:[#allocation3 + $0xb0] sm:$0xff]  ;;  %v20403_v36 = vpack.c.bf16 %v5072_v16, %v5071_v38  ;;  %v11121_v8 = vld [vmem:[#allocation3 + $0x15c] sm:$0xff] }
 0x448   : > { %15601 = vmatmul.mubr.msk.bf16.gmra.mrb[136].mxu1 %vm514_vm0, %v20346_v43  ;;  %16346 = vmatprep.subr.bf16.mxu0 %v17740_v33  ;;  %v20364_v58 = vpack.c.bf16 %v5058_v31, %v5057_v56  ;;  %v5073_v31 = vld [vmem:[#allocation3 + $0x168] sm:$0xff]  ;;  %v5624_v56 = vld [vmem:[#allocation3 + $0x1a] sm:$0xff] }
 0x449   : > { %15604 = vmatprep.mubr.msk.bf16.mxu1 %vm514_vm0, %v20351_v26  ;;  %v20410_v7 = vpack.c.bf16 %v5074_v20, %v5073_v31  ;;  %v5655_v14 = vpack.c.bf16 %v5625_v57, %v5624_v56  ;;  %v5644_v22 = vld [vmem:[#allocation3 + $0x10a] sm:$0xff]  ;;  %v5648_v20 = vld [vmem:[#allocation3 + $0x13a] sm:$0xff] }
 0x44b   : > { %16347 = vmatpush3.bf16.msra.mxu0 %v17740_v33  ;;  %v11120_v33 = vld [vmem:[#allocation3 + $0x154] sm:$0xff] }
 0x44c   : > { %16348 = vmatprep.subr.bf16.mxu0 %v17742_v29  ;;  %v11141_v32 = vpack.c.bf16 %v11121_v8, %v11120_v33  ;;  %v5646_v33 = vld [vmem:[#allocation3 + $0x122] sm:$0xff] }
 0x44e   : > { %16317 = vmatmul.mubr.msk.bf16.gmra.mrb[4].mxu0 %vm514_vm0, %v11133_v54 }
 0x44f   : > { %16320 = vmatprep.mubr.msk.bf16.mxu0 %vm514_vm0, %v11134_v6  ;;  %16349 = vmatpush3.bf16.msra.mxu0 %v17742_v29  ;;  %v5622_v29 = vld [vmem:[#allocation3 + $0x2] sm:$0xff]  ;;  %v11125_v6 = vld [vmem:[#allocation3 + $0x18c] sm:$0xff] }
 0x450   : > { %15605 = vmatmul.mubr.msk.bf16.gmra.mrb[140].mxu1 %vm514_vm0, %v20364_v58  ;;  %16350 = vmatprep.subr.bf16.mxu0 %v17746_v55  ;;  %v5654_v54 = vpack.c.bf16 %v5623_v35, %v5622_v29 }
 0x451   : > { %15608 = vmatprep.mubr.msk.bf16.mxu1 %vm514_vm0, %v20367_v1 }
 0x453   : > { %16351 = vmatpush3.bf16.msra.mxu0 %v17746_v55  ;;  %v11124_v55 = vld [vmem:[#allocation3 + $0x184] sm:$0xff] }
 0x454   : > { %16384 = vmatprep.subr.bf16.mxu0 %v20374_v42  ;;  %v11143_v23 = vpack.c.bf16 %v11125_v6, %v11124_v55  ;;  %v5944_v55 = vld [vmem:[#allocation3 + $0x3] sm:$0xff]  ;;  %v5945_v6 = vld [vmem:[#allocation3 + $0xb] sm:$0xff] }
 0x456   : > { %16321 = vmatmul.mubr.msk.bf16.gmra.mrb[8].mxu0 %vm514_vm0, %v11135_v27  ;;  %v11144_v27 = vpack.c.bf16 %v11127_v21, %v11126_v15  ;;  %v11445_v15 = vld [vmem:[#allocation3 + $0x180] sm:$0xff] }
 0x457   : > { %16324 = vmatprep.mubr.msk.bf16.mxu0 %vm514_vm0, %v11136_v39  ;;  %v17751_v39 = vld [vmem:[%s21259_s9 + $0x68] sm:$0xff]  }
 0x458   : > { %15609 = vmatmul.mubr.msk.bf16.gmra.mrb[144].mxu1 %vm514_vm0, %v20380_v59 }
 0x459   : > { %15612 = vmatprep.mubr.msk.bf16.mxu1 %vm514_vm0, %v20383_v37 }
 0x45e   : > { %16325 = vmatmul.mubr.msk.bf16.gmra.mrb[12].mxu0 %vm514_vm0, %v11137_v0 }
 0x45f   : > { %16328 = vmatprep.mubr.msk.bf16.mxu0 %vm514_vm0, %v11138_v49 }
 0x460   : > { %15613 = vmatmul.mubr.msk.bf16.gmra.mrb[148].mxu1 %vm514_vm0, %v20390_v4 }
 0x461   : > { %15616 = vmatprep.mubr.msk.bf16.mxu1 %vm514_vm0, %v20393_v60 }
 0x466   : > { %16329 = vmatmul.mubr.msk.bf16.gmra.mrb[16].mxu0 %vm514_vm0, %v11139_v9  ;;  %v5645_v9 = vld [vmem:[#allocation3 + $0x112] sm:$0xff] }
 0x467   : > { %16332 = vmatprep.mubr.msk.bf16.mxu0 %vm514_vm0, %v11140_v28 }
 0x468   : > { %15617 = vmatmul.mubr.msk.bf16.gmra.mrb[152].mxu1 %vm514_vm0, %v20400_v18 }
 0x469   : > { %15620 = vmatprep.mubr.msk.bf16.mxu1 %vm514_vm0, %v20403_v36 }
 0x46e   : > { %16333 = vmatmul.mubr.msk.bf16.gmra.mrb[20].mxu0 %vm514_vm0, %v11141_v32 }
 0x46f   : > { %16336 = vmatprep.mubr.msk.bf16.mxu0 %vm514_vm0, %v11142_v40  ;;  %v5650_v40 = vld [vmem:[#allocation3 + $0x152] sm:$0xff] }
 0x470   : > { %15621 = vmatmul.mubr.msk.bf16.gmra.mrb[156].mxu1 %vm514_vm0, %v20410_v7 }
 0x471   : > { %15632 = vmatprep.mubr.msk.bf16.mxu1 %vm514_vm0, %v5654_v54  ;;  %v11446_v54 = vld [vmem:[#allocation3 + $0x188] sm:$0xff] }
 0x476   : > { %16337 = vmatmul.mubr.msk.bf16.gmra.mrb[24].mxu0 %vm514_vm0, %v11143_v23  ;;  %v5652_v23 = vld [vmem:[#allocation3 + $0x16a] sm:$0xff] }
 0x477   : > { %16340 = vmatprep.mubr.msk.bf16.mxu0 %vm514_vm0, %v11144_v27 }
 0x478   : > { %15633 = vmatmul.mubr.msk.bf16.vlgmr.msra.gmra.mrb[128].mxu1 %vm514_vm0, %v5655_v14  ;;  %v5976_v14 = vpack.c.bf16 %v5945_v6, %v5944_v55  ;;  %v5952_v55 = vld [vmem:[#allocation3 + $0x63] sm:$0xff]  ;;  %v5953_v6 = vld [vmem:[#allocation3 + $0x6b] sm:$0xff] }
 0x479   : > { %15636 = vmatprep.mubr.msk.bf16.mxu1 %vm514_vm0, %v5656_v10  ;;  %15665 = vmatpush3.bf16.msra.mxu1 %v20340_v45  ;;  %v20440_v45 = vld [vmem:[%s21259_s9 + $0x80] sm:$0xff]   ;;  %v11450_v10 = vld [vmem:[#allocation3 + $0x1b8] sm:$0xff] }
 0x47a   : > { %15666 = vmatprep.subr.bf16.mxu1 %v17751_v39 }
 0x47d   : > { %15667 = vmatpush3.bf16.msra.mxu1 %v17751_v39  ;;  %v11449_v39 = vld [vmem:[#allocation3 + $0x1b0] sm:$0xff] }
 0x47e   : > { %16341 = vmatmul.mubr.msk.bf16.gmra.mrb[28].mxu0 %vm514_vm0, %v11145_v63  ;;  %15668 = vmatprep.subr.bf16.mxu1 %v17752_v41  ;;  %v5947_v63 = vld [vmem:[#allocation3 + $0x23] sm:$0xff] }
 0x47f   : > { %16352 = vmatprep.mubr.msk.bf16.mxu0 %vm514_vm0, %v20332_v17  ;;  %v5637_v17 = vld [vmem:[#allocation3 + $0xb2] sm:$0xff] }
 0x480   : > { %15637 = vmatmul.mubr.msk.bf16.gmra.mrb[132].mxu1 %vm514_vm0, %v20170_v47  ;;  %v17750_v47 = vld [vmem:[%s21259_s9 + $0x2b0] sm:$0xff]  }
 0x481   : > { %15640 = vmatprep.mubr.msk.bf16.mxu1 %vm514_vm0, %v20185_v53  ;;  %15669 = vmatpush3.bf16.msra.mxu1 %v17752_v41 }
 0x482   : > { %15670 = vmatprep.subr.bf16.mxu1 %v17753_v44 }
 0x485   : > { %15671 = vmatpush3.bf16.msra.mxu1 %v17753_v44  ;;  %v11467_v44 = vpack.c.bf16 %v11450_v10, %v11449_v39  ;;  %v11745_v39 = vld [vmem:[#allocation3 + $0x79] sm:$0xff] }
 0x486   : > { %16353 = vmatmul.mubr.msk.bf16.vlgmr.msra.gmra.mrb[0].mxu0 %vm514_vm0, %v20346_v43  ;;  %15704 = vmatprep.subr.bf16.mxu1 %v20440_v45  ;;  %v11748_v10 = vld [vmem:[#allocation3 + $0x99] sm:$0xff] }
 0x487   : > { %16385 = vmatpush3.bf16.msra.mxu0 %v20374_v42  ;;  %16356 = vmatprep.mubr.msk.bf16.mxu0 %vm514_vm0, %v20351_v26  ;;  %v17754_v26 = vld [vmem:[%s21259_s9 + $0x2b8] sm:$0xff]  }
 0x488   : > { %15641 = vmatmul.mubr.msk.bf16.gmra.mrb[136].mxu1 %vm514_vm0, %v20190_v30  ;;  %16386 = vmatprep.subr.bf16.mxu0 %v17748_v24  ;;  %v5636_v42 = vld [vmem:[#allocation3 + $0xaa] sm:$0xff] }
 0x489   : > { %15644 = vmatprep.mubr.msk.bf16.mxu1 %vm514_vm0, %v20203_v61  ;;  %v20471_v61 = vpack.c.bf16 %v5637_v17, %v5636_v42  ;;  %v5948_v17 = vld [vmem:[#allocation3 + $0x33] sm:$0xff] }
 0x48b   : > { %v20458_v53 = vpop.f32.mrb[96].mxu1  ;;  %16387 = vmatpush3.bf16.msra.mxu0 %v17748_v24 }
 0x48c   : > { %v20460_v43 = vpop.f32.mrb[97].mxu1  ;;  %16388 = vmatprep.subr.bf16.mxu0 %v17750_v47 }
 0x48d   : > { %v20465_v30 = vpop.f32.mrb[98].mxu1 }
 0x48e   : > { %v20467_v0 = vpop.f32.mrb[99].mxu1  ;;  %16357 = vmatmul.mubr.msk.bf16.gmra.mrb[4].mxu0 %vm514_vm0, %v20364_v58  ;;  %v5641_v58 = vld [vmem:[#allocation3 + $0xe2] sm:$0xff] }
 0x48f   : > { %16360 = vmatprep.mubr.msk.bf16.mxu0 %vm514_vm0, %v20367_v1  ;;  %16389 = vmatpush3.bf16.msra.mxu0 %v17750_v47  ;;  %v5643_v1 = vld [vmem:[#allocation3 + $0xfa] sm:$0xff]  ;;  %v20495_v51 = vpack.c.bf16 %v5641_v58, %v5640_v2  ;;  %v5977_v47 = vpack.c.bf16 %v5947_v63, %v5946_v48  ;;  %v11747_v63 = vld [vmem:[#allocation3 + $0x91] sm:$0xff] }
 0x490   : > { %15645 = vmatmul.mubr.msk.bf16.gmra.mrb[140].mxu1 %vm514_vm0, %v20471_v61  ;;  %16390 = vmatprep.subr.bf16.mxu0 %v17754_v26 }
 0x491   : > { %15648 = vmatprep.mubr.msk.bf16.mxu1 %vm514_vm0, %v20218_v3  ;;  %v5642_v3 = vld [vmem:[#allocation3 + $0xf2] sm:$0xff] }
 0x492   : > { %v20499_v5 = vpack.c.bf16 %v5643_v1, %v5642_v3  ;;  %v17759_v1 = vld [vmem:[%s21259_s9 + $0x88] sm:$0xff]   ;;  %v11451_v3 = vld [vmem:[#allocation3 + $0x1c8] sm:$0xff] }
 0x493   : > { %v20484_v49 = vpop.f32.mrb[100].mxu1  ;;  %16391 = vmatpush3.bf16.msra.mxu0 %v17754_v26  ;;  %v5949_v26 = vld [vmem:[#allocation3 + $0x3b] sm:$0xff] }
 0x494   : > { %v20486_v50 = vpop.f32.mrb[101].mxu1  ;;  %16424 = vmatprep.subr.bf16.mxu0 %v20480_v19  ;;  %v5978_v2 = vpack.c.bf16 %v5949_v26, %v5948_v17  ;;  %v5956_v26 = vld [vmem:[#allocation3 + $0x93] sm:$0xff] }
 0x495   : > { %v20489_v11 = vpop.f32.mrb[102].mxu1 }
 0x496   : > { %v20491_v62 = vpop.f32.mrb[103].mxu1  ;;  %16361 = vmatmul.mubr.msk.bf16.gmra.mrb[8].mxu0 %vm514_vm0, %v20380_v59  ;;  %v5647_v59 = vld [vmem:[#allocation3 + $0x12a] sm:$0xff] }
 0x497   : > { %16364 = vmatprep.mubr.msk.bf16.mxu0 %vm514_vm0, %v20383_v37  ;;  %v20515_v37 = vpack.c.bf16 %v5645_v9, %v5644_v22  ;;  %v20519_v8 = vpack.c.bf16 %v5647_v59, %v5646_v33  ;;  %v11452_v9 = vld [vmem:[#allocation3 + $0x1d0] sm:$0xff]  ;;  %v17760_v33 = vld [vmem:[%s21259_s9 + $0x90] sm:$0xff]  }
 0x498   : > { %15649 = vmatmul.mubr.msk.bf16.gmra.mrb[144].mxu1 %vm514_vm0, %v20495_v51  ;;  %v11468_v59 = vpack.c.bf16 %v11452_v9, %v11451_v3  ;;  %v11744_v22 = vld [vmem:[#allocation3 + $0x69] sm:$0xff]  ;;  %v11777_v9 = vpack.c.bf16 %v11748_v10, %v11747_v63 }
 0x499   : > { %15652 = vmatprep.mubr.msk.bf16.mxu1 %vm514_vm0, %v20499_v5 }
 0x49b   : > { %v20505_v25 = vpop.f32.mrb[104].mxu1 }
 0x49c   : > { %v20507_v16 = vpop.f32.mrb[105].mxu1 }
 0x49d   : > { %v20509_v28 = vpop.f32.mrb[106].mxu1 }
 0x49e   : > { %v20511_v38 = vpop.f32.mrb[107].mxu1  ;;  %16365 = vmatmul.mubr.msk.bf16.gmra.mrb[12].mxu0 %vm514_vm0, %v20390_v4  ;;  %v5651_v4 = vld [vmem:[#allocation3 + $0x15a] sm:$0xff] }
 0x49f   : > { %16368 = vmatprep.mubr.msk.bf16.mxu0 %vm514_vm0, %v20393_v60  ;;  %v20535_v60 = vpack.c.bf16 %v5649_v46, %v5648_v20  ;;  %v20539_v31 = vpack.c.bf16 %v5651_v4, %v5650_v40  ;;  %v5950_v4 = vld [vmem:[#allocation3 + $0x4b] sm:$0xff]  ;;  %v5951_v20 = vld [vmem:[#allocation3 + $0x53] sm:$0xff] }
 0x4a0   : > { %15653 = vmatmul.mubr.msk.bf16.gmra.mrb[148].mxu1 %vm514_vm0, %v20515_v37 }
 0x4a1   : > { %15656 = vmatprep.mubr.msk.bf16.mxu1 %vm514_vm0, %v20519_v8 }
 0x4a3   : > { %v20525_v52 = vpop.f32.mrb[108].mxu1 }
 0x4a4   : > { %v20527_v29 = vpop.f32.mrb[109].mxu1 }
 0x4a5   : > { %v20529_v35 = vpop.f32.mrb[110].mxu1 }
 0x4a6   : > { %v20531_v32 = vpop.f32.mrb[111].mxu1  ;;  %16369 = vmatmul.mubr.msk.bf16.gmra.mrb[16].mxu0 %vm514_vm0, %v20400_v18  ;;  %v5653_v18 = vld [vmem:[#allocation3 + $0x172] sm:$0xff] }
 0x4a7   : > { %21349 = vst [vmem:[#allocation10_spill] sm:$0xff] %v20531_v32  ;;  %16372 = vmatprep.mubr.msk.bf16.mxu0 %vm514_vm0, %v20403_v36  ;;  %v11465_v36 = vpack.c.bf16 %v11446_v54, %v11445_v15  ;;  %v20555_v27 = vpack.c.bf16 %v5653_v18, %v5652_v23  ;;  %v11743_v54 = vld [vmem:[#allocation3 + $0x61] sm:$0xff] }
 0x4a8   : > { %15657 = vmatmul.mubr.msk.bf16.gmra.mrb[152].mxu1 %vm514_vm0, %v20535_v60  ;;  %v11775_v15 = vpack.c.bf16 %v11744_v22, %v11743_v54  ;;  %v17761_v23 = vld [vmem:[%s21259_s9 + $0x98] sm:$0xff]  }
 0x4a9   : > { %15660 = vmatprep.mubr.msk.bf16.mxu1 %vm514_vm0, %v20539_v31  ;;  %v11749_v54 = vld [vmem:[#allocation3 + $0xa9] sm:$0xff] }
 0x4ab   : > { %v20545_v56 = vpop.f32.mrb[112].mxu1 }
 0x4ac   : > { %21350 = vst [vmem:[#allocation11_spill] sm:$0xff] %v20545_v56  ;;  %v20547_v57 = vpop.f32.mrb[113].mxu1  ;;  %v6592_v56 = vld [vmem:[#allocation3 + $0x38] sm:$0xff] }
 0x4ad   : > { %21351 = vst [vmem:[#allocation12_spill] sm:$0xff] %v20547_v57  ;;  %v20549_v21 = vpop.f32.mrb[114].mxu1  ;;  %v11774_v57 = vld [vmem:[#allocation3 + $0x1d1] sm:$0xff] }
 0x4ae   : > { %21352 = vst [vmem:[#allocation13_spill] sm:$0xff] %v20549_v21  ;;  %v20551_v12 = vpop.f32.mrb[115].mxu1  ;;  %16373 = vmatmul.mubr.msk.bf16.gmra.mrb[20].mxu0 %vm514_vm0, %v20410_v7  ;;  %v11466_v7 = vpack.c.bf16 %v11448_v13, %v11447_v34  ;;  %v11746_v34 = vld [vmem:[#allocation3 + $0x81] sm:$0xff]  ;;  %v20601_v13 = vld [vmem:[%s21259_s9 + $0xa0] sm:$0xff]  }
 0x4af   : > { %21353 = vst [vmem:[#allocation14_spill] sm:$0xff] %v20551_v12  ;;  %16376 = vmatprep.mubr.msk.bf16.mxu0 %vm514_vm0, %v11465_v36  ;;  %v5979_v36 = vpack.c.bf16 %v5951_v20, %v5950_v4  ;;  %v11776_v17 = vpack.c.bf16 %v11746_v34, %v11745_v39  ;;  %v17758_v4 = vld [vmem:[%s21259_s9 + $0x2d0] sm:$0xff]   ;;  %v11750_v20 = vld [vmem:[#allocation3 + $0xb1] sm:$0xff]  ;;  %v17762_v39 = vld [vmem:[%s21259_s9 + $0x2d8] sm:$0xff]  }
 0x4b0   : > { %15661 = vmatmul.mubr.msk.bf16.gmra.mrb[156].mxu1 %vm514_vm0, %v20555_v27  ;;  %v5961_v34 = vld [vmem:[#allocation3 + $0xcb] sm:$0xff]  ;;  %v12092_v21 = vld [vmem:[#allocation3 + $0x1a2] sm:$0xff] }
 0x4b1   : > { %15672 = vmatprep.mubr.msk.bf16.mxu1 %vm514_vm0, %v5976_v14  ;;  %v20593_v14 = vpack.c.bf16 %v5953_v6, %v5952_v55  ;;  %v11752_v55 = vld [vmem:[#allocation3 + $0xc9] sm:$0xff]  ;;  %v11751_v6 = vld [vmem:[#allocation3 + $0xc1] sm:$0xff] }
 0x4b2   : > { %v11779_v10 = vpack.c.bf16 %v11752_v55, %v11751_v6  ;;  %v5965_v55 = vld [vmem:[#allocation3 + $0xfb] sm:$0xff]  ;;  %v11773_v12 = vld [vmem:[#allocation3 + $0x1c9] sm:$0xff] }
 0x4b3   : > { %v20561_v41 = vpop.f32.mrb[116].mxu1 }
 0x4b4   : > { %21354 = vst [vmem:[#allocation15_spill] sm:$0xff] %v20561_v41  ;;  %v20563_v24 = vpop.f32.mrb[117].mxu1 }
 0x4b5   : > { %21355 = vst [vmem:[#allocation16_spill] sm:$0xff] %v20563_v24  ;;  %v20565_v42 = vpop.f32.mrb[118].mxu1  ;;  %v11772_v24 = vld [vmem:[#allocation3 + $0x1b9] sm:$0xff] }
 0x4b6   : > { %21356 = vst [vmem:[#allocation17_spill] sm:$0xff] %v20565_v42  ;;  %v20567_v58 = vpop.f32.mrb[119].mxu1  ;;  %16377 = vmatmul.mubr.msk.bf16.gmra.mrb[24].mxu0 %vm514_vm0, %v11466_v7  ;;  %v5955_v7 = vld [vmem:[#allocation3 + $0x83] sm:$0xff]  ;;  %v6270_v42 = vld [vmem:[#allocation3 + $0x34] sm:$0xff] }
 0x4b7   : > { %21357 = vst [vmem:[#allocation18_spill] sm:$0xff] %v20567_v58  ;;  %16380 = vmatprep.mubr.msk.bf16.mxu0 %vm514_vm0, %v11467_v44  ;;  %v5954_v44 = vld [vmem:[#allocation3 + $0x7b] sm:$0xff]  ;;  %v11771_v58 = vld [vmem:[#allocation3 + $0x1b1] sm:$0xff] }
 0x4b8   : > { %15673 = vmatmul.mubr.msk.bf16.vlgmr.msra.gmra.mrb[128].mxu1 %vm514_vm0, %v5977_v47  ;;  %v20615_v22 = vpack.c.bf16 %v5955_v7, %v5954_v44  ;;  %v20643_v7 = vld [vmem:[%s21259_s9 + $0x2e0] sm:$0xff]  }
 0x4b9   : > { %15676 = vmatprep.mubr.msk.bf16.mxu1 %vm514_vm0, %v5978_v2  ;;  %15705 = vmatpush3.bf16.msra.mxu1 %v20440_v45  ;;  %v17756_v2 = vld [vmem:[%s21259_s9 + $0x2c8] sm:$0xff]  }
 0x4ba   : > { %15706 = vmatprep.subr.bf16.mxu1 %v17759_v1 }
 0x4bb   : > { %v20580_v46 = vpop.f32.mrb[120].mxu1 }
 0x4bc   : > { %21358 = vst [vmem:[#allocation19_spill] sm:$0xff] %v20580_v46  ;;  %v20582_v40 = vpop.f32.mrb[121].mxu1  ;;  %v11769_v46 = vld [vmem:[#allocation3 + $0x199] sm:$0xff] }
 0x4bd   : > { %21359 = vst [vmem:[#allocation20_spill] sm:$0xff] %v20582_v40  ;;  %v20584_v18 = vpop.f32.mrb[122].mxu1  ;;  %15707 = vmatpush3.bf16.msra.mxu1 %v17759_v1  ;;  %v5957_v1 = vld [vmem:[#allocation3 + $0x9b] sm:$0xff]  ;;  %v5975_v40 = vld [vmem:[#allocation3 + $0x173] sm:$0xff] }
 0x4be   : > { %21360 = vst [vmem:[#allocation21_spill] sm:$0xff] %v20584_v18  ;;  %v20586_v45 = vpop.f32.mrb[123].mxu1  ;;  %16381 = vmatmul.mubr.msk.bf16.gmra.mrb[28].mxu0 %vm514_vm0, %v11468_v59  ;;  %15708 = vmatprep.subr.bf16.mxu1 %v17760_v33 }
 0x4bf   : > { %21361 = vst [vmem:[#allocation22_spill] sm:$0xff] %v20586_v45  ;;  %16392 = vmatprep.mubr.msk.bf16.mxu0 %vm514_vm0, %v11775_v15  ;;  %v5959_v15 = vld [vmem:[#allocation3 + $0xb3] sm:$0xff]  ;;  %v5974_v45 = vld [vmem:[#allocation3 + $0x16b] sm:$0xff] }
 0x4c0   : > { %15677 = vmatmul.mubr.msk.bf16.gmra.mrb[132].mxu1 %vm514_vm0, %v5979_v36  ;;  %v11778_v36 = vpack.c.bf16 %v11750_v20, %v11749_v54  ;;  %v5964_v54 = vld [vmem:[#allocation3 + $0xf3] sm:$0xff] }
 0x4c1   : > { %15680 = vmatprep.mubr.msk.bf16.mxu1 %vm514_vm0, %v20593_v14  ;;  %15709 = vmatpush3.bf16.msra.mxu1 %v17760_v33  ;;  %v20620_v33 = vpack.c.bf16 %v5957_v1, %v5956_v26  ;;  %v11756_v26 = vld [vmem:[#allocation3 + $0xf9] sm:$0xff] }
 0x4c2   : > { %15710 = vmatprep.subr.bf16.mxu1 %v17761_v23  ;;  %v11753_v1 = vld [vmem:[#allocation3 + $0xd9] sm:$0xff] }
 0x4c3   : > { %v20603_v48 = vpop.f32.mrb[124].mxu1 }
 0x4c4   : > { %21362 = vst [vmem:[#allocation23_spill] sm:$0xff] %v20603_v48  ;;  %v20605_v47 = vpop.f32.mrb[125].mxu1  ;;  %v5973_v48 = vld [vmem:[#allocation3 + $0x15b] sm:$0xff] }
 0x4c5   : > { %21363 = vst [vmem:[#allocation24_spill] sm:$0xff] %v20605_v47  ;;  %v20610_v3 = vpop.f32.mrb[126].mxu1  ;;  %15711 = vmatpush3.bf16.msra.mxu1 %v17761_v23  ;;  %v5960_v23 = vld [vmem:[#allocation3 + $0xc3] sm:$0xff] }
 0x4c6   : > { %21364 = vst [vmem:[#allocation25_spill] sm:$0xff] %v20610_v3  ;;  %v20612_v59 = vpop.f32.mrb[127].mxu1  ;;  %16393 = vmatmul.mubr.msk.bf16.vlgmr.msra.gmra.mrb[0].mxu0 %vm514_vm0, %v11776_v17  ;;  %15744 = vmatprep.subr.bf16.mxu1 %v20601_v13  ;;  %v20636_v44 = vpack.c.bf16 %v5961_v34, %v5960_v23  ;;  %v11754_v17 = vld [vmem:[#allocation3 + $0xe1] sm:$0xff]  ;;  %v11760_v23 = vld [vmem:[#allocation3 + $0x129] sm:$0xff] }
 0x4c7   : > { %21365 = vst [vmem:[#allocation26_spill] sm:$0xff] %v20612_v59  ;;  %16425 = vmatpush3.bf16.msra.mxu0 %v20480_v19  ;;  %16396 = vmatprep.mubr.msk.bf16.mxu0 %vm514_vm0, %v11777_v9  ;;  %v5958_v19 = vld [vmem:[#allocation3 + $0xab] sm:$0xff]  ;;  %v5963_v9 = vld [vmem:[#allocation3 + $0xe3] sm:$0xff]  ;;  %v20647_v20 = vpack.c.bf16 %v11754_v17, %v11753_v1 }
 0x4c8   : > { %15681 = vmatmul.mubr.msk.bf16.gmra.mrb[136].mxu1 %vm514_vm0, %v20615_v22  ;;  %16426 = vmatprep.subr.bf16.mxu0 %v17756_v2  ;;  %v20633_v63 = vpack.c.bf16 %v5959_v15, %v5958_v19  ;;  %v20658_v15 = vpack.c.bf16 %v5965_v55, %v5964_v54  ;;  %v11757_v34 = vld [vmem:[#allocation3 + $0x109] sm:$0xff]  ;;  %v11762_v55 = vld [vmem:[#allocation3 + $0x141] sm:$0xff] }
 0x4c9   : > { %15684 = vmatprep.mubr.msk.bf16.mxu1 %vm514_vm0, %v20620_v33  ;;  %v5968_v1 = vld [vmem:[#allocation3 + $0x123] sm:$0xff] }
 0x4ca   : > { %v11765_v47 = vld [vmem:[#allocation3 + $0x169] sm:$0xff] }
 0x4cb   : > { %16427 = vmatpush3.bf16.msra.mxu0 %v17756_v2  ;;  %v5962_v2 = vld [vmem:[#allocation3 + $0xdb] sm:$0xff] }
 0x4cc   : > { %16428 = vmatprep.subr.bf16.mxu0 %v17758_v4  ;;  %v20654_v19 = vpack.c.bf16 %v5963_v9, %v5962_v2  ;;  %v5969_v2 = vld [vmem:[#allocation3 + $0x12b] sm:$0xff] }
 0x4cd   : > { %v20674_v54 = vpack.c.bf16 %v5969_v2, %v5968_v1 }
 0x4ce   : > { %16397 = vmatmul.mubr.msk.bf16.gmra.mrb[4].mxu0 %vm514_vm0, %v11778_v36  ;;  %v11758_v36 = vld [vmem:[#allocation3 + $0x111] sm:$0xff] }
 0x4cf   : > { %16400 = vmatprep.mubr.msk.bf16.mxu0 %vm514_vm0, %v11779_v10  ;;  %16429 = vmatpush3.bf16.msra.mxu0 %v17758_v4  ;;  %v11755_v4 = vld [vmem:[#allocation3 + $0xf1] sm:$0xff]  ;;  %v20664_v17 = vpack.c.bf16 %v11758_v36, %v11757_v34  ;;  %v11764_v36 = vld [vmem:[#allocation3 + $0x159] sm:$0xff] }
 0x4d0   : > { %15685 = vmatmul.mubr.msk.bf16.gmra.mrb[140].mxu1 %vm514_vm0, %v20633_v63  ;;  %16430 = vmatprep.subr.bf16.mxu0 %v17762_v39  ;;  %v20650_v6 = vpack.c.bf16 %v11756_v26, %v11755_v4  ;;  %v5967_v10 = vld [vmem:[#allocation3 + $0x113] sm:$0xff]  ;;  %v11759_v26 = vld [vmem:[#allocation3 + $0x121] sm:$0xff] }
 0x4d1   : > { %15688 = vmatprep.mubr.msk.bf16.mxu1 %vm514_vm0, %v20636_v44  ;;  %v20666_v9 = vpack.c.bf16 %v11760_v23, %v11759_v26  ;;  %v11761_v23 = vld [vmem:[#allocation3 + $0x139] sm:$0xff]  ;;  %v5971_v26 = vld [vmem:[#allocation3 + $0x143] sm:$0xff] }
 0x4d2   : > { %v5970_v34 = vld [vmem:[#allocation3 + $0x13b] sm:$0xff]  ;;  %v20680_v3 = vpack.c.bf16 %v11762_v55, %v11761_v23  ;;  %v11766_v55 = vld [vmem:[#allocation3 + $0x171] sm:$0xff]  ;;  %v11768_v23 = vld [vmem:[#allocation3 + $0x189] sm:$0xff] }
 0x4d3   : > { %16431 = vmatpush3.bf16.msra.mxu0 %v17762_v39  ;;  %v5966_v39 = vld [vmem:[#allocation3 + $0x10b] sm:$0xff]  ;;  %v20686_v1 = vpack.c.bf16 %v5971_v26, %v5970_v34  ;;  %v20696_v34 = vpack.c.bf16 %v11766_v55, %v11765_v47  ;;  %v11767_v26 = vld [vmem:[#allocation3 + $0x181] sm:$0xff] }
 0x4d4   : > { %16464 = vmatprep.subr.bf16.mxu0 %v20643_v7  ;;  %v20670_v4 = vpack.c.bf16 %v5967_v10, %v5966_v39  ;;  %v11763_v39 = vld [vmem:[#allocation3 + $0x151] sm:$0xff]  ;;  %v20698_v18 = vpack.c.bf16 %v11768_v23, %v11767_v26  ;;  %v11770_v47 = vld [vmem:[#allocation3 + $0x1a1] sm:$0xff] }
 0x4d5   : > { %v5972_v10 = vld [vmem:[#allocation3 + $0x153] sm:$0xff]  ;;  %v20682_v59 = vpack.c.bf16 %v11764_v36, %v11763_v39  ;;  %v6266_v36 = vld [vmem:[#allocation3 + $0x4] sm:$0xff]  ;;  %v6268_v55 = vld [vmem:[#allocation3 + $0x1c] sm:$0xff] }
 0x4d6   : > { %16401 = vmatmul.mubr.msk.bf16.gmra.mrb[8].mxu0 %vm514_vm0, %v20647_v20  ;;  %v20690_v2 = vpack.c.bf16 %v5973_v48, %v5972_v10  ;;  %v6267_v39 = vld [vmem:[#allocation3 + $0xc] sm:$0xff]  ;;  %v20702_v10 = vpack.c.bf16 %v5975_v40, %v5974_v45  ;;  %v6269_v23 = vld [vmem:[#allocation3 + $0x24] sm:$0xff]  ;;  %v6271_v40 = vld [vmem:[#allocation3 + $0x3c] sm:$0xff] }
 0x4d7   : > { %16404 = vmatprep.mubr.msk.bf16.mxu0 %vm514_vm0, %v20650_v6  ;;  %v6298_v48 = vpack.c.bf16 %v6267_v39, %v6266_v36  ;;  %v11789_v36 = vpack.c.bf16 %v11772_v24, %v11771_v58  ;;  %v11788_v39 = vpack.c.bf16 %v11770_v47, %v11769_v46  ;;  %v6299_v26 = vpack.c.bf16 %v6269_v23, %v6268_v55  ;;  %v17767_v45 = vld [vmem:[%s21259_s9 + $0xa8] sm:$0xff]   ;;  %v12066_v58 = vld [vmem:[#allocation3 + $0x6a] sm:$0xff]  ;;  %v17768_v46 = vld [vmem:[%s21259_s9 + $0xb0] sm:$0xff]  }
 0x4d8   : > { %15689 = vmatmul.mubr.msk.bf16.gmra.mrb[144].mxu1 %vm514_vm0, %v20654_v19  ;;  %v6300_v41 = vpack.c.bf16 %v6271_v40, %v6270_v42  ;;  %v11790_v24 = vpack.c.bf16 %v11774_v57, %v11773_v12  ;;  %v6273_v47 = vld [vmem:[#allocation3 + $0x54] sm:$0xff]  ;;  %v12065_v42 = vld [vmem:[#allocation3 + $0x62] sm:$0xff]  ;;  %v6275_v23 = vld [vmem:[#allocation3 + $0x6c] sm:$0xff] }
 0x4d9   : > { %15692 = vmatprep.mubr.msk.bf16.mxu1 %vm514_vm0, %v20658_v15  ;;  %v6274_v55 = vld [vmem:[#allocation3 + $0x64] sm:$0xff]  ;;  %v12069_v40 = vld [vmem:[#allocation3 + $0x92] sm:$0xff] }
 0x4da   : > { %v17769_v57 = vld [vmem:[%s21259_s9 + $0xb8] sm:$0xff]   ;;  %v20725_v12 = vpack.c.bf16 %v6275_v23, %v6274_v55 }
 0x4de   : > { %16405 = vmatmul.mubr.msk.bf16.gmra.mrb[12].mxu0 %vm514_vm0, %v20664_v17 }
 0x4df   : > { %16408 = vmatprep.mubr.msk.bf16.mxu0 %vm514_vm0, %v20666_v9 }
 0x4e0   : > { %15693 = vmatmul.mubr.msk.bf16.gmra.mrb[148].mxu1 %vm514_vm0, %v20670_v4 }
 0x4e1   : > { %15696 = vmatprep.mubr.msk.bf16.mxu1 %vm514_vm0, %v20674_v54 }
 0x4e6   : > { %16409 = vmatmul.mubr.msk.bf16.gmra.mrb[16].mxu0 %vm514_vm0, %v20680_v3 }
 0x4e7   : > { %16412 = vmatprep.mubr.msk.bf16.mxu0 %vm514_vm0, %v20682_v59 }
 0x4e8   : > { %15697 = vmatmul.mubr.msk.bf16.gmra.mrb[152].mxu1 %vm514_vm0, %v20686_v1 }
 0x4e9   : > { %15700 = vmatprep.mubr.msk.bf16.mxu1 %vm514_vm0, %v20690_v2 }
 0x4ee   : > { %16413 = vmatmul.mubr.msk.bf16.gmra.mrb[20].mxu0 %vm514_vm0, %v20696_v34 }
 0x4ef   : > { %16416 = vmatprep.mubr.msk.bf16.mxu0 %vm514_vm0, %v20698_v18 }
 0x4f0   : > { %15701 = vmatmul.mubr.msk.bf16.gmra.mrb[156].mxu1 %vm514_vm0, %v20702_v10 }
 0x4f1   : > { %15712 = vmatprep.mubr.msk.bf16.mxu1 %vm514_vm0, %v6298_v48  ;;  %v6272_v48 = vld [vmem:[#allocation3 + $0x4c] sm:$0xff] }
 0x4f6   : > { %16417 = vmatmul.mubr.msk.bf16.gmra.mrb[24].mxu0 %vm514_vm0, %v11788_v39  ;;  %v6301_v39 = vpack.c.bf16 %v6273_v47, %v6272_v48  ;;  %v6278_v48 = vld [vmem:[#allocation3 + $0x94] sm:$0xff]  ;;  %v6279_v47 = vld [vmem:[#allocation3 + $0x9c] sm:$0xff] }
 0x4f7   : > { %16420 = vmatprep.mubr.msk.bf16.mxu0 %vm514_vm0, %v11789_v36  ;;  %v12097_v36 = vpack.c.bf16 %v12066_v58, %v12065_v42  ;;  %v17764_v42 = vld [vmem:[%s21259_s9 + $0x2e8] sm:$0xff]  }
 0x4f8   : > { %15713 = vmatmul.mubr.msk.bf16.vlgmr.msra.gmra.mrb[128].mxu1 %vm514_vm0, %v6299_v26  ;;  %v12070_v26 = vld [vmem:[#allocation3 + $0x9a] sm:$0xff] }
 0x4f9   : > { %15716 = vmatprep.mubr.msk.bf16.mxu1 %vm514_vm0, %v6300_v41  ;;  %15745 = vmatpush3.bf16.msra.mxu1 %v20601_v13  ;;  %v12068_v41 = vld [vmem:[#allocation3 + $0x82] sm:$0xff]  ;;  %v12067_v13 = vld [vmem:[#allocation3 + $0x7a] sm:$0xff]  ;;  %v12099_v55 = vpack.c.bf16 %v12070_v26, %v12069_v40  ;;  %v6283_v40 = vld [vmem:[#allocation3 + $0xcc] sm:$0xff] }
 0x4fa   : > { %15746 = vmatprep.subr.bf16.mxu1 %v17767_v45  ;;  %v12098_v58 = vpack.c.bf16 %v12068_v41, %v12067_v13  ;;  %v12073_v41 = vld [vmem:[#allocation3 + $0xc2] sm:$0xff]  ;;  %v6280_v13 = vld [vmem:[#allocation3 + $0xac] sm:$0xff]  ;;  %v6281_v26 = vld [vmem:[#allocation3 + $0xb4] sm:$0xff] }
 0x4fd   : > { %15747 = vmatpush3.bf16.msra.mxu1 %v17767_v45  ;;  %v6276_v45 = vld [vmem:[#allocation3 + $0x7c] sm:$0xff] }
 0x4fe   : > { %16421 = vmatmul.mubr.msk.bf16.gmra.mrb[28].mxu0 %vm514_vm0, %v11790_v24  ;;  %15748 = vmatprep.subr.bf16.mxu1 %v17768_v46  ;;  %v6277_v24 = vld [vmem:[#allocation3 + $0x84] sm:$0xff] }
 0x4ff   : > { %16432 = vmatprep.mubr.msk.bf16.mxu0 %vm514_vm0, %v12097_v36  ;;  %v20734_v23 = vpack.c.bf16 %v6277_v24, %v6276_v45  ;;  %v20744_v36 = vpack.c.bf16 %v6279_v47, %v6278_v48  ;;  %v17770_v45 = vld [vmem:[%s21259_s9 + $0x2f8] sm:$0xff]   ;;  %v20768_v47 = vld [vmem:[%s21259_s9 + $0x300] sm:$0xff]  }
 0x500   : > { %15717 = vmatmul.mubr.msk.bf16.gmra.mrb[132].mxu1 %vm514_vm0, %v6301_v39  ;;  %v17766_v39 = vld [vmem:[%s21259_s9 + $0x2f0] sm:$0xff]  }
 0x501   : > { %15720 = vmatprep.mubr.msk.bf16.mxu1 %vm514_vm0, %v20725_v12  ;;  %15749 = vmatpush3.bf16.msra.mxu1 %v17768_v46  ;;  %v20739_v46 = vld [vmem:[%s21259_s9 + $0xc0] sm:$0xff]  }
 0x502   : > { %15750 = vmatprep.subr.bf16.mxu1 %v17769_v57 }
 0x505   : > { %15751 = vmatpush3.bf16.msra.mxu1 %v17769_v57  ;;  %v12074_v57 = vld [vmem:[#allocation3 + $0xca] sm:$0xff] }
 0x506   : > { %16433 = vmatmul.mubr.msk.bf16.vlgmr.msra.gmra.mrb[0].mxu0 %vm514_vm0, %v12098_v58  ;;  %16544 = vmatprep.subr.bf16.mxu1 %v20739_v46  ;;  %v12101_v24 = vpack.c.bf16 %v12074_v57, %v12073_v41  ;;  %v20758_v58 = vpack.c.bf16 %v6281_v26, %v6280_v13  ;;  %v6287_v57 = vld [vmem:[#allocation3 + $0xfc] sm:$0xff]  ;;  %v6288_v13 = vld [vmem:[#allocation3 + $0x10c] sm:$0xff]  ;;  %v6289_v26 = vld [vmem:[#allocation3 + $0x114] sm:$0xff] }
 0x507   : > { %16465 = vmatpush3.bf16.msra.mxu0 %v20643_v7  ;;  %16436 = vmatprep.mubr.msk.bf16.mxu0 %vm514_vm0, %v12099_v55  ;;  %v6282_v7 = vld [vmem:[#allocation3 + $0xc4] sm:$0xff]  ;;  %v6286_v55 = vld [vmem:[#allocation3 + $0xf4] sm:$0xff] }
 0x508   : > { %15721 = vmatmul.mubr.msk.bf16.gmra.mrb[136].mxu1 %vm514_vm0, %v20734_v23  ;;  %16466 = vmatprep.subr.bf16.mxu0 %v17764_v42  ;;  %v20761_v48 = vpack.c.bf16 %v6283_v40, %v6282_v7  ;;  %v20779_v41 = vpack.c.bf16 %v6287_v57, %v6286_v55  ;;  %v6290_v7 = vld [vmem:[#allocation3 + $0x124] sm:$0xff]  ;;  %v6291_v40 = vld [vmem:[#allocation3 + $0x12c] sm:$0xff]  ;;  %v6589_v57 = vld [vmem:[#allocation3 + $0x18] sm:$0xff] }
 0x509   : > { %15724 = vmatprep.mubr.msk.bf16.mxu1 %vm514_vm0, %v20744_v36  ;;  %v12090_v55 = vld [vmem:[#allocation3 + $0x18a] sm:$0xff] }
 0x50b   : > { %16467 = vmatpush3.bf16.msra.mxu0 %v17764_v42  ;;  %v6285_v42 = vld [vmem:[#allocation3 + $0xe4] sm:$0xff] }
 0x50c   : > { %16468 = vmatprep.subr.bf16.mxu0 %v17766_v39 }
 0x50e   : > { %16437 = vmatmul.mubr.msk.bf16.gmra.mrb[4].mxu0 %vm514_vm0, %v20471_v61  ;;  %v6284_v61 = vld [vmem:[#allocation3 + $0xdc] sm:$0xff] }
 0x50f   : > { %16440 = vmatprep.mubr.msk.bf16.mxu0 %vm514_vm0, %v12101_v24  ;;  %16469 = vmatpush3.bf16.msra.mxu0 %v17766_v39  ;;  %v20775_v39 = vpack.c.bf16 %v6285_v42, %v6284_v61  ;;  %v6293_v24 = vld [vmem:[#allocation3 + $0x144] sm:$0xff]  ;;  %v6294_v61 = vld [vmem:[#allocation3 + $0x154] sm:$0xff]  ;;  %v6295_v42 = vld [vmem:[#allocation3 + $0x15c] sm:$0xff] }
 0x510   : > { %15725 = vmatmul.mubr.msk.bf16.gmra.mrb[140].mxu1 %vm514_vm0, %v20758_v58  ;;  %16470 = vmatprep.subr.bf16.mxu0 %v17770_v45 }
 0x511   : > { %15728 = vmatprep.mubr.msk.bf16.mxu1 %vm514_vm0, %v20761_v48 }
 0x513   : > { %16471 = vmatpush3.bf16.msra.mxu0 %v17770_v45  ;;  %v6292_v45 = vld [vmem:[#allocation3 + $0x13c] sm:$0xff] }
 0x514   : > { %16504 = vmatprep.subr.bf16.mxu0 %v20768_v47 }
 0x516   : > { %16441 = vmatmul.mubr.msk.bf16.gmra.mrb[8].mxu0 %vm514_vm0, %v20495_v51  ;;  %v20787_v51 = vpack.c.bf16 %v6289_v26, %v6288_v13  ;;  %v6590_v13 = vld [vmem:[#allocation3 + $0x20] sm:$0xff]  ;;  %v6296_v26 = vld [vmem:[#allocation3 + $0x16c] sm:$0xff] }
 0x517   : > { %16444 = vmatprep.mubr.msk.bf16.mxu0 %vm514_vm0, %v20499_v5  ;;  %v20791_v5 = vpack.c.bf16 %v6291_v40, %v6290_v7  ;;  %v6297_v7 = vld [vmem:[#allocation3 + $0x174] sm:$0xff]  ;;  %v12089_v40 = vld [vmem:[#allocation3 + $0x182] sm:$0xff] }
 0x518   : > { %15729 = vmatmul.mubr.msk.bf16.gmra.mrb[144].mxu1 %vm514_vm0, %v20775_v39 }
 0x519   : > { %15732 = vmatprep.mubr.msk.bf16.mxu1 %vm514_vm0, %v20779_v41 }
 0x51e   : > { %16445 = vmatmul.mubr.msk.bf16.gmra.mrb[12].mxu0 %vm514_vm0, %v20515_v37  ;;  %v20799_v37 = vpack.c.bf16 %v6293_v24, %v6292_v45  ;;  %v6621_v45 = vpack.c.bf16 %v6590_v13, %v6589_v57  ;;  %v12093_v24 = vld [vmem:[#allocation3 + $0x1b2] sm:$0xff] }
 0x51f   : > { %16448 = vmatprep.mubr.msk.bf16.mxu0 %vm514_vm0, %v20519_v8  ;;  %v20803_v8 = vpack.c.bf16 %v6295_v42, %v6294_v61  ;;  %v12094_v61 = vld [vmem:[#allocation3 + $0x1ba] sm:$0xff]  ;;  %v6594_v57 = vld [vmem:[#allocation3 + $0x50] sm:$0xff] }
 0x520   : > { %15733 = vmatmul.mubr.msk.bf16.gmra.mrb[148].mxu1 %vm514_vm0, %v20787_v51  ;;  %v12091_v42 = vld [vmem:[#allocation3 + $0x19a] sm:$0xff]  ;;  %v12111_v32 = vpack.c.bf16 %v12094_v61, %v12093_v24  ;;  %v6591_v13 = vld [vmem:[#allocation3 + $0x30] sm:$0xff]  ;;  %v6596_v24 = vld [vmem:[#allocation3 + $0x68] sm:$0xff] }
 0x521   : > { %15736 = vmatprep.mubr.msk.bf16.mxu1 %vm514_vm0, %v20791_v5  ;;  %v6595_v61 = vld [vmem:[#allocation3 + $0x60] sm:$0xff] }
 0x526   : > { %16449 = vmatmul.mubr.msk.bf16.gmra.mrb[16].mxu0 %vm514_vm0, %v20535_v60  ;;  %v12109_v60 = vpack.c.bf16 %v12090_v55, %v12089_v40  ;;  %v12110_v55 = vpack.c.bf16 %v12092_v21, %v12091_v42  ;;  %v12095_v40 = vld [vmem:[#allocation3 + $0x1ca] sm:$0xff]  ;;  %v17776_v21 = vld [vmem:[%s21259_s9 + $0xc8] sm:$0xff]  }
 0x527   : > { %16452 = vmatprep.mubr.msk.bf16.mxu0 %vm514_vm0, %v20539_v31  ;;  %v20811_v31 = vpack.c.bf16 %v6297_v7, %v6296_v26  ;;  %v6593_v26 = vld [vmem:[#allocation3 + $0x48] sm:$0xff]  ;;  %v6597_v42 = vld [vmem:[#allocation3 + $0x78] sm:$0xff] }
 0x528   : > { %15737 = vmatmul.mubr.msk.bf16.gmra.mrb[152].mxu1 %vm514_vm0, %v20799_v37  ;;  %v6623_v7 = vpack.c.bf16 %v6594_v57, %v6593_v26  ;;  %v17778_v57 = vld [vmem:[%s21259_s9 + $0xd8] sm:$0xff]   ;;  %v17772_v26 = vld [vmem:[%s21259_s9 + $0x308] sm:$0xff]  }
 0x529   : > { %15740 = vmatprep.mubr.msk.bf16.mxu1 %vm514_vm0, %v20803_v8 }
 0x52e   : > { %16453 = vmatmul.mubr.msk.bf16.gmra.mrb[20].mxu0 %vm514_vm0, %v20555_v27  ;;  %v6622_v27 = vpack.c.bf16 %v6592_v56, %v6591_v13  ;;  %v6598_v56 = vld [vmem:[#allocation3 + $0x80] sm:$0xff]  ;;  %v6600_v13 = vld [vmem:[#allocation3 + $0x98] sm:$0xff] }
 0x52f   : > { %16456 = vmatprep.mubr.msk.bf16.mxu0 %vm514_vm0, %v12109_v60  ;;  %v12096_v60 = vld [vmem:[#allocation3 + $0x1d2] sm:$0xff] }
 0x530   : > { %15741 = vmatmul.mubr.msk.bf16.gmra.mrb[156].mxu1 %vm514_vm0, %v20811_v31 }
 0x531   : > { %15752 = vmatprep.mubr.msk.bf16.mxu1 %vm514_vm0, %v6621_v45  ;;  %v12112_v45 = vpack.c.bf16 %v12096_v60, %v12095_v40  ;;  %v6601_v40 = vld [vmem:[#allocation3 + $0xa8] sm:$0xff] }
 0x536   : > { %16457 = vmatmul.mubr.msk.bf16.gmra.mrb[24].mxu0 %vm514_vm0, %v12110_v55  ;;  %v17777_v55 = vld [vmem:[%s21259_s9 + $0xd0] sm:$0xff]  }
 0x537   : > { %16460 = vmatprep.mubr.msk.bf16.mxu0 %vm514_vm0, %v12111_v32  ;;  %v6624_v32 = vpack.c.bf16 %v6596_v24, %v6595_v61  ;;  %v6603_v24 = vld [vmem:[#allocation3 + $0xc0] sm:$0xff] }
 0x538   : > { %15753 = vmatmul.mubr.msk.bf16.vlgmr.msra.gmra.mrb[128].mxu1 %vm514_vm0, %v6622_v27  ;;  %v6602_v27 = vld [vmem:[#allocation3 + $0xb0] sm:$0xff] }
 0x539   : > { %15756 = vmatprep.mubr.msk.bf16.mxu1 %vm514_vm0, %v6623_v7  ;;  %16548 = vmatpush3.bf16.msra.mxu1 %v20739_v46  ;;  %v6625_v46 = vpack.c.bf16 %v6598_v56, %v6597_v42  ;;  %v6599_v7 = vld [vmem:[#allocation3 + $0x90] sm:$0xff]  ;;  %v6627_v60 = vpack.c.bf16 %v6602_v27, %v6601_v40  ;;  %v6605_v56 = vld [vmem:[#allocation3 + $0xd8] sm:$0xff]  ;;  %v6611_v27 = vld [vmem:[#allocation3 + $0x120] sm:$0xff] }
 0x53a   : > { %16545 = vmatprep.subr.bf16.mxu1 %v17776_v21  ;;  %v6610_v42 = vld [vmem:[#allocation3 + $0x110] sm:$0xff] }
 0x53b   : > { %v6615_v40 = vld [vmem:[#allocation3 + $0x150] sm:$0xff] }
 0x53d   : > { %16549 = vmatpush3.bf16.msra.mxu1 %v17776_v21  ;;  %v6604_v21 = vld [vmem:[#allocation3 + $0xc8] sm:$0xff] }
 0x53e   : > { %16461 = vmatmul.mubr.msk.bf16.gmra.mrb[28].mxu0 %vm514_vm0, %v12112_v45  ;;  %16546 = vmatprep.subr.bf16.mxu1 %v17777_v55  ;;  %v17773_v45 = vld [vmem:[%s21259_s9 + $0x310] sm:$0xff]  }
 0x53f   : > { %16472 = vmatprep.mubr.msk.bf16.mxu0 %vm514_vm0, %v20593_v14  ;;  %v6626_v14 = vpack.c.bf16 %v6600_v13, %v6599_v7  ;;  %v6614_v13 = vld [vmem:[#allocation3 + $0x140] sm:$0xff]  ;;  %v6613_v7 = vld [vmem:[#allocation3 + $0x138] sm:$0xff] }
 0x540   : > { %15757 = vmatmul.mubr.msk.bf16.gmra.mrb[132].mxu1 %vm514_vm0, %v6624_v32  ;;  %v6608_v32 = vld [vmem:[#allocation3 + $0xf8] sm:$0xff] }
 0x541   : > { %15760 = vmatprep.mubr.msk.bf16.mxu1 %vm514_vm0, %v6625_v46  ;;  %16550 = vmatpush3.bf16.msra.mxu1 %v17777_v55  ;;  %v6607_v55 = vld [vmem:[#allocation3 + $0xf0] sm:$0xff]  ;;  %v6609_v46 = vld [vmem:[#allocation3 + $0x108] sm:$0xff] }
 0x542   : > { %16547 = vmatprep.subr.bf16.mxu1 %v17778_v57 }
 0x545   : > { %16551 = vmatpush3.bf16.msra.mxu1 %v17778_v57  ;;  %v6612_v57 = vld [vmem:[#allocation3 + $0x128] sm:$0xff] }
 0x546   : > { %16473 = vmatmul.mubr.msk.bf16.vlgmr.msra.gmra.mrb[0].mxu0 %vm514_vm0, %v20615_v22  ;;  %v6606_v22 = vld [vmem:[#allocation3 + $0xe0] sm:$0xff] }
 0x547   : > { %16505 = vmatpush3.bf16.msra.mxu0 %v20768_v47  ;;  %16476 = vmatprep.mubr.msk.bf16.mxu0 %vm514_vm0, %v20620_v33  ;;  %v17774_v47 = vld [vmem:[%s21259_s9 + $0x318] sm:$0xff]   ;;  %v6628_v33 = vpack.c.bf16 %v6604_v21, %v6603_v24  ;;  %v6629_v61 = vpack.c.bf16 %v6606_v22, %v6605_v56  ;;  %v6619_v24 = vld [vmem:[#allocation3 + $0x180] sm:$0xff] }
 0x548   : > { %15761 = vmatmul.mubr.msk.bf16.gmra.mrb[136].mxu1 %vm514_vm0, %v6626_v14  ;;  %16506 = vmatprep.subr.bf16.mxu0 %v17772_v26  ;;  %v6618_v14 = vld [vmem:[#allocation3 + $0x170] sm:$0xff]  ;;  %v6620_v22 = vld [vmem:[#allocation3 + $0x188] sm:$0xff]  ;;  %v12413_v56 = vld [vmem:[#allocation3 + $0x19b] sm:$0xff] }
 0x549   : > { %15764 = vmatprep.mubr.msk.bf16.mxu1 %vm514_vm0, %v6627_v60  ;;  %v12412_v21 = vld [vmem:[#allocation3 + $0x18b] sm:$0xff] }
 0x54b   : > { %16507 = vmatpush3.bf16.msra.mxu0 %v17772_v26  ;;  %v6632_v26 = vpack.c.bf16 %v6612_v57, %v6611_v27 }
 0x54c   : > { %16508 = vmatprep.subr.bf16.mxu0 %v17773_v45 }
 0x54e   : > { %16477 = vmatmul.mubr.msk.bf16.gmra.mrb[4].mxu0 %vm514_vm0, %v20633_v63  ;;  %v6630_v63 = vpack.c.bf16 %v6608_v32, %v6607_v55  ;;  %v12417_v55 = vld [vmem:[#allocation3 + $0x1cb] sm:$0xff] }
 0x54f   : > { %16480 = vmatprep.mubr.msk.bf16.mxu0 %vm514_vm0, %v20636_v44  ;;  %16509 = vmatpush3.bf16.msra.mxu0 %v17773_v45  ;;  %v6631_v44 = vpack.c.bf16 %v6610_v42, %v6609_v46  ;;  %v6617_v45 = vld [vmem:[#allocation3 + $0x168] sm:$0xff] }
 0x550   : > { %15765 = vmatmul.mubr.msk.bf16.gmra.mrb[140].mxu1 %vm514_vm0, %v6628_v33  ;;  %16510 = vmatprep.subr.bf16.mxu0 %v17774_v47  ;;  %v6636_v33 = vpack.c.bf16 %v6620_v22, %v6619_v24 }
 0x551   : > { %15768 = vmatprep.mubr.msk.bf16.mxu1 %vm514_vm0, %v6629_v61  ;;  %v12414_v61 = vld [vmem:[#allocation3 + $0x1a3] sm:$0xff] }
 0x552   : > { %v12432_v42 = vpack.c.bf16 %v12414_v61, %v12413_v56 }
 0x553   : > { %16511 = vmatpush3.bf16.msra.mxu0 %v17774_v47 }
 0x556   : > { %16481 = vmatmul.mubr.msk.bf16.gmra.mrb[8].mxu0 %vm514_vm0, %v20654_v19  ;;  %v6633_v19 = vpack.c.bf16 %v6614_v13, %v6613_v7 }
 0x557   : > { %16484 = vmatprep.mubr.msk.bf16.mxu0 %vm514_vm0, %v20658_v15  ;;  %v6616_v15 = vld [vmem:[#allocation3 + $0x158] sm:$0xff] }
 0x558   : > { %15769 = vmatmul.mubr.msk.bf16.gmra.mrb[144].mxu1 %vm514_vm0, %v6630_v63  ;;  %v6634_v60 = vpack.c.bf16 %v6616_v15, %v6615_v40 }
 0x559   : > { %15772 = vmatprep.mubr.msk.bf16.mxu1 %vm514_vm0, %v6631_v44 }
 0x55e   : > { %16485 = vmatmul.mubr.msk.bf16.gmra.mrb[12].mxu0 %vm514_vm0, %v20670_v4  ;;  %v6635_v4 = vpack.c.bf16 %v6618_v14, %v6617_v45 }
 0x55f   : > { %16488 = vmatprep.mubr.msk.bf16.mxu0 %vm514_vm0, %v20674_v54  ;;  %v12411_v54 = vld [vmem:[#allocation3 + $0x183] sm:$0xff] }
 0x560   : > { %15773 = vmatmul.mubr.msk.bf16.gmra.mrb[148].mxu1 %vm514_vm0, %v6632_v26  ;;  %v12431_v47 = vpack.c.bf16 %v12412_v21, %v12411_v54 }
 0x561   : > { %15776 = vmatprep.mubr.msk.bf16.mxu1 %vm514_vm0, %v6633_v19 }
 0x566   : > { %16489 = vmatmul.mubr.msk.bf16.gmra.mrb[16].mxu0 %vm514_vm0, %v20686_v1  ;;  %v12415_v1 = vld [vmem:[#allocation3 + $0x1b3] sm:$0xff] }
 0x567   : > { %16492 = vmatprep.mubr.msk.bf16.mxu0 %vm514_vm0, %v20690_v2  ;;  %v12416_v2 = vld [vmem:[#allocation3 + $0x1bb] sm:$0xff] }
 0x568   : > { %15777 = vmatmul.mubr.msk.bf16.gmra.mrb[152].mxu1 %vm514_vm0, %v6634_v60  ;;  %v12433_v32 = vpack.c.bf16 %v12416_v2, %v12415_v1 }
 0x569   : > { %15780 = vmatprep.mubr.msk.bf16.mxu1 %vm514_vm0, %v6635_v4 }
 0x56e   : > { %16493 = vmatmul.mubr.msk.bf16.gmra.mrb[20].mxu0 %vm514_vm0, %v20702_v10  ;;  %v12418_v10 = vld [vmem:[#allocation3 + $0x1d3] sm:$0xff] }
 0x56f   : > { %16496 = vmatprep.mubr.msk.bf16.mxu0 %vm514_vm0, %v12431_v47  ;;  %v12434_v63 = vpack.c.bf16 %v12418_v10, %v12417_v55  ;;  %v20960_v47 = vld [vmem:[%s21260_s10] ss:$0 sm:$0xff] }
 0x570   : > { %15781 = vmatmul.mubr.msk.bf16.gmra.mrb[156].mxu1 %vm514_vm0, %v6636_v33 }
 0x571   : > { %15808 = vmatprep.mubr.msk.bf16.mxu1 %vm514_vm0, %v20647_v20  ;;  %v12737_v20 = vld [vmem:[#allocation3 + $0x1b4] sm:$0xff] }
 0x576   : > { %16497 = vmatmul.mubr.msk.bf16.gmra.mrb[24].mxu0 %vm514_vm0, %v12432_v42 }
 0x577   : > { %16500 = vmatprep.mubr.msk.bf16.mxu0 %vm514_vm0, %v12433_v32 }
 0x578   : > { %15809 = vmatmul.mubr.msk.bf16.vlgmr.msra.gmra.mrb[144].mxu1 %vm514_vm0, %v20650_v6  ;;  %v12738_v6 = vld [vmem:[#allocation3 + $0x1bc] sm:$0xff] }
 0x579   : > { %15812 = vmatprep.mubr.msk.bf16.mxu1 %vm514_vm0, %v20664_v17  ;;  %v12735_v17 = vld [vmem:[#allocation3 + $0x19c] sm:$0xff] }
 0x57e   : > { %16501 = vmatmul.mubr.msk.bf16.gmra.mrb[28].mxu0 %vm514_vm0, %v12434_v63 }
 0x57f   : > { %16512 = vmatprep.mubr.msk.bf16.mxu0 %vm514_vm0, %v20725_v12 }
 0x580   : > { %15813 = vmatmul.mubr.msk.bf16.gmra.mrb[148].mxu1 %vm514_vm0, %v20666_v9  ;;  %v12736_v9 = vld [vmem:[#allocation3 + $0x1a4] sm:$0xff] }
 0x581   : > { %15816 = vmatprep.mubr.msk.bf16.mxu1 %vm514_vm0, %v20680_v3  ;;  %v12733_v3 = vld [vmem:[#allocation3 + $0x184] sm:$0xff]  ;;  %v12754_v12 = vpack.c.bf16 %v12736_v9, %v12735_v17 }
 0x586   : > { %16513 = vmatmul.mubr.msk.bf16.vlgmr.msra.gmra.mrb[0].mxu0 %vm514_vm0, %v20734_v23  ;;  %v12739_v23 = vld [vmem:[#allocation3 + $0x1cc] sm:$0xff] }
 0x587   : > { %16516 = vmatprep.mubr.msk.bf16.mxu0 %vm514_vm0, %v20744_v36  ;;  %v12740_v36 = vld [vmem:[#allocation3 + $0x1d4] sm:$0xff] }
 0x588   : > { %15817 = vmatmul.mubr.msk.bf16.gmra.mrb[152].mxu1 %vm514_vm0, %v20682_v59 }
 0x589   : > { %15820 = vmatprep.mubr.msk.bf16.mxu1 %vm514_vm0, %v20696_v34  ;;  %v12755_v34 = vpack.c.bf16 %v12738_v6, %v12737_v20 }
 0x58e   : > { %16517 = vmatmul.mubr.msk.bf16.gmra.mrb[4].mxu0 %vm514_vm0, %v20758_v58  ;;  %v12756_v58 = vpack.c.bf16 %v12740_v36, %v12739_v23 }
 0x58f   : > { %16520 = vmatprep.mubr.msk.bf16.mxu0 %vm514_vm0, %v20761_v48 }
 0x590   : > { %15821 = vmatmul.mubr.msk.bf16.gmra.mrb[156].mxu1 %vm514_vm0, %v20698_v18  ;;  %v12734_v18 = vld [vmem:[#allocation3 + $0x18c] sm:$0xff] }
 0x591   : > { %v12753_v59 = vpack.c.bf16 %v12734_v18, %v12733_v3 }
 0x596   : > { %16521 = vmatmul.mubr.msk.bf16.gmra.mrb[8].mxu0 %vm514_vm0, %v20775_v39 }
 0x597   : > { %16524 = vmatprep.mubr.msk.bf16.mxu0 %vm514_vm0, %v20779_v41 }
 0x59e   : > { %16525 = vmatmul.mubr.msk.bf16.gmra.mrb[12].mxu0 %vm514_vm0, %v20787_v51 }
 0x59f   : > { %16528 = vmatprep.mubr.msk.bf16.mxu0 %vm514_vm0, %v20791_v5 }
 0x5a6   : > { %16529 = vmatmul.mubr.msk.bf16.gmra.mrb[16].mxu0 %vm514_vm0, %v20799_v37 }
 0x5a7   : > { %16532 = vmatprep.mubr.msk.bf16.mxu0 %vm514_vm0, %v20803_v8 }
 0x5ae   : > { %16533 = vmatmul.mubr.msk.bf16.gmra.mrb[20].mxu0 %vm514_vm0, %v20811_v31 }
 0x5af   : > { %16536 = vmatprep.mubr.msk.bf16.mxu0 %vm514_vm0, %v12753_v59 }
 0x5b6   : > { %16537 = vmatmul.mubr.msk.bf16.gmra.mrb[24].mxu0 %vm514_vm0, %v12754_v12 }
 0x5b7   : > { %16540 = vmatprep.mubr.msk.bf16.mxu0 %vm514_vm0, %v12755_v34 }
 0x5be   : > { %16541 = vmatmul.mubr.msk.bf16.gmra.mrb[28].mxu0 %vm514_vm0, %v12756_v58 }
 0x60b   : > { %v15754_v48 = vpop.f32.mrb[128].mxu1 }
 0x60c   : > { %v6752_v39 = vpop.f32.mrb[129].mxu1 }
 0x60d   : > { %v15755_v41 = vpop.f32.mrb[130].mxu1 }
 0x60e   : > { %v6755_v51 = vpop.f32.mrb[131].mxu1 }
 0x613   : > { %v15758_v5 = vpop.f32.mrb[132].mxu1 }
 0x614   : > { %v6768_v37 = vpop.f32.mrb[133].mxu1 }
 0x615   : > { %v15759_v8 = vpop.f32.mrb[134].mxu1 }
 0x616   : > { %v6771_v31 = vpop.f32.mrb[135].mxu1 }
 0x61b   : > { %v15762_v46 = vpop.f32.mrb[136].mxu1 }
 0x61c   : > { %v20927_v44 = vpop.f32.mrb[137].mxu1 }
 0x61d   : > { %v20929_v57 = vpop.f32.mrb[138].mxu1 }
 0x61e   : > { %v20931_v13 = vpop.f32.mrb[139].mxu1 }
 0x623   : > { %v20933_v27 = vpop.f32.mrb[140].mxu1 }
 0x624   : > { %v20935_v26 = vpop.f32.mrb[141].mxu1 }
 0x625   : > { %v20937_v7 = vpop.f32.mrb[142].mxu1 }
 0x626   : > { %v20939_v19 = vpop.f32.mrb[143].mxu1 }
 0x64b   : > { %v20941_v15 = vpop.f32.mrb[144].mxu1 }
 0x64c   : > { %v20943_v14 = vpop.f32.mrb[145].mxu1 }
 0x64d   : > { %v20945_v40 = vpop.f32.mrb[146].mxu1 }
 0x64e   : > { %v20947_v60 = vpop.f32.mrb[147].mxu1 }
 0x653   : > { %v20949_v45 = vpop.f32.mrb[148].mxu1 }
 0x654   : > { %v20951_v4 = vpop.f32.mrb[149].mxu1 }
 0x655   : > { %v20953_v54 = vpop.f32.mrb[150].mxu1 }
 0x656   : > { %v20955_v21 = vpop.f32.mrb[151].mxu1 }
 0x659   : > { %v16514_v22 = vpop.f32.mrb[0].mxu0 }
 0x65a   : > { %v16552_v24 = vadd.f32 %v16514_v22, %v15754_v48  ;;  %v12872_v33 = vpop.f32.mrb[1].mxu0 }
 0x65b   : > { %v16553_v1 = vadd.f32 %v12872_v33, %v6752_v39  ;;  %v20962_v2 = vpop.f32.mrb[152].mxu1  ;;  %v16515_v56 = vpop.f32.mrb[2].mxu0 }
 0x65c   : > { %v13040_v61 = vadd.f32 %v16552_v24, %v20960_v47  ;;  %v16554_v32 = vadd.f32 %v16515_v56, %v15755_v41  ;;  %v20965_v42 = vpop.f32.mrb[153].mxu1  ;;  %v12875_v55 = vpop.f32.mrb[3].mxu0 }
 0x65d   : > { %v16555_v10 = vadd.f32 %v12875_v55, %v6755_v51  ;;  %v20967_v63 = vpop.f32.mrb[154].mxu1  ;;  %v13038_v18 = vadd.f32 %v16553_v1, %v20960_v47 }
 0x65e   : > { %v13072_v3 = vmax.f32 %v13040_v61, 0.0  ;;  %v13041_v59 = vadd.f32 %v16554_v32, %v20960_v47  ;;  %v20971_v20 = vpop.f32.mrb[155].mxu1 }
 0x65f   : > { %v13039_v17 = vadd.f32 %v16555_v10, %v20960_v47  ;;  %v13070_v34 = vmax.f32 %v13038_v18, 0.0 }
 0x660   : > { %v13073_v6 = vmax.f32 %v13041_v59, 0.0  ;;  %13138 = vrot.lane.b32.xlu0 %v13072_v3, %s17845_s13 }
 0x661   : > { %v16518_v9 = vpop.f32.mrb[4].mxu0  ;;  %v13071_v39 = vmax.f32 %v13039_v17, 0.0 }
 0x662   : > { %v16556_v12 = vadd.f32 %v16518_v9, %v15758_v5  ;;  %v12888_v23 = vpop.f32.mrb[5].mxu0  ;;  %13140 = vrot.lane.b32.xlu1 %v13073_v6, %s17845_s13 }
 0x663   : > { %v16557_v36 = vadd.f32 %v12888_v23, %v6768_v37  ;;  %v20976_v58 = vpop.f32.mrb[156].mxu1  ;;  %v16519_v48 = vpop.f32.mrb[6].mxu0 }
 0x664   : > { %v13044_v41 = vadd.f32 %v16556_v12, %v20960_v47  ;;  %v16558_v51 = vadd.f32 %v16519_v48, %v15759_v8  ;;  %v12891_v22 = vpop.f32.mrb[7].mxu0  ;;  %13134 = vrot.lane.b32.xlu0 %v13070_v34, %s17845_s13  ;;  %v20980_v24 = vpop.f32.mrb[157].mxu1 }
 0x665   : > { %v16559_v33 = vadd.f32 %v12891_v22, %v6771_v31  ;;  %v20982_v1 = vpop.f32.mrb[158].mxu1  ;;  %v13042_v56 = vadd.f32 %v16557_v36, %v20960_v47 }
 0x666   : > { %v13076_v5 = vmax.f32 %v13044_v41, 0.0  ;;  %v13045_v37 = vadd.f32 %v16558_v51, %v20960_v47  ;;  %13136 = vrot.lane.b32.xlu1 %v13071_v39, %s17845_s13  ;;  %v20987_v61 = vpop.f32.mrb[159].mxu1 }
 0x667   : > { %v13043_v8 = vadd.f32 %v16559_v33, %v20960_v47  ;;  %v13074_v10 = vmax.f32 %v13042_v56, 0.0 }
 0x668   : > { %v13077_v32 = vmax.f32 %v13045_v37, 0.0  ;;  %13146 = vrot.lane.b32.xlu0 %v13076_v5, %s17845_s13 }
 0x669   : > { %v16522_v55 = vpop.f32.mrb[8].mxu0  ;;  %v13075_v6 = vmax.f32 %v13043_v8, 0.0 }
 0x66a   : > { %v16560_v3 = vadd.f32 %v16522_v55, %v15762_v46  ;;  %v12904_v31 = vpop.f32.mrb[9].mxu0  ;;  %13148 = vrot.lane.b32.xlu1 %v13077_v32, %s17845_s13 }
 0x66b   : > { %v16561_v18 = vadd.f32 %v12904_v31, %v20927_v44  ;;  %v16523_v59 = vpop.f32.mrb[10].mxu0 }
 0x66c   : > { %v13048_v17 = vadd.f32 %v16560_v3, %v20960_v47  ;;  %v16562_v9 = vadd.f32 %v16523_v59, %v20929_v57  ;;  %v12907_v34 = vpop.f32.mrb[11].mxu0  ;;  %13142 = vrot.lane.b32.xlu0 %v13074_v10, %s17845_s13 }
 0x66d   : > { %v16563_v12 = vadd.f32 %v12907_v34, %v20931_v13  ;;  %v13046_v36 = vadd.f32 %v16561_v18, %v20960_v47 }
 0x66e   : > { %v13080_v23 = vmax.f32 %v13048_v17, 0.0  ;;  %v13049_v46 = vadd.f32 %v16562_v9, %v20960_v47  ;;  %13144 = vrot.lane.b32.xlu1 %v13075_v6, %s17845_s13 }
 0x66f   : > { %v13047_v44 = vadd.f32 %v16563_v12, %v20960_v47  ;;  %v13078_v41 = vmax.f32 %v13046_v36, 0.0 }
 0x670   : > { %v13081_v48 = vmax.f32 %v13049_v46, 0.0  ;;  %13154 = vrot.lane.b32.xlu0 %v13080_v23, %s17845_s13 }
 0x671   : > { %v16526_v39 = vpop.f32.mrb[12].mxu0  ;;  %v13079_v33 = vmax.f32 %v13047_v44, 0.0 }
 0x672   : > { %v16564_v57 = vadd.f32 %v16526_v39, %v20933_v27  ;;  %v12920_v51 = vpop.f32.mrb[13].mxu0  ;;  %13156 = vrot.lane.b32.xlu1 %v13081_v48, %s17845_s13 }
 0x673   : > { %v16565_v13 = vadd.f32 %v12920_v51, %v20935_v26  ;;  %v16527_v22 = vpop.f32.mrb[14].mxu0 }
 0x674   : > { %v13052_v5 = vadd.f32 %v16564_v57, %v20960_v47  ;;  %v16566_v56 = vadd.f32 %v16527_v22, %v20937_v7  ;;  %v12923_v37 = vpop.f32.mrb[15].mxu0  ;;  %13150 = vrot.lane.b32.xlu0 %v13078_v41, %s17845_s13 }
 0x675   : > { %v16567_v32 = vadd.f32 %v12923_v37, %v20939_v19  ;;  %v13050_v55 = vadd.f32 %v16565_v13, %v20960_v47 }
 0x676   : > { %v13084_v8 = vmax.f32 %v13052_v5, 0.0  ;;  %v13053_v27 = vadd.f32 %v16566_v56, %v20960_v47  ;;  %13152 = vrot.lane.b32.xlu1 %v13079_v33, %s17845_s13 }
 0x677   : > { %v13051_v26 = vadd.f32 %v16567_v32, %v20960_v47  ;;  %v13082_v31 = vmax.f32 %v13050_v55, 0.0 }
 0x678   : > { %v13085_v10 = vmax.f32 %v13053_v27, 0.0  ;;  %13162 = vrot.lane.b32.xlu0 %v13084_v8, %s17845_s13 }
 0x679   : > { %v16530_v3 = vpop.f32.mrb[16].mxu0  ;;  %v13083_v6 = vmax.f32 %v13051_v26, 0.0 }
 0x67a   : > { %v16568_v7 = vadd.f32 %v16530_v3, %v20941_v15  ;;  %v12936_v18 = vpop.f32.mrb[17].mxu0  ;;  %13164 = vrot.lane.b32.xlu1 %v13085_v10, %s17845_s13 }
 0x67b   : > { %v16569_v19 = vadd.f32 %v12936_v18, %v20943_v14  ;;  %v16531_v59 = vpop.f32.mrb[18].mxu0 }
 0x67c   : > { %v13056_v17 = vadd.f32 %v16568_v7, %v20960_v47  ;;  %v16570_v9 = vadd.f32 %v16531_v59, %v20945_v40  ;;  %v12939_v34 = vpop.f32.mrb[19].mxu0  ;;  %13158 = vrot.lane.b32.xlu0 %v13082_v31, %s17845_s13 }
 0x67d   : > { %v16571_v12 = vadd.f32 %v12939_v34, %v20947_v60  ;;  %v13054_v36 = vadd.f32 %v16569_v19, %v20960_v47 }
 0x67e   : > { %v13088_v23 = vmax.f32 %v13056_v17, 0.0  ;;  %v13057_v15 = vadd.f32 %v16570_v9, %v20960_v47  ;;  %13160 = vrot.lane.b32.xlu1 %v13083_v6, %s17845_s13 }
 0x67f   : > { %v13055_v14 = vadd.f32 %v16571_v12, %v20960_v47  ;;  %v13086_v44 = vmax.f32 %v13054_v36, 0.0 }
 0x680   : > { %v13089_v46 = vmax.f32 %v13057_v15, 0.0  ;;  %13170 = vrot.lane.b32.xlu0 %v13088_v23, %s17845_s13 }
 0x681   : > { %v16534_v48 = vpop.f32.mrb[20].mxu0  ;;  %v13087_v57 = vmax.f32 %v13055_v14, 0.0 }
 0x682   : > { %v16572_v40 = vadd.f32 %v16534_v48, %v20949_v45  ;;  %v12952_v39 = vpop.f32.mrb[21].mxu0  ;;  %13172 = vrot.lane.b32.xlu1 %v13089_v46, %s17845_s13 }
 0x683   : > { %v16573_v60 = vadd.f32 %v12952_v39, %v20951_v4  ;;  %v16535_v41 = vpop.f32.mrb[22].mxu0 }
 0x684   : > { %v13060_v51 = vadd.f32 %v16572_v40, %v20960_v47  ;;  %v16574_v13 = vadd.f32 %v16535_v41, %v20953_v54  ;;  %v12955_v22 = vpop.f32.mrb[23].mxu0  ;;  %13166 = vrot.lane.b32.xlu0 %v13086_v44, %s17845_s13 }
 0x685   : > { %v16575_v33 = vadd.f32 %v12955_v22, %v20955_v21  ;;  %v13058_v56 = vadd.f32 %v16573_v60, %v20960_v47 }
 0x686   : > { %v13092_v5 = vmax.f32 %v13060_v51, 0.0  ;;  %v13061_v45 = vadd.f32 %v16574_v13, %v20960_v47  ;;  %13168 = vrot.lane.b32.xlu1 %v13087_v57, %s17845_s13 }
 0x687   : > { %v13059_v4 = vadd.f32 %v16575_v33, %v20960_v47  ;;  %v13090_v8 = vmax.f32 %v13058_v56, 0.0 }
 0x688   : > { %v13093_v37 = vmax.f32 %v13061_v45, 0.0  ;;  %13178 = vrot.lane.b32.xlu0 %v13092_v5, %s17845_s13 }
 0x689   : > { %v16538_v32 = vpop.f32.mrb[24].mxu0  ;;  %v13091_v10 = vmax.f32 %v13059_v4, 0.0 }
 0x68a   : > { %v16576_v54 = vadd.f32 %v16538_v32, %v20962_v2  ;;  %v12968_v55 = vpop.f32.mrb[25].mxu0  ;;  %13180 = vrot.lane.b32.xlu1 %v13093_v37, %s17845_s13 }
 0x68b   : > { %v16577_v21 = vadd.f32 %v12968_v55, %v20965_v42  ;;  %v16539_v27 = vpop.f32.mrb[26].mxu0 }
 0x68c   : > { %v13064_v26 = vadd.f32 %v16576_v54, %v20960_v47  ;;  %v16578_v3 = vadd.f32 %v16539_v27, %v20967_v63  ;;  %v12971_v31 = vpop.f32.mrb[27].mxu0  ;;  %13174 = vrot.lane.b32.xlu0 %v13090_v8, %s17845_s13 }
 0x68d   : > { %v16579_v7 = vadd.f32 %v12971_v31, %v20971_v20  ;;  %v13062_v19 = vadd.f32 %v16577_v21, %v20960_v47 }
 0x68e   : > { %v13096_v18 = vmax.f32 %v13064_v26, 0.0  ;;  %v13065_v2 = vadd.f32 %v16578_v3, %v20960_v47  ;;  %13176 = vrot.lane.b32.xlu1 %v13091_v10, %s17845_s13 }
 0x68f   : > { %v13063_v42 = vadd.f32 %v16579_v7, %v20960_v47  ;;  %v13094_v17 = vmax.f32 %v13062_v19, 0.0 }
 0x690   : > { %v13097_v59 = vmax.f32 %v13065_v2, 0.0  ;;  %13186 = vrot.lane.b32.xlu0 %v13096_v18, %s17845_s13 }
 0x691   : > { %v16542_v6 = vpop.f32.mrb[28].mxu0  ;;  %v13095_v12 = vmax.f32 %v13063_v42, 0.0 }
 0x692   : > { %v16580_v63 = vadd.f32 %v16542_v6, %v20976_v58  ;;  %v12984_v9 = vpop.f32.mrb[29].mxu0  ;;  %13188 = vrot.lane.b32.xlu1 %v13097_v59, %s17845_s13 }
 0x693   : > { %v16581_v20 = vadd.f32 %v12984_v9, %v20980_v24  ;;  %v16543_v34 = vpop.f32.mrb[30].mxu0 }
 0x694   : > { %v16582_v23 = vadd.f32 %v16543_v34, %v20982_v1  ;;  %v12987_v36 = vpop.f32.mrb[31].mxu0  ;;  %13182 = vrot.lane.b32.xlu0 %v13094_v17, %s17845_s13  ;;  %v13068_v58 = vadd.f32 %v16580_v63, %v20960_v47 }
 0x695   : > { %v13066_v15 = vadd.f32 %v16581_v20, %v20960_v47  ;;  %v16583_v46 = vadd.f32 %v12987_v36, %v20987_v61  ;;  %v21068_v61 = vld [vmem:[%s21258_s8] ss:$0 sm:$0xff] }
 0x696   : > { %13184 = vrot.lane.b32.xlu1 %v13095_v12, %s17845_s13  ;;  %v13069_v24 = vadd.f32 %v16582_v23, %v20960_v47  ;;  %v13100_v1 = vmax.f32 %v13068_v58, 0.0  ;;  %v4888_v39 = vadd.f32 %v20465_v30, %v21068_v61  ;;  %v4885_v41 = vadd.f32 %v21068_v61, %v20460_v43  ;;  %v21366_v58 = vld [vmem:[#allocation10_spill] sm:$0xff] }
 0x697   : > { %v13098_v14 = vmax.f32 %v13066_v15, 0.0  ;;  %v13067_v48 = vadd.f32 %v16583_v46, %v20960_v47  ;;  %v4887_v47 = vadd.f32 %v20458_v53, %v21068_v61  ;;  %v4886_v13 = vadd.f32 %v21068_v61, %v20467_v0 }
 0x698   : > { %v13101_v40 = vmax.f32 %v13069_v24, 0.0  ;;  %v4920_v51 = vmax.f32 %v4888_v39, 0.0  ;;  %v4917_v5 = vmax.f32 %v4885_v41, 0.0  ;;  %v4891_v53 = vadd.f32 %v20484_v49, %v21068_v61  ;;  %v21368_v39 = vld [vmem:[#allocation13_spill] sm:$0xff] }
 0x699   : > { %v13099_v44 = vmax.f32 %v13067_v48, 0.0  ;;  %13190 = vrot.lane.b32.xlu0 %v13098_v14, %s17845_s13  ;;  %v4919_v60 = vmax.f32 %v4887_v47, 0.0  ;;  %v4918_v43 = vmax.f32 %v4886_v13, 0.0  ;;  %v4892_v45 = vadd.f32 %v20489_v11, %v21068_v61  ;;  %v21369_v13 = vld [vmem:[#allocation12_spill] sm:$0xff] }
 0x69a   : > { %v4923_v4 = vmax.f32 %v4891_v53, 0.0  ;;  %v4889_v32 = vadd.f32 %v21068_v61, %v20486_v50  ;;  %v4890_v55 = vadd.f32 %v21068_v61, %v20491_v62  ;;  %v4895_v10 = vadd.f32 %v20505_v25, %v21068_v61 }
 0x69b   : > { %13192 = vrot.lane.b32.xlu1 %v13099_v44, %s17845_s13  ;;  %v4924_v54 = vmax.f32 %v4892_v45, 0.0  ;;  %v4896_v31 = vadd.f32 %v20509_v28, %v21068_v61  ;;  %v4893_v19 = vadd.f32 %v21068_v61, %v20507_v16  ;;  %v4894_v42 = vadd.f32 %v21068_v61, %v20511_v38  ;;  %v21367_v44 = vld [vmem:[#allocation11_spill] sm:$0xff] }
 0x69c   : > { %v4921_v27 = vmax.f32 %v4889_v32, 0.0  ;;  %v4922_v3 = vmax.f32 %v4890_v55, 0.0  ;;  %v4927_v18 = vmax.f32 %v4895_v10, 0.0  ;;  %v4899_v63 = vadd.f32 %v20525_v52, %v21068_v61  ;;  %v21373_v10 = vld [vmem:[#allocation16_spill] sm:$0xff] }
 0x69d   : > { %13194 = vrot.lane.b32.xlu0 %v13100_v1, %s17845_s13  ;;  %v4928_v59 = vmax.f32 %v4896_v31, 0.0  ;;  %v4925_v17 = vmax.f32 %v4893_v19, 0.0  ;;  %v4926_v20 = vmax.f32 %v4894_v42, 0.0  ;;  %v4900_v34 = vadd.f32 %v20529_v35, %v21068_v61 }
 0x69e   : > { %v4931_v23 = vmax.f32 %v4899_v63, 0.0  ;;  %v4897_v36 = vadd.f32 %v21068_v61, %v20527_v29  ;;  %v4898_v14 = vadd.f32 %v21068_v61, %v21366_v58  ;;  %v4903_v1 = vadd.f32 %v21367_v44, %v21068_v61 }
 0x69f   : > { %13196 = vrot.lane.b32.xlu1 %v13101_v40, %s17845_s13  ;;  %v4932_v46 = vmax.f32 %v4900_v34, 0.0  ;;  %v21377_v34 = vld [vmem:[#allocation20_spill] sm:$0xff]  ;;  %s14443_s13 = sshll.u32 %s17930_s21, 13  ;;  %s21209_s21 = scalar_lea.sflag [#allocation5], %s392_s19 }
 0x6a0   : > { %v4929_v24 = vmax.f32 %v4897_v36, 0.0  ;;  %v4930_v47 = vmax.f32 %v4898_v14, 0.0  ;;  %s21200_s12 = scalar_lea.hbm %s21261_s11, %s14443_s13 }
 0x6d2   : > { %v13139_v57 = vpop.permute.xlu0 %13138 }
 0x6d3   : > { %v13264_v22 = vsel %vm514_vm0, %v4919_v60, %v13139_v57  ;;  %v4904_v60 = vadd.f32 %v21368_v39, %v21068_v61 }
 0x6d4   : > { %13299 = vst [vmem:[%s19233_s22 + $0x28] sm:$0xff] %v13264_v22  ;;  %v13141_v33 = vpop.permute.xlu1 %13140  ;;  %v4901_v22 = vadd.f32 %v21068_v61, %v21369_v13 }
 0x6d5   : > { %v13265_v30 = vsel %vm514_vm0, %v4920_v51, %v13141_v33  ;;  %v4935_v51 = vmax.f32 %v4903_v1, 0.0  ;;  %v4936_v53 = vmax.f32 %v4904_v60, 0.0 }
 0x6d6   : > { %13301 = vst [vmem:[%s19233_s22 + $0x38] sm:$0xff] %v13265_v30  ;;  %v13135_v56 = vpop.permute.xlu0 %13134  ;;  %v21370_v30 = vld [vmem:[#allocation14_spill] sm:$0xff] }
 0x6d7   : > { %v13262_v0 = vsel %vm514_vm0, %v4917_v5, %v13135_v56  ;;  %v4902_v56 = vadd.f32 %v21068_v61, %v21370_v30 }
 0x6d8   : > { %13295 = vst [vmem:[%s19233_s22 + $0x8] sm:$0xff] %v13262_v0  ;;  %v13137_v37 = vpop.permute.xlu1 %13136  ;;  %v4933_v0 = vmax.f32 %v4901_v22, 0.0  ;;  %v21382_v22 = vld [vmem:[#allocation25_spill] sm:$0xff] }
 0x6d9   : > { %v13263_v49 = vsel %vm514_vm0, %v4918_v43, %v13137_v37  ;;  %v21371_v37 = vld [vmem:[#allocation15_spill] sm:$0xff] }
 0x6da   : > { %13297 = vst [vmem:[%s19233_s22 + $0x18] sm:$0xff] %v13263_v49  ;;  %v13147_v8 = vpop.permute.xlu0 %13146 }
 0x6db   : > { %v13268_v11 = vsel %vm514_vm0, %v4923_v4, %v13147_v8  ;;  %v4907_v4 = vadd.f32 %v21371_v37, %v21068_v61  ;;  %v4934_v8 = vmax.f32 %v4902_v56, 0.0 }
 0x6dc   : > { %13307 = vst [vmem:[%s19233_s22 + $0x68] sm:$0xff] %v13268_v11  ;;  %v13149_v21 = vpop.permute.xlu1 %13148 }
 0x6dd   : > { %v13269_v50 = vsel %vm514_vm0, %v4924_v54, %v13149_v21  ;;  %v21372_v54 = vld [vmem:[#allocation17_spill] sm:$0xff] }
 0x6de   : > { %13309 = vst [vmem:[%s19233_s22 + $0x78] sm:$0xff] %v13269_v50  ;;  %v13143_v26 = vpop.permute.xlu0 %13142  ;;  %v4908_v55 = vadd.f32 %v21372_v54, %v21068_v61  ;;  %v4905_v50 = vadd.f32 %v21068_v61, %v21373_v10 }
 0x6df   : > { %v13266_v62 = vsel %vm514_vm0, %v4921_v27, %v13143_v26  ;;  %v4939_v27 = vmax.f32 %v4907_v4, 0.0 }
 0x6e0   : > { %13303 = vst [vmem:[%s19233_s22 + $0x48] sm:$0xff] %v13266_v62  ;;  %v13145_v7 = vpop.permute.xlu1 %13144  ;;  %v4940_v31 = vmax.f32 %v4908_v55, 0.0  ;;  %v21374_v62 = vld [vmem:[#allocation18_spill] sm:$0xff] }
 0x6e1   : > { %v13267_v25 = vsel %vm514_vm0, %v4922_v3, %v13145_v7  ;;  %v4906_v7 = vadd.f32 %v21068_v61, %v21374_v62 }
 0x6e2   : > { %13305 = vst [vmem:[%s19233_s22 + $0x58] sm:$0xff] %v13267_v25  ;;  %v13155_v2 = vpop.permute.xlu0 %13154  ;;  %v4937_v25 = vmax.f32 %v4905_v50, 0.0 }
 0x6e3   : > { %v13272_v28 = vsel %vm514_vm0, %v4927_v18, %v13155_v2  ;;  %v21375_v2 = vld [vmem:[#allocation19_spill] sm:$0xff] }
 0x6e4   : > { %13315 = vst [vmem:[%s19233_s22 + $0xa8] sm:$0xff] %v13272_v28  ;;  %v13157_v6 = vpop.permute.xlu1 %13156 }
 0x6e5   : > { %v13273_v16 = vsel %vm514_vm0, %v4928_v59, %v13157_v6  ;;  %v4911_v59 = vadd.f32 %v21375_v2, %v21068_v61  ;;  %v4938_v6 = vmax.f32 %v4906_v7, 0.0 }
 0x6e6   : > { %13317 = vst [vmem:[%s19233_s22 + $0xb8] sm:$0xff] %v13273_v16  ;;  %v13151_v9 = vpop.permute.xlu0 %13150 }
 0x6e7   : > { %v13270_v38 = vsel %vm514_vm0, %v4925_v17, %v13151_v9  ;;  %v21376_v17 = vld [vmem:[#allocation21_spill] sm:$0xff] }
 0x6e8   : > { %13311 = vst [vmem:[%s19233_s22 + $0x88] sm:$0xff] %v13270_v38  ;;  %v13153_v12 = vpop.permute.xlu1 %13152  ;;  %v4912_v63 = vadd.f32 %v21376_v17, %v21068_v61  ;;  %v4909_v38 = vadd.f32 %v21068_v61, %v21377_v34 }
 0x6e9   : > { %v13271_v52 = vsel %vm514_vm0, %v4926_v20, %v13153_v12  ;;  %v4943_v20 = vmax.f32 %v4911_v59, 0.0 }
 0x6ea   : > { %13313 = vst [vmem:[%s19233_s22 + $0x98] sm:$0xff] %v13271_v52  ;;  %v13163_v15 = vpop.permute.xlu0 %13162  ;;  %v4944_v36 = vmax.f32 %v4912_v63, 0.0  ;;  %v21378_v52 = vld [vmem:[#allocation22_spill] sm:$0xff]  ;;  %v4941_v14 = vmax.f32 %v4909_v38, 0.0 }
 0x6eb   : > { %v13276_v35 = vsel %vm514_vm0, %v4931_v23, %v13163_v15  ;;  %v4910_v15 = vadd.f32 %v21068_v61, %v21378_v52 }
 0x6ec   : > { %13323 = vst [vmem:[%s19233_s22 + $0xe8] sm:$0xff] %v13276_v35  ;;  %v13165_v48 = vpop.permute.xlu1 %13164 }
 0x6ed   : > { %v13277_v29 = vsel %vm514_vm0, %v4932_v46, %v13165_v48  ;;  %v21379_v48 = vld [vmem:[#allocation24_spill] sm:$0xff]  ;;  %v4942_v1 = vmax.f32 %v4910_v15, 0.0 }
 0x6ee   : > { %13325 = vst [vmem:[%s19233_s22 + $0xf8] sm:$0xff] %v13277_v29  ;;  %v13159_v40 = vpop.permute.xlu0 %13158 }
 0x6ef   : > { %v13274_v41 = vsel %vm514_vm0, %v4929_v24, %v13159_v40  ;;  %v4913_v24 = vadd.f32 %v21068_v61, %v21379_v48  ;;  %v21380_v40 = vld [vmem:[#allocation26_spill] sm:$0xff] }
 0x6f0   : > { %13319 = vst [vmem:[%s19233_s22 + $0xc8] sm:$0xff] %v13274_v41  ;;  %v13161_v57 = vpop.permute.xlu1 %13160  ;;  %v21381_v41 = vld [vmem:[#allocation23_spill] sm:$0xff] }
 0x6f1   : > { %v13275_v33 = vsel %vm514_vm0, %v4930_v47, %v13161_v57  ;;  %v4914_v47 = vadd.f32 %v21068_v61, %v21380_v40  ;;  %v4915_v57 = vadd.f32 %v21381_v41, %v21068_v61 }
 0x6f2   : > { %13321 = vst [vmem:[%s19233_s22 + $0xd8] sm:$0xff] %v13275_v33  ;;  %v13171_v5 = vpop.permute.xlu0 %13170  ;;  %v4916_v33 = vadd.f32 %v21382_v22, %v21068_v61 }
 0x6f3   : > { %v13280_v43 = vsel %vm514_vm0, %v4935_v51, %v13171_v5  ;;  %v4945_v51 = vmax.f32 %v4913_v24, 0.0  ;;  %v4946_v5 = vmax.f32 %v4914_v47, 0.0  ;;  %v4947_v56 = vmax.f32 %v4915_v57, 0.0 }
 0x6f4   : > { %13331 = vst [vmem:[%s19233_s22 + $0x128] sm:$0xff] %v13280_v43  ;;  %v13173_v45 = vpop.permute.xlu1 %13172 }
 0x6f5   : > { %v13281_v32 = vsel %vm514_vm0, %v4936_v53, %v13173_v45 }
 0x6f6   : > { %13333 = vst [vmem:[%s19233_s22 + $0x138] sm:$0xff] %v13281_v32  ;;  %v13167_v49 = vpop.permute.xlu0 %13166 }
 0x6f7   : > { %v13278_v11 = vsel %vm514_vm0, %v4933_v0, %v13167_v49  ;;  %v4948_v0 = vmax.f32 %v4916_v33, 0.0 }
 0x6f8   : > { %13327 = vst [vmem:[%s19233_s22 + $0x108] sm:$0xff] %v13278_v11  ;;  %v13169_v21 = vpop.permute.xlu1 %13168 }
 0x6f9   : > { %v13279_v26 = vsel %vm514_vm0, %v4934_v8, %v13169_v21 }
 0x6fa   : > { %13329 = vst [vmem:[%s19233_s22 + $0x118] sm:$0xff] %v13279_v26  ;;  %v13179_v3 = vpop.permute.xlu0 %13178 }
 0x6fb   : > { %v13284_v18 = vsel %vm514_vm0, %v4939_v27, %v13179_v3 }
 0x6fc   : > { %13339 = vst [vmem:[%s19233_s22 + $0x168] sm:$0xff] %v13284_v18  ;;  %v13181_v19 = vpop.permute.xlu1 %13180 }
 0x6fd   : > { %v13285_v42 = vsel %vm514_vm0, %v4940_v31, %v13181_v19 }
 0x6fe   : > { %13341 = vst [vmem:[%s19233_s22 + $0x178] sm:$0xff] %v13285_v42  ;;  %v13175_v28 = vpop.permute.xlu0 %13174 }
 0x6ff   : > { %v13282_v16 = vsel %vm514_vm0, %v4937_v25, %v13175_v28 }
 0x700   : > { %13335 = vst [vmem:[%s19233_s22 + $0x148] sm:$0xff] %v13282_v16  ;;  %v13177_v9 = vpop.permute.xlu1 %13176 }
 0x701   : > { %v13283_v12 = vsel %vm514_vm0, %v4938_v6, %v13177_v9 }
 0x702   : > { %13337 = vst [vmem:[%s19233_s22 + $0x158] sm:$0xff] %v13283_v12  ;;  %v13187_v23 = vpop.permute.xlu0 %13186 }
 0x703   : > { %v13288_v46 = vsel %vm514_vm0, %v4943_v20, %v13187_v23 }
 0x704   : > { %13347 = vst [vmem:[%s19233_s22 + $0x1a8] sm:$0xff] %v13288_v46  ;;  %v13189_v58 = vpop.permute.xlu1 %13188 }
 0x705   : > { %v13289_v35 = vsel %vm514_vm0, %v4944_v36, %v13189_v58 }
 0x706   : > { %13349 = vst [vmem:[%s19233_s22 + $0x1b8] sm:$0xff] %v13289_v35  ;;  %v13183_v44 = vpop.permute.xlu0 %13182 }
 0x707   : > { %v13286_v29 = vsel %vm514_vm0, %v4941_v14, %v13183_v44 }
 0x708   : > { %13343 = vst [vmem:[%s19233_s22 + $0x188] sm:$0xff] %v13286_v29  ;;  %v13185_v39 = vpop.permute.xlu1 %13184 }
 0x709   : > { %v13287_v60 = vsel %vm514_vm0, %v4942_v1, %v13185_v39 }
 0x70a   : > { %13345 = vst [vmem:[%s19233_s22 + $0x198] sm:$0xff] %v13287_v60 }
 0x70b   : > { %v13191_v13 = vpop.permute.xlu0 %13190 }
 0x70c   : > { %v13290_v53 = vsel %vm514_vm0, %v4945_v51, %v13191_v13 }
 0x70d   : > { %13351 = vst [vmem:[%s19233_s22 + $0x1c8] sm:$0xff] %v13290_v53  ;;  %v13193_v30 = vpop.permute.xlu1 %13192 }
 0x70e   : > { %v13291_v43 = vsel %vm514_vm0, %v4946_v5, %v13193_v30 }
 0x70f   : > { %13353 = vst [vmem:[%s19233_s22 + $0x1d8] sm:$0xff] %v13291_v43  ;;  %v13195_v45 = vpop.permute.xlu0 %13194 }
 0x710   : > { %v13292_v37 = vsel %vm514_vm0, %v4947_v56, %v13195_v45 }
 0x711   : > { %13355 = vst [vmem:[%s19233_s22 + $0x1e8] sm:$0xff] %v13292_v37  ;;  %v13197_v61 = vpop.permute.xlu1 %13196 }
 0x712   : > { %v13293_v4 = vsel %vm514_vm0, %v4948_v0, %v13197_v61 }
 0x713   : > { %13357 = vst [vmem:[%s19233_s22 + $0x1f8] sm:$0xff] %v13293_v4 }
 0x714   : > { %17792 = shalt.err (!%p17789_p3)
}
 0x715   : > { %s17793_s19 = scalar_lea.hbm %s21200_s12, 8192  ;;  %s17797_s26 = scalar_lea.hbm %s21261_s11, 16384 }
 0x716   : > { %p17794_p4 = scmp.ne.s32.totalorder %s21200_s12, %s17793_s19  ;;  %p17798_p9 = scmp.lt.u32.totalorder %s21200_s12, %s21261_s11 }
 0x717   : > { %p17799_p10 = scmp.lt.u32.totalorder %s17797_s26, %s17793_s19  ;;  %p17801_p12 = scmp.lt.u32.totalorder %s17793_s19, %s21200_s12 }
 0x718   : > { %p17795_p7 = pnand %p17794_p4, %p17947_p5 }
 0x719   : > { %p17800_p11 = por %p17799_p10, %p17798_p9 }
 0x71a   : > { %p17796_p8 = pneg %p17795_p7 }
 0x71b   : > { %p17802_p13 = por %p17801_p12, %p17800_p11 }
 0x71d   : > { %p17803_p0 = pnand %p17802_p13, %p17796_p8 }
 0x71f   : > { %17806 = shalt.err (!%p17803_p0)
}
 0x720   : > { %s17847_s23 = smov 256   ;;  %s17848_s15 = smov 16  }
 0x721   : > { %17577 = dma.vmem_to_hbm [thread:$0]  (%p17947_p5), %s21202_s25, 8192, %s21200_s12, %s21209_s21, %s17847_s23, %s17847_s23, %s17848_s15  }
 0x722 PF: > { %p17583_p1 = scmp.ge.s32.totalorder %s17841_s20, 2  ;;  %s13387_s14 = sand.u32 1, %s17829_s17  }
 0x723   : > { %s13388_s16 = scalar_lea.sflag [#allocation5], %s13387_s14 }
 0x724   : > { %p17580_p2 = pnand %p17583_p1, %p17951_p6 }
 0x726   : > { %17824 = dma.done.wait (!%p17580_p2), %s13388_s16, 8192  }
 0x727   : > { %17826 = vsyncadd (!%p17580_p2), %s13388_s16, 4294959104  ;;  %s21383_s20 = sld [smem:[#allocation8_spill]]  ;;  %s21384_s29 = sld [smem:[#allocation7_spill]] }
 0x728   : > { %s21385_s19 = sld [smem:[#allocation9_spill]]  ;;  %s21386_s17 = smov %s17833_s18 }
 0x72d   : > { %p21_p3 = scmp.ge.s32.totalorder %s21383_s20, 4   ;;  %s21387_s18 = smov %s21384_s29 }
 0x72f   :  { %23 = sbr.rel (!%p21_p3) target bundleno = 3 (0x3), region = 140 }
 0x736   :  { %13393 = vsyncpa [#allocation5], 1 }
 0x737   :  { %13395 = vsyncpa [#allocation5 + $0x1], 1 }

</bundles_post_ra>
